<compile_context>
chip_gen: v6e
topology: v6e:2x2x1
jax: 0.10.0
libtpu: 0.0.40
codegen_flags: <defaults>
</compile_context>

<pallas_src>
import functools

import jax
import jax.numpy as jnp
from jax.experimental import pallas as pl
from jax.experimental.pallas import tpu as pltpu

MATMUL_DTYPE = jnp.bfloat16  # MXU input dtype (f32 accumulation everywhere)


def _round_up(x, m):
    return ((x + m - 1) // m) * m


def _pick_rows_per_block(r_pad, m, cap=512):
    """Largest multiple of 8 that divides r_pad, capped at `cap` rows."""
    best = 8
    start = min(cap, r_pad)
    start -= start % 8
    for b in range(start, 7, -8):
        if r_pad % b == 0:
            best = b
            break
    # v7x: keep >= 2 independent "parallel" grid entries so both TensorCores get work.
    while m * (r_pad // best) < 2 and best % 16 == 0:
        best //= 2
    return best


# ---------------- Pallas kernels ----------------

def mlp_kernel(x_ref, w1_ref, b1_ref, w2_ref, b2_ref, o_ref):
    # x_ref:(rows, cv_pad) bf16 | w1_ref:(cv_pad,H) bf16 (BN already folded in)
    # b1_ref:(1,H) f32 | w2_ref:(H,F) bf16 | b2_ref:(1,F) f32 | o_ref:(rows,F) f32
    h = jnp.dot(x_ref[...], w1_ref[...], preferred_element_type=jnp.float32)
    h = jnp.maximum(h + b1_ref[...], 0.0)                    # ReLU; Dropout = identity (eval)
    o_ref[...] = (jnp.dot(h.astype(w2_ref.dtype), w2_ref[...],
                          preferred_element_type=jnp.float32) + b2_ref[...]).astype(o_ref.dtype)


def mlp_lda_kernel(x_ref, w1_ref, b1_ref, ws_ref, bls_ref, o_ref):
    # Fused second pass: recompute h from bf16 x, then apply the LDA transform with
    # the pre-folded weight ws = w2 @ scalings and bias (b2 - xbar) @ scalings.
    # o_ref:(rows, rank2) f32 — last dim is the real rank2 (no 128-lane padding).
    h = jnp.dot(x_ref[...], w1_ref[...], preferred_element_type=jnp.float32)
    h = jnp.maximum(h + b1_ref[...], 0.0)
    o_ref[...] = jnp.dot(h.astype(ws_ref.dtype), ws_ref[...],
                         preferred_element_type=jnp.float32) + bls_ref[...]


# ---------------- pallas_call wrappers ----------------

def run_mlp(x_m, w1_m, b1_m, w2, b2, *, rows_per_block):
    # x_m: (M, R_pad, cv_pad) bf16, w1_m: (M, cv_pad, H) bf16, b1_m: (M, 1, H) f32
    M, R_pad, cv_pad = x_m.shape
    H = w1_m.shape[2]
    F_OUT = w2.shape[1]
    grid = (M, R_pad // rows_per_block)
    return pl.pallas_call(
        mlp_kernel,
        out_shape=jax.ShapeDtypeStruct((M, R_pad, F_OUT), jnp.float32),
        grid_spec=pltpu.PrefetchScalarGridSpec(
            num_scalar_prefetch=0,
            grid=grid,
            in_specs=[
                pl.BlockSpec((None, rows_per_block, cv_pad), lambda m, i: (m, i, 0)),
                pl.BlockSpec((None, cv_pad, H), lambda m, i: (m, 0, 0)),
                pl.BlockSpec((None, 1, H), lambda m, i: (m, 0, 0)),
                pl.BlockSpec((H, F_OUT), lambda m, i: (0, 0)),
                pl.BlockSpec((1, F_OUT), lambda m, i: (0, 0)),
            ],
            out_specs=pl.BlockSpec((None, rows_per_block, F_OUT), lambda m, i: (m, i, 0)),
        ),
        compiler_params=pltpu.CompilerParams(
            dimension_semantics=("parallel", "parallel")),
    )(x_m, w1_m, b1_m, w2, b2)


def run_mlp_lda(x_m, w1_m, b1_m, ws, bls, *, rows_per_block):
    # Second pass: same bf16 x_m slab in, tiny (rows, rank2) f32 transform out.
    M, R_pad, cv_pad = x_m.shape
    H = w1_m.shape[2]
    rank2 = ws.shape[1]
    grid = (M, R_pad // rows_per_block)
    return pl.pallas_call(
        mlp_lda_kernel,
        out_shape=jax.ShapeDtypeStruct((M, R_pad, rank2), jnp.float32),
        grid_spec=pltpu.PrefetchScalarGridSpec(
            num_scalar_prefetch=0,
            grid=grid,
            in_specs=[
                pl.BlockSpec((None, rows_per_block, cv_pad), lambda m, i: (m, i, 0)),
                pl.BlockSpec((None, cv_pad, H), lambda m, i: (m, 0, 0)),
                pl.BlockSpec((None, 1, H), lambda m, i: (m, 0, 0)),
                pl.BlockSpec((H, rank2), lambda m, i: (0, 0)),
                pl.BlockSpec((1, rank2), lambda m, i: (0, 0)),
            ],
            out_specs=pl.BlockSpec((None, rows_per_block, rank2), lambda m, i: (m, i, 0)),
        ),
        compiler_params=pltpu.CompilerParams(
            dimension_semantics=("parallel", "parallel")),
    )(x_m, w1_m, b1_m, ws, bls)


# ---------------- LDA fit (sklearn solver='svd' math, plain JAX glue) ----------------

def lda_fit(features, labels, n_classes, tol=1e-4):
    # TODO(synk): SVD has no Pallas TPU primitive; LDA fit stays in plain JAX (jnp.linalg.svd).
    # TODO(synk): dynamic rank truncation of the within-class SVD replaced by static
    #             tol-masking + the static full-rank value (n_classes - 1) for shapes.
    x = features.astype(jnp.float32)
    n_samples, _ = x.shape
    onehot = jax.nn.one_hot(labels, n_classes, dtype=jnp.float32)
    counts = onehot.sum(axis=0)
    priors = counts / n_samples
    means = (onehot.T @ x) / counts[:, None]
    xbar = priors @ means
    xc = x - means[labels]                       # within-class centered
    std = xc.std(axis=0)
    std = jnp.where(std == 0, 1.0, std)
    fac = 1.0 / (n_samples - n_classes)
    xs = jnp.sqrt(fac) * (xc / std)
    _, s, vt = jnp.linalg.svd(xs, full_matrices=False)
    keep = (s > tol).astype(jnp.float32)         # mask instead of dynamic truncation
    s_safe = jnp.where(s > tol, s, 1.0)
    scalings = ((vt / std[None, :]).T / s_safe[None, :]) * keep[None, :]
    fac2 = 1.0 if n_classes == 1 else 1.0 / (n_classes - 1)
    xb = (jnp.sqrt(n_samples * priors * fac2)[:, None] * (means - xbar)) @ scalings
    _, s2, vt2 = jnp.linalg.svd(xb, full_matrices=False)
    rank2 = max(n_classes - 1, 1)
    scalings_ = scalings @ vt2.T[:, :rank2]      # (n_features, n_classes-1)
    return xbar, scalings_


# ---------------- net.forward ----------------

@functools.partial(jax.jit, static_argnames=("n_classes",))
def net_forward(params, x, y, *, n_classes):
    N, C, T, V, M = x.shape
    cv = C * V
    cv_pad = _round_up(cv, 128)                  # lane-dense feature dim (75 -> 128)
    R = N * T                                    # rows per person m
    R_pad = _round_up(R, 8)                      # minimal sublane padding only
    rows_per_block = _pick_rows_per_block(R_pad, M)

    # ---- label handling, as in the torch module ----
    y = jnp.asarray(y)
    if y.ndim == 1 and y.shape[0] == N:
        y_inst = jnp.repeat(y, M)
    elif y.ndim == 1 and y.shape[0] == N * M:
        y_inst = y
    elif y.ndim == 2 and y.shape == (N, M):
        y_inst = y.reshape(N * M)
    else:
        raise ValueError(
            f"Input y has shape {y.shape}; expected ({N},), ({N*M},) or ({N},{M}).")
    y_inst = y_inst.astype(jnp.int32)
    # rows are processed in (m, n, t) order inside the kernels
    y_mn = jnp.transpose(y_inst.reshape(N, M)).reshape(M * N)
    lda_y = jnp.repeat(y_mn, T)

    # ---- activations: (N,C,T,V,M) -> (M, N*T, C*V), feature index c*V+v ----
    # cast to bf16 BEFORE the repack so the transpose/pad pass writes half the bytes
    x_m = jnp.transpose(x.astype(MATMUL_DTYPE), (4, 0, 2, 1, 3)).reshape(M, R, cv)
    x_m = jnp.pad(x_m, ((0, 0), (0, R_pad - R), (0, cv_pad - cv)))

    # ---- fold eval-mode BatchNorm1d into the first Linear, per person m ----
    gamma, beta, r_mean, r_var = params["bn"]
    eps = 1e-5
    scale_ch = gamma * jax.lax.rsqrt(r_var + eps)          # per channel m*V*C + v*C + c
    bias_ch = beta - r_mean * scale_ch

    def to_mcv(p):                                         # (M*V*C,) -> (M, c*V+v)
        return jnp.transpose(p.reshape(M, V, C), (0, 2, 1)).reshape(M, cv)

    scale_m = to_mcv(scale_ch)
    bias_m = to_mcv(bias_ch)

    w1, b1, w2, b2 = params["w1"], params["b1"], params["w2"], params["b2"]
    F_OUT = w2.shape[1]
    w1_m = scale_m[:, :, None] * w1[None, :, :]            # (M, cv, H)
    w1_m = jnp.pad(w1_m, ((0, 0), (0, cv_pad - cv), (0, 0))).astype(MATMUL_DTYPE)
    b1_m = (b1[None, :] + bias_m @ w1)[:, None, :].astype(jnp.float32)   # (M, 1, H)
    w2_c = w2.astype(MATMUL_DTYPE)
    b2_r = b2.reshape(1, -1).astype(jnp.float32)

    # ---- pass 1: fused (BN-folded) Linear -> ReLU -> Linear, feats kept f32 for SVD ----
    feats_pad = run_mlp(x_m, w1_m, b1_m, w2_c, b2_r,
                        rows_per_block=rows_per_block)     # (M, R_pad, F_OUT) f32

    if R_pad == R:
        feats = feats_pad.reshape(M * R, F_OUT)            # no slice copy (common case)
    else:
        feats = feats_pad[:, :R, :].reshape(M * R, F_OUT)  # only when R % 8 != 0 (<=7 rows pad)

    # ---- LDA fit (plain JAX) ----
    xbar, scalings = lda_fit(feats, lda_y, n_classes)      # scalings: (F_OUT, rank2)
    rank2 = scalings.shape[1]

    # fold the transform into the second MLP pass:
    #   (feats - xbar) @ S = h @ (w2 @ S) + (b2 - xbar) @ S
    ws = (w2 @ scalings).astype(MATMUL_DTYPE)              # (H, rank2)
    bls = ((b2 - xbar) @ scalings).reshape(1, -1).astype(jnp.float32)

    # ---- pass 2: recompute h from bf16 x_m, emit (rows, rank2) transform directly ----
    x_lda_pad = run_mlp_lda(x_m, w1_m, b1_m, ws, bls,
                            rows_per_block=rows_per_block)  # (M, R_pad, rank2) f32

    x_lda = x_lda_pad if R_pad == R else x_lda_pad[:, :R, :]
    # reorder rows back to the torch (n, m, t) order
    x_lda = jnp.transpose(x_lda.reshape(M, N, T, rank2), (1, 0, 2, 3))
    return x_lda.reshape(N * M * T, rank2)                 # (N*M*T, n_classes-1), float32


# ---------------- main ----------------

if __name__ == "__main__":
    # small shapes consistent with the module defaults: V=25, C=3, M=2; N=2, T=8
    N, C, T, V, M = 2, 3, 8, 25, 2
    H, F_OUT = 128, 256
    ch = M * V * C

    key = jax.random.PRNGKey(0)
    ks = jax.random.split(key, 10)
    params = {
        "bn": (
            1.0 + 0.1 * jax.random.normal(ks[0], (ch,), jnp.float32),   # gamma
            0.1 * jax.random.normal(ks[1], (ch,), jnp.float32),         # beta
            0.1 * jax.random.normal(ks[2], (ch,), jnp.float32),         # running_mean
            jax.random.uniform(ks[3], (ch,), jnp.float32, 0.5, 1.5),    # running_var
        ),
        "w1": jax.random.normal(ks[4], (C * V, H), jnp.float32) / jnp.sqrt(float(C * V)),
        "b1": 0.01 * jax.random.normal(ks[5], (H,), jnp.float32),
        "w2": jax.random.normal(ks[6], (H, F_OUT), jnp.float32) / jnp.sqrt(float(H)),
        "b2": 0.01 * jax.random.normal(ks[7], (F_OUT,), jnp.float32),
    }

    x = jax.random.normal(ks[8], (N, C, T, V, M), jnp.float32)
    y = jnp.array([0, 1], dtype=jnp.int32)                  # sample-level labels, 2 classes

    out = net_forward(params, x, y, n_classes=2)            # static n_classes: no host sync
    out = jax.block_until_ready(out)
    assert out.shape == (N * M * T, 1)                      # min(n_classes-1, mlp_output_dim)
    assert out.dtype == jnp.float32
    assert bool(jnp.all(jnp.isfinite(out)))
    print("KERNEL_OK")
</pallas_src>

<mosaic_0001>
module attributes {stable_mosaic.version = 11 : i64} {
  func.func @mlp_kernel(%arg0: i32, %arg1: i32, %arg2: memref<1x16x128xbf16, #tpu.memory_space<vmem>>, %arg3: memref<1x128x128xbf16, #tpu.memory_space<vmem>>, %arg4: memref<1x1x128xf32, #tpu.memory_space<vmem>>, %arg5: memref<128x256xbf16, #tpu.memory_space<vmem>>, %arg6: memref<1x256xf32, #tpu.memory_space<vmem>>, %arg7: memref<1x16x256xf32, #tpu.memory_space<vmem>>) attributes {dimension_semantics = [#tpu.dimension_semantics<parallel>, #tpu.dimension_semantics<parallel>], iteration_bounds = array<i64: 2, 1>, scalar_prefetch = 0 : i64, scratch_operands = 0 : i64, tpu.core_type = #tpu.core_type<tc>, window_params = [{transform_indices = @transform_0, window_bounds = array<i64: 1, 16, 128>}, {transform_indices = @transform_1, window_bounds = array<i64: 1, 128, 128>}, {transform_indices = @transform_2, window_bounds = array<i64: 1, 1, 128>}, {pipeline_mode = #tpu.pipeline_mode<synchronous>, transform_indices = @transform_3, window_bounds = array<i64: 128, 256>}, {pipeline_mode = #tpu.pipeline_mode<synchronous>, transform_indices = @transform_4, window_bounds = array<i64: 1, 256>}, {transform_indices = @transform_5, window_bounds = array<i64: 1, 16, 256>}]} {
    %c0 = arith.constant 0 : index
    %c0_0 = arith.constant 0 : index
    %c0_1 = arith.constant 0 : index
    %0 = vector.load %arg2[%c0, %c0_0, %c0_1] : memref<1x16x128xbf16, #tpu.memory_space<vmem>>, vector<1x16x128xbf16>
    %1 = vector.shape_cast %0 : vector<1x16x128xbf16> to vector<16x128xbf16>
    %c0_2 = arith.constant 0 : index
    %c0_3 = arith.constant 0 : index
    %c0_4 = arith.constant 0 : index
    %2 = vector.load %arg3[%c0_2, %c0_3, %c0_4] : memref<1x128x128xbf16, #tpu.memory_space<vmem>>, vector<1x128x128xbf16>
    %3 = vector.shape_cast %2 : vector<1x128x128xbf16> to vector<128x128xbf16>
    %cst = arith.constant dense<0.000000e+00> : vector<16x128xf32>
    %4 = tpu.matmul %1, %3, %cst {dimension_numbers = #tpu.dot_dimension_numbers<[1], [0], [0], [1], [0, 0, 1, 1], [], []>} : vector<16x128xbf16>, vector<128x128xbf16>, vector<16x128xf32> -> vector<16x128xf32>
    %c0_5 = arith.constant 0 : index
    %c0_6 = arith.constant 0 : index
    %c0_7 = arith.constant 0 : index
    %5 = vector.load %arg4[%c0_5, %c0_6, %c0_7] : memref<1x1x128xf32, #tpu.memory_space<vmem>>, vector<1x1x128xf32>
    %6 = vector.shape_cast %5 : vector<1x1x128xf32> to vector<1x128xf32>
    %7 = vector.broadcast %6 : vector<1x128xf32> to vector<16x128xf32>
    %8 = arith.addf %4, %7 : vector<16x128xf32>
    %cst_8 = arith.constant 0.000000e+00 : f32
    %9 = vector.broadcast %cst_8 : f32 to vector<16x128xf32>
    %10 = arith.maximumf %8, %9 : vector<16x128xf32>
    %11 = arith.truncf %10 : vector<16x128xf32> to vector<16x128xbf16>
    %c0_9 = arith.constant 0 : index
    %c0_10 = arith.constant 0 : index
    %12 = vector.load %arg5[%c0_9, %c0_10] : memref<128x256xbf16, #tpu.memory_space<vmem>>, vector<128x256xbf16>
    %cst_11 = arith.constant dense<0.000000e+00> : vector<16x256xf32>
    %13 = tpu.matmul %11, %12, %cst_11 {dimension_numbers = #tpu.dot_dimension_numbers<[1], [0], [0], [1], [0, 0, 1, 1], [], []>} : vector<16x128xbf16>, vector<128x256xbf16>, vector<16x256xf32> -> vector<16x256xf32>
    %c0_12 = arith.constant 0 : index
    %c0_13 = arith.constant 0 : index
    %14 = vector.load %arg6[%c0_12, %c0_13] : memref<1x256xf32, #tpu.memory_space<vmem>>, vector<1x256xf32>
    %15 = vector.broadcast %14 : vector<1x256xf32> to vector<16x256xf32>
    %16 = arith.addf %13, %15 : vector<16x256xf32>
    %c0_14 = arith.constant 0 : index
    %c0_15 = arith.constant 0 : index
    %c0_16 = arith.constant 0 : index
    %17 = vector.load %arg7[%c0_14, %c0_15, %c0_16] : memref<1x16x256xf32, #tpu.memory_space<vmem>>, vector<1x16x256xf32>
    %18 = vector.shape_cast %17 : vector<1x16x256xf32> to vector<16x256xf32>
    %19 = vector.shape_cast %16 : vector<16x256xf32> to vector<1x16x256xf32>
    tpu.vector_store %arg7[%c0_14, %c0_15, %c0_16], %19 {strides = array<i32>} : memref<1x16x256xf32, #tpu.memory_space<vmem>>, vector<1x16x256xf32>,
    return
  }
  func.func @transform_0(%arg0: i32, %arg1: i32) -> (i32, i32, i32) {
    %c0_i32 = arith.constant 0 : i32
    %c0_i32_0 = arith.constant 0 : i32
    return %arg0, %arg1, %c0_i32 : i32, i32, i32
  }
  func.func @transform_1(%arg0: i32, %arg1: i32) -> (i32, i32, i32) {
    %c0_i32 = arith.constant 0 : i32
    %c0_i32_0 = arith.constant 0 : i32
    %c0_i32_1 = arith.constant 0 : i32
    return %arg0, %c0_i32, %c0_i32_0 : i32, i32, i32
  }
  func.func @transform_2(%arg0: i32, %arg1: i32) -> (i32, i32, i32) {
    %c0_i32 = arith.constant 0 : i32
    %c0_i32_0 = arith.constant 0 : i32
    %c0_i32_1 = arith.constant 0 : i32
    return %arg0, %c0_i32, %c0_i32_0 : i32, i32, i32
  }
  func.func @transform_3(%arg0: i32, %arg1: i32) -> (i32, i32) {
    %c0_i32 = arith.constant 0 : i32
    %c0_i32_0 = arith.constant 0 : i32
    %c0_i32_1 = arith.constant 0 : i32
    return %c0_i32, %c0_i32_0 : i32, i32
  }
  func.func @transform_4(%arg0: i32, %arg1: i32) -> (i32, i32) {
    %c0_i32 = arith.constant 0 : i32
    %c0_i32_0 = arith.constant 0 : i32
    %c0_i32_1 = arith.constant 0 : i32
    return %c0_i32, %c0_i32_0 : i32, i32
  }
  func.func @transform_5(%arg0: i32, %arg1: i32) -> (i32, i32, i32) {
    %c0_i32 = arith.constant 0 : i32
    %c0_i32_0 = arith.constant 0 : i32
    return %arg0, %arg1, %c0_i32 : i32, i32, i32
  }
}

module attributes {stable_mosaic.version = 11 : i64} {
  func.func @mlp_lda_kernel(%arg0: i32, %arg1: i32, %arg2: memref<1x16x128xbf16, #tpu.memory_space<vmem>>, %arg3: memref<1x128x128xbf16, #tpu.memory_space<vmem>>, %arg4: memref<1x1x128xf32, #tpu.memory_space<vmem>>, %arg5: memref<128x1xbf16, #tpu.memory_space<vmem>>, %arg6: memref<1x1xf32, #tpu.memory_space<vmem>>, %arg7: memref<1x16x1xf32, #tpu.memory_space<vmem>>) attributes {dimension_semantics = [#tpu.dimension_semantics<parallel>, #tpu.dimension_semantics<parallel>], iteration_bounds = array<i64: 2, 1>, scalar_prefetch = 0 : i64, scratch_operands = 0 : i64, tpu.core_type = #tpu.core_type<tc>, window_params = [{transform_indices = @transform_0, window_bounds = array<i64: 1, 16, 128>}, {transform_indices = @transform_1, window_bounds = array<i64: 1, 128, 128>}, {transform_indices = @transform_2, window_bounds = array<i64: 1, 1, 128>}, {pipeline_mode = #tpu.pipeline_mode<synchronous>, transform_indices = @transform_3, window_bounds = array<i64: 128, 1>}, {pipeline_mode = #tpu.pipeline_mode<synchronous>, transform_indices = @transform_4, window_bounds = array<i64: 1, 1>}, {transform_indices = @transform_5, window_bounds = array<i64: 1, 16, 1>}]} {
    %c0 = arith.constant 0 : index
    %c0_0 = arith.constant 0 : index
    %c0_1 = arith.constant 0 : index
    %0 = vector.load %arg2[%c0, %c0_0, %c0_1] : memref<1x16x128xbf16, #tpu.memory_space<vmem>>, vector<1x16x128xbf16>
    %1 = vector.shape_cast %0 : vector<1x16x128xbf16> to vector<16x128xbf16>
    %c0_2 = arith.constant 0 : index
    %c0_3 = arith.constant 0 : index
    %c0_4 = arith.constant 0 : index
    %2 = vector.load %arg3[%c0_2, %c0_3, %c0_4] : memref<1x128x128xbf16, #tpu.memory_space<vmem>>, vector<1x128x128xbf16>
    %3 = vector.shape_cast %2 : vector<1x128x128xbf16> to vector<128x128xbf16>
    %cst = arith.constant dense<0.000000e+00> : vector<16x128xf32>
    %4 = tpu.matmul %1, %3, %cst {dimension_numbers = #tpu.dot_dimension_numbers<[1], [0], [0], [1], [0, 0, 1, 1], [], []>} : vector<16x128xbf16>, vector<128x128xbf16>, vector<16x128xf32> -> vector<16x128xf32>
    %c0_5 = arith.constant 0 : index
    %c0_6 = arith.constant 0 : index
    %c0_7 = arith.constant 0 : index
    %5 = vector.load %arg4[%c0_5, %c0_6, %c0_7] : memref<1x1x128xf32, #tpu.memory_space<vmem>>, vector<1x1x128xf32>
    %6 = vector.shape_cast %5 : vector<1x1x128xf32> to vector<1x128xf32>
    %7 = vector.broadcast %6 : vector<1x128xf32> to vector<16x128xf32>
    %8 = arith.addf %4, %7 : vector<16x128xf32>
    %cst_8 = arith.constant 0.000000e+00 : f32
    %9 = vector.broadcast %cst_8 : f32 to vector<16x128xf32>
    %10 = arith.maximumf %8, %9 : vector<16x128xf32>
    %11 = arith.truncf %10 : vector<16x128xf32> to vector<16x128xbf16>
    %c0_9 = arith.constant 0 : index
    %c0_10 = arith.constant 0 : index
    %12 = vector.load %arg5[%c0_9, %c0_10] : memref<128x1xbf16, #tpu.memory_space<vmem>>, vector<128x1xbf16>
    %cst_11 = arith.constant dense<0.000000e+00> : vector<16x1xf32>
    %13 = tpu.matmul %11, %12, %cst_11 {dimension_numbers = #tpu.dot_dimension_numbers<[1], [0], [0], [1], [0, 0, 1, 1], [], []>} : vector<16x128xbf16>, vector<128x1xbf16>, vector<16x1xf32> -> vector<16x1xf32>
    %c0_12 = arith.constant 0 : index
    %c0_13 = arith.constant 0 : index
    %14 = vector.load %arg6[%c0_12, %c0_13] : memref<1x1xf32, #tpu.memory_space<vmem>>, vector<1x1xf32>
    %15 = vector.broadcast %14 : vector<1x1xf32> to vector<16x1xf32>
    %16 = arith.addf %13, %15 : vector<16x1xf32>
    %c0_14 = arith.constant 0 : index
    %c0_15 = arith.constant 0 : index
    %c0_16 = arith.constant 0 : index
    %17 = vector.load %arg7[%c0_14, %c0_15, %c0_16] : memref<1x16x1xf32, #tpu.memory_space<vmem>>, vector<1x16x1xf32>
    %18 = vector.shape_cast %17 : vector<1x16x1xf32> to vector<16x1xf32>
    %19 = vector.shape_cast %16 : vector<16x1xf32> to vector<1x16x1xf32>
    tpu.vector_store %arg7[%c0_14, %c0_15, %c0_16], %19 {strides = array<i32>} : memref<1x16x1xf32, #tpu.memory_space<vmem>>, vector<1x16x1xf32>,
    return
  }
  func.func @transform_0(%arg0: i32, %arg1: i32) -> (i32, i32, i32) {
    %c0_i32 = arith.constant 0 : i32
    %c0_i32_0 = arith.constant 0 : i32
    return %arg0, %arg1, %c0_i32 : i32, i32, i32
  }
  func.func @transform_1(%arg0: i32, %arg1: i32) -> (i32, i32, i32) {
    %c0_i32 = arith.constant 0 : i32
    %c0_i32_0 = arith.constant 0 : i32
    %c0_i32_1 = arith.constant 0 : i32
    return %arg0, %c0_i32, %c0_i32_0 : i32, i32, i32
  }
  func.func @transform_2(%arg0: i32, %arg1: i32) -> (i32, i32, i32) {
    %c0_i32 = arith.constant 0 : i32
    %c0_i32_0 = arith.constant 0 : i32
    %c0_i32_1 = arith.constant 0 : i32
    return %arg0, %c0_i32, %c0_i32_0 : i32, i32, i32
  }
  func.func @transform_3(%arg0: i32, %arg1: i32) -> (i32, i32) {
    %c0_i32 = arith.constant 0 : i32
    %c0_i32_0 = arith.constant 0 : i32
    %c0_i32_1 = arith.constant 0 : i32
    return %c0_i32, %c0_i32_0 : i32, i32
  }
  func.func @transform_4(%arg0: i32, %arg1: i32) -> (i32, i32) {
    %c0_i32 = arith.constant 0 : i32
    %c0_i32_0 = arith.constant 0 : i32
    %c0_i32_1 = arith.constant 0 : i32
    return %c0_i32, %c0_i32_0 : i32, i32
  }
  func.func @transform_5(%arg0: i32, %arg1: i32) -> (i32, i32, i32) {
    %c0_i32 = arith.constant 0 : i32
    %c0_i32_0 = arith.constant 0 : i32
    return %arg0, %arg1, %c0_i32 : i32, i32, i32
  }
}

</mosaic_0001>

<bundles_post_ra>
// kernel: mul.112
= control target key start
LH: loop header
LB: loop body
LE: loop exit
PB: predicated region body
PF: predicated region fallthrough
CT: control target
= control target key end

     0   :  { %s11_s10 = smov 3  ;;  %vm13_vm0 = vcmask 203776   ;;  %s23_s11 = smov 3  ;;  %vm20_vm1 = vcmask 613776   ;;  %vm27_vm2 = vcmask 408776   ;;  %s61_s0 = inlined_call_operand.vmem [shape: f32[2,3,25], index: 0, kind: input, shape index: {}]   ;;  %s62_s1 = inlined_call_operand.vmem [shape: f32[2,75], index: 1, kind: output, shape index: {}]  }
   0x1   :  { %v37_v0 = vld [vmem:[%s61_s0 + $0x4] sm:$0xf]  ;;  %v9_v1 = vld [vmem:[%s61_s0] sm:$0xf]  ;;  %s16_s0 = smov 3  ;;  %s40_s12 = smov 50  }
   0x2   :  { %8 = vst [vmem:[#allocation1 + $0x8] sm:$0xf] %v37_v0  ;;  %10 = vst [vmem:[#allocation1] sm:$0xf] %v9_v1  ;;  %s41_s13 = smov 25  }
   0x9   :  { %v17_v2 = vld [vmem:[#allocation1 + $0x2] ss:$8 sm:%s16_s0]   ;;  %v12_v3 = vld [vmem:[#allocation1] ss:$8 sm:%s11_s10]   ;;  %v24_v4 = vld [vmem:[#allocation1 + $0x1] ss:$8 sm:%s23_s11]  }
   0xa   :  { %18 = vrot.lane.b32.xlu0 %v17_v2, %s40_s12  ;;  %14 = vst.msk [vmem:[#allocation0] sm:$0x3] %vm13_vm0, %v12_v3  }
   0xe   :  { %25 = vrot.lane.b32.xlu0 %v24_v4, %s41_s13 }
  0x7c   :  { %v19_v5 = vpop.permute.xlu0 %18  }
  0x7d   :  { %21 = vst.msk [vmem:[#allocation0] sm:$0x3] %vm20_vm1, %v19_v5  }
  0x80   :  { %v26_v6 = vpop.permute.xlu0 %25  }
  0x81   :  { %28 = vst.msk [vmem:[#allocation0] sm:$0x3] %vm27_vm2, %v26_v6  }
  0x88   :  { %v33_v7 = vld [vmem:[#allocation0] sm:$0x3] }
  0x89   :  { %36 = vst [vmem:[%s62_s1] sm:$0x3] %v33_v7 }

// kernel: eq.28
= control target key start
LH: loop header
LB: loop body
LE: loop exit
PB: predicated region body
PF: predicated region fallthrough
CT: control target
= control target key end

     0   :  { %vm8_vm0 = vcmask 64512   ;;  %s40_s8 = smov 8   ;;  %s41_s9 = smov 16   ;;  %vm14_vm1 = vcmask 261312   ;;  %vm20_vm2 = vcmask 195712   ;;  %vm26_vm3 = vcmask 130112   ;;  %s58_s0 = inlined_call_operand.vmem [shape: s32[4,8], index: 0, kind: input, shape index: {}]   ;;  %s59_s1 = inlined_call_operand.vmem [shape: s32[32], index: 1, kind: output, shape index: {}]  }
   0x1   :  { %v5_v0 = vld [vmem:[%s58_s0] sm:$0xf]  ;;  %s39_s0 = smov 24  }
   0x2   :  { %6 = vst [vmem:[#allocation1] sm:$0xf] %v5_v0 }
   0x9   :  { %v11_v1 = vld [vmem:[#allocation1 + $0x3] sm:$0x1]   ;;  %v23_v2 = vld [vmem:[#allocation1 + $0x1] sm:$0x1]   ;;  %v7_v3 = vld [vmem:[#allocation1] sm:$0x1]  }
   0xa   :  { %12 = vrot.lane.b32.xlu0 %v11_v1, %s39_s0  ;;  %24 = vrot.lane.b32.xlu1 %v23_v2, %s40_s8  ;;  %v17_v4 = vld [vmem:[#allocation1 + $0x2] sm:$0x1]   ;;  %9 = vst.msk [vmem:[#allocation0] sm:$0x1] %vm8_vm0, %v7_v3  }
   0xe   :  { %18 = vrot.lane.b32.xlu0 %v17_v4, %s41_s9 }
  0x7c   :  { %v13_v5 = vpop.permute.xlu0 %12   ;;  %v25_v6 = vpop.permute.xlu1 %24  }
  0x7d   :  { %15 = vst.msk [vmem:[#allocation0] sm:$0x1] %vm14_vm1, %v13_v5  }
  0x80   :  { %v19_v7 = vpop.permute.xlu0 %18  }
  0x81   :  { %21 = vst.msk [vmem:[#allocation0] sm:$0x1] %vm20_vm2, %v19_v7  }
  0x82   :  { %27 = vst.msk [vmem:[#allocation0] sm:$0x1] %vm26_vm3, %v25_v6  }
  0x89   :  { %v32_v8 = vld [vmem:[#allocation0] sm:$0x1] }
  0x8a   :  { %35 = vst [vmem:[%s59_s1] sm:$0x1] %v32_v8 }

// kernel: sub.30
= control target key start
LH: loop header
LB: loop body
LE: loop exit
PB: predicated region body
PF: predicated region fallthrough
CT: control target
= control target key end

     0   :  { %s188_s0 = inlined_call_operand.vmem [shape: f32[32,256], index: 0, kind: input, shape index: {}]   ;;  %s189_s1 = inlined_call_operand.vmem [shape: f32[32,256], index: 1, kind: input, shape index: {}]   ;;  %s190_s2 = inlined_call_operand.vmem [shape: f32[32,256], index: 2, kind: output, shape index: {}]  }
   0x1   :  { %v3_v0 = vld [vmem:[%s188_s0] sm:$0xff]  ;;  %v80_v2 = vld [vmem:[%s188_s0 + $0x10] sm:$0xff]  ;;  %v89_v11 = vld [vmem:[%s188_s0 + $0x8] sm:$0xff] }
   0x2   :  { %v4_v1 = vld [vmem:[%s189_s1] sm:$0xff]  ;;  %v81_v4 = vld [vmem:[%s189_s1 + $0x10] sm:$0xff]  ;;  %v90_v13 = vld [vmem:[%s189_s1 + $0x8] sm:$0xff] }
   0x3   :  { %v7_v3 = vsub.f32 %v3_v0, %v4_v1  ;;  %v83_v5 = vld [vmem:[%s188_s0 + $0x20] sm:$0xff]  ;;  %v16_v7 = vsub.f32 %v80_v2, %v81_v4  ;;  %v86_v9 = vld [vmem:[%s188_s0 + $0x30] sm:$0xff]  ;;  %v92_v14 = vld [vmem:[%s188_s0 + $0x18] sm:$0xff]  ;;  %v46_v16 = vsub.f32 %v89_v11, %v90_v13 }
   0x4   :  { %v84_v6 = vld [vmem:[%s189_s1 + $0x20] sm:$0xff]  ;;  %v87_v10 = vld [vmem:[%s189_s1 + $0x30] sm:$0xff]  ;;  %v93_v15 = vld [vmem:[%s189_s1 + $0x18] sm:$0xff] }
   0x5   :  { %v26_v8 = vsub.f32 %v83_v5, %v84_v6  ;;  %9 = vst [vmem:[%s190_s2] sm:$0xff] %v7_v3  ;;  %v36_v12 = vsub.f32 %v86_v9, %v87_v10  ;;  %82 = vst [vmem:[%s190_s2 + $0x10] sm:$0xff] %v16_v7  ;;  %v56_v17 = vsub.f32 %v92_v14, %v93_v15  ;;  %v95_v18 = vld [vmem:[%s188_s0 + $0x28] sm:$0xff]  ;;  %v98_v20 = vld [vmem:[%s188_s0 + $0x38] sm:$0xff] }
   0x6   :  { %v96_v19 = vld [vmem:[%s189_s1 + $0x28] sm:$0xff]  ;;  %v99_v22 = vld [vmem:[%s189_s1 + $0x38] sm:$0xff]  ;;  %91 = vst [vmem:[%s190_s2 + $0x8] sm:$0xff] %v46_v16 }
   0x7   :  { %85 = vst [vmem:[%s190_s2 + $0x20] sm:$0xff] %v26_v8  ;;  %88 = vst [vmem:[%s190_s2 + $0x30] sm:$0xff] %v36_v12  ;;  %v66_v21 = vsub.f32 %v95_v18, %v96_v19  ;;  %v76_v23 = vsub.f32 %v98_v20, %v99_v22 }
   0x8   :  { %94 = vst [vmem:[%s190_s2 + $0x18] sm:$0xff] %v56_v17 }
   0x9   :  { %97 = vst [vmem:[%s190_s2 + $0x28] sm:$0xff] %v66_v21  ;;  %100 = vst [vmem:[%s190_s2 + $0x38] sm:$0xff] %v76_v23 }

// kernel: custom-call.58
= control target key start
LH: loop header
LB: loop body
LE: loop exit
PB: predicated region body
PF: predicated region fallthrough
CT: control target
= control target key end

     0   :  { %v2621_v6 = vmov 0.0   ;;  %s2734_s17 = smov 0   ;;  %s4163_s0 = inlined_call_operand.vmem [shape: f32[256,32], index: 0, kind: input, shape index: {}]   ;;  %s4164_s1 = inlined_call_operand.vmem [shape: f32[256,32], index: 1, kind: output, shape index: {0}]   ;;  %s4165_s2 = inlined_call_operand.vmem [shape: f32[32], index: 2, kind: output, shape index: {1}]  }
   0x1   :  { %v94_v0 = vld [vmem:[%s4163_s0] sm:$0xff]  ;;  %v96_v1 = vld [vmem:[%s4163_s0 + $0x8] sm:$0xff]  ;;  %v98_v2 = vld [vmem:[%s4163_s0 + $0x10] sm:$0xff]  ;;  %287 = vst [vmem:[#allocation2] sm:$0x1] %v2621_v6 }
   0x2   :  { %v100_v3 = vld [vmem:[%s4163_s0 + $0x18] sm:$0xff]  ;;  %v102_v4 = vld [vmem:[%s4163_s0 + $0x20] sm:$0xff]  ;;  %v104_v5 = vld [vmem:[%s4163_s0 + $0x28] sm:$0xff]  ;;  %162 = vst [vmem:[#allocation1] sm:$0xff] %v94_v0 }
   0x3   :  { %166 = vst [vmem:[#allocation1 + $0x8] sm:$0xff] %v96_v1  ;;  %170 = vst [vmem:[#allocation1 + $0x10] sm:$0xff] %v98_v2  ;;  %v106_v7 = vld [vmem:[%s4163_s0 + $0x30] sm:$0xff]  ;;  %v108_v8 = vld [vmem:[%s4163_s0 + $0x38] sm:$0xff] }
   0x4   :  { %v110_v9 = vld [vmem:[%s4163_s0 + $0x40] sm:$0xff]  ;;  %174 = vst [vmem:[#allocation1 + $0x18] sm:$0xff] %v100_v3  ;;  %178 = vst [vmem:[#allocation1 + $0x20] sm:$0xff] %v102_v4  ;;  %v112_v10 = vld [vmem:[%s4163_s0 + $0x48] sm:$0xff] }
   0x5   :  { %182 = vst [vmem:[#allocation1 + $0x28] sm:$0xff] %v104_v5  ;;  %v114_v11 = vld [vmem:[%s4163_s0 + $0x50] sm:$0xff]  ;;  %v116_v12 = vld [vmem:[%s4163_s0 + $0x58] sm:$0xff]  ;;  %186 = vst [vmem:[#allocation1 + $0x30] sm:$0xff] %v106_v7 }
   0x6   :  { %190 = vst [vmem:[#allocation1 + $0x38] sm:$0xff] %v108_v8  ;;  %194 = vst [vmem:[#allocation1 + $0x40] sm:$0xff] %v110_v9  ;;  %v118_v13 = vld [vmem:[%s4163_s0 + $0x60] sm:$0xff]  ;;  %v120_v14 = vld [vmem:[%s4163_s0 + $0x68] sm:$0xff] }
   0x7   :  { %v122_v15 = vld [vmem:[%s4163_s0 + $0x70] sm:$0xff]  ;;  %198 = vst [vmem:[#allocation1 + $0x48] sm:$0xff] %v112_v10  ;;  %202 = vst [vmem:[#allocation1 + $0x50] sm:$0xff] %v114_v11  ;;  %v124_v16 = vld [vmem:[%s4163_s0 + $0x78] sm:$0xff] }
   0x8   :  { %206 = vst [vmem:[#allocation1 + $0x58] sm:$0xff] %v116_v12  ;;  %v126_v17 = vld [vmem:[%s4163_s0 + $0x80] sm:$0xff]  ;;  %v128_v18 = vld [vmem:[%s4163_s0 + $0x88] sm:$0xff]  ;;  %210 = vst [vmem:[#allocation1 + $0x60] sm:$0xff] %v118_v13 }
   0x9   :  { %214 = vst [vmem:[#allocation1 + $0x68] sm:$0xff] %v120_v14  ;;  %218 = vst [vmem:[#allocation1 + $0x70] sm:$0xff] %v122_v15  ;;  %v130_v19 = vld [vmem:[%s4163_s0 + $0x90] sm:$0xff]  ;;  %v132_v20 = vld [vmem:[%s4163_s0 + $0x98] sm:$0xff] }
   0xa   :  { %v134_v21 = vld [vmem:[%s4163_s0 + $0xa0] sm:$0xff]  ;;  %222 = vst [vmem:[#allocation1 + $0x78] sm:$0xff] %v124_v16  ;;  %226 = vst [vmem:[#allocation1 + $0x80] sm:$0xff] %v126_v17  ;;  %v136_v22 = vld [vmem:[%s4163_s0 + $0xa8] sm:$0xff] }
   0xb   :  { %230 = vst [vmem:[#allocation1 + $0x88] sm:$0xff] %v128_v18  ;;  %v138_v23 = vld [vmem:[%s4163_s0 + $0xb0] sm:$0xff]  ;;  %v140_v24 = vld [vmem:[%s4163_s0 + $0xb8] sm:$0xff]  ;;  %234 = vst [vmem:[#allocation1 + $0x90] sm:$0xff] %v130_v19 }
   0xc   :  { %238 = vst [vmem:[#allocation1 + $0x98] sm:$0xff] %v132_v20  ;;  %242 = vst [vmem:[#allocation1 + $0xa0] sm:$0xff] %v134_v21  ;;  %v142_v25 = vld [vmem:[%s4163_s0 + $0xc0] sm:$0xff]  ;;  %v144_v26 = vld [vmem:[%s4163_s0 + $0xc8] sm:$0xff] }
   0xd   :  { %v146_v27 = vld [vmem:[%s4163_s0 + $0xd0] sm:$0xff]  ;;  %246 = vst [vmem:[#allocation1 + $0xa8] sm:$0xff] %v136_v22  ;;  %250 = vst [vmem:[#allocation1 + $0xb0] sm:$0xff] %v138_v23  ;;  %v148_v28 = vld [vmem:[%s4163_s0 + $0xd8] sm:$0xff] }
   0xe   :  { %254 = vst [vmem:[#allocation1 + $0xb8] sm:$0xff] %v140_v24  ;;  %v150_v29 = vld [vmem:[%s4163_s0 + $0xe0] sm:$0xff]  ;;  %v152_v30 = vld [vmem:[%s4163_s0 + $0xe8] sm:$0xff]  ;;  %258 = vst [vmem:[#allocation1 + $0xc0] sm:$0xff] %v142_v25 }
   0xf   :  { %262 = vst [vmem:[#allocation1 + $0xc8] sm:$0xff] %v144_v26  ;;  %266 = vst [vmem:[#allocation1 + $0xd0] sm:$0xff] %v146_v27  ;;  %v154_v31 = vld [vmem:[%s4163_s0 + $0xf0] sm:$0xff]  ;;  %v156_v32 = vld [vmem:[%s4163_s0 + $0xf8] sm:$0xff] }
  0x10   :  { %270 = vst [vmem:[#allocation1 + $0xd8] sm:$0xff] %v148_v28  ;;  %274 = vst [vmem:[#allocation1 + $0xe0] sm:$0xff] %v150_v29 }
  0x11   :  { %278 = vst [vmem:[#allocation1 + $0xe8] sm:$0xff] %v152_v30  ;;  %282 = vst [vmem:[#allocation1 + $0xf0] sm:$0xff] %v154_v31 }
  0x12   :  { %286 = vst [vmem:[#allocation1 + $0xf8] sm:$0xff] %v156_v32 }
  0x13 LB: > { %v295_v33 = vlaneseq  ;;  %v294_v34 = vld [vmem:[#allocation1] sm:$0xff]  ;;  %v2743_v36 = vstv %s2619_s17  ;;  %v303_v37 = vld [vmem:[#allocation1 + $0x8] sm:$0xff]  ;;  %v313_v39 = vld [vmem:[#allocation1 + $0x10] sm:$0xff]  ;;  %s632_s0 = scalar_lea.vmem [#allocation1], %s2619_s17  ;;  %s2837_s18 = smov [#allocation1]  ;;  %s2619_s17 = sphi %s2734_s17, %s293_s17  }
  0x14   : > { %v323_v41 = vld [vmem:[#allocation1 + $0x18] sm:$0xff]  ;;  %v333_v48 = vld [vmem:[#allocation1 + $0x20] sm:$0xff]  ;;  %v343_v54 = vld [vmem:[#allocation1 + $0x28] sm:$0xff]  ;;  %s1248_s19 = scalar_lea.vmem [#allocation4], %s2619_s17  ;;  %s3127_s20 = smov [#allocation1] }
  0x15   : > { %v2740_v35 = vshrl.u32 %v295_v33, 7  ;;  %v353_v59 = vld [vmem:[#allocation1 + $0x30] sm:$0xff]  ;;  %v363_v0 = vld [vmem:[#allocation1 + $0x38] sm:$0xff]  ;;  %v373_v5 = vld [vmem:[#allocation1 + $0x40] sm:$0xff]  ;;  %s3134_s21 = smov [#allocation4] }
  0x16   : > { %v383_v10 = vld [vmem:[#allocation1 + $0x48] sm:$0xff]  ;;  %v393_v15 = vld [vmem:[#allocation1 + $0x50] sm:$0xff]  ;;  %v403_v20 = vld [vmem:[#allocation1 + $0x58] sm:$0xff] }
  0x17   : > { %vm299_vm0 = vcmp.gt.s32.totalorder %v2740_v35, %v2743_v36  ;;  %v306_v38 = vadd.s32 8, %v2740_v35  ;;  %v316_v40 = vadd.s32 16, %v2740_v35  ;;  %v326_v42 = vadd.s32 24, %v2740_v35  ;;  %v413_v25 = vld [vmem:[#allocation1 + $0x60] sm:$0xff]  ;;  %v423_v30 = vld [vmem:[#allocation1 + $0x68] sm:$0xff] }
  0x18   : > { %v300_v43 = vsel %vm299_vm0, %v294_v34, 0.0  ;;  %v336_v44 = vadd.s32 32, %v2740_v35  ;;  %v346_v45 = vadd.s32 40, %v2740_v35  ;;  %v356_v46 = vadd.s32 48, %v2740_v35 }
  0x19   : > { %v301_v47 = vmul.f32 %v300_v43, %v300_v43  ;;  %vm308_vm1 = vcmp.gt.s32.totalorder %v306_v38, %v2743_v36  ;;  %vm318_vm2 = vcmp.gt.s32.totalorder %v316_v40, %v2743_v36  ;;  %vm328_vm3 = vcmp.gt.s32.totalorder %v326_v42, %v2743_v36  ;;  %v433_v38 = vld [vmem:[#allocation1 + $0x70] sm:$0xff]  ;;  %v443_v43 = vld [vmem:[#allocation1 + $0x78] sm:$0xff] }
  0x1a   : > { %v309_v49 = vsel %vm308_vm1, %v303_v37, 0.0  ;;  %v319_v50 = vsel %vm318_vm2, %v313_v39, 0.0  ;;  %v329_v51 = vsel %vm328_vm3, %v323_v41, 0.0  ;;  %vm338_vm4 = vcmp.gt.s32.totalorder %v336_v44, %v2743_v36 }
  0x1b   : > { %v310_v52 = vmul.f32 %v309_v49, %v309_v49  ;;  %v320_v53 = vmul.f32 %v319_v50, %v319_v50  ;;  %v339_v55 = vsel %vm338_vm4, %v333_v48, 0.0  ;;  %vm348_vm5 = vcmp.gt.s32.totalorder %v346_v45, %v2743_v36  ;;  %v453_v48 = vld [vmem:[#allocation1 + $0x80] sm:$0xff] }
  0x1c   : > { %v366_v56 = vadd.s32 56, %v2740_v35  ;;  %v330_v58 = vmul.f32 %v329_v51, %v329_v51  ;;  %vm358_vm6 = vcmp.gt.s32.totalorder %v356_v46, %v2743_v36  ;;  %v376_v60 = vadd.s32 64, %v2740_v35 }
  0x1d   : > { %v311_v57 = vadd.f32 %v310_v52, %v301_v47  ;;  %v349_v61 = vsel %vm348_vm5, %v343_v54, 0.0  ;;  %v340_v63 = vmul.f32 %v339_v55, %v339_v55  ;;  %v386_v1 = vadd.s32 72, %v2740_v35 }
  0x1e   : > { %vm368_vm7 = vcmp.gt.s32.totalorder %v366_v56, %v2743_v36  ;;  %v359_v2 = vsel %vm358_vm6, %v353_v59, 0.0  ;;  %v350_v4 = vmul.f32 %v349_v61, %v349_v61  ;;  %vm378_vm8 = vcmp.gt.s32.totalorder %v376_v60, %v2743_v36 }
  0x1f   : > { %v321_v62 = vadd.f32 %v320_v53, %v311_v57  ;;  %v396_v6 = vadd.s32 80, %v2740_v35  ;;  %v369_v7 = vsel %vm368_vm7, %v363_v0, 0.0  ;;  %v360_v9 = vmul.f32 %v359_v2, %v359_v2  ;;  %v463_v53 = vld [vmem:[#allocation1 + $0x88] sm:$0xff] }
  0x20   : > { %vm388_vm9 = vcmp.gt.s32.totalorder %v386_v1, %v2743_v36  ;;  %v406_v11 = vadd.s32 88, %v2740_v35  ;;  %v379_v12 = vsel %vm378_vm8, %v373_v5, 0.0  ;;  %v370_v14 = vmul.f32 %v369_v7, %v369_v7 }
  0x21   : > { %v331_v3 = vadd.f32 %v330_v58, %v321_v62  ;;  %vm398_vm10 = vcmp.gt.s32.totalorder %v396_v6, %v2743_v36  ;;  %v416_v16 = vadd.s32 96, %v2740_v35  ;;  %v389_v17 = vsel %vm388_vm9, %v383_v10, 0.0  ;;  %v473_v58 = vld [vmem:[#allocation1 + $0x90] sm:$0xff] }
  0x22   : > { %v380_v19 = vmul.f32 %v379_v12, %v379_v12  ;;  %vm408_vm11 = vcmp.gt.s32.totalorder %v406_v11, %v2743_v36  ;;  %v426_v21 = vadd.s32 104, %v2740_v35  ;;  %v399_v22 = vsel %vm398_vm10, %v393_v15, 0.0 }
  0x23   : > { %v341_v8 = vadd.f32 %v340_v63, %v331_v3  ;;  %v390_v24 = vmul.f32 %v389_v17, %v389_v17  ;;  %vm418_vm12 = vcmp.gt.s32.totalorder %v416_v16, %v2743_v36  ;;  %v436_v26 = vadd.s32 112, %v2740_v35  ;;  %v483_v63 = vld [vmem:[#allocation1 + $0x98] sm:$0xff] }
  0x24   : > { %v409_v27 = vsel %vm408_vm11, %v403_v20, 0.0  ;;  %v400_v29 = vmul.f32 %v399_v22, %v399_v22  ;;  %vm428_vm13 = vcmp.gt.s32.totalorder %v426_v21, %v2743_v36  ;;  %v446_v31 = vadd.s32 120, %v2740_v35 }
  0x25   : > { %v351_v13 = vadd.f32 %v350_v4, %v341_v8  ;;  %v419_v32 = vsel %vm418_vm12, %v413_v25, 0.0  ;;  %v410_v37 = vmul.f32 %v409_v27, %v409_v27  ;;  %vm438_vm14 = vcmp.gt.s32.totalorder %v436_v26, %v2743_v36  ;;  %v493_v4 = vld [vmem:[#allocation1 + $0xa0] sm:$0xff] }
  0x26   : > { %v456_v39 = vadd.s32 128, %v2740_v35  ;;  %v429_v40 = vsel %vm428_vm13, %v423_v30, 0.0  ;;  %v420_v42 = vmul.f32 %v419_v32, %v419_v32  ;;  %vm448_vm15 = vcmp.gt.s32.totalorder %v446_v31, %v2743_v36 }
  0x27   : > { %v361_v18 = vadd.f32 %v360_v9, %v351_v13  ;;  %v466_v44 = vadd.s32 136, %v2740_v35  ;;  %v439_v45 = vsel %vm438_vm14, %v433_v38, 0.0  ;;  %v430_v47 = vmul.f32 %v429_v40, %v429_v40  ;;  %v503_v9 = vld [vmem:[#allocation1 + $0xa8] sm:$0xff] }
  0x28   : > { %vm458_vm0 = vcmp.gt.s32.totalorder %v456_v39, %v2743_v36  ;;  %v476_v49 = vadd.s32 144, %v2740_v35  ;;  %v449_v50 = vsel %vm448_vm15, %v443_v43, 0.0  ;;  %v440_v52 = vmul.f32 %v439_v45, %v439_v45 }
  0x29   : > { %v371_v23 = vadd.f32 %v370_v14, %v361_v18  ;;  %vm468_vm1 = vcmp.gt.s32.totalorder %v466_v44, %v2743_v36  ;;  %v486_v54 = vadd.s32 152, %v2740_v35  ;;  %v459_v55 = vsel %vm458_vm0, %v453_v48, 0.0  ;;  %v513_v14 = vld [vmem:[#allocation1 + $0xb0] sm:$0xff] }
  0x2a   : > { %v450_v57 = vmul.f32 %v449_v50, %v449_v50  ;;  %vm478_vm2 = vcmp.gt.s32.totalorder %v476_v49, %v2743_v36  ;;  %v496_v59 = vadd.s32 160, %v2740_v35  ;;  %v469_v60 = vsel %vm468_vm1, %v463_v53, 0.0 }
  0x2b   : > { %v381_v28 = vadd.f32 %v380_v19, %v371_v23  ;;  %v460_v62 = vmul.f32 %v459_v55, %v459_v55  ;;  %vm488_vm3 = vcmp.gt.s32.totalorder %v486_v54, %v2743_v36  ;;  %v506_v0 = vadd.s32 168, %v2740_v35  ;;  %v523_v19 = vld [vmem:[#allocation1 + $0xb8] sm:$0xff] }
  0x2c   : > { %v479_v1 = vsel %vm478_vm2, %v473_v58, 0.0  ;;  %v470_v3 = vmul.f32 %v469_v60, %v469_v60  ;;  %vm498_vm4 = vcmp.gt.s32.totalorder %v496_v59, %v2743_v36  ;;  %v516_v5 = vadd.s32 176, %v2740_v35 }
  0x2d   : > { %v391_v34 = vadd.f32 %v390_v24, %v381_v28  ;;  %v489_v6 = vsel %vm488_vm3, %v483_v63, 0.0  ;;  %v480_v8 = vmul.f32 %v479_v1, %v479_v1  ;;  %vm508_vm5 = vcmp.gt.s32.totalorder %v506_v0, %v2743_v36  ;;  %v533_v24 = vld [vmem:[#allocation1 + $0xc0] sm:$0xff] }
  0x2e   : > { %v526_v10 = vadd.s32 184, %v2740_v35  ;;  %v499_v11 = vsel %vm498_vm4, %v493_v4, 0.0  ;;  %v490_v13 = vmul.f32 %v489_v6, %v489_v6  ;;  %vm518_vm6 = vcmp.gt.s32.totalorder %v516_v5, %v2743_v36 }
  0x2f   : > { %v401_v41 = vadd.f32 %v400_v29, %v391_v34  ;;  %v536_v15 = vadd.s32 192, %v2740_v35  ;;  %v509_v16 = vsel %vm508_vm5, %v503_v9, 0.0  ;;  %v500_v18 = vmul.f32 %v499_v11, %v499_v11  ;;  %v543_v29 = vld [vmem:[#allocation1 + $0xc8] sm:$0xff] }
  0x30   : > { %vm528_vm7 = vcmp.gt.s32.totalorder %v526_v10, %v2743_v36  ;;  %v546_v20 = vadd.s32 200, %v2740_v35  ;;  %v519_v21 = vsel %vm518_vm6, %v513_v14, 0.0  ;;  %v510_v23 = vmul.f32 %v509_v16, %v509_v16  ;;  %v2813_v14 = vld [vmem:[%s632_s0] ss:$0 sm:$0xff] }
  0x31   : > { %v411_v46 = vadd.f32 %v410_v37, %v401_v41  ;;  %vm538_vm8 = vcmp.gt.s32.totalorder %v536_v15, %v2743_v36  ;;  %v556_v25 = vadd.s32 208, %v2740_v35  ;;  %v529_v26 = vsel %vm528_vm7, %v523_v19, 0.0  ;;  %v553_v37 = vld [vmem:[#allocation1 + $0xd0] sm:$0xff] }
  0x32   : > { %v520_v28 = vmul.f32 %v519_v21, %v519_v21  ;;  %vm548_vm9 = vcmp.gt.s32.totalorder %v546_v20, %v2743_v36  ;;  %v566_v30 = vadd.s32 216, %v2740_v35  ;;  %v539_v31 = vsel %vm538_vm8, %v533_v24, 0.0 }
  0x33   : > { %v421_v51 = vadd.f32 %v420_v42, %v411_v46  ;;  %v530_v34 = vmul.f32 %v529_v26, %v529_v26  ;;  %vm558_vm10 = vcmp.gt.s32.totalorder %v556_v25, %v2743_v36  ;;  %v576_v38 = vadd.s32 224, %v2740_v35  ;;  %v563_v42 = vld [vmem:[#allocation1 + $0xd8] sm:$0xff] }
  0x34   : > { %v549_v39 = vsel %vm548_vm9, %v543_v29, 0.0  ;;  %v540_v41 = vmul.f32 %v539_v31, %v539_v31  ;;  %vm568_vm11 = vcmp.gt.s32.totalorder %v566_v30, %v2743_v36  ;;  %v586_v43 = vadd.s32 232, %v2740_v35 }
  0x35   : > { %v431_v56 = vadd.f32 %v430_v47, %v421_v51  ;;  %v559_v44 = vsel %vm558_vm10, %v553_v37, 0.0  ;;  %v550_v46 = vmul.f32 %v549_v39, %v549_v39  ;;  %v573_v47 = vld [vmem:[#allocation1 + $0xe0] sm:$0xff]  ;;  %vm578_vm12 = vcmp.gt.s32.totalorder %v576_v38, %v2743_v36 }
  0x36   : > { %v596_v48 = vadd.s32 240, %v2740_v35  ;;  %v569_v49 = vsel %vm568_vm11, %v563_v42, 0.0  ;;  %v560_v51 = vmul.f32 %v559_v44, %v559_v44  ;;  %vm588_vm13 = vcmp.gt.s32.totalorder %v586_v43, %v2743_v36 }
  0x37   : > { %v441_v61 = vadd.f32 %v440_v52, %v431_v56  ;;  %v583_v52 = vld [vmem:[#allocation1 + $0xe8] sm:$0xff]  ;;  %v606_v53 = vadd.s32 248, %v2740_v35  ;;  %v579_v54 = vsel %vm578_vm12, %v573_v47, 0.0  ;;  %v570_v56 = vmul.f32 %v569_v49, %v569_v49 }
  0x38   : > { %vm598_vm14 = vcmp.gt.s32.totalorder %v596_v48, %v2743_v36  ;;  %v589_v58 = vsel %vm588_vm13, %v583_v52, 0.0  ;;  %v580_v60 = vmul.f32 %v579_v54, %v579_v54  ;;  %v634_v15 = vand.u32 2147483647, %v2813_v14  ;;  %v672_v54 = vld [vmem:[%s2837_s18] sm:$0xff] }
  0x39   : > { %v451_v2 = vadd.f32 %v450_v57, %v441_v61  ;;  %v593_v57 = vld [vmem:[#allocation1 + $0xf0] sm:$0xff]  ;;  %v603_v61 = vld [vmem:[#allocation1 + $0xf8] sm:$0xff]  ;;  %vm608_vm15 = vcmp.gt.s32.totalorder %v606_v53, %v2743_v36  ;;  %v590_v0 = vmul.f32 %v589_v58, %v589_v58  ;;  %vm659_vm5 = vcmp.lt.f32.partialorder %v2813_v14, 0.0  ;;  %v2410_v58 = vld [vmem:[%s2837_s18 + $0x20] sm:$0xff] }
  0x3a   : > { %v611_v1 = vsel %vm608_vm15, %v603_v61, 0.0  ;;  %v635_v20 = vmax.f32 %v634_v15, 0.0  ;;  %v2835_v35 = vmov %v2740_v35  ;;  %v2845_v52 = vand.u32 127, %v295_v33  ;;  %v2408_v53 = vld [vmem:[%s2837_s18 + $0x10] sm:$0xff] }
  0x3b   : > { %v461_v7 = vadd.f32 %v460_v62, %v451_v2  ;;  %v599_v62 = vsel %vm598_vm14, %v593_v57, 0.0  ;;  %v612_v5 = vmul.f32 %v611_v1, %v611_v1  ;;  %v708_v47 = vadd.s32 16, %v2835_v35  ;;  %v2411_v57 = vld [vmem:[%s2837_s18 + $0x28] sm:$0xff] }
  0x3c   : > { %v726_v48 = vadd.s32 24, %v2835_v35  ;;  %v690_v49 = vadd.s32 8, %v2835_v35  ;;  %vm675_vm7 = vcmp.gt.s32.totalorder %v2835_v35, %v2743_v36  ;;  %v798_v33 = vadd.s32 56, %v2835_v35 }
  0x3d   : > { %v471_v12 = vadd.f32 %v470_v3, %v461_v7  ;;  %v600_v3 = vmul.f32 %v599_v62, %v599_v62  ;;  %vm710_vm6 = vcmp.gt.s32.totalorder %v708_v47, %v2743_v36  ;;  %v676_v61 = vsel %vm675_vm7, %v672_v54, 0.0  ;;  %v2419_v54 = vld [vmem:[%s2837_s18 + $0x68] sm:$0xff] }
  0x3e   : > { %vm728_vm8 = vcmp.gt.s32.totalorder %v726_v48, %v2743_v36  ;;  %vm692_vm9 = vcmp.gt.s32.totalorder %v690_v49, %v2743_v36  ;;  %vm2864_vm12 = vcmp.eq.s32.totalorder %v2845_v52, %v2743_v36  ;;  %vm800_vm13 = vcmp.gt.s32.totalorder %v798_v33, %v2743_v36 }
  0x3f   : > { %v481_v17 = vadd.f32 %v480_v8, %v471_v12 }
  0x41   : > { %v491_v22 = vadd.f32 %v490_v13, %v481_v17 }
  0x43   : > { %v501_v27 = vadd.f32 %v500_v18, %v491_v22 }
  0x45   : > { %v511_v32 = vadd.f32 %v510_v23, %v501_v27 }
  0x47   : > { %v521_v40 = vadd.f32 %v520_v28, %v511_v32 }
  0x49   : > { %v531_v45 = vadd.f32 %v530_v34, %v521_v40 }
  0x4b   : > { %v541_v50 = vadd.f32 %v540_v41, %v531_v45 }
  0x4d   : > { %v551_v55 = vadd.f32 %v550_v46, %v541_v50  ;;  %v762_v50 = vadd.s32 40, %v2835_v35 }
  0x4f   : > { %v561_v59 = vadd.f32 %v560_v51, %v551_v55  ;;  %v744_v51 = vadd.s32 32, %v2835_v35  ;;  %v2409_v55 = vld [vmem:[%s2837_s18 + $0x18] sm:$0xff]  ;;  %vm764_vm10 = vcmp.gt.s32.totalorder %v762_v50, %v2743_v36 }
  0x50   : > { %v729_v62 = vsel %vm728_vm8, %v2409_v55, 0.0  ;;  %v765_v1 = vsel %vm764_vm10, %v2411_v57, 0.0  ;;  %v2418_v55 = vld [vmem:[%s2837_s18 + $0x60] sm:$0xff]  ;;  %v924_v57 = vadd.s32 112, %v2835_v35 }
  0x51   : > { %v571_v63 = vadd.f32 %v570_v56, %v561_v59  ;;  %v2407_v56 = vld [vmem:[%s2837_s18 + $0x8] sm:$0xff]  ;;  %vm746_vm11 = vcmp.gt.s32.totalorder %v744_v51, %v2743_v36  ;;  %v780_v59 = vadd.s32 48, %v2835_v35 }
  0x52   : > { %vm926_vm7 = vcmp.gt.s32.totalorder %v924_v57, %v2743_v36 }
  0x53   : > { %v581_v2 = vadd.f32 %v580_v60, %v571_v63  ;;  %v711_v60 = vsel %vm710_vm6, %v2408_v53, 0.0  ;;  %v693_v63 = vsel %vm692_vm9, %v2407_v56, 0.0  ;;  %vm782_vm14 = vcmp.gt.s32.totalorder %v780_v59, %v2743_v36 }
  0x54   : > { %v942_v56 = vadd.s32 120, %v2835_v35 }
  0x55   : > { %v591_v4 = vadd.f32 %v590_v0, %v581_v2  ;;  %v747_v2 = vsel %vm746_vm11, %v2410_v58, 0.0 }
  0x56   : > { %vm944_vm6 = vcmp.gt.s32.totalorder %v942_v56, %v2743_v36 }
  0x57   : > { %v601_v6 = vadd.f32 %v600_v3, %v591_v4  ;;  %v834_v4 = vadd.s32 72, %v2835_v35 }
  0x59   : > { %v613_v7 = vadd.f32 %v612_v5, %v601_v6  ;;  %v816_v5 = vadd.s32 64, %v2835_v35  ;;  %vm836_vm15 = vcmp.gt.s32.totalorder %v834_v4, %v2743_v36  ;;  %v2420_v4 = vld [vmem:[%s2837_s18 + $0x70] sm:$0xff] }
  0x5b   : > { %v614_v8 = vrot.slane %v613_v7, 4 }
  0x5d   : > { %v615_v9 = vadd.f32 %v614_v8, %v613_v7 }
  0x5f   : > { %v616_v10 = vrot.slane %v615_v9, 2 }
  0x61   : > { %v617_v11 = vadd.f32 %v616_v10, %v615_v9  ;;  %v2413_v10 = vld [vmem:[%s2837_s18 + $0x38] sm:$0xff] }
  0x63   : > { %v618_v12 = vrot.slane %v617_v11, 1 }
  0x65   : > { %v2809_v13 = vadd.f32 %v618_v12, %v617_v11  ;;  %v2412_v11 = vld [vmem:[%s2837_s18 + $0x30] sm:$0xff] }
  0x67   : > { %2603 = vrsqrt.f32 %v2809_v13  ;;  %vm622_vm0 = vcmp.eq.f32.partialorder %v2809_v13, inf  ;;  %v625_v17 = vand.u32 2147483648, %v2809_v13  ;;  %vm624_vm1 = vcmp.eq.f32.partialorder %v2809_v13, 0.0 }
  0x74   : > { %v2604_v16 = vpop.eup %2603 }
  0x75   : > { %v621_v18 = vmul.f32 %v2604_v16, %v2809_v13 }
  0x77   : > { %v623_v19 = vsel %vm622_vm0, %v2809_v13, %v621_v18  ;;  %vm818_vm0 = vcmp.gt.s32.totalorder %v816_v5, %v2743_v36  ;;  %v978_v5 = vadd.s32 136, %v2835_v35 }
  0x78   : > { %v626_v21 = vsel %vm624_vm1, %v625_v17, %v623_v19 }
  0x79   : > { %v636_v22 = vand.u32 2147483647, %v626_v21  ;;  %vm980_vm8 = vcmp.gt.s32.totalorder %v978_v5, %v2743_v36 }
  0x7b   : > { %v637_v23 = vmax.f32 %v635_v20, %v636_v22 }
  0x7d   : > { %2605 = vrcp.f32 %v637_v23  ;;  %vm649_vm4 = vcmp.eq.f32.partialorder %v637_v23, 0.0 }
  0x8a   : > { %v2606_v24 = vpop.eup %2605 }
  0x8b   : > { %v639_v25 = vmul.f32 %v2606_v24, %v634_v15  ;;  %v642_v26 = vmul.f32 0.0, %v2606_v24  ;;  %v646_v27 = vmul.f32 %v2606_v24, %v636_v22  ;;  %v801_v22 = vsel %vm800_vm13, %v2413_v10, 0.0  ;;  %v2415_v24 = vld [vmem:[%s2837_s18 + $0x48] sm:$0xff] }
  0x8d   : > { %v640_v28 = vmul.f32 %v639_v25, %v639_v25  ;;  %v643_v29 = vmul.f32 %v642_v26, %v642_v26  ;;  %v647_v30 = vmul.f32 %v646_v27, %v646_v27  ;;  %v2414_v25 = vld [vmem:[%s2837_s18 + $0x40] sm:$0xff]  ;;  %v870_v26 = vadd.s32 88, %v2835_v35 }
  0x8e   : > { %v852_v27 = vadd.s32 80, %v2835_v35 }
  0x8f   : > { %v644_v31 = vadd.f32 %v643_v29, %v640_v28 }
  0x91   : > { %v648_v32 = vadd.f32 %v647_v30, %v644_v31 }
  0x93   : > { %2607 = vrsqrt.f32 %v648_v32  ;;  %vm652_vm2 = vcmp.eq.f32.partialorder %v648_v32, inf  ;;  %v655_v37 = vand.u32 2147483648, %v648_v32  ;;  %vm654_vm3 = vcmp.eq.f32.partialorder %v648_v32, 0.0 }
  0xa0   : > { %v2608_v34 = vpop.eup %2607 }
  0xa1   : > { %v651_v38 = vmul.f32 %v2608_v34, %v648_v32 }
  0xa3   : > { %v653_v39 = vsel %vm652_vm2, %v648_v32, %v651_v38  ;;  %v819_v38 = vsel %vm818_vm0, %v2414_v25, 0.0  ;;  %vm872_vm2 = vcmp.gt.s32.totalorder %v870_v26, %v2743_v36 }
  0xa4   : > { %v656_v40 = vsel %vm654_vm3, %v655_v37, %v653_v39  ;;  %v837_v37 = vsel %vm836_vm15, %v2415_v24, 0.0  ;;  %v2417_v39 = vld [vmem:[%s2837_s18 + $0x58] sm:$0xff]  ;;  %vm854_vm3 = vcmp.gt.s32.totalorder %v852_v27, %v2743_v36 }
  0xa5   : > { %v657_v41 = vmul.f32 %v656_v40, %v637_v23  ;;  %v783_v23 = vsel %vm782_vm14, %v2412_v11, 0.0  ;;  %v2416_v40 = vld [vmem:[%s2837_s18 + $0x50] sm:$0xff]  ;;  %v873_v51 = vsel %vm872_vm2, %v2417_v39, 0.0 }
  0xa6   : > { %v855_v53 = vsel %vm854_vm3, %v2416_v40, 0.0 }
  0xa7   : > { %v658_v42 = vsel %vm649_vm4, 0.0, %v657_v41  ;;  %v906_v41 = vadd.s32 104, %v2835_v35 }
  0xa8   : > { %v660_v43 = vxor.u32 2147483648, %v658_v42 }
  0xa9   : > { %vm908_vm4 = vcmp.gt.s32.totalorder %v906_v41, %v2743_v36 }
  0xaa   : > { %v2824_v44 = vsel %vm659_vm5, %v658_v42, %v660_v43  ;;  %v888_v42 = vadd.s32 96, %v2835_v35 }
  0xab   : > { %v2830_v45 = vsel %vm624_vm1, %v2813_v14, %v2824_v44 }
  0xac   : > { %4170 = vst [vmem:[#allocation5_spill] sm:$0xff] %v2830_v45  ;;  %v667_v46 = vsub.f32 %v2813_v14, %v2830_v45  ;;  %vm890_vm5 = vcmp.gt.s32.totalorder %v888_v42, %v2743_v36 }
  0xae   : > { %2609 = vrcp.f32 %v667_v46 }
  0xaf   : > { %2611 = vrcp.f32 %v2824_v44 }
  0xbb   : > { %v2868_v3 = vpop.eup %2609 }
  0xbc   : > { %v713_v6 = vmul.f32 %v2868_v3, %v711_v60  ;;  %v678_v7 = vmul.f32 %v2868_v3, %v676_v61  ;;  %v731_v8 = vmul.f32 %v2868_v3, %v729_v62  ;;  %v695_v9 = vmul.f32 %v2868_v3, %v693_v63 }
  0xbd   : > { %v767_v12 = vmul.f32 %v2868_v3, %v765_v1  ;;  %v749_v15 = vmul.f32 %v2868_v3, %v747_v2  ;;  %v803_v32 = vmul.f32 %v2868_v3, %v801_v22  ;;  %v785_v34 = vmul.f32 %v2868_v3, %v783_v23  ;;  %v2421_v2 = vld [vmem:[%s2837_s18 + $0x78] sm:$0xff] }
  0xbe   : > { %v714_v16 = vsel %vm624_vm1, 0.0, %v713_v6  ;;  %v679_v17 = vsel %vm624_vm1, 0.0, %v678_v7  ;;  %v732_v18 = vsel %vm624_vm1, 0.0, %v731_v8  ;;  %v696_v19 = vsel %vm624_vm1, 0.0, %v695_v9 }
  0xbf   : > { %v719_v20 = vsel %vm2864_vm12, %v714_v16, 0.0  ;;  %v684_v21 = vsel %vm2864_vm12, %v679_v17, 0.0  ;;  %v737_v28 = vsel %vm2864_vm12, %v732_v18, 0.0  ;;  %v701_v29 = vsel %vm2864_vm12, %v696_v19, 0.0  ;;  %v2423_v17 = vld [vmem:[%s2837_s18 + $0x88] sm:$0xff]  ;;  %v2422_v18 = vld [vmem:[%s2837_s18 + $0x80] sm:$0xff] }
  0xc0   : > { %720 = vadd.xlane.f32.xlu1 %v719_v20  ;;  %685 = vadd.xlane.f32.xlu0 %v684_v21  ;;  %v768_v30 = vsel %vm624_vm1, 0.0, %v767_v12  ;;  %v750_v31 = vsel %vm624_vm1, 0.0, %v749_v15  ;;  %v804_v47 = vsel %vm624_vm1, 0.0, %v803_v32  ;;  %v786_v48 = vsel %vm624_vm1, 0.0, %v785_v34 }
  0xc1   : > { %v773_v43 = vsel %vm2864_vm12, %v768_v30, 0.0  ;;  %v755_v46 = vsel %vm2864_vm12, %v750_v31, 0.0  ;;  %v839_v49 = vmul.f32 %v2868_v3, %v837_v37  ;;  %v821_v50 = vmul.f32 %v2868_v3, %v819_v38  ;;  %v2424_v30 = vld [vmem:[%s2837_s18 + $0x90] sm:$0xff] }
  0xc2   : > { %v809_v58 = vsel %vm2864_vm12, %v804_v47, 0.0  ;;  %v791_v33 = vsel %vm2864_vm12, %v786_v48, 0.0  ;;  %v875_v61 = vmul.f32 %v2868_v3, %v873_v51  ;;  %v857_v62 = vmul.f32 %v2868_v3, %v855_v53  ;;  %v2426_v47 = vld [vmem:[%s2837_s18 + $0xa0] sm:$0xff] }
  0xc3   : > { %v840_v59 = vsel %vm624_vm1, 0.0, %v839_v49  ;;  %v822_v60 = vsel %vm624_vm1, 0.0, %v821_v50  ;;  %v909_v63 = vsel %vm908_vm4, %v2419_v54, 0.0  ;;  %v891_v1 = vsel %vm890_vm5, %v2418_v55, 0.0 }
  0xc4   : > { %738 = vadd.xlane.f32.xlu1 %v737_v28  ;;  %702 = vadd.xlane.f32.xlu0 %v701_v29  ;;  %v960_v6 = vadd.s32 128, %v2835_v35  ;;  %v845_v7 = vsel %vm2864_vm12, %v840_v59, 0.0  ;;  %v827_v8 = vsel %vm2864_vm12, %v822_v60, 0.0  ;;  %v876_v9 = vsel %vm624_vm1, 0.0, %v875_v61  ;;  %v2425_v29 = vld [vmem:[%s2837_s18 + $0x98] sm:$0xff]  ;;  %v2428_v59 = vld [vmem:[%s2837_s18 + $0xb0] sm:$0xff] }
  0xc5   : > { %v858_v10 = vsel %vm624_vm1, 0.0, %v857_v62  ;;  %v911_v11 = vmul.f32 %v2868_v3, %v909_v63  ;;  %v893_v12 = vmul.f32 %v2868_v3, %v891_v1  ;;  %v945_v15 = vsel %vm944_vm6, %v2421_v2, 0.0 }
  0xc6   : > { %v927_v16 = vsel %vm926_vm7, %v2420_v4, 0.0  ;;  %vm962_vm9 = vcmp.gt.s32.totalorder %v960_v6, %v2743_v36  ;;  %v1014_v19 = vadd.s32 152, %v2835_v35  ;;  %v996_v20 = vadd.s32 144, %v2835_v35 }
  0xc7   : > { %v881_v21 = vsel %vm2864_vm12, %v876_v9, 0.0  ;;  %v863_v22 = vsel %vm2864_vm12, %v858_v10, 0.0  ;;  %v912_v23 = vsel %vm624_vm1, 0.0, %v911_v11  ;;  %v894_v24 = vsel %vm624_vm1, 0.0, %v893_v12  ;;  %v2430_v9 = vld [vmem:[%s2837_s18 + $0xc0] sm:$0xff] }
  0xc8   : > { %774 = vadd.xlane.f32.xlu1 %v773_v43  ;;  %756 = vadd.xlane.f32.xlu0 %v755_v46  ;;  %v947_v25 = vmul.f32 %v2868_v3, %v945_v15  ;;  %v929_v26 = vmul.f32 %v2868_v3, %v927_v16  ;;  %v981_v27 = vsel %vm980_vm8, %v2423_v17, 0.0  ;;  %v963_v28 = vsel %vm962_vm9, %v2422_v18, 0.0  ;;  %v2427_v46 = vld [vmem:[%s2837_s18 + $0xa8] sm:$0xff] }
  0xc9   : > { %vm1016_vm10 = vcmp.gt.s32.totalorder %v1014_v19, %v2743_v36  ;;  %vm998_vm11 = vcmp.gt.s32.totalorder %v996_v20, %v2743_v36  ;;  %v1050_v31 = vadd.s32 168, %v2835_v35  ;;  %v1032_v32 = vadd.s32 160, %v2835_v35 }
  0xca   : > { %v917_v34 = vsel %vm2864_vm12, %v912_v23, 0.0  ;;  %v899_v37 = vsel %vm2864_vm12, %v894_v24, 0.0  ;;  %v948_v38 = vsel %vm624_vm1, 0.0, %v947_v25  ;;  %v930_v39 = vsel %vm624_vm1, 0.0, %v929_v26  ;;  %v2433_v23 = vld [vmem:[%s2837_s18 + $0xd8] sm:$0xff]  ;;  %v2432_v24 = vld [vmem:[%s2837_s18 + $0xd0] sm:$0xff] }
  0xcb   : > { %v983_v40 = vmul.f32 %v2868_v3, %v981_v27  ;;  %v965_v41 = vmul.f32 %v2868_v3, %v963_v28  ;;  %v1017_v42 = vsel %vm1016_vm10, %v2425_v29, 0.0  ;;  %v999_v43 = vsel %vm998_vm11, %v2424_v30, 0.0 }
  0xcc   : > { %810 = vadd.xlane.f32.xlu1 %v809_v58  ;;  %792 = vadd.xlane.f32.xlu0 %v791_v33  ;;  %vm1052_vm13 = vcmp.gt.s32.totalorder %v1050_v31, %v2743_v36  ;;  %vm1034_vm14 = vcmp.gt.s32.totalorder %v1032_v32, %v2743_v36  ;;  %v1086_v48 = vadd.s32 184, %v2835_v35  ;;  %v1068_v49 = vadd.s32 176, %v2835_v35  ;;  %v2429_v33 = vld [vmem:[%s2837_s18 + $0xb8] sm:$0xff] }
  0xcd   : > { %v953_v50 = vsel %vm2864_vm12, %v948_v38, 0.0  ;;  %v935_v51 = vsel %vm2864_vm12, %v930_v39, 0.0  ;;  %v984_v53 = vsel %vm624_vm1, 0.0, %v983_v40  ;;  %v966_v54 = vsel %vm624_vm1, 0.0, %v965_v41  ;;  %v2435_v38 = vld [vmem:[%s2837_s18 + $0xe8] sm:$0xff]  ;;  %v2434_v39 = vld [vmem:[%s2837_s18 + $0xe0] sm:$0xff] }
  0xce   : > { %v1019_v55 = vmul.f32 %v2868_v3, %v1017_v42  ;;  %v1001_v56 = vmul.f32 %v2868_v3, %v999_v43  ;;  %v1053_v57 = vsel %vm1052_vm13, %v2427_v46, 0.0  ;;  %v1035_v58 = vsel %vm1034_vm14, %v2426_v47, 0.0 }
  0xcf   : > { %vm1088_vm15 = vcmp.gt.s32.totalorder %v1086_v48, %v2743_v36  ;;  %vm1070_vm0 = vcmp.gt.s32.totalorder %v1068_v49, %v2743_v36  ;;  %v1122_v60 = vadd.s32 200, %v2835_v35  ;;  %v1104_v61 = vadd.s32 192, %v2835_v35  ;;  %v2437_v49 = vld [vmem:[%s2837_s18 + $0xf8] sm:$0xff] }
  0xd0   : > { %846 = vadd.xlane.f32.xlu1 %v845_v7  ;;  %828 = vadd.xlane.f32.xlu0 %v827_v8  ;;  %v989_v62 = vsel %vm2864_vm12, %v984_v53, 0.0  ;;  %v971_v63 = vsel %vm2864_vm12, %v966_v54, 0.0  ;;  %v1020_v1 = vsel %vm624_vm1, 0.0, %v1019_v55  ;;  %v1002_v2 = vsel %vm624_vm1, 0.0, %v1001_v56  ;;  %v2431_v8 = vld [vmem:[%s2837_s18 + $0xc8] sm:$0xff]  ;;  %v2436_v54 = vld [vmem:[%s2837_s18 + $0xf0] sm:$0xff] }
  0xd1   : > { %v1055_v4 = vmul.f32 %v2868_v3, %v1053_v57  ;;  %v1037_v5 = vmul.f32 %v2868_v3, %v1035_v58  ;;  %v1089_v6 = vsel %vm1088_vm15, %v2429_v33, 0.0  ;;  %v1071_v7 = vsel %vm1070_vm0, %v2428_v59, 0.0 }
  0xd2   : > { %vm1124_vm2 = vcmp.gt.s32.totalorder %v1122_v60, %v2743_v36  ;;  %vm1106_vm3 = vcmp.gt.s32.totalorder %v1104_v61, %v2743_v36  ;;  %v1158_v10 = vadd.s32 216, %v2835_v35  ;;  %v1140_v11 = vadd.s32 208, %v2835_v35 }
  0xd3   : > { %v1025_v12 = vsel %vm2864_vm12, %v1020_v1, 0.0  ;;  %v1007_v15 = vsel %vm2864_vm12, %v1002_v2, 0.0  ;;  %v1056_v16 = vsel %vm624_vm1, 0.0, %v1055_v4  ;;  %v1038_v17 = vsel %vm624_vm1, 0.0, %v1037_v5  ;;  %v2612_v2 = vpop.eup %2611 }
  0xd4   : > { %882 = vadd.xlane.f32.xlu1 %v881_v21  ;;  %864 = vadd.xlane.f32.xlu0 %v863_v22  ;;  %v1091_v18 = vmul.f32 %v2868_v3, %v1089_v6  ;;  %v1073_v19 = vmul.f32 %v2868_v3, %v1071_v7  ;;  %v1125_v20 = vsel %vm1124_vm2, %v2431_v8, 0.0  ;;  %v1107_v21 = vsel %vm1106_vm3, %v2430_v9, 0.0 }
  0xd5   : > { %v1230_v22 = vadd.s32 248, %v2835_v35  ;;  %vm1160_vm4 = vcmp.gt.s32.totalorder %v1158_v10, %v2743_v36  ;;  %vm1142_vm5 = vcmp.gt.s32.totalorder %v1140_v11, %v2743_v36  ;;  %v1194_v25 = vadd.s32 232, %v2835_v35 }
  0xd6   : > { %v1176_v26 = vadd.s32 224, %v2835_v35  ;;  %v1061_v27 = vsel %vm2864_vm12, %v1056_v16, 0.0  ;;  %v1043_v28 = vsel %vm2864_vm12, %v1038_v17, 0.0  ;;  %v1092_v29 = vsel %vm624_vm1, 0.0, %v1091_v18 }
  0xd7   : > { %v1074_v30 = vsel %vm624_vm1, 0.0, %v1073_v19  ;;  %v1127_v31 = vmul.f32 %v2868_v3, %v1125_v20  ;;  %v1109_v32 = vmul.f32 %v2868_v3, %v1107_v21  ;;  %vm1232_vm6 = vcmp.gt.s32.totalorder %v1230_v22, %v2743_v36 }
  0xd8   : > { %918 = vadd.xlane.f32.xlu1 %v917_v34  ;;  %900 = vadd.xlane.f32.xlu0 %v899_v37  ;;  %v1161_v34 = vsel %vm1160_vm4, %v2433_v23, 0.0  ;;  %v1143_v37 = vsel %vm1142_vm5, %v2432_v24, 0.0  ;;  %vm1233_vm7 = vcmp.lt.s32.totalorder %v1230_v22, 256  ;;  %vm1196_vm8 = vcmp.gt.s32.totalorder %v1194_v25, %v2743_v36 }
  0xd9   : > { %vm1178_vm9 = vcmp.gt.s32.totalorder %v1176_v26, %v2743_v36  ;;  %v1212_v40 = vadd.s32 240, %v2835_v35  ;;  %v1097_v41 = vsel %vm2864_vm12, %v1092_v29, 0.0  ;;  %v1079_v42 = vsel %vm2864_vm12, %v1074_v30, 0.0  ;;  %vm3080_vm10 = vmand %vm1232_vm6, %vm1233_vm7 }
  0xda   : > { %v1128_v43 = vsel %vm624_vm1, 0.0, %v1127_v31  ;;  %v1110_v46 = vsel %vm624_vm1, 0.0, %v1109_v32  ;;  %v1163_v47 = vmul.f32 %v2868_v3, %v1161_v34  ;;  %v1145_v48 = vmul.f32 %v2868_v3, %v1143_v37 }
  0xdb   : > { %v1179_v53 = vsel %vm1178_vm9, %v2434_v39, 0.0  ;;  %vm1214_vm11 = vcmp.gt.s32.totalorder %v1212_v40, %v2743_v36  ;;  %v1133_v55 = vsel %vm2864_vm12, %v1128_v43, 0.0  ;;  %v1115_v56 = vsel %vm2864_vm12, %v1110_v46, 0.0 }
  0xdc   : > { %954 = vadd.xlane.f32.xlu1 %v953_v50  ;;  %936 = vadd.xlane.f32.xlu0 %v935_v51  ;;  %v1197_v51 = vsel %vm1196_vm8, %v2435_v38, 0.0  ;;  %v1235_v57 = vsel %vm3080_vm10, %v2437_v49, 0.0  ;;  %v1164_v58 = vsel %vm624_vm1, 0.0, %v1163_v47  ;;  %v1146_v33 = vsel %vm624_vm1, 0.0, %v1145_v48 }
  0xdd   : > { %v1199_v59 = vmul.f32 %v2868_v3, %v1197_v51  ;;  %v1181_v60 = vmul.f32 %v2868_v3, %v1179_v53  ;;  %v1215_v61 = vsel %vm1214_vm11, %v2436_v54, 0.0  ;;  %v1237_v1 = vmul.f32 %v2868_v3, %v1235_v57  ;;  %v1261_v54 = vld [vmem:[#allocation2] ss:$0 sm:$0xff] }
  0xde   : > { %v1217_v6 = vmul.f32 %v2868_v3, %v1215_v61  ;;  %v662_v7 = vsub.f32 %v2824_v44, %v2813_v14  ;;  %v2622_v53 = vmov 1.0   ;;  %v1271_v57 = vld [vmem:[%s3127_s20] sm:$0xff]  ;;  %v1268_v35 = vmov %v2740_v35 }
  0xdf   : > { %v1200_v4 = vsel %vm624_vm1, 0.0, %v1199_v59  ;;  %v1182_v5 = vsel %vm624_vm1, 0.0, %v1181_v60  ;;  %v1238_v10 = vsel %vm624_vm1, 0.0, %v1237_v1  ;;  %v2443_v1 = vld [vmem:[%s3127_s20 + $0x18] sm:$0xff]  ;;  %vm3246_vm6 = vcmp.gt.s32.totalorder %v2845_v52, %v2743_v36 }
  0xe0   : > { %990 = vadd.xlane.f32.xlu1 %v989_v62  ;;  %972 = vadd.xlane.f32.xlu0 %v971_v63  ;;  %v1169_v62 = vsel %vm2864_vm12, %v1164_v58, 0.0  ;;  %v1151_v63 = vsel %vm2864_vm12, %v1146_v33, 0.0  ;;  %v1205_v8 = vsel %vm2864_vm12, %v1200_v4, 0.0  ;;  %v1187_v9 = vsel %vm2864_vm12, %v1182_v5, 0.0  ;;  %v2439_v58 = vld [vmem:[%s3127_s20 + $0x8] sm:$0xff]  ;;  %v2441_v33 = vld [vmem:[%s3127_s20 + $0x10] sm:$0xff] }
  0xe1   : > { %v1218_v11 = vsel %vm624_vm1, 0.0, %v1217_v6  ;;  %v1243_v14 = vsel %vm2864_vm12, %v1238_v10, 0.0  ;;  %v2445_v6 = vld [vmem:[%s3127_s20 + $0x20] sm:$0xff]  ;;  %v2447_v10 = vld [vmem:[%s3127_s20 + $0x28] sm:$0xff] }
  0xe2   : > { %v1223_v44 = vsel %vm2864_vm12, %v1218_v11, 0.0 }
  0xe4   : > { %1026 = vadd.xlane.f32.xlu1 %v1025_v12  ;;  %1008 = vadd.xlane.f32.xlu0 %v1007_v15  ;;  %v664_v12 = vmul.f32 %v2612_v2, %v662_v7 }
  0xe6   : > { %v666_v3 = vsel %vm624_vm1, 0.0, %v664_v12 }
  0xe7   : > { %v1254_v15 = vsel %vm2864_vm12, %v666_v3, 0.0 }
  0xe8   : > { %1062 = vadd.xlane.f32.xlu1 %v1061_v27  ;;  %1044 = vadd.xlane.f32.xlu0 %v1043_v28 }
  0xec   : > { %1098 = vadd.xlane.f32.xlu1 %v1097_v41  ;;  %1080 = vadd.xlane.f32.xlu0 %v1079_v42 }
  0xf0   : > { %1134 = vadd.xlane.f32.xlu1 %v1133_v55  ;;  %1116 = vadd.xlane.f32.xlu0 %v1115_v56 }
  0xf4   : > { %1170 = vadd.xlane.f32.xlu1 %v1169_v62  ;;  %1152 = vadd.xlane.f32.xlu0 %v1151_v63 }
  0xf8   : > { %1206 = vadd.xlane.f32.xlu1 %v1205_v8  ;;  %1188 = vadd.xlane.f32.xlu0 %v1187_v9 }
  0xfc   : > { %1244 = vadd.xlane.f32.xlu1 %v1243_v14  ;;  %1224 = vadd.xlane.f32.xlu0 %v1223_v44  ;;  %v2449_v44 = vld [vmem:[%s3127_s20 + $0x30] sm:$0xff] }
 0x100   : > { %1255 = vadd.xlane.f32.xlu0 %v1254_v15 }
 0x149   : > { %v721_v16 = vpop.xlane.xlu1 %720  ;;  %v686_v17 = vpop.xlane.xlu0 %685 }
 0x14a   : > { %723 = vst [vmem:[#allocation4 + $0x10] sm:$0xff] %v721_v16  ;;  %687 = vst [vmem:[#allocation4] sm:$0xff] %v686_v17  ;;  %v2451_v17 = vld [vmem:[%s3127_s20 + $0x38] sm:$0xff] }
 0x14d   : > { %v739_v18 = vpop.xlane.xlu1 %738  ;;  %v703_v19 = vpop.xlane.xlu0 %702 }
 0x14e   : > { %741 = vst [vmem:[#allocation4 + $0x18] sm:$0xff] %v739_v18  ;;  %705 = vst [vmem:[#allocation4 + $0x8] sm:$0xff] %v703_v19 }
 0x151   : > { %v775_v20 = vpop.xlane.xlu1 %774  ;;  %v757_v21 = vpop.xlane.xlu0 %756 }
 0x152   : > { %777 = vst [vmem:[#allocation4 + $0x28] sm:$0xff] %v775_v20  ;;  %759 = vst [vmem:[#allocation4 + $0x20] sm:$0xff] %v757_v21  ;;  %v2453_v21 = vld [vmem:[%s3127_s20 + $0x40] sm:$0xff] }
 0x155   : > { %v811_v13 = vpop.xlane.xlu1 %810  ;;  %v793_v22 = vpop.xlane.xlu0 %792 }
 0x156   : > { %813 = vst [vmem:[#allocation4 + $0x38] sm:$0xff] %v811_v13  ;;  %795 = vst [vmem:[#allocation4 + $0x30] sm:$0xff] %v793_v22 }
 0x159   : > { %v847_v23 = vpop.xlane.xlu1 %846  ;;  %v829_v24 = vpop.xlane.xlu0 %828 }
 0x15a   : > { %849 = vst [vmem:[#allocation4 + $0x48] sm:$0xff] %v847_v23  ;;  %831 = vst [vmem:[#allocation4 + $0x40] sm:$0xff] %v829_v24  ;;  %v2455_v24 = vld [vmem:[%s3127_s20 + $0x48] sm:$0xff] }
 0x15d   : > { %v883_v25 = vpop.xlane.xlu1 %882  ;;  %v865_v26 = vpop.xlane.xlu0 %864 }
 0x15e   : > { %885 = vst [vmem:[#allocation4 + $0x58] sm:$0xff] %v883_v25  ;;  %867 = vst [vmem:[#allocation4 + $0x50] sm:$0xff] %v865_v26 }
 0x161   : > { %v919_v27 = vpop.xlane.xlu1 %918  ;;  %v901_v28 = vpop.xlane.xlu0 %900 }
 0x162   : > { %921 = vst [vmem:[#allocation4 + $0x68] sm:$0xff] %v919_v27  ;;  %903 = vst [vmem:[#allocation4 + $0x60] sm:$0xff] %v901_v28  ;;  %v2457_v28 = vld [vmem:[%s3127_s20 + $0x50] sm:$0xff] }
 0x165   : > { %v955_v29 = vpop.xlane.xlu1 %954  ;;  %v937_v30 = vpop.xlane.xlu0 %936 }
 0x166   : > { %957 = vst [vmem:[#allocation4 + $0x78] sm:$0xff] %v955_v29  ;;  %939 = vst [vmem:[#allocation4 + $0x70] sm:$0xff] %v937_v30 }
 0x169   : > { %v991_v31 = vpop.xlane.xlu1 %990  ;;  %v973_v32 = vpop.xlane.xlu0 %972 }
 0x16a   : > { %993 = vst [vmem:[#allocation4 + $0x88] sm:$0xff] %v991_v31  ;;  %975 = vst [vmem:[#allocation4 + $0x80] sm:$0xff] %v973_v32  ;;  %v2459_v32 = vld [vmem:[%s3127_s20 + $0x58] sm:$0xff] }
 0x16d   : > { %v1027_v34 = vpop.xlane.xlu1 %1026  ;;  %v1009_v37 = vpop.xlane.xlu0 %1008 }
 0x16e   : > { %1029 = vst [vmem:[#allocation4 + $0x98] sm:$0xff] %v1027_v34  ;;  %1011 = vst [vmem:[#allocation4 + $0x90] sm:$0xff] %v1009_v37 }
 0x171   : > { %v1063_v38 = vpop.xlane.xlu1 %1062  ;;  %v1045_v39 = vpop.xlane.xlu0 %1044 }
 0x172   : > { %1065 = vst [vmem:[#allocation4 + $0xa8] sm:$0xff] %v1063_v38  ;;  %1047 = vst [vmem:[#allocation4 + $0xa0] sm:$0xff] %v1045_v39  ;;  %v2461_v39 = vld [vmem:[%s3127_s20 + $0x60] sm:$0xff] }
 0x175   : > { %v1099_v40 = vpop.xlane.xlu1 %1098  ;;  %v1081_v41 = vpop.xlane.xlu0 %1080 }
 0x176   : > { %1101 = vst [vmem:[#allocation4 + $0xb8] sm:$0xff] %v1099_v40  ;;  %1083 = vst [vmem:[#allocation4 + $0xb0] sm:$0xff] %v1081_v41 }
 0x179   : > { %v1135_v42 = vpop.xlane.xlu1 %1134  ;;  %v1117_v43 = vpop.xlane.xlu0 %1116 }
 0x17a   : > { %1137 = vst [vmem:[#allocation4 + $0xc8] sm:$0xff] %v1135_v42  ;;  %1119 = vst [vmem:[#allocation4 + $0xc0] sm:$0xff] %v1117_v43  ;;  %v2463_v43 = vld [vmem:[%s3127_s20 + $0x68] sm:$0xff] }
 0x17d   : > { %v1171_v46 = vpop.xlane.xlu1 %1170  ;;  %v1153_v47 = vpop.xlane.xlu0 %1152 }
 0x17e   : > { %1173 = vst [vmem:[#allocation4 + $0xd8] sm:$0xff] %v1171_v46  ;;  %1155 = vst [vmem:[#allocation4 + $0xd0] sm:$0xff] %v1153_v47 }
 0x181   : > { %v1207_v48 = vpop.xlane.xlu1 %1206  ;;  %v1189_v49 = vpop.xlane.xlu0 %1188 }
 0x182   : > { %1209 = vst [vmem:[#allocation4 + $0xe8] sm:$0xff] %v1207_v48  ;;  %1191 = vst [vmem:[#allocation4 + $0xe0] sm:$0xff] %v1189_v49  ;;  %v2465_v49 = vld [vmem:[%s3127_s20 + $0x70] sm:$0xff] }
 0x185   : > { %v1245_v50 = vpop.xlane.xlu1 %1244  ;;  %v1225_v51 = vpop.xlane.xlu0 %1224 }
 0x186   : > { %1247 = vst [vmem:[#allocation4 + $0xf8] sm:$0xff] %v1245_v50  ;;  %1227 = vst [vmem:[#allocation4 + $0xf0] sm:$0xff] %v1225_v51 }
 0x187   : > { %1249 = vst [vmem:[%s1248_s19] sm:$0x1] %v2622_v53 }
 0x189   : > { %v3129_v55 = vpop.xlane.xlu0 %1255 }
 0x18a   : > { %v1262_v56 = vsel %vm2864_vm12, %v3129_v55, %v1261_v54  ;;  %v2467_v54 = vld [vmem:[%s3127_s20 + $0x78] sm:$0xff] }
 0x18b   : > { %1263 = vst [vmem:[#allocation2] sm:$0x1] %v1262_v56 }
 0x18e   : > { %v1270_v59 = vld [vmem:[%s3134_s21] sm:$0xff]  ;;  %v2438_v60 = vld [vmem:[%s3134_s21 + $0x8] sm:$0xff]  ;;  %v2440_v61 = vld [vmem:[%s3134_s21 + $0x10] sm:$0xff] }
 0x18f   : > { %v1272_v62 = vmul.f32 %v1271_v57, %v1270_v59  ;;  %v1278_v63 = vmul.f32 %v2439_v58, %v2438_v60  ;;  %v2442_v2 = vld [vmem:[%s3134_s21 + $0x18] sm:$0xff]  ;;  %v1285_v5 = vmul.f32 %v2441_v33, %v2440_v61  ;;  %v2444_v7 = vld [vmem:[%s3134_s21 + $0x20] sm:$0xff]  ;;  %v2446_v11 = vld [vmem:[%s3134_s21 + $0x28] sm:$0xff] }
 0x190   : > { %v1292_v9 = vmul.f32 %v2443_v1, %v2442_v2  ;;  %v1299_v14 = vmul.f32 %v2445_v6, %v2444_v7  ;;  %v2448_v3 = vld [vmem:[%s3134_s21 + $0x30] sm:$0xff]  ;;  %v1306_v16 = vmul.f32 %v2447_v10, %v2446_v11  ;;  %v2450_v18 = vld [vmem:[%s3134_s21 + $0x38] sm:$0xff]  ;;  %v2452_v13 = vld [vmem:[%s3134_s21 + $0x40] sm:$0xff] }
 0x191   : > { %v1279_v4 = vadd.f32 %v1278_v63, %v1272_v62  ;;  %v1313_v20 = vmul.f32 %v2449_v44, %v2448_v3  ;;  %v1320_v23 = vmul.f32 %v2451_v17, %v2450_v18  ;;  %v2454_v25 = vld [vmem:[%s3134_s21 + $0x48] sm:$0xff]  ;;  %v1327_v27 = vmul.f32 %v2453_v21, %v2452_v13  ;;  %v2456_v29 = vld [vmem:[%s3134_s21 + $0x50] sm:$0xff]  ;;  %v2458_v34 = vld [vmem:[%s3134_s21 + $0x58] sm:$0xff] }
 0x192   : > { %v1334_v31 = vmul.f32 %v2455_v24, %v2454_v25  ;;  %v1341_v38 = vmul.f32 %v2457_v28, %v2456_v29  ;;  %v2460_v40 = vld [vmem:[%s3134_s21 + $0x60] sm:$0xff]  ;;  %v1348_v42 = vmul.f32 %v2459_v32, %v2458_v34  ;;  %v2462_v46 = vld [vmem:[%s3134_s21 + $0x68] sm:$0xff]  ;;  %v2464_v50 = vld [vmem:[%s3134_s21 + $0x70] sm:$0xff] }
 0x193   : > { %v1286_v8 = vadd.f32 %v1285_v5, %v1279_v4  ;;  %v1355_v48 = vmul.f32 %v2461_v39, %v2460_v40  ;;  %v1362_v53 = vmul.f32 %v2463_v43, %v2462_v46  ;;  %v2466_v56 = vld [vmem:[%s3134_s21 + $0x78] sm:$0xff]  ;;  %v1369_v58 = vmul.f32 %v2465_v49, %v2464_v50  ;;  %v2469_v33 = vld [vmem:[%s3127_s20 + $0x80] sm:$0xff]  ;;  %v2471_v62 = vld [vmem:[%s3127_s20 + $0x88] sm:$0xff] }
 0x194   : > { %v2468_v59 = vld [vmem:[%s3134_s21 + $0x80] sm:$0xff]  ;;  %v1376_v61 = vmul.f32 %v2467_v54, %v2466_v56  ;;  %v2470_v63 = vld [vmem:[%s3134_s21 + $0x88] sm:$0xff]  ;;  %v2473_v4 = vld [vmem:[%s3127_s20 + $0x90] sm:$0xff] }
 0x195   : > { %v1293_v12 = vadd.f32 %v1292_v9, %v1286_v8  ;;  %v1383_v2 = vmul.f32 %v2469_v33, %v2468_v59  ;;  %v2472_v5 = vld [vmem:[%s3134_s21 + $0x90] sm:$0xff]  ;;  %v1390_v7 = vmul.f32 %v2471_v62, %v2470_v63  ;;  %v2475_v8 = vld [vmem:[%s3127_s20 + $0x98] sm:$0xff] }
 0x196   : > { %v2474_v9 = vld [vmem:[%s3134_s21 + $0x98] sm:$0xff]  ;;  %v1397_v11 = vmul.f32 %v2473_v4, %v2472_v5  ;;  %v2496_v59 = vld [vmem:[%s3134_s21 + $0xf0] sm:$0xff] }
 0x197   : > { %v1300_v15 = vadd.f32 %v1299_v14, %v1293_v12  ;;  %v2476_v12 = vld [vmem:[%s3134_s21 + $0xa0] sm:$0xff]  ;;  %v1404_v44 = vmul.f32 %v2475_v8, %v2474_v9  ;;  %v2499_v33 = vld [vmem:[%s3127_s20 + $0xf8] sm:$0xff] }
 0x198   : > { %v2477_v14 = vld [vmem:[%s3127_s20 + $0xa0] sm:$0xff] }
 0x199   : > { %v1307_v19 = vadd.f32 %v1306_v16, %v1300_v15  ;;  %v2478_v15 = vld [vmem:[%s3134_s21 + $0xa8] sm:$0xff]  ;;  %v1411_v18 = vmul.f32 %v2477_v14, %v2476_v12 }
 0x19a   : > { %v2479_v16 = vld [vmem:[%s3127_s20 + $0xa8] sm:$0xff] }
 0x19b   : > { %v1314_v22 = vadd.f32 %v1313_v20, %v1307_v19  ;;  %v2480_v19 = vld [vmem:[%s3134_s21 + $0xb0] sm:$0xff]  ;;  %v1418_v13 = vmul.f32 %v2479_v16, %v2478_v15 }
 0x19c   : > { %v2481_v20 = vld [vmem:[%s3127_s20 + $0xb0] sm:$0xff] }
 0x19d   : > { %v1321_v26 = vadd.f32 %v1320_v23, %v1314_v22  ;;  %v2482_v22 = vld [vmem:[%s3134_s21 + $0xb8] sm:$0xff]  ;;  %v1425_v25 = vmul.f32 %v2481_v20, %v2480_v19 }
 0x19e   : > { %v2483_v23 = vld [vmem:[%s3127_s20 + $0xb8] sm:$0xff] }
 0x19f   : > { %v1328_v30 = vadd.f32 %v1327_v27, %v1321_v26  ;;  %v2484_v26 = vld [vmem:[%s3134_s21 + $0xc0] sm:$0xff]  ;;  %v1432_v29 = vmul.f32 %v2483_v23, %v2482_v22  ;;  %v4267_v23 = vld [vmem:[#allocation5_spill] sm:$0xff] }
 0x1a0   : > { %v2485_v27 = vld [vmem:[%s3127_s20 + $0xc0] sm:$0xff] }
 0x1a1   : > { %v1335_v37 = vadd.f32 %v1334_v31, %v1328_v30  ;;  %v2486_v30 = vld [vmem:[%s3134_s21 + $0xc8] sm:$0xff]  ;;  %v1439_v34 = vmul.f32 %v2485_v27, %v2484_v26 }
 0x1a2   : > { %v2487_v31 = vld [vmem:[%s3127_s20 + $0xc8] sm:$0xff] }
 0x1a3   : > { %v1342_v41 = vadd.f32 %v1341_v38, %v1335_v37  ;;  %v2488_v37 = vld [vmem:[%s3134_s21 + $0xd0] sm:$0xff]  ;;  %v1446_v40 = vmul.f32 %v2487_v31, %v2486_v30 }
 0x1a4   : > { %v2489_v38 = vld [vmem:[%s3127_s20 + $0xd0] sm:$0xff] }
 0x1a5   : > { %v1349_v47 = vadd.f32 %v1348_v42, %v1342_v41  ;;  %v2490_v41 = vld [vmem:[%s3134_s21 + $0xd8] sm:$0xff]  ;;  %v1453_v46 = vmul.f32 %v2489_v38, %v2488_v37 }
 0x1a6   : > { %v2491_v42 = vld [vmem:[%s3127_s20 + $0xd8] sm:$0xff] }
 0x1a7   : > { %v1356_v51 = vadd.f32 %v1355_v48, %v1349_v47  ;;  %v2492_v47 = vld [vmem:[%s3134_s21 + $0xe0] sm:$0xff]  ;;  %v1460_v50 = vmul.f32 %v2491_v42, %v2490_v41 }
 0x1a8   : > { %v2493_v48 = vld [vmem:[%s3127_s20 + $0xe0] sm:$0xff] }
 0x1a9   : > { %v1363_v57 = vadd.f32 %v1362_v53, %v1356_v51  ;;  %v2494_v51 = vld [vmem:[%s3134_s21 + $0xe8] sm:$0xff]  ;;  %v1467_v56 = vmul.f32 %v2493_v48, %v2492_v47 }
 0x1aa   : > { %v2495_v53 = vld [vmem:[%s3127_s20 + $0xe8] sm:$0xff] }
 0x1ab   : > { %v1370_v60 = vadd.f32 %v1369_v58, %v1363_v57  ;;  %v1483_v57 = vadd.s32 248, %v1268_v35  ;;  %v2498_v58 = vld [vmem:[%s3134_s21 + $0xf8] sm:$0xff]  ;;  %v1474_v62 = vmul.f32 %v2495_v53, %v2494_v51  ;;  %v3202_v35 = vmov %v2740_v35  ;;  %s3295_s21 = smov %s3134_s21 }
 0x1ac   : > { %v1488_v63 = vmul.f32 %v2499_v33, %v2498_v58  ;;  %v1544_v9 = vadd.s32 16, %v3202_v35  ;;  %vm1519_vm13 = vcmp.ge.s32.totalorder %v3202_v35, %v2743_v36  ;;  %v1607_v14 = vadd.s32 40, %v3202_v35  ;;  %v3357_v51 = vld [vmem:[%s3295_s21] sm:$0xff]  ;;  %v3360_v53 = vld [vmem:[%s3295_s21 + $0x8] sm:$0xff] }
 0x1ad   : > { %v1377_v1 = vadd.f32 %v1376_v61, %v1370_v60  ;;  %v2497_v60 = vld [vmem:[%s3127_s20 + $0xf0] sm:$0xff]  ;;  %vm1489_vm1 = vcmp.lt.s32.totalorder %v1483_v57, 256  ;;  %v3217_v15 = vadd.s32 64, %v3202_v35  ;;  %v3220_v16 = vadd.s32 72, %v3202_v35  ;;  %s3260_s20 = smov %s3127_s20  ;;  %vm3267_vm10 = vmand %vm2864_vm12, %vm1519_vm13 }
 0x1ae   : > { %v1490_v5 = vsel %vm1489_vm1, %v1488_v63, 0.0  ;;  %vm1561_vm15 = vcmp.ge.s32.totalorder %v1544_v9, %v2743_v36  ;;  %v3227_v19 = vadd.s32 88, %v3202_v35  ;;  %v3230_v20 = vadd.s32 96, %v3202_v35  ;;  %v2501_v41 = vld [vmem:[%s3260_s20 + $0x8] sm:$0xff]  ;;  %v2504_v42 = vld [vmem:[%s3260_s20 + $0x10] sm:$0xff]  ;;  %v3380_v33 = vld [vmem:[%s3260_s20 + $0x38] sm:$0xff]  ;;  %s2174_s22 = scalar_lea.vmem %s3260_s20, %s2619_s17 }
 0x1af   : > { %v1384_v6 = vadd.f32 %v1383_v2, %v1377_v1  ;;  %v1481_v2 = vmul.f32 %v2497_v60, %v2496_v59  ;;  %vm1624_vm3 = vcmp.ge.s32.totalorder %v1607_v14, %v2743_v36  ;;  %vm1687_vm7 = vcmp.ge.s32.totalorder %v3217_v15, %v2743_v36  ;;  %vm3283_vm1 = vmand %vm2864_vm12, %vm1561_vm15  ;;  %v3369_v57 = vld [vmem:[%s3260_s20 + $0x30] sm:$0xff]  ;;  %v3552_v52 = vld [vmem:[%s3260_s20 + $0x68] sm:$0xff]  ;;  %s293_s17 = sadd.s32 1, %s2619_s17  }
 0x1b0   : > { %vm1708_vm8 = vcmp.ge.s32.totalorder %v3220_v16, %v2743_v36  ;;  %v3310_v30 = vadd.s32 136, %v3202_v35  ;;  %v3313_v31 = vadd.s32 144, %v3202_v35  ;;  %v3324_v37 = vadd.s32 152, %v3202_v35  ;;  %v2503_v63 = vld [vmem:[%s3295_s21 + $0x10] sm:$0xff]  ;;  %v3567_v27 = vld [vmem:[%s3260_s20 + $0x78] sm:$0xff]  ;;  %p290_p0 = scmp.ge.s32.totalorder %s293_s17, 32  }
 0x1b1   : > { %v1391_v10 = vadd.f32 %v1390_v7, %v1384_v6  ;;  %v1523_v7 = vadd.s32 8, %v3202_v35  ;;  %v3327_v38 = vadd.s32 160, %v3202_v35  ;;  %v3345_v47 = vadd.s32 176, %v3202_v35 }
 0x1b2   : > { %v3348_v48 = vadd.s32 184, %v3202_v35  ;;  %v3385_v59 = vadd.s32 208, %v3202_v35  ;;  %v3388_v60 = vadd.s32 216, %v3202_v35  ;;  %v4199_v15 = vmov 0 }
 0x1b3   : > { %v1398_v3 = vadd.f32 %v1397_v11, %v1391_v10  ;;  %v1565_v10 = vadd.s32 24, %v3202_v35  ;;  %v1586_v11 = vadd.s32 32, %v3202_v35  ;;  %vm1540_vm14 = vcmp.ge.s32.totalorder %v1523_v7, %v2743_v36  ;;  %v3418_v7 = vld [vmem:[%s3295_s21 + $0x30] sm:$0xff] }
 0x1b4   : > { %vm3275_vm11 = vmand %vm2864_vm12, %vm1540_vm14 }
 0x1b5   : > { %v1405_v17 = vadd.f32 %v1404_v44, %v1398_v3  ;;  %v1628_v44 = vadd.s32 48, %v3202_v35  ;;  %v3213_v3 = vadd.s32 56, %v3202_v35  ;;  %vm1582_vm0 = vcmp.ge.s32.totalorder %v1565_v10, %v2743_v36 }
 0x1b6   : > { %vm1603_vm2 = vcmp.ge.s32.totalorder %v1586_v11, %v2743_v36  ;;  %vm3301_vm15 = vmand %vm2864_vm12, %vm1582_vm0 }
 0x1b7   : > { %v1412_v21 = vadd.f32 %v1411_v18, %v1405_v17  ;;  %v3223_v17 = vadd.s32 80, %v3202_v35  ;;  %vm1645_vm4 = vcmp.ge.s32.totalorder %v1628_v44, %v2743_v36  ;;  %vm1666_vm5 = vcmp.ge.s32.totalorder %v3213_v3, %v2743_v36  ;;  %vm3319_vm0 = vmand %vm2864_vm12, %vm1603_vm2 }
 0x1b8   : > { %vm3340_vm2 = vmand %vm2864_vm12, %vm1624_vm3 }
 0x1b9   : > { %v1419_v24 = vadd.f32 %v1418_v13, %v1412_v21  ;;  %v3235_v21 = vadd.s32 104, %v3202_v35  ;;  %v3238_v13 = vadd.s32 112, %v3202_v35  ;;  %vm1729_vm9 = vcmp.ge.s32.totalorder %v3223_v17, %v2743_v36  ;;  %vm3375_vm3 = vmand %vm2864_vm12, %vm1645_vm4  ;;  %v3770_v17 = vld [vmem:[%s3260_s20 + $0xb8] sm:$0xff] }
 0x1ba   : > { %vm3436_vm14 = vmand %vm2864_vm12, %vm1666_vm5 }
 0x1bb   : > { %v1426_v28 = vadd.f32 %v1425_v25, %v1419_v24  ;;  %v3257_v24 = vadd.s32 120, %v3202_v35  ;;  %vm3455_vm5 = vmand %vm2864_vm12, %vm1687_vm7 }
 0x1bc   : > { %vm3464_vm4 = vmand %vm2864_vm12, %vm1708_vm8  ;;  %vm4201_vm8 = vcmp.ge.s32.totalorder %v3227_v19, %v2743_v36  ;;  %v4205_v19 = vmov 0 }
 0x1bd   : > { %v1433_v32 = vadd.f32 %v1432_v29, %v1426_v28  ;;  %v3292_v28 = vadd.s32 128, %v3202_v35  ;;  %vm3473_vm13 = vmand %vm2864_vm12, %vm1729_vm9 }
 0x1be   : > { %v4200_v15 = vsel %vm3473_vm13, 4294967295, %v4199_v15  ;;  %vm3484_vm9 = vmand %vm2864_vm12, %vm4201_vm8  ;;  %vm4204_vm13 = vcmp.ge.s32.totalorder %v3230_v20, %v2743_v36 }
 0x1bf   : > { %v1440_v39 = vadd.f32 %v1439_v34, %v1433_v32  ;;  %vm3499_vm8 = vmand %vm2864_vm12, %vm4204_vm13  ;;  %vm4208_vm13 = vcmp.ge.s32.totalorder %v3235_v21, %v2743_v36 }
 0x1c0   : > { %v4206_v19 = vsel %vm3499_vm8, 4294967295, %v4205_v19  ;;  %vm3528_vm7 = vmand %vm2864_vm12, %vm4208_vm13  ;;  %vm4217_vm13 = vcmp.ge.s32.totalorder %v3292_v28, %v2743_v36 }
 0x1c1   : > { %v1447_v43 = vadd.f32 %v1446_v40, %v1440_v39  ;;  %v3330_v39 = vadd.s32 168, %v3202_v35  ;;  %v1509_v40 = vld [vmem:[%s3260_s20] sm:$0xff]  ;;  %4207 = vst [vmem:[#allocation8_spill] sm:$0xff] %v4206_v19  ;;  %v3518_v19 = vld [vmem:[%s3260_s20 + $0x50] sm:$0xff] }
 0x1c3   : > { %v1454_v49 = vadd.f32 %v1453_v46, %v1447_v43  ;;  %v2507_v43 = vld [vmem:[%s3260_s20 + $0x18] sm:$0xff] }
 0x1c5   : > { %v1461_v54 = vadd.f32 %v1460_v50, %v1454_v49  ;;  %v3351_v49 = vadd.s32 192, %v3202_v35  ;;  %v3354_v50 = vadd.s32 200, %v3202_v35 }
 0x1c7   : > { %v1468_v61 = vadd.f32 %v1467_v56, %v1461_v54  ;;  %v3363_v54 = vld [vmem:[%s3260_s20 + $0x20] sm:$0xff]  ;;  %v3366_v56 = vld [vmem:[%s3260_s20 + $0x28] sm:$0xff] }
 0x1c9   : > { %v1475_v1 = vadd.f32 %v1474_v62, %v1468_v61  ;;  %v3391_v61 = vadd.s32 224, %v3202_v35 }
 0x1cb   : > { %v1482_v4 = vadd.f32 %v1481_v2, %v1475_v1  ;;  %v2506_v1 = vld [vmem:[%s3295_s21 + $0x18] sm:$0xff]  ;;  %v3399_v2 = vld [vmem:[%s3295_s21 + $0x20] sm:$0xff] }
 0x1cd   : > { %v1491_v6 = vadd.f32 %v1490_v5, %v1482_v4  ;;  %v3406_v4 = vadd.s32 232, %v3202_v35  ;;  %v3409_v5 = vadd.s32 240, %v3202_v35 }
 0x1cf   : > { %v1492_v8 = vrot.slane %v1491_v6, 4  ;;  %4191 = vst [vmem:[#allocation6_spill] sm:$0xff] %v3409_v5  ;;  %v3515_v5 = vld [vmem:[%s3260_s20 + $0x48] sm:$0xff] }
 0x1d1   : > { %v1493_v12 = vadd.f32 %v1492_v8, %v1491_v6  ;;  %v3412_v6 = vadd.s32 248, %v3202_v35  ;;  %v3421_v8 = vld [vmem:[%s3295_s21 + $0x38] sm:$0xff] }
 0x1d3   : > { %v1494_v18 = vrot.slane %v1493_v12, 2  ;;  %4192 = vst [vmem:[#allocation7_spill] sm:$0xff] %v3412_v6 }
 0x1d5   : > { %v1495_v22 = vadd.f32 %v1494_v18, %v1493_v12 }
 0x1d7   : > { %v1496_v25 = vrot.slane %v1495_v22, 1 }
 0x1d9   : > { %v1497_v32 = vadd.f32 %v1496_v25, %v1495_v22  ;;  %v3752_v22 = vld [vmem:[%s3260_s20 + $0xa0] sm:$0xff] }
 0x1db   : > { %v3394_v62 = vmul.f32 %v1497_v32, %v3129_v55  ;;  %v3415_v55 = vld [vmem:[%s3295_s21 + $0x28] sm:$0xff] }
 0x1dd   : > { %v1508_v9 = vmul.f32 %v3357_v51, %v3394_v62  ;;  %v1528_v10 = vmul.f32 %v3360_v53, %v3394_v62  ;;  %v1549_v11 = vmul.f32 %v2503_v63, %v3394_v62  ;;  %v1570_v35 = vmul.f32 %v2506_v1, %v3394_v62 }
 0x1de   : > { %v1591_v14 = vmul.f32 %v3399_v2, %v3394_v62  ;;  %v1612_v44 = vmul.f32 %v3415_v55, %v3394_v62  ;;  %v1633_v18 = vmul.f32 %v3418_v7, %v3394_v62  ;;  %v1654_v3 = vmul.f32 %v3421_v8, %v3394_v62 }
 0x1df   : > { %v1512_v16 = vsub.f32 %v1509_v40, %v1508_v9  ;;  %v1533_v32 = vsub.f32 %v2501_v41, %v1528_v10  ;;  %v1554_v45 = vsub.f32 %v2504_v42, %v1549_v11  ;;  %v1575_v6 = vsub.f32 %v2507_v43, %v1570_v35 }
 0x1e0   : > { %v1596_v9 = vsub.f32 %v3363_v54, %v1591_v14  ;;  %v1617_v10 = vsub.f32 %v3366_v56, %v1612_v44  ;;  %v1638_v11 = vsub.f32 %v3369_v57, %v1633_v18  ;;  %v1659_v35 = vsub.f32 %v3380_v33, %v1654_v3  ;;  %v3512_v3 = vld [vmem:[%s3260_s20 + $0x40] sm:$0xff] }
 0x1e1   : > { %v1513_v14 = vsel %vm3246_vm6, %v1512_v16, %v1509_v40  ;;  %v1534_v44 = vsel %vm3246_vm6, %v1533_v32, %v2501_v41  ;;  %v1555_v18 = vsel %vm3246_vm6, %v1554_v45, %v2504_v42  ;;  %v1576_v20 = vsel %vm3246_vm6, %v1575_v6, %v2507_v43  ;;  %v3521_v40 = vld [vmem:[%s3260_s20 + $0x58] sm:$0xff]  ;;  %v3543_v6 = vld [vmem:[%s3295_s21 + $0x40] sm:$0xff]  ;;  %v3546_v16 = vld [vmem:[%s3295_s21 + $0x48] sm:$0xff] }
 0x1e2   : > { %v1521_v41 = vsel %vm3267_vm10, %v3357_v51, %v1513_v14  ;;  %v1542_v42 = vsel %vm3275_vm11, %v3360_v53, %v1534_v44  ;;  %v1563_v43 = vsel %vm3283_vm1, %v2503_v63, %v1555_v18  ;;  %v1584_v21 = vsel %vm3301_vm15, %v2506_v1, %v1576_v20  ;;  %v3549_v32 = vld [vmem:[%s3260_s20 + $0x60] sm:$0xff]  ;;  %v3555_v51 = vld [vmem:[%s3260_s20 + $0x70] sm:$0xff]  ;;  %v3591_v14 = vld [vmem:[%s3295_s21 + $0x58] sm:$0xff] }
 0x1e3   : > { %vm4211_vm10 = vcmp.ge.s32.totalorder %v3238_v13, %v2743_v36  ;;  %1522 = vst [vmem:[%s3260_s20] sm:$0xff] %v1521_v41  ;;  %2502 = vst [vmem:[%s3260_s20 + $0x8] sm:$0xff] %v1542_v42  ;;  %v1597_v13 = vsel %vm3246_vm6, %v1596_v9, %v3363_v54  ;;  %v1618_v29 = vsel %vm3246_vm6, %v1617_v10, %v3366_v56  ;;  %v3588_v1 = vld [vmem:[%s3295_s21 + $0x50] sm:$0xff]  ;;  %v3594_v54 = vld [vmem:[%s3295_s21 + $0x60] sm:$0xff]  ;;  %vm4232_vm1 = vnez %v4200_v15 }
 0x1e4   : > { %vm3562_vm11 = vmand %vm2864_vm12, %vm4211_vm10  ;;  %2505 = vst [vmem:[%s3260_s20 + $0x10] sm:$0xff] %v1563_v43  ;;  %v1639_v53 = vsel %vm3246_vm6, %v1638_v11, %v3369_v57  ;;  %v1660_v63 = vsel %vm3246_vm6, %v1659_v35, %v3380_v33  ;;  %v1605_v56 = vsel %vm3319_vm0, %v3399_v2, %v1597_v13  ;;  %v1626_v57 = vsel %vm3340_vm2, %v3415_v55, %v1618_v29  ;;  %v3611_v10 = vld [vmem:[%s3295_s21 + $0x68] sm:$0xff]  ;;  %v3614_v11 = vld [vmem:[%s3295_s21 + $0x70] sm:$0xff] }
 0x1e5   : > { %2508 = vst [vmem:[%s3260_s20 + $0x18] sm:$0xff] %v1584_v21  ;;  %v1647_v33 = vsel %vm3375_vm3, %v3418_v7, %v1639_v53  ;;  %v1668_v9 = vsel %vm3436_vm14, %v3421_v8, %v1660_v63  ;;  %v3617_v35 = vld [vmem:[%s3295_s21 + $0x78] sm:$0xff]  ;;  %2511 = vst [vmem:[%s3260_s20 + $0x20] sm:$0xff] %v1605_v56  ;;  %v1675_v34 = vmul.f32 %v3543_v6, %v3394_v62  ;;  %v3767_v15 = vld [vmem:[%s3260_s20 + $0xb0] sm:$0xff] }
 0x1e6   : > { %2514 = vst [vmem:[%s3260_s20 + $0x28] sm:$0xff] %v1626_v57  ;;  %2517 = vst [vmem:[%s3260_s20 + $0x30] sm:$0xff] %v1647_v33  ;;  %v1696_v46 = vmul.f32 %v3546_v16, %v3394_v62  ;;  %v1717_v58 = vmul.f32 %v3588_v1, %v3394_v62  ;;  %v1738_v2 = vmul.f32 %v3591_v14, %v3394_v62  ;;  %v3713_v57 = vld [vmem:[%s3260_s20 + $0x80] sm:$0xff]  ;;  %v3716_v33 = vld [vmem:[%s3260_s20 + $0x88] sm:$0xff] }
 0x1e7   : > { %2520 = vst [vmem:[%s3260_s20 + $0x38] sm:$0xff] %v1668_v9  ;;  %vm4214_vm14 = vcmp.ge.s32.totalorder %v3257_v24, %v2743_v36  ;;  %v1759_v7 = vmul.f32 %v3594_v54, %v3394_v62  ;;  %v1780_v8 = vmul.f32 %v3611_v10, %v3394_v62  ;;  %v1801_v12 = vmul.f32 %v3614_v11, %v3394_v62  ;;  %vm3657_vm10 = vmand %vm2864_vm12, %vm4217_vm13  ;;  %v3722_v9 = vld [vmem:[%s3260_s20 + $0x98] sm:$0xff]  ;;  %v2582_v18 = vld [vmem:[%s3260_s20 + $0xe0] sm:$0xff] }
 0x1e8   : > { %vm3638_vm2 = vmand %vm2864_vm12, %vm4214_vm14  ;;  %v1822_v24 = vmul.f32 %v3617_v35, %v3394_v62  ;;  %vm4220_vm14 = vcmp.ge.s32.totalorder %v3310_v30, %v2743_v36  ;;  %v1680_v28 = vsub.f32 %v3512_v3, %v1675_v34  ;;  %v1701_v20 = vsub.f32 %v3515_v5, %v1696_v46  ;;  %v3746_v46 = vld [vmem:[%s3295_s21 + $0x80] sm:$0xff]  ;;  %v2585_v42 = vld [vmem:[%s3260_s20 + $0xe8] sm:$0xff] }
 0x1e9   : > { %vm3666_vm3 = vmand %vm2864_vm12, %vm4220_vm14  ;;  %v1722_v41 = vsub.f32 %v3518_v19, %v1717_v58  ;;  %v1743_v30 = vsub.f32 %v3521_v40, %v1738_v2  ;;  %vm4223_vm13 = vcmp.ge.s32.totalorder %v3313_v31, %v2743_v36  ;;  %v1764_v43 = vsub.f32 %v3549_v32, %v1759_v7  ;;  %v3749_v58 = vld [vmem:[%s3295_s21 + $0x88] sm:$0xff]  ;;  %v2551_v2 = vld [vmem:[%s3295_s21 + $0x90] sm:$0xff] }
 0x1ea   : > { %vm3681_vm14 = vmand %vm2864_vm12, %vm4223_vm13  ;;  %v1785_v21 = vsub.f32 %v3552_v52, %v1780_v8  ;;  %v1806_v13 = vsub.f32 %v3555_v51, %v1801_v12  ;;  %v1827_v29 = vsub.f32 %v3567_v27, %v1822_v24  ;;  %vm4226_vm15 = vcmp.ge.s32.totalorder %v3324_v37, %v2743_v36  ;;  %v2554_v7 = vld [vmem:[%s3295_s21 + $0x98] sm:$0xff]  ;;  %v3793_v8 = vld [vmem:[%s3295_s21 + $0xa0] sm:$0xff] }
 0x1eb   : > { %vm3696_vm13 = vmand %vm2864_vm12, %vm4226_vm15  ;;  %v1681_v53 = vsel %vm3246_vm6, %v1680_v28, %v3512_v3  ;;  %v1702_v63 = vsel %vm3246_vm6, %v1701_v20, %v3515_v5  ;;  %v1723_v37 = vsel %vm3246_vm6, %v1722_v41, %v3518_v19  ;;  %v1744_v56 = vsel %vm3246_vm6, %v1743_v30, %v3521_v40  ;;  %v3719_v3 = vld [vmem:[%s3260_s20 + $0x90] sm:$0xff]  ;;  %v3810_v24 = vld [vmem:[%s3295_s21 + $0xa8] sm:$0xff] }
 0x1ec   : > { %vm4229_vm15 = vcmp.ge.s32.totalorder %v3327_v38, %v2743_v36  ;;  %v1689_v19 = vsel %vm3455_vm5, %v3543_v6, %v1681_v53  ;;  %v1710_v40 = vsel %vm3464_vm4, %v3546_v16, %v1702_v63  ;;  %v1731_v38 = vsel %vm4232_vm1, %v3588_v1, %v1723_v37  ;;  %v3755_v6 = vld [vmem:[%s3260_s20 + $0xa8] sm:$0xff]  ;;  %v3813_v28 = vld [vmem:[%s3295_s21 + $0xb0] sm:$0xff]  ;;  %v3816_v20 = vld [vmem:[%s3295_s21 + $0xb8] sm:$0xff] }
 0x1ed   : > { %vm3729_vm0 = vmand %vm2864_vm12, %vm4229_vm15  ;;  %v1752_v34 = vsel %vm3484_vm9, %v3591_v14, %v1744_v56  ;;  %vm4233_vm4 = vcmp.ge.s32.totalorder %v3330_v39, %v2743_v36  ;;  %vm2107_vm9 = vcmp.ge.s32.totalorder %v3391_v61, %v2743_v36  ;;  %2523 = vst [vmem:[%s3260_s20 + $0x40] sm:$0xff] %v1689_v19  ;;  %v1765_v39 = vsel %vm3246_vm6, %v1764_v43, %v3549_v32  ;;  %v4241_v55 = vld [vmem:[#allocation7_spill] sm:$0xff] }
 0x1ee   : > { %vm3762_vm5 = vmand %vm2864_vm12, %vm4233_vm4  ;;  %2526 = vst [vmem:[%s3260_s20 + $0x48] sm:$0xff] %v1710_v40  ;;  %v1786_v16 = vsel %vm3246_vm6, %v1785_v21, %v3552_v52  ;;  %v1807_v1 = vsel %vm3246_vm6, %v1806_v13, %v3555_v51  ;;  %v1828_v14 = vsel %vm3246_vm6, %v1827_v29, %v3567_v27  ;;  %vm2128_vm1 = vcmp.ge.s32.totalorder %v3406_v4, %v2743_v36 }
 0x1ef   : > { %2529 = vst [vmem:[%s3260_s20 + $0x50] sm:$0xff] %v1731_v38  ;;  %2532 = vst [vmem:[%s3260_s20 + $0x58] sm:$0xff] %v1752_v34  ;;  %v1773_v52 = vsel %vm3499_vm8, %v3594_v54, %v1765_v39  ;;  %v1794_v51 = vsel %vm3528_vm7, %v3611_v10, %v1786_v16  ;;  %v1815_v27 = vsel %vm3562_vm11, %v3614_v11, %v1807_v1  ;;  %v4237_v54 = vld [vmem:[#allocation6_spill] sm:$0xff]  ;;  %v2570_v16 = vld [vmem:[%s3260_s20 + $0xc0] sm:$0xff] }
 0x1f0   : > { %v1836_v12 = vsel %vm3638_vm2, %v3617_v35, %v1828_v14  ;;  %2535 = vst [vmem:[%s3260_s20 + $0x60] sm:$0xff] %v1773_v52  ;;  %2538 = vst [vmem:[%s3260_s20 + $0x68] sm:$0xff] %v1794_v51  ;;  %v1843_v45 = vmul.f32 %v3746_v46, %v3394_v62  ;;  %v1864_v26 = vmul.f32 %v3749_v58, %v3394_v62  ;;  %v2573_v1 = vld [vmem:[%s3260_s20 + $0xc8] sm:$0xff]  ;;  %v2569_v52 = vld [vmem:[%s3295_s21 + $0xc0] sm:$0xff] }
 0x1f1   : > { %2541 = vst [vmem:[%s3260_s20 + $0x70] sm:$0xff] %v1815_v27  ;;  %2544 = vst [vmem:[%s3260_s20 + $0x78] sm:$0xff] %v1836_v12  ;;  %v1885_v10 = vmul.f32 %v2551_v2, %v3394_v62  ;;  %v1906_v11 = vmul.f32 %v2554_v7, %v3394_v62  ;;  %vm4238_vm7 = vcmp.ge.s32.totalorder %v3345_v47, %v2743_v36  ;;  %v2572_v51 = vld [vmem:[%s3295_s21 + $0xc8] sm:$0xff]  ;;  %v2575_v27 = vld [vmem:[%s3295_s21 + $0xd0] sm:$0xff] }
 0x1f2   : > { %vm3835_vm11 = vmand %vm2864_vm12, %vm4238_vm7  ;;  %v1927_v41 = vmul.f32 %v3793_v8, %v3394_v62  ;;  %v1948_v30 = vmul.f32 %v3810_v24, %v3394_v62  ;;  %v1969_v43 = vmul.f32 %v3813_v28, %v3394_v62  ;;  %v1990_v47 = vmul.f32 %v3816_v20, %v3394_v62  ;;  %v2578_v12 = vld [vmem:[%s3295_s21 + $0xd8] sm:$0xff] }
 0x1f3   : > { %vm4242_vm15 = vcmp.ge.s32.totalorder %v3348_v48, %v2743_v36  ;;  %v1848_v13 = vsub.f32 %v3713_v57, %v1843_v45  ;;  %v1869_v29 = vsub.f32 %v3716_v33, %v1864_v26  ;;  %v1890_v53 = vsub.f32 %v3719_v3, %v1885_v10  ;;  %v2581_v45 = vld [vmem:[%s3295_s21 + $0xe0] sm:$0xff]  ;;  %v2587_v10 = vld [vmem:[%s3295_s21 + $0xf0] sm:$0xff] }
 0x1f4   : > { %vm3854_vm4 = vmand %vm2864_vm12, %vm4242_vm15  ;;  %v1911_v63 = vsub.f32 %v3722_v9, %v1906_v11  ;;  %vm4245_vm7 = vcmp.ge.s32.totalorder %v3351_v49, %v2743_v36  ;;  %v1932_v37 = vsub.f32 %v3752_v22, %v1927_v41  ;;  %v1953_v56 = vsub.f32 %v3755_v6, %v1948_v30  ;;  %v2590_v11 = vld [vmem:[%s3295_s21 + $0xf8] sm:$0xff] }
 0x1f5   : > { %vm3867_vm15 = vmand %vm2864_vm12, %vm4245_vm7  ;;  %v1974_v19 = vsub.f32 %v3767_v15, %v1969_v43  ;;  %v1995_v40 = vsub.f32 %v3770_v17, %v1990_v47  ;;  %vm4248_vm2 = vcmp.ge.s32.totalorder %v3354_v50, %v2743_v36  ;;  %v1849_v38 = vsel %vm3246_vm6, %v1848_v13, %v3713_v57  ;;  %v2576_v57 = vld [vmem:[%s3260_s20 + $0xd0] sm:$0xff] }
 0x1f6   : > { %vm3880_vm8 = vmand %vm2864_vm12, %vm4248_vm2  ;;  %v1870_v34 = vsel %vm3246_vm6, %v1869_v29, %v3716_v33  ;;  %v1891_v50 = vsel %vm3246_vm6, %v1890_v53, %v3719_v3  ;;  %v1912_v39 = vsel %vm3246_vm6, %v1911_v63, %v3722_v9  ;;  %vm4251_vm2 = vcmp.ge.s32.totalorder %v3385_v59, %v2743_v36  ;;  %v2579_v3 = vld [vmem:[%s3260_s20 + $0xd8] sm:$0xff] }
 0x1f7   : > { %vm3904_vm7 = vmand %vm2864_vm12, %vm4251_vm2  ;;  %v1857_v9 = vsel %vm3657_vm10, %v3746_v46, %v1849_v38  ;;  %v1878_v14 = vsel %vm3666_vm3, %v3749_v58, %v1870_v34  ;;  %v1899_v59 = vsel %vm3681_vm14, %v2551_v2, %v1891_v50  ;;  %v1920_v32 = vsel %vm3696_vm13, %v2554_v7, %v1912_v39  ;;  %v2588_v46 = vld [vmem:[%s3260_s20 + $0xf0] sm:$0xff]  ;;  %v2591_v58 = vld [vmem:[%s3260_s20 + $0xf8] sm:$0xff] }
 0x1f8   : > { %vm4254_vm2 = vcmp.ge.s32.totalorder %v3388_v60, %v2743_v36  ;;  %2547 = vst [vmem:[%s3260_s20 + $0x80] sm:$0xff] %v1857_v9  ;;  %2550 = vst [vmem:[%s3260_s20 + $0x88] sm:$0xff] %v1878_v14  ;;  %v1933_v60 = vsel %vm3246_vm6, %v1932_v37, %v3752_v22  ;;  %v1954_v31 = vsel %vm3246_vm6, %v1953_v56, %v3755_v6  ;;  %v2186_v14 = vld [vmem:[#allocation2] sm:$0x1] (%p290_p0) }
 0x1f9   : > { %vm3926_vm10 = vmand %vm2864_vm12, %vm4254_vm2  ;;  %2553 = vst [vmem:[%s3260_s20 + $0x90] sm:$0xff] %v1899_v59  ;;  %v1975_v2 = vsel %vm3246_vm6, %v1974_v19, %v3767_v15  ;;  %v1996_v7 = vsel %vm3246_vm6, %v1995_v40, %v3770_v17  ;;  %v1941_v22 = vsel %vm3729_vm0, %v3793_v8, %v1933_v60  ;;  %v1962_v6 = vsel %vm3762_vm5, %v3810_v24, %v1954_v31  ;;  %v2584_v17 = vld [vmem:[%s3295_s21 + $0xe8] sm:$0xff] }
 0x1fa   : > { %2556 = vst [vmem:[%s3260_s20 + $0x98] sm:$0xff] %v1920_v32  ;;  %v1983_v26 = vsel %vm3835_vm11, %v3813_v28, %v1975_v2  ;;  %v2004_v15 = vsel %vm3854_vm4, %v3816_v20, %v1996_v7  ;;  %2559 = vst [vmem:[%s3260_s20 + $0xa0] sm:$0xff] %v1941_v22  ;;  %v2011_v5 = vmul.f32 %v2569_v52, %v3394_v62 }
 0x1fb   : > { %2562 = vst [vmem:[%s3260_s20 + $0xa8] sm:$0xff] %v1962_v6  ;;  %2565 = vst [vmem:[%s3260_s20 + $0xb0] sm:$0xff] %v1983_v26  ;;  %v2032_v25 = vmul.f32 %v2572_v51, %v3394_v62  ;;  %v2053_v8 = vmul.f32 %v2575_v27, %v3394_v62  ;;  %v2074_v24 = vmul.f32 %v2578_v12, %v3394_v62 }
 0x1fc   : > { %2568 = vst [vmem:[%s3260_s20 + $0xb8] sm:$0xff] %v2004_v15  ;;  %vm3981_vm0 = vmand %vm2864_vm12, %vm2107_vm9  ;;  %v2095_v20 = vmul.f32 %v2581_v45, %v3394_v62  ;;  %v2116_v35 = vmul.f32 %v2584_v17, %v3394_v62  ;;  %v2137_v41 = vmul.f32 %v2587_v10, %v3394_v62  ;;  %v2158_v30 = vmul.f32 %v2590_v11, %v3394_v62 }
 0x1fd   : > { %vm3994_vm3 = vmand %vm2864_vm12, %vm2128_vm1  ;;  %v2016_v43 = vsub.f32 %v2570_v16, %v2011_v5  ;;  %v2037_v47 = vsub.f32 %v2573_v1, %v2032_v25  ;;  %v2058_v21 = vsub.f32 %v2576_v57, %v2053_v8  ;;  %v2079_v13 = vsub.f32 %v2579_v3, %v2074_v24  ;;  %2189 = vst [vmem:[#allocation3] sm:$0x1] (%p290_p0), %v2186_v14 }
 0x1fe   : > { %vm4261_vm14 = vcmp.ge.s32.totalorder %v4237_v54, %v2743_v36  ;;  %v2100_v4 = vsub.f32 %v2582_v18, %v2095_v20  ;;  %v2121_v29 = vsub.f32 %v2585_v42, %v2116_v35  ;;  %v2142_v53 = vsub.f32 %v2588_v46, %v2137_v41 }
 0x1ff   : > { %vm4003_vm13 = vmand %vm2864_vm12, %vm4261_vm14  ;;  %v2163_v63 = vsub.f32 %v2591_v58, %v2158_v30  ;;  %vm4264_vm5 = vcmp.ge.s32.totalorder %v4241_v55, %v2743_v36  ;;  %v2017_v37 = vsel %vm3246_vm6, %v2016_v43, %v2570_v16  ;;  %v2038_v56 = vsel %vm3246_vm6, %v2037_v47, %v2573_v1 }
 0x200   : > { %vm4012_vm9 = vmand %vm2864_vm12, %vm4264_vm5  ;;  %v2059_v19 = vsel %vm3246_vm6, %v2058_v21, %v2576_v57  ;;  %v2080_v40 = vsel %vm3246_vm6, %v2079_v13, %v2579_v3  ;;  %v2025_v36 = vsel %vm3867_vm15, %v2569_v52, %v2017_v37  ;;  %v2046_v55 = vsel %vm3880_vm8, %v2572_v51, %v2038_v56 }
 0x201   : > { %v2067_v38 = vsel %vm3904_vm7, %v2575_v27, %v2059_v19  ;;  %v2088_v34 = vsel %vm3926_vm10, %v2578_v12, %v2080_v40  ;;  %2571 = vst [vmem:[%s3260_s20 + $0xc0] sm:$0xff] %v2025_v36  ;;  %2574 = vst [vmem:[%s3260_s20 + $0xc8] sm:$0xff] %v2046_v55  ;;  %v2101_v48 = vsel %vm3246_vm6, %v2100_v4, %v2582_v18 }
 0x202   : > { %2577 = vst [vmem:[%s3260_s20 + $0xd0] sm:$0xff] %v2067_v38  ;;  %2580 = vst [vmem:[%s3260_s20 + $0xd8] sm:$0xff] %v2088_v34  ;;  %v2122_v49 = vsel %vm3246_vm6, %v2121_v29, %v2585_v42  ;;  %v2143_v50 = vsel %vm3246_vm6, %v2142_v53, %v2588_v46  ;;  %v2164_v39 = vsel %vm3246_vm6, %v2163_v63, %v2591_v58 }
 0x203   : > { %v2109_v16 = vsel %vm3981_vm0, %v2581_v45, %v2101_v48  ;;  %v2130_v1 = vsel %vm3994_vm3, %v2584_v17, %v2122_v49  ;;  %v2151_v57 = vsel %vm4003_vm13, %v2587_v10, %v2143_v50  ;;  %v2172_v33 = vsel %vm4012_vm9, %v2590_v11, %v2164_v39 }
 0x204   : > { %2583 = vst [vmem:[%s3260_s20 + $0xe0] sm:$0xff] %v2109_v16  ;;  %2586 = vst [vmem:[%s3260_s20 + $0xe8] sm:$0xff] %v2130_v1  ;;  %v2365_v30 = vld [vmem:[#allocation3] sm:$0x1] (%p290_p0) }
 0x205   : > { %2589 = vst [vmem:[%s3260_s20 + $0xf0] sm:$0xff] %v2151_v57  ;;  %2592 = vst [vmem:[%s3260_s20 + $0xf8] sm:$0xff] %v2172_v33 }
 0x206   :  { %2366 = vst [vmem:[%s4165_s2] sm:$0x1] (%p290_p0), %v2365_v30 }
 0x20a   :  { %292 = sbr.rel (!%p290_p0) target bundleno = 19 (0x13), region = 418 }
 0x20c   : > { %v2175_v3 = vld [vmem:[%s2174_s22] ss:$0 sm:$0xff] }
 0x20d   : > { %v2180_v9 = vsel %vm2864_vm12, %v4267_v23, %v2175_v3 }
 0x20e   : > { %2181 = vst [vmem:[%s2174_s22] sm:$0x1] %v2180_v9 }
 0x215   :  { %v2280_v59 = vld [vmem:[#allocation1] sm:$0xff]  ;;  %v2282_v32 = vld [vmem:[#allocation1 + $0x8] sm:$0xff]  ;;  %v2284_v0 = vld [vmem:[#allocation1 + $0x10] sm:$0xff] }
 0x216   :  { %2281 = vst [vmem:[%s4164_s1] sm:$0xff] %v2280_v59  ;;  %2283 = vst [vmem:[%s4164_s1 + $0x8] sm:$0xff] %v2282_v32  ;;  %v2286_v52 = vld [vmem:[#allocation1 + $0x18] sm:$0xff]  ;;  %v2288_v51 = vld [vmem:[#allocation1 + $0x20] sm:$0xff] }
 0x217   :  { %2285 = vst [vmem:[%s4164_s1 + $0x10] sm:$0xff] %v2284_v0  ;;  %2287 = vst [vmem:[%s4164_s1 + $0x18] sm:$0xff] %v2286_v52  ;;  %v2290_v44 = vld [vmem:[#allocation1 + $0x28] sm:$0xff]  ;;  %v2292_v18 = vld [vmem:[#allocation1 + $0x30] sm:$0xff] }
 0x218   :  { %2289 = vst [vmem:[%s4164_s1 + $0x20] sm:$0xff] %v2288_v51  ;;  %v2294_v42 = vld [vmem:[#allocation1 + $0x38] sm:$0xff]  ;;  %2291 = vst [vmem:[%s4164_s1 + $0x28] sm:$0xff] %v2290_v44  ;;  %v2296_v46 = vld [vmem:[#allocation1 + $0x40] sm:$0xff] }
 0x219   :  { %2293 = vst [vmem:[%s4164_s1 + $0x30] sm:$0xff] %v2292_v18  ;;  %2295 = vst [vmem:[%s4164_s1 + $0x38] sm:$0xff] %v2294_v42  ;;  %v2298_v58 = vld [vmem:[#allocation1 + $0x48] sm:$0xff]  ;;  %v2300_v60 = vld [vmem:[#allocation1 + $0x50] sm:$0xff] }
 0x21a   :  { %2297 = vst [vmem:[%s4164_s1 + $0x40] sm:$0xff] %v2296_v46  ;;  %2299 = vst [vmem:[%s4164_s1 + $0x48] sm:$0xff] %v2298_v58  ;;  %v2302_v31 = vld [vmem:[#allocation1 + $0x58] sm:$0xff]  ;;  %v2304_v2 = vld [vmem:[#allocation1 + $0x60] sm:$0xff] }
 0x21b   :  { %2301 = vst [vmem:[%s4164_s1 + $0x50] sm:$0xff] %v2300_v60  ;;  %v2306_v7 = vld [vmem:[#allocation1 + $0x68] sm:$0xff]  ;;  %2303 = vst [vmem:[%s4164_s1 + $0x58] sm:$0xff] %v2302_v31  ;;  %v2308_v27 = vld [vmem:[#allocation1 + $0x70] sm:$0xff] }
 0x21c   :  { %2305 = vst [vmem:[%s4164_s1 + $0x60] sm:$0xff] %v2304_v2  ;;  %2307 = vst [vmem:[%s4164_s1 + $0x68] sm:$0xff] %v2306_v7  ;;  %v2310_v12 = vld [vmem:[#allocation1 + $0x78] sm:$0xff]  ;;  %v2312_v45 = vld [vmem:[#allocation1 + $0x80] sm:$0xff] }
 0x21d   :  { %2309 = vst [vmem:[%s4164_s1 + $0x70] sm:$0xff] %v2308_v27  ;;  %2311 = vst [vmem:[%s4164_s1 + $0x78] sm:$0xff] %v2310_v12  ;;  %v2314_v22 = vld [vmem:[#allocation1 + $0x88] sm:$0xff]  ;;  %v2316_v6 = vld [vmem:[#allocation1 + $0x90] sm:$0xff] }
 0x21e   :  { %2313 = vst [vmem:[%s4164_s1 + $0x80] sm:$0xff] %v2312_v45  ;;  %v2318_v26 = vld [vmem:[#allocation1 + $0x98] sm:$0xff]  ;;  %2315 = vst [vmem:[%s4164_s1 + $0x88] sm:$0xff] %v2314_v22  ;;  %v2320_v15 = vld [vmem:[#allocation1 + $0xa0] sm:$0xff] }
 0x21f   :  { %2317 = vst [vmem:[%s4164_s1 + $0x90] sm:$0xff] %v2316_v6  ;;  %2319 = vst [vmem:[%s4164_s1 + $0x98] sm:$0xff] %v2318_v26  ;;  %v2322_v17 = vld [vmem:[#allocation1 + $0xa8] sm:$0xff]  ;;  %v2324_v10 = vld [vmem:[#allocation1 + $0xb0] sm:$0xff] }
 0x220   :  { %2321 = vst [vmem:[%s4164_s1 + $0xa0] sm:$0xff] %v2320_v15  ;;  %2323 = vst [vmem:[%s4164_s1 + $0xa8] sm:$0xff] %v2322_v17  ;;  %v2326_v11 = vld [vmem:[#allocation1 + $0xb8] sm:$0xff]  ;;  %v2328_v5 = vld [vmem:[#allocation1 + $0xc0] sm:$0xff] }
 0x221   :  { %2325 = vst [vmem:[%s4164_s1 + $0xb0] sm:$0xff] %v2324_v10  ;;  %v2330_v25 = vld [vmem:[#allocation1 + $0xc8] sm:$0xff]  ;;  %2327 = vst [vmem:[%s4164_s1 + $0xb8] sm:$0xff] %v2326_v11  ;;  %v2332_v8 = vld [vmem:[#allocation1 + $0xd0] sm:$0xff] }
 0x222   :  { %2329 = vst [vmem:[%s4164_s1 + $0xc0] sm:$0xff] %v2328_v5  ;;  %2331 = vst [vmem:[%s4164_s1 + $0xc8] sm:$0xff] %v2330_v25  ;;  %v2334_v24 = vld [vmem:[#allocation1 + $0xd8] sm:$0xff]  ;;  %v2336_v28 = vld [vmem:[#allocation1 + $0xe0] sm:$0xff] }
 0x223   :  { %2333 = vst [vmem:[%s4164_s1 + $0xd0] sm:$0xff] %v2332_v8  ;;  %2335 = vst [vmem:[%s4164_s1 + $0xd8] sm:$0xff] %v2334_v24  ;;  %v2338_v20 = vld [vmem:[#allocation1 + $0xe8] sm:$0xff]  ;;  %v2340_v35 = vld [vmem:[#allocation1 + $0xf0] sm:$0xff] }
 0x224   :  { %2337 = vst [vmem:[%s4164_s1 + $0xe0] sm:$0xff] %v2336_v28  ;;  %v2342_v41 = vld [vmem:[#allocation1 + $0xf8] sm:$0xff]  ;;  %2339 = vst [vmem:[%s4164_s1 + $0xe8] sm:$0xff] %v2338_v20 }
 0x225   :  { %2341 = vst [vmem:[%s4164_s1 + $0xf0] sm:$0xff] %v2340_v35  ;;  %2343 = vst [vmem:[%s4164_s1 + $0xf8] sm:$0xff] %v2342_v41 }

// kernel: custom-call.60
= control target key start
LH: loop header
LB: loop body
LE: loop exit
PB: predicated region body
PF: predicated region fallthrough
CT: control target
= control target key end

     0   :  { %s1102_s0 = inlined_call_operand.vmem [shape: f32[32,32], index: 0, kind: input, shape index: {}]   ;;  %s1103_s1 = inlined_call_operand.vmem [shape: f32[32,32], index: 1, kind: output, shape index: {}]  }
   0x1   :  { %s15_s8 = scalar_lea.vmem %s1102_s0, 24 }
   0x2   :  { %p721_p0 = scmp.gt.s32.totalorder %s1102_s0, %s15_s8 }
   0x3   :  { %s923_s11 = smov (!%p721_p0), [#allocation0]   ;;  %s927_s14 = smov (!%p721_p0), %s1102_s0  }
   0x4   :  { %722 = sbr.rel (%p721_p0) target bundleno = 17 (0x11), region = 108 }
   0x9 LB: > { %v49_v0 = vld [vmem:[%s929_s14] sm:$0xff]  ;;  %s51_s14 = scalar_lea.vmem %s929_s14, 8   ;;  %s929_s14 = sphi %s927_s14, %s51_s14   ;;  %s925_s11 = sphi %s923_s11, %s52_s11  }
   0xa   : > { %50 = vst [vmem:[%s925_s11] sm:$0xff] %v49_v0  ;;  %s52_s11 = scalar_lea.vmem %s925_s11, 8   ;;  %p46_p1 = scmp.gt.s32.totalorder %s51_s14, %s15_s8 }
   0xc   :  { %48 = sbr.rel (!%p46_p1) target bundleno = 9 (0x9), region = 114 }
  0x11 PF:  { %v65_v1 = vlaneseq  ;;  %v99_v2 = vld [vmem:[#allocation0 + $0x1] ss:$0 sm:$0xff]  ;;  %vm100_vm0 = vcmask 261120   ;;  %v110_v10 = vld [vmem:[#allocation0 + $0x2] ss:$0 sm:$0xff]  ;;  %v939_v41 = vmov 0.0   ;;  %s931_s16 = smov %s1103_s1  }
  0x12   :  { %v71_v5 = vld [vmem:[#allocation0] sm:$0xff]  ;;  %v101_v6 = vsel %vm100_vm0, %v99_v2, 0.0  ;;  %v112_v11 = vsel %vm100_vm0, %v110_v10, 0.0  ;;  %v176_v37 = vld [vmem:[#allocation0 + $0x8] ss:$0 sm:$0xff]  ;;  %s935_s17 = smov [#allocation1]  }
  0x13   :  { %v959_v3 = vand.u32 127, %v65_v1  ;;  %v961_v4 = vshrl.u32 %v65_v1, 7  ;;  %v121_v15 = vld [vmem:[#allocation0 + $0x3] ss:$0 sm:$0xff]  ;;  %v132_v20 = vld [vmem:[#allocation0 + $0x4] ss:$0 sm:$0xff] }
  0x14   :  { %v123_v16 = vsel %vm100_vm0, %v121_v15, 0.0  ;;  %v134_v21 = vsel %vm100_vm0, %v132_v20, 0.0  ;;  %v143_v25 = vld [vmem:[#allocation0 + $0x5] ss:$0 sm:$0xff]  ;;  %v154_v30 = vld [vmem:[#allocation0 + $0x6] ss:$0 sm:$0xff] }
  0x15   :  { %vm70_vm1 = vcmp.eq.s32.totalorder %v959_v3, %v961_v4  ;;  %vm74_vm2 = vcmp.eq.s32.totalorder %v959_v3, 0  ;;  %vm104_vm3 = vcmp.eq.s32.totalorder %v959_v3, 1  ;;  %vm115_vm4 = vcmp.eq.s32.totalorder %v959_v3, 2  ;;  %v165_v36 = vld [vmem:[#allocation0 + $0x7] ss:$0 sm:$0xff] }
  0x16   :  { %v75_v7 = vsel %vm74_vm2, %v71_v5, 1.0  ;;  %vm126_vm5 = vcmp.eq.s32.totalorder %v959_v3, 3  ;;  %vm137_vm6 = vcmp.eq.s32.totalorder %v959_v3, 4  ;;  %v145_v26 = vsel %vm100_vm0, %v143_v25, 0.0  ;;  %v191_v47 = vld [vmem:[#allocation0 + $0x9] ss:$0 sm:$0xff] }
  0x17   :  { %v76_v8 = vsel %vm70_vm1, %v75_v7, 0.0  ;;  %vm148_vm7 = vcmp.eq.s32.totalorder %v959_v3, 5  ;;  %v156_v31 = vsel %vm100_vm0, %v154_v30, 0.0  ;;  %v81_v35 = vadd.s32 8, %v961_v4  ;;  %v206_v55 = vld [vmem:[#allocation0 + $0xa] ss:$0 sm:$0xff] }
  0x18   :  { %v105_v9 = vmul.f32 %v101_v6, %v76_v8  ;;  %vm159_vm8 = vcmp.eq.s32.totalorder %v959_v3, 6  ;;  %v167_v38 = vsel %vm100_vm0, %v165_v36, 0.0  ;;  %v178_v43 = vsel %vm100_vm0, %v176_v37, 0.0  ;;  %v221_v63 = vld [vmem:[#allocation0 + $0xb] ss:$0 sm:$0xff] }
  0x19   :  { %vm82_vm9 = vcmp.eq.s32.totalorder %v959_v3, %v81_v35  ;;  %vm170_vm10 = vcmp.eq.s32.totalorder %v959_v3, 7  ;;  %vm181_vm11 = vcmp.eq.s32.totalorder %v959_v3, 8  ;;  %v193_v50 = vsel %vm100_vm0, %v191_v47, 0.0  ;;  %v266_v25 = vld [vmem:[#allocation0 + $0xe] ss:$0 sm:$0xff] }
  0x1a   :  { %106 = vadd.xlane.f32.xlu0 %v105_v9  ;;  %v83_v42 = vsel %vm82_vm9, 1.0, %v939_v41  ;;  %vm196_vm12 = vcmp.eq.s32.totalorder %v959_v3, 9  ;;  %v208_v58 = vsel %vm100_vm0, %v206_v55, 0.0  ;;  %vm211_vm13 = vcmp.eq.s32.totalorder %v959_v3, 10  ;;  %v236_v9 = vld [vmem:[#allocation0 + $0xc] ss:$0 sm:$0xff] }
  0x1b   :  { %v186_v45 = vmul.f32 %v178_v43, %v83_v42  ;;  %v223_v2 = vsel %vm100_vm0, %v221_v63, 0.0  ;;  %vm226_vm14 = vcmp.eq.s32.totalorder %v959_v3, 11  ;;  %vm241_vm15 = vcmp.eq.s32.totalorder %v959_v3, 12 }
  0x1c   :  { %vm256_vm1 = vcmp.eq.s32.totalorder %v959_v3, 13  ;;  %vm271_vm2 = vcmp.eq.s32.totalorder %v959_v3, 14  ;;  %vm377_vm9 = vcmp.eq.s32.totalorder %v959_v3, 20 }
  0xa3   :  { %v107_v12 = vpop.xlane.xlu0 %106 }
  0xa4   :  { %v108_v13 = vsel %vm104_vm3, %v107_v12, %v76_v8  ;;  %v238_v12 = vsel %vm100_vm0, %v236_v9, 0.0  ;;  %vm286_vm3 = vcmp.eq.s32.totalorder %v959_v3, 15 }
  0xa5   :  { %v116_v14 = vmul.f32 %v112_v11, %v108_v13 }
  0xa7   :  { %117 = vadd.xlane.f32.xlu0 %v116_v14 }
 0x130   :  { %v118_v17 = vpop.xlane.xlu0 %117 }
 0x131   :  { %v119_v18 = vsel %vm115_vm4, %v118_v17, %v108_v13  ;;  %v251_v17 = vld [vmem:[#allocation0 + $0xd] ss:$0 sm:$0xff] }
 0x132   :  { %v127_v19 = vmul.f32 %v123_v16, %v119_v18  ;;  %v253_v20 = vsel %vm100_vm0, %v251_v17, 0.0 }
 0x134   :  { %128 = vadd.xlane.f32.xlu1 %v127_v19 }
 0x1bd   :  { %v129_v22 = vpop.xlane.xlu1 %128 }
 0x1be   :  { %v130_v23 = vsel %vm126_vm5, %v129_v22, %v119_v18  ;;  %vm301_vm5 = vcmp.eq.s32.totalorder %v959_v3, 16 }
 0x1bf   :  { %v138_v24 = vmul.f32 %v134_v21, %v130_v23 }
 0x1c1   :  { %139 = vadd.xlane.f32.xlu1 %v138_v24 }
 0x24a   :  { %v140_v27 = vpop.xlane.xlu1 %139 }
 0x24b   :  { %v141_v28 = vsel %vm137_vm6, %v140_v27, %v130_v23  ;;  %vm320_vm6 = vcmp.eq.s32.totalorder %v959_v3, 17 }
 0x24c   :  { %v149_v29 = vmul.f32 %v145_v26, %v141_v28 }
 0x24e   :  { %150 = vadd.xlane.f32.xlu0 %v149_v29 }
 0x2d7   :  { %v151_v32 = vpop.xlane.xlu0 %150 }
 0x2d8   :  { %v152_v33 = vsel %vm148_vm7, %v151_v32, %v141_v28  ;;  %v268_v28 = vsel %vm100_vm0, %v266_v25, 0.0  ;;  %vm339_vm7 = vcmp.eq.s32.totalorder %v959_v3, 18 }
 0x2d9   :  { %v160_v34 = vmul.f32 %v156_v31, %v152_v33 }
 0x2db   :  { %161 = vadd.xlane.f32.xlu1 %v160_v34 }
 0x364   :  { %v162_v39 = vpop.xlane.xlu1 %161 }
 0x365   :  { %v163_v40 = vsel %vm159_vm8, %v162_v39, %v152_v33  ;;  %v281_v33 = vld [vmem:[#allocation0 + $0xf] ss:$0 sm:$0xff]  ;;  %vm358_vm8 = vcmp.eq.s32.totalorder %v959_v3, 19 }
 0x366   :  { %v171_v44 = vmul.f32 %v167_v38, %v163_v40  ;;  %v283_v36 = vsel %vm100_vm0, %v281_v33, 0.0 }
 0x368   :  { %172 = vadd.xlane.f32.xlu0 %v171_v44 }
 0x36c   :  { %187 = vadd.xlane.f32.xlu0 %v186_v45 }
 0x3f1   :  { %v173_v46 = vpop.xlane.xlu0 %172 }
 0x3f2   :  { %v174_v48 = vsel %vm170_vm10, %v173_v46, %v163_v40  ;;  %vm396_vm10 = vcmp.eq.s32.totalorder %v959_v3, 21 }
 0x3f3   :  { %v182_v49 = vmul.f32 %v178_v43, %v174_v48 }
 0x3f5   :  { %183 = vadd.xlane.f32.xlu1 %v182_v49  ;;  %v188_v51 = vpop.xlane.xlu0 %187  ;;  %v88_v49 = vadd.s32 16, %v961_v4 }
 0x3f6   :  { %v189_v52 = vsel %vm181_vm11, %v188_v51, %v83_v42  ;;  %v296_v42 = vld [vmem:[#allocation0 + $0x10] ss:$0 sm:$0xff] }
 0x3f7   :  { %v201_v53 = vmul.f32 %v193_v50, %v189_v52  ;;  %v298_v45 = vsel %vm100_vm0, %v296_v42, 0.0  ;;  %vm89_vm4 = vcmp.eq.s32.totalorder %v959_v3, %v88_v49 }
 0x3f9   :  { %202 = vadd.xlane.f32.xlu0 %v201_v53 }
 0x47e   :  { %v184_v54 = vpop.xlane.xlu1 %183 }
 0x47f   :  { %v185_v56 = vsel %vm181_vm11, %v184_v54, %v174_v48  ;;  %vm415_vm11 = vcmp.eq.s32.totalorder %v959_v3, 22 }
 0x480   :  { %v197_v57 = vmul.f32 %v193_v50, %v185_v56 }
 0x482   :  { %198 = vadd.xlane.f32.xlu1 %v197_v57  ;;  %v203_v59 = vpop.xlane.xlu0 %202 }
 0x483   :  { %v204_v60 = vsel %vm196_vm12, %v203_v59, %v189_v52  ;;  %v90_v52 = vsel %vm89_vm4, 1.0, %v939_v41  ;;  %vm568_vm4 = vcmp.eq.s32.totalorder %v959_v3, 29 }
 0x484   :  { %v216_v61 = vmul.f32 %v208_v58, %v204_v60  ;;  %v310_v55 = vmul.f32 %v298_v45, %v90_v52 }
 0x486   :  { %217 = vadd.xlane.f32.xlu0 %v216_v61 }
 0x50b   :  { %v199_v62 = vpop.xlane.xlu1 %198 }
 0x50c   :  { %v200_v0 = vsel %vm196_vm12, %v199_v62, %v185_v56  ;;  %v315_v56 = vld [vmem:[#allocation0 + $0x11] ss:$0 sm:$0xff]  ;;  %vm434_vm12 = vcmp.eq.s32.totalorder %v959_v3, 23 }
 0x50d   :  { %v212_v1 = vmul.f32 %v208_v58, %v200_v0  ;;  %v317_v58 = vsel %vm100_vm0, %v315_v56, 0.0 }
 0x50f   :  { %213 = vadd.xlane.f32.xlu1 %v212_v1  ;;  %v218_v5 = vpop.xlane.xlu0 %217 }
 0x510   :  { %v219_v6 = vsel %vm211_vm13, %v218_v5, %v204_v60 }
 0x511   :  { %v231_v7 = vmul.f32 %v223_v2, %v219_v6 }
 0x513   :  { %232 = vadd.xlane.f32.xlu0 %v231_v7 }
 0x598   :  { %v214_v8 = vpop.xlane.xlu1 %213 }
 0x599   :  { %v215_v10 = vsel %vm211_vm13, %v214_v8, %v200_v0  ;;  %v334_v0 = vld [vmem:[#allocation0 + $0x12] ss:$0 sm:$0xff] }
 0x59a   :  { %v227_v11 = vmul.f32 %v223_v2, %v215_v10  ;;  %v336_v5 = vsel %vm100_vm0, %v334_v0, 0.0 }
 0x59c   :  { %228 = vadd.xlane.f32.xlu1 %v227_v11  ;;  %v233_v13 = vpop.xlane.xlu0 %232 }
 0x59d   :  { %v234_v14 = vsel %vm226_vm14, %v233_v13, %v219_v6  ;;  %v353_v13 = vld [vmem:[#allocation0 + $0x13] ss:$0 sm:$0xff] }
 0x59e   :  { %v246_v15 = vmul.f32 %v238_v12, %v234_v14 }
 0x5a0   :  { %247 = vadd.xlane.f32.xlu0 %v246_v15 }
 0x625   :  { %v229_v16 = vpop.xlane.xlu1 %228 }
 0x626   :  { %v230_v18 = vsel %vm226_vm14, %v229_v16, %v215_v10  ;;  %v355_v16 = vsel %vm100_vm0, %v353_v13, 0.0  ;;  %vm453_vm14 = vcmp.eq.s32.totalorder %v959_v3, 24 }
 0x627   :  { %v242_v19 = vmul.f32 %v238_v12, %v230_v18 }
 0x629   :  { %243 = vadd.xlane.f32.xlu1 %v242_v19  ;;  %v248_v21 = vpop.xlane.xlu0 %247 }
 0x62a   :  { %v249_v22 = vsel %vm241_vm15, %v248_v21, %v234_v14 }
 0x62b   :  { %v261_v23 = vmul.f32 %v253_v20, %v249_v22 }
 0x62d   :  { %262 = vadd.xlane.f32.xlu0 %v261_v23 }
 0x6b2   :  { %v244_v24 = vpop.xlane.xlu1 %243 }
 0x6b3   :  { %v245_v26 = vsel %vm241_vm15, %v244_v24, %v230_v18  ;;  %v372_v24 = vld [vmem:[#allocation0 + $0x14] ss:$0 sm:$0xff]  ;;  %vm476_vm15 = vcmp.eq.s32.totalorder %v959_v3, 25 }
 0x6b4   :  { %v257_v27 = vmul.f32 %v253_v20, %v245_v26 }
 0x6b6   :  { %258 = vadd.xlane.f32.xlu1 %v257_v27  ;;  %v263_v29 = vpop.xlane.xlu0 %262  ;;  %v374_v27 = vsel %vm100_vm0, %v372_v24, 0.0 }
 0x6b7   :  { %v264_v30 = vsel %vm256_vm1, %v263_v29, %v249_v22 }
 0x6b8   :  { %v276_v31 = vmul.f32 %v268_v28, %v264_v30 }
 0x6ba   :  { %277 = vadd.xlane.f32.xlu0 %v276_v31 }
 0x73f   :  { %v259_v32 = vpop.xlane.xlu1 %258 }
 0x740   :  { %v260_v34 = vsel %vm256_vm1, %v259_v32, %v245_v26  ;;  %vm499_vm1 = vcmp.eq.s32.totalorder %v959_v3, 26 }
 0x741   :  { %v272_v35 = vmul.f32 %v268_v28, %v260_v34 }
 0x743   :  { %273 = vadd.xlane.f32.xlu1 %v272_v35  ;;  %v278_v37 = vpop.xlane.xlu0 %277  ;;  %v391_v35 = vld [vmem:[#allocation0 + $0x15] ss:$0 sm:$0xff] }
 0x744   :  { %v279_v38 = vsel %vm271_vm2, %v278_v37, %v264_v30 }
 0x745   :  { %v291_v39 = vmul.f32 %v283_v36, %v279_v38 }
 0x747   :  { %292 = vadd.xlane.f32.xlu0 %v291_v39 }
 0x7cc   :  { %v274_v40 = vpop.xlane.xlu1 %273 }
 0x7cd   :  { %v275_v43 = vsel %vm271_vm2, %v274_v40, %v260_v34  ;;  %vm522_vm2 = vcmp.eq.s32.totalorder %v959_v3, 27 }
 0x7ce   :  { %v287_v44 = vmul.f32 %v283_v36, %v275_v43 }
 0x7d0   :  { %288 = vadd.xlane.f32.xlu1 %v287_v44  ;;  %v293_v46 = vpop.xlane.xlu0 %292 }
 0x7d1   :  { %v294_v47 = vsel %vm286_vm3, %v293_v46, %v279_v38  ;;  %v393_v38 = vsel %vm100_vm0, %v391_v35, 0.0 }
 0x7d2   :  { %v306_v48 = vmul.f32 %v298_v45, %v294_v47 }
 0x7d4   :  { %307 = vadd.xlane.f32.xlu0 %v306_v48 }
 0x859   :  { %v289_v50 = vpop.xlane.xlu1 %288 }
 0x85a   :  { %v290_v51 = vsel %vm286_vm3, %v289_v50, %v275_v43  ;;  %vm545_vm3 = vcmp.eq.s32.totalorder %v959_v3, 28 }
 0x85b   :  { %v302_v53 = vmul.f32 %v298_v45, %v290_v51 }
 0x85d   :  { %303 = vadd.xlane.f32.xlu1 %v302_v53  ;;  %v308_v54 = vpop.xlane.xlu0 %307 }
 0x85e   :  { %v309_v57 = vsel %vm301_vm5, %v308_v54, %v294_v47  ;;  %v410_v47 = vld [vmem:[#allocation0 + $0x16] ss:$0 sm:$0xff] }
 0x85f   :  { %v325_v59 = vmul.f32 %v317_v58, %v309_v57  ;;  %v412_v50 = vsel %vm100_vm0, %v410_v47, 0.0 }
 0x861   :  { %311 = vadd.xlane.f32.xlu1 %v310_v55 }
 0x865   :  { %326 = vadd.xlane.f32.xlu1 %v325_v59 }
 0x8e6   :  { %v304_v60 = vpop.xlane.xlu1 %303 }
 0x8e7   :  { %v305_v61 = vsel %vm301_vm5, %v304_v60, %v290_v51 }
 0x8e8   :  { %v321_v62 = vmul.f32 %v317_v58, %v305_v61 }
 0x8ea   :  { %v312_v63 = vpop.xlane.xlu1 %311  ;;  %322 = vadd.xlane.f32.xlu0 %v321_v62 }
 0x8eb   :  { %v313_v1 = vsel %vm301_vm5, %v312_v63, %v90_v52  ;;  %vm591_vm5 = vcmp.eq.s32.totalorder %v959_v3, 30 }
 0x8ec   :  { %v329_v2 = vmul.f32 %v317_v58, %v313_v1  ;;  %v429_v58 = vld [vmem:[#allocation0 + $0x17] ss:$0 sm:$0xff] }
 0x8ee   :  { %330 = vadd.xlane.f32.xlu0 %v329_v2  ;;  %v327_v6 = vpop.xlane.xlu1 %326 }
 0x8ef   :  { %v328_v7 = vsel %vm320_vm6, %v327_v6, %v309_v57  ;;  %v95_v6 = vadd.s32 24, %v961_v4 }
 0x8f0   :  { %v344_v8 = vmul.f32 %v336_v5, %v328_v7 }
 0x8f1   :  { %vm96_vm13 = vcmp.eq.s32.totalorder %v959_v3, %v95_v6 }
 0x8f2   :  { %345 = vadd.xlane.f32.xlu0 %v344_v8  ;;  %v448_v8 = vld [vmem:[#allocation0 + $0x18] ss:$0 sm:$0xff] }
 0x973   :  { %v323_v9 = vpop.xlane.xlu0 %322 }
 0x974   :  { %v324_v10 = vsel %vm320_vm6, %v323_v9, %v305_v61  ;;  %v431_v61 = vsel %vm100_vm0, %v429_v58, 0.0 }
 0x975   :  { %v340_v11 = vmul.f32 %v336_v5, %v324_v10 }
 0x977   :  { %341 = vadd.xlane.f32.xlu1 %v340_v11  ;;  %v331_v12 = vpop.xlane.xlu0 %330  ;;  %v450_v11 = vsel %vm100_vm0, %v448_v8, 0.0 }
 0x978   :  { %v332_v14 = vsel %vm320_vm6, %v331_v12, %v313_v1 }
 0x979   :  { %v348_v15 = vmul.f32 %v336_v5, %v332_v14 }
 0x97b   :  { %349 = vadd.xlane.f32.xlu1 %v348_v15  ;;  %v346_v17 = vpop.xlane.xlu0 %345 }
 0x97c   :  { %v347_v18 = vsel %vm339_vm7, %v346_v17, %v328_v7 }
 0x97d   :  { %v363_v19 = vmul.f32 %v355_v16, %v347_v18 }
 0x97f   :  { %364 = vadd.xlane.f32.xlu1 %v363_v19 }
 0xa00   :  { %v342_v20 = vpop.xlane.xlu1 %341 }
 0xa01   :  { %v343_v21 = vsel %vm339_vm7, %v342_v20, %v324_v10  ;;  %v471_v20 = vld [vmem:[#allocation0 + $0x19] ss:$0 sm:$0xff] }
 0xa02   :  { %v359_v22 = vmul.f32 %v355_v16, %v343_v21 }
 0xa04   :  { %360 = vadd.xlane.f32.xlu0 %v359_v22  ;;  %v350_v23 = vpop.xlane.xlu1 %349 }
 0xa05   :  { %v351_v25 = vsel %vm339_vm7, %v350_v23, %v332_v14  ;;  %v97_v14 = vsel %vm96_vm13, 1.0, %v939_v41  ;;  %v473_v41 = vsel %vm100_vm0, %v471_v20, 0.0 }
 0xa06   :  { %v367_v26 = vmul.f32 %v355_v16, %v351_v25  ;;  %v466_v4 = vmul.f32 %v450_v11, %v97_v14 }
 0xa08   :  { %368 = vadd.xlane.f32.xlu0 %v367_v26  ;;  %v365_v28 = vpop.xlane.xlu1 %364 }
 0xa09   :  { %v366_v29 = vsel %vm358_vm8, %v365_v28, %v347_v18 }
 0xa0a   :  { %v382_v30 = vmul.f32 %v374_v27, %v366_v29 }
 0xa0c   :  { %383 = vadd.xlane.f32.xlu0 %v382_v30 }
 0xa8d   :  { %v361_v31 = vpop.xlane.xlu0 %360 }
 0xa8e   :  { %v362_v32 = vsel %vm358_vm8, %v361_v31, %v343_v21 }
 0xa8f   :  { %v378_v33 = vmul.f32 %v374_v27, %v362_v32 }
 0xa91   :  { %379 = vadd.xlane.f32.xlu1 %v378_v33  ;;  %v369_v34 = vpop.xlane.xlu0 %368  ;;  %v494_v33 = vld [vmem:[#allocation0 + $0x1a] ss:$0 sm:$0xff] }
 0xa92   :  { %v370_v36 = vsel %vm358_vm8, %v369_v34, %v351_v25 }
 0xa93   :  { %v386_v37 = vmul.f32 %v374_v27, %v370_v36 }
 0xa95   :  { %387 = vadd.xlane.f32.xlu1 %v386_v37  ;;  %v384_v39 = vpop.xlane.xlu0 %383 }
 0xa96   :  { %v385_v40 = vsel %vm377_vm9, %v384_v39, %v366_v29 }
 0xa97   :  { %v401_v42 = vmul.f32 %v393_v38, %v385_v40 }
 0xa99   :  { %402 = vadd.xlane.f32.xlu1 %v401_v42 }
 0xb1a   :  { %v380_v43 = vpop.xlane.xlu1 %379 }
 0xb1b   :  { %v381_v44 = vsel %vm377_vm9, %v380_v43, %v362_v32 }
 0xb1c   :  { %v397_v45 = vmul.f32 %v393_v38, %v381_v44 }
 0xb1e   :  { %398 = vadd.xlane.f32.xlu0 %v397_v45  ;;  %v388_v46 = vpop.xlane.xlu1 %387 }
 0xb1f   :  { %v389_v48 = vsel %vm377_vm9, %v388_v46, %v370_v36  ;;  %v496_v36 = vsel %vm100_vm0, %v494_v33, 0.0 }
 0xb20   :  { %v405_v49 = vmul.f32 %v393_v38, %v389_v48 }
 0xb22   :  { %406 = vadd.xlane.f32.xlu0 %v405_v49  ;;  %v403_v51 = vpop.xlane.xlu1 %402 }
 0xb23   :  { %v404_v52 = vsel %vm396_vm10, %v403_v51, %v385_v40 }
 0xb24   :  { %v420_v53 = vmul.f32 %v412_v50, %v404_v52 }
 0xb26   :  { %421 = vadd.xlane.f32.xlu0 %v420_v53 }
 0xba7   :  { %v399_v54 = vpop.xlane.xlu0 %398 }
 0xba8   :  { %v400_v55 = vsel %vm396_vm10, %v399_v54, %v381_v44 }
 0xba9   :  { %v416_v56 = vmul.f32 %v412_v50, %v400_v55 }
 0xbab   :  { %417 = vadd.xlane.f32.xlu1 %v416_v56  ;;  %v407_v57 = vpop.xlane.xlu0 %406 }
 0xbac   :  { %v408_v59 = vsel %vm396_vm10, %v407_v57, %v389_v48  ;;  %v517_v48 = vld [vmem:[#allocation0 + $0x1b] ss:$0 sm:$0xff] }
 0xbad   :  { %v424_v60 = vmul.f32 %v412_v50, %v408_v59  ;;  %v519_v51 = vsel %vm100_vm0, %v517_v48, 0.0 }
 0xbaf   :  { %425 = vadd.xlane.f32.xlu1 %v424_v60  ;;  %v422_v62 = vpop.xlane.xlu0 %421 }
 0xbb0   :  { %v423_v63 = vsel %vm415_vm11, %v422_v62, %v404_v52  ;;  %v540_v62 = vld [vmem:[#allocation0 + $0x1c] ss:$0 sm:$0xff] }
 0xbb1   :  { %v439_v0 = vmul.f32 %v431_v61, %v423_v63 }
 0xbb3   :  { %440 = vadd.xlane.f32.xlu1 %v439_v0 }
 0xc34   :  { %v418_v1 = vpop.xlane.xlu1 %417 }
 0xc35   :  { %v419_v2 = vsel %vm415_vm11, %v418_v1, %v400_v55  ;;  %v542_v1 = vsel %vm100_vm0, %v540_v62, 0.0 }
 0xc36   :  { %v435_v5 = vmul.f32 %v431_v61, %v419_v2 }
 0xc38   :  { %436 = vadd.xlane.f32.xlu0 %v435_v5  ;;  %v426_v7 = vpop.xlane.xlu1 %425 }
 0xc39   :  { %v427_v9 = vsel %vm415_vm11, %v426_v7, %v408_v59 }
 0xc3a   :  { %v443_v10 = vmul.f32 %v431_v61, %v427_v9 }
 0xc3c   :  { %444 = vadd.xlane.f32.xlu0 %v443_v10  ;;  %v441_v12 = vpop.xlane.xlu1 %440 }
 0xc3d   :  { %v442_v13 = vsel %vm434_vm12, %v441_v12, %v423_v63 }
 0xc3e   :  { %v458_v15 = vmul.f32 %v450_v11, %v442_v13 }
 0xc40   :  { %459 = vadd.xlane.f32.xlu0 %v458_v15 }
 0xc44   :  { %467 = vadd.xlane.f32.xlu0 %v466_v4 }
 0xcc1   :  { %v437_v16 = vpop.xlane.xlu0 %436 }
 0xcc2   :  { %v438_v17 = vsel %vm434_vm12, %v437_v16, %v419_v2 }
 0xcc3   :  { %v454_v18 = vmul.f32 %v450_v11, %v438_v17 }
 0xcc5   :  { %455 = vadd.xlane.f32.xlu1 %v454_v18  ;;  %v445_v19 = vpop.xlane.xlu0 %444 }
 0xcc6   :  { %v446_v21 = vsel %vm434_vm12, %v445_v19, %v427_v9 }
 0xcc7   :  { %v462_v22 = vmul.f32 %v450_v11, %v446_v21 }
 0xcc9   :  { %463 = vadd.xlane.f32.xlu1 %v462_v22  ;;  %v460_v23 = vpop.xlane.xlu0 %459 }
 0xcca   :  { %v461_v24 = vsel %vm453_vm14, %v460_v23, %v442_v13 }
 0xccb   :  { %v481_v25 = vmul.f32 %v473_v41, %v461_v24 }
 0xccd   :  { %482 = vadd.xlane.f32.xlu0 %v481_v25  ;;  %v468_v26 = vpop.xlane.xlu0 %467 }
 0xcce   :  { %v469_v27 = vsel %vm453_vm14, %v468_v26, %v97_v14  ;;  %v563_v14 = vld [vmem:[#allocation0 + $0x1d] ss:$0 sm:$0xff]  ;;  %v586_v26 = vld [vmem:[#allocation0 + $0x1e] ss:$0 sm:$0xff] }
 0xccf   :  { %v489_v28 = vmul.f32 %v473_v41, %v469_v27  ;;  %v565_v16 = vsel %vm100_vm0, %v563_v14, 0.0 }
 0xcd1   :  { %490 = vadd.xlane.f32.xlu0 %v489_v28 }
 0xd4e   :  { %v456_v29 = vpop.xlane.xlu1 %455 }
 0xd4f   :  { %v457_v30 = vsel %vm453_vm14, %v456_v29, %v438_v17  ;;  %v588_v29 = vsel %vm100_vm0, %v586_v26, 0.0 }
 0xd50   :  { %v477_v31 = vmul.f32 %v473_v41, %v457_v30 }
 0xd52   :  { %478 = vadd.xlane.f32.xlu1 %v477_v31  ;;  %v464_v32 = vpop.xlane.xlu1 %463 }
 0xd53   :  { %v465_v34 = vsel %vm453_vm14, %v464_v32, %v446_v21 }
 0xd54   :  { %v485_v35 = vmul.f32 %v473_v41, %v465_v34 }
 0xd56   :  { %486 = vadd.xlane.f32.xlu1 %v485_v35  ;;  %v483_v37 = vpop.xlane.xlu0 %482 }
 0xd57   :  { %v484_v38 = vsel %vm476_vm15, %v483_v37, %v461_v24 }
 0xd58   :  { %v504_v39 = vmul.f32 %v496_v36, %v484_v38 }
 0xd5a   :  { %505 = vadd.xlane.f32.xlu0 %v504_v39  ;;  %v491_v40 = vpop.xlane.xlu0 %490 }
 0xd5b   :  { %v492_v42 = vsel %vm476_vm15, %v491_v40, %v469_v27  ;;  %v609_v40 = vld [vmem:[#allocation0 + $0x1f] ss:$0 sm:$0xff] }
 0xd5c   :  { %v512_v43 = vmul.f32 %v496_v36, %v492_v42 }
 0xd5e   :  { %513 = vadd.xlane.f32.xlu0 %v512_v43 }
 0xddb   :  { %v479_v44 = vpop.xlane.xlu1 %478 }
 0xddc   :  { %v480_v45 = vsel %vm476_vm15, %v479_v44, %v457_v30  ;;  %v611_v44 = vsel %vm100_vm0, %v609_v40, 0.0  ;;  %vm614_vm0 = vcmp.eq.s32.totalorder %v959_v3, 31 }
 0xddd   :  { %v500_v46 = vmul.f32 %v496_v36, %v480_v45 }
 0xddf   :  { %501 = vadd.xlane.f32.xlu1 %v500_v46  ;;  %v487_v47 = vpop.xlane.xlu1 %486 }
 0xde0   :  { %v488_v49 = vsel %vm476_vm15, %v487_v47, %v465_v34 }
 0xde1   :  { %v508_v50 = vmul.f32 %v496_v36, %v488_v49 }
 0xde3   :  { %509 = vadd.xlane.f32.xlu1 %v508_v50  ;;  %v506_v52 = vpop.xlane.xlu0 %505 }
 0xde4   :  { %v507_v53 = vsel %vm499_vm1, %v506_v52, %v484_v38 }
 0xde5   :  { %v527_v54 = vmul.f32 %v519_v51, %v507_v53 }
 0xde7   :  { %528 = vadd.xlane.f32.xlu0 %v527_v54  ;;  %v514_v55 = vpop.xlane.xlu0 %513 }
 0xde8   :  { %v515_v56 = vsel %vm499_vm1, %v514_v55, %v492_v42 }
 0xde9   :  { %v535_v57 = vmul.f32 %v519_v51, %v515_v56 }
 0xdeb   :  { %536 = vadd.xlane.f32.xlu0 %v535_v57 }
 0xe68   :  { %v502_v58 = vpop.xlane.xlu1 %501 }
 0xe69   :  { %v503_v59 = vsel %vm499_vm1, %v502_v58, %v480_v45 }
 0xe6a   :  { %v523_v60 = vmul.f32 %v519_v51, %v503_v59 }
 0xe6c   :  { %524 = vadd.xlane.f32.xlu1 %v523_v60  ;;  %v510_v61 = vpop.xlane.xlu1 %509 }
 0xe6d   :  { %v511_v63 = vsel %vm499_vm1, %v510_v61, %v488_v49 }
 0xe6e   :  { %v531_v0 = vmul.f32 %v519_v51, %v511_v63 }
 0xe70   :  { %532 = vadd.xlane.f32.xlu1 %v531_v0  ;;  %v529_v2 = vpop.xlane.xlu0 %528 }
 0xe71   :  { %v530_v5 = vsel %vm522_vm2, %v529_v2, %v507_v53 }
 0xe72   :  { %v550_v6 = vmul.f32 %v542_v1, %v530_v5 }
 0xe74   :  { %551 = vadd.xlane.f32.xlu0 %v550_v6  ;;  %v537_v7 = vpop.xlane.xlu0 %536 }
 0xe75   :  { %v538_v8 = vsel %vm522_vm2, %v537_v7, %v515_v56 }
 0xe76   :  { %v558_v9 = vmul.f32 %v542_v1, %v538_v8 }
 0xe78   :  { %559 = vadd.xlane.f32.xlu0 %v558_v9 }
 0xef5   :  { %v525_v10 = vpop.xlane.xlu1 %524 }
 0xef6   :  { %v526_v11 = vsel %vm522_vm2, %v525_v10, %v503_v59 }
 0xef7   :  { %v546_v12 = vmul.f32 %v542_v1, %v526_v11 }
 0xef9   :  { %547 = vadd.xlane.f32.xlu1 %v546_v12  ;;  %v533_v13 = vpop.xlane.xlu1 %532 }
 0xefa   :  { %v534_v15 = vsel %vm522_vm2, %v533_v13, %v511_v63 }
 0xefb   :  { %v554_v4 = vmul.f32 %v542_v1, %v534_v15 }
 0xefd   :  { %555 = vadd.xlane.f32.xlu1 %v554_v4  ;;  %v552_v17 = vpop.xlane.xlu0 %551 }
 0xefe   :  { %v553_v18 = vsel %vm545_vm3, %v552_v17, %v530_v5 }
 0xeff   :  { %v573_v19 = vmul.f32 %v565_v16, %v553_v18 }
 0xf01   :  { %574 = vadd.xlane.f32.xlu0 %v573_v19  ;;  %v560_v20 = vpop.xlane.xlu0 %559 }
 0xf02   :  { %v561_v21 = vsel %vm545_vm3, %v560_v20, %v538_v8 }
 0xf03   :  { %v581_v22 = vmul.f32 %v565_v16, %v561_v21 }
 0xf05   :  { %582 = vadd.xlane.f32.xlu0 %v581_v22 }
 0xf82   :  { %v548_v41 = vpop.xlane.xlu1 %547 }
 0xf83   :  { %v549_v23 = vsel %vm545_vm3, %v548_v41, %v526_v11 }
 0xf84   :  { %v569_v24 = vmul.f32 %v565_v16, %v549_v23 }
 0xf86   :  { %570 = vadd.xlane.f32.xlu1 %v569_v24  ;;  %v556_v25 = vpop.xlane.xlu1 %555 }
 0xf87   :  { %v557_v27 = vsel %vm545_vm3, %v556_v25, %v534_v15 }
 0xf88   :  { %v577_v28 = vmul.f32 %v565_v16, %v557_v27 }
 0xf8a   :  { %578 = vadd.xlane.f32.xlu1 %v577_v28  ;;  %v575_v30 = vpop.xlane.xlu0 %574 }
 0xf8b   :  { %v576_v31 = vsel %vm568_vm4, %v575_v30, %v553_v18 }
 0xf8c   :  { %v596_v32 = vmul.f32 %v588_v29, %v576_v31 }
 0xf8e   :  { %597 = vadd.xlane.f32.xlu0 %v596_v32  ;;  %v583_v33 = vpop.xlane.xlu0 %582 }
 0xf8f   :  { %v584_v34 = vsel %vm568_vm4, %v583_v33, %v561_v21 }
 0xf90   :  { %v604_v35 = vmul.f32 %v588_v29, %v584_v34 }
 0xf92   :  { %605 = vadd.xlane.f32.xlu0 %v604_v35 }
0x100f   :  { %v571_v36 = vpop.xlane.xlu1 %570 }
0x1010   :  { %v572_v37 = vsel %vm568_vm4, %v571_v36, %v549_v23 }
0x1011   :  { %v592_v38 = vmul.f32 %v588_v29, %v572_v37 }
0x1013   :  { %593 = vadd.xlane.f32.xlu1 %v592_v38  ;;  %v579_v39 = vpop.xlane.xlu1 %578 }
0x1014   :  { %v580_v42 = vsel %vm568_vm4, %v579_v39, %v557_v27 }
0x1015   :  { %v600_v43 = vmul.f32 %v588_v29, %v580_v42 }
0x1017   :  { %601 = vadd.xlane.f32.xlu1 %v600_v43  ;;  %v598_v45 = vpop.xlane.xlu0 %597 }
0x1018   :  { %v599_v46 = vsel %vm591_vm5, %v598_v45, %v576_v31 }
0x1019   :  { %v619_v47 = vmul.f32 %v611_v44, %v599_v46 }
0x101b   :  { %620 = vadd.xlane.f32.xlu0 %v619_v47  ;;  %v606_v48 = vpop.xlane.xlu0 %605 }
0x101c   :  { %v607_v49 = vsel %vm591_vm5, %v606_v48, %v584_v34 }
0x101d   :  { %v627_v50 = vmul.f32 %v611_v44, %v607_v49 }
0x101f   :  { %628 = vadd.xlane.f32.xlu0 %v627_v50 }
0x109c   :  { %v594_v51 = vpop.xlane.xlu1 %593 }
0x109d   :  { %v595_v52 = vsel %vm591_vm5, %v594_v51, %v572_v37 }
0x109e   :  { %v615_v53 = vmul.f32 %v611_v44, %v595_v52 }
0x10a0   :  { %616 = vadd.xlane.f32.xlu1 %v615_v53  ;;  %v602_v54 = vpop.xlane.xlu1 %601 }
0x10a1   :  { %v603_v55 = vsel %vm591_vm5, %v602_v54, %v580_v42 }
0x10a2   :  { %v623_v56 = vmul.f32 %v611_v44, %v603_v55 }
0x10a4   :  { %624 = vadd.xlane.f32.xlu1 %v623_v56  ;;  %v621_v57 = vpop.xlane.xlu0 %620 }
0x10a5   :  { %v622_v58 = vsel %vm614_vm0, %v621_v57, %v599_v46 }
0x10a6   :  { %633 = vst [vmem:[#allocation1 + $0x8] sm:$0xff] %v622_v58 }
0x10a8   :  { %v629_v59 = vpop.xlane.xlu0 %628 }
0x10a9   :  { %v630_v60 = vsel %vm614_vm0, %v629_v59, %v607_v49 }
0x10aa   :  { %637 = vst [vmem:[#allocation1 + $0x18] sm:$0xff] %v630_v60 }
0x1129   :  { %v617_v61 = vpop.xlane.xlu1 %616 }
0x112a   :  { %v618_v62 = vsel %vm614_vm0, %v617_v61, %v595_v52  }
0x112b   :  { %631 = vst [vmem:[#allocation1] sm:$0xff] %v618_v62 }
0x112d   :  { %v625_v63 = vpop.xlane.xlu1 %624 }
0x112e   :  { %v626_v0 = vsel %vm614_vm0, %v625_v63, %v603_v55 }
0x112f   :  { %635 = vst [vmem:[#allocation1 + $0x10] sm:$0xff] %v626_v0 }
0x1130 LB:  { %s937_s17 = sphi %s935_s17, %s687_s17   ;;  %s933_s16 = sphi %s931_s16, %s688_s16  }
0x1136   : > { %v685_v3 = vld [vmem:[%s937_s17] sm:$0xff]  ;;  %s687_s17 = scalar_lea.vmem %s937_s17, 8  }
0x1137   : > { %686 = vst [vmem:[%s933_s16] sm:$0xff] %v685_v3  ;;  %s688_s16 = scalar_lea.vmem %s933_s16, 8   ;;  %p682_p2 = scmp.gt.s32.totalorder %s687_s17, [#allocation1 + $0x18] }
0x1139   :  { %684 = sbr.rel (!%p682_p2) target bundleno = 4400 (0x1130), region = 136 }

// kernel: net_forward.2
= control target key start
LH: loop header
LB: loop body
LE: loop exit
PB: predicated region body
PF: predicated region fallthrough
CT: control target
= control target key end

     0   :  { %s881_s18 = smov 0   ;;  %s883_s19 = smov 0   ;;  %s987_s0 = inlined_call_operand.vmem [shape: bf16[2,16,128], index: 0, kind: input, shape index: {}]   ;;  %s988_s1 = inlined_call_operand.vmem [shape: bf16[2,128,128], index: 1, kind: input, shape index: {}]   ;;  %s989_s2 = inlined_call_operand.vmem [shape: f32[2,1,128], index: 2, kind: input, shape index: {}]   ;;  %s990_s3 = inlined_call_operand.vmem [shape: bf16[128,256], index: 3, kind: input, shape index: {}]   ;;  %s991_s4 = inlined_call_operand.vmem [shape: f32[1,256], index: 4, kind: input, shape index: {}]   ;;  %s992_s5 = inlined_call_operand.vmem [shape: f32[2,16,256], index: 5, kind: output, shape index: {}]  }
   0x1   :  { %s885_s20 = smov 0  }
   0x2 LB: > { %s27_s21 = sadd.s32 1, %s842_s19  ;;  %p697_p0 = scmp.ge.s32.totalorder %s846_s20, 1  ;;  %s846_s20 = sphi %s885_s20, %s15_s20   ;;  %s842_s19 = sphi %s883_s19, %s994_s19   ;;  %s838_s18 = sphi %s881_s18, %s993_s18  }
   0x3   : > { %p29_p1 = scmp.ge.s32.totalorder %s27_s21, 2  ;;  %p226_p2 = scmp.lt.s32.totalorder %s846_s20, 3 }
   0x5   : > { %s996_s21 = smov (%p29_p1, %s27_s21), 0  ;;  %p227_p3 = pnand %p697_p0, %p226_p2 }
   0x6   : > { %p272_p4 = scmp.lt.s32.totalorder (!%p227_p3), %s838_s18, 1 }
   0x7   : > { %230 = sbr.rel (%p227_p3) target bundleno = 453 (0x1c5), region = 40 }
   0xc   : > { %v848_v0 = vmov 0.0   ;;  %vm849_vm0 = vmmov 0   ;;  %v800_v1 = vld [vmem:[%s990_s3 + $0x74] ss:$8 sps:$4 sm:$0xff]   ;;  %v802_v2 = vld [vmem:[%s990_s3 + $0x70] ss:$8 sps:$4 sm:$0xff]   ;;  %v442_v37 = vlaneseq }
   0xd   : > { %744 = vmatprep.subr.bf16.mxu0 %v848_v0  ;;  %760 = vmatprep.mubr.msk.bf16.mxu0 %vm849_vm0, %v848_v0  ;;  %s998_s18 = smov (!%p272_p4, %s838_s18), 1  ;;  %v803_v3 = vld [vmem:[%s990_s3 + $0x64] ss:$8 sps:$4 sm:$0xff]   ;;  %v805_v4 = vld [vmem:[%s990_s3 + $0x60] ss:$8 sps:$4 sm:$0xff]   ;;  %v850_v26 = vmov 0  }
   0xe   : > { %532 = vmatprep.subr.bf16.mxu1 %v800_v1  ;;  %s733_s28 = sshll.u32 %s998_s18, 6  ;;  %v806_v5 = vld [vmem:[%s990_s3 + $0x54] ss:$8 sps:$4 sm:$0xff]   ;;  %v808_v7 = vld [vmem:[%s990_s3 + $0x50] ss:$8 sps:$4 sm:$0xff]   ;;  %s732_s15 = sshll.u32 %s998_s18, 3  ;;  %564 = vmatprep.mubr.bf16.mxu1 %v850_v26 }
   0xf   : > { %533 = vmatpush1.bf16.msra.mxu1 %v802_v2  ;;  %s917_s8 = scalar_lea.vmem %s988_s1, %s733_s28  ;;  %v809_v9 = vld [vmem:[%s990_s3 + $0x44] ss:$8 sps:$4 sm:$0xff]   ;;  %v811_v10 = vld [vmem:[%s990_s3 + $0x40] ss:$8 sps:$4 sm:$0xff]   ;;  %s279_s24 = scalar_lea.vmem %s987_s0, %s732_s15  ;;  %v812_v13 = vld [vmem:[%s990_s3 + $0x34] ss:$8 sps:$4 sm:$0xff]  }
  0x10   : > { %534 = vmatprep.subr.bf16.mxu1 %v803_v3  ;;  %v791_v6 = vld [vmem:[%s917_s8 + $0x38] sm:$0xff]   ;;  %v792_v8 = vld [vmem:[%s917_s8 + $0x30] sm:$0xff]   ;;  %v793_v11 = vld [vmem:[%s917_s8 + $0x28] sm:$0xff]   ;;  %s288_s22 = scalar_lea.vmem %s989_s2, %s998_s18  ;;  %v443_v38 = vshrl.u32 %v442_v37, 7  ;;  %s734_s25 = sshll.u32 %s998_s18, 5 }
  0x11   : > { %745 = vmatpush3.bf16.msra.mxu0 %v791_v6  ;;  %v794_v12 = vld [vmem:[%s917_s8 + $0x20] sm:$0xff]   ;;  %v814_v14 = vld [vmem:[%s990_s3 + $0x30] ss:$8 sps:$4 sm:$0xff]   ;;  %v797_v18 = vld [vmem:[%s917_s8 + $0x8] sm:$0xff]   ;;  %s298_s28 = scalar_lea.vmem %s992_s5, %s734_s25 }
  0x12   : > { %746 = vmatprep.subr.bf16.mxu0 %v848_v0  ;;  %v815_v15 = vld [vmem:[%s990_s3 + $0x24] ss:$8 sps:$4 sm:$0xff]   ;;  %v795_v16 = vld [vmem:[%s917_s8 + $0x18] sm:$0xff]   ;;  %v796_v17 = vld [vmem:[%s917_s8 + $0x10] sm:$0xff]   ;;  %v444_v39 = vsub.s32 0, %v443_v38  ;;  %v448_v41 = vsub.s32 1, %v443_v38 }
  0x13   : > { %535 = vmatpush1.bf16.msra.mxu1 %v805_v4  ;;  %v798_v19 = vld [vmem:[%s917_s8] sm:$0xff]   ;;  %v818_v22 = vld [vmem:[%s990_s3 + $0x14] ss:$8 sps:$4 sm:$0xff]   ;;  %v820_v23 = vld [vmem:[%s990_s3 + $0x10] ss:$8 sps:$4 sm:$0xff]  }
  0x14   : > { %536 = vmatprep.subr.bf16.mxu1 %v806_v5  ;;  %v799_v20 = vld [vmem:[%s279_s24] sm:$0xff]  }
  0x15   : > { %747 = vmatpush3.bf16.msra.mxu0 %v792_v8  ;;  %v817_v21 = vld [vmem:[%s990_s3 + $0x20] ss:$8 sps:$4 sm:$0xff]   ;;  %v821_v24 = vld [vmem:[%s990_s3 + $0x4] ss:$8 sps:$4 sm:$0xff]  }
  0x16   : > { %748 = vmatprep.subr.bf16.mxu0 %v848_v0  ;;  %v823_v25 = vld [vmem:[%s990_s3] ss:$8 sps:$4 sm:$0xff]  }
  0x17   : > { %537 = vmatpush1.bf16.msra.mxu1 %v808_v7  ;;  %v704_v27 = vld [vmem:[%s288_s22] ss:$0 sm:$0xff] }
  0x18   : > { %538 = vmatprep.subr.bf16.mxu1 %v809_v9  ;;  %v440_v40 = vld [vmem:[%s991_s4] sm:$0x3] }
  0x19   : > { %749 = vmatpush3.bf16.msra.mxu0 %v793_v11  ;;  %v445_v42 = vrot.slane %v440_v40, %v444_v39  ;;  %v449_v43 = vrot.slane %v440_v40, %v448_v41 }
  0x1a   : > { %750 = vmatprep.subr.bf16.mxu0 %v848_v0 }
  0x1b   : > { %539 = vmatpush1.bf16.msra.mxu1 %v811_v10 }
  0x1c   : > { %540 = vmatprep.subr.bf16.mxu1 %v812_v13 }
  0x1d   : > { %751 = vmatpush3.bf16.msra.mxu0 %v794_v12 }
  0x1e   : > { %752 = vmatprep.subr.bf16.mxu0 %v848_v0 }
  0x1f   : > { %541 = vmatpush1.bf16.msra.mxu1 %v814_v14 }
  0x20   : > { %542 = vmatprep.subr.bf16.mxu1 %v815_v15 }
  0x21   : > { %753 = vmatpush3.bf16.msra.mxu0 %v795_v16 }
  0x22   : > { %754 = vmatprep.subr.bf16.mxu0 %v848_v0 }
  0x23   : > { %543 = vmatpush1.bf16.msra.mxu1 %v817_v21 }
  0x24   : > { %544 = vmatprep.subr.bf16.mxu1 %v818_v22 }
  0x25   : > { %755 = vmatpush3.bf16.msra.mxu0 %v796_v17 }
  0x26   : > { %756 = vmatprep.subr.bf16.mxu0 %v848_v0 }
  0x27   : > { %545 = vmatpush1.bf16.msra.mxu1 %v820_v23 }
  0x28   : > { %546 = vmatprep.subr.bf16.mxu1 %v821_v24 }
  0x29   : > { %757 = vmatpush3.bf16.msra.mxu0 %v797_v18 }
  0x2a   : > { %758 = vmatprep.subr.bf16.mxu0 %v848_v0 }
  0x2b   : > { %547 = vmatpush1.bf16.msra.mxu1 %v823_v25 }
  0x2d   : > { %759 = vmatpush3.bf16.msra.mxu0 %v798_v19 }
  0x30   : > { %761 = vmatmul.mubr.bf16.vlgmr.msra.gmra.mxu0 %v799_v20 }
  0xf0   : > { %v414_v28 = vpop.f32.mrf.mxu0 }
  0xf1   : > { %v415_v30 = vadd.f32 %v704_v27, %v414_v28 }
  0xf2   : > { %v762_v29 = vpop.f32.mrf.mxu0 }
  0xf3   : > { %v421_v34 = vmax.f32 %v415_v30, 0.0 }
  0xf4   : > { %v417_v31 = vpop.f32.mrf.mxu0 }
  0xf5   : > { %v418_v32 = vadd.f32 %v704_v27, %v417_v31 }
  0xf6   : > { %v763_v33 = vpop.f32.mrf.mxu0 }
  0xf7   : > { %v422_v35 = vmax.f32 %v418_v32, 0.0 }
  0xf9   : > { %v423_v36 = vpack.c.bf16 %v422_v35, %v421_v34 }
  0xfb   : > { %565 = vmatmul.mubr.bf16.vlgmr.msra.gmra.mxu1 %v423_v36 }
 0x1bb   : > { %v566_v44 = vpop.f32.mrf.mxu1 }
 0x1bc   : > { %v567_v45 = vadd.f32 %v566_v44, %v445_v42 }
 0x1bd   : > { %v568_v46 = vpop.f32.mrf.mxu1 }
 0x1be   : > { %575 = vst [vmem:[%s298_s28] sm:$0xff] %v567_v45  ;;  %v569_v47 = vadd.f32 %v568_v46, %v449_v43 }
 0x1bf   : > { %v570_v48 = vpop.f32.mrf.mxu1 }
 0x1c0   : > { %576 = vst [vmem:[%s298_s28 + $0x8] sm:$0xff] %v569_v47  ;;  %v571_v49 = vadd.f32 %v570_v48, %v445_v42 }
 0x1c1   : > { %v572_v50 = vpop.f32.mrf.mxu1 }
 0x1c2   : > { %577 = vst [vmem:[%s298_s28 + $0x10] sm:$0xff] %v571_v49  ;;  %v573_v51 = vadd.f32 %v572_v50, %v449_v43 }
 0x1c4   : > { %578 = vst [vmem:[%s298_s28 + $0x18] sm:$0xff] %v573_v51 }
 0x1c5 PF: > { %s15_s20 = sadd.s32 1, %s846_s20   ;;  %s993_s18 = smov %s842_s19 }
 0x1c6   : > { %p12_p5 = scmp.ge.s32.totalorder %s15_s20, 4   ;;  %s994_s19 = smov %s996_s21 }
 0x1c8   :  { %14 = sbr.rel (!%p12_p5) target bundleno = 2 (0x2), region = 76 }

// kernel: custom-call.141
= control target key start
LH: loop header
LB: loop body
LE: loop exit
PB: predicated region body
PF: predicated region fallthrough
CT: control target
= control target key end

     0   :  { %v845_v6 = vmov 0.0   ;;  %s886_s25 = smov 0   ;;  %s1209_s0 = inlined_call_operand.vmem [shape: f32[64,32], index: 0, kind: input, shape index: {}]   ;;  %s1210_s1 = inlined_call_operand.vmem [shape: f32[64,32], index: 1, kind: output, shape index: {0}]   ;;  %s1211_s2 = inlined_call_operand.vmem [shape: f32[32], index: 2, kind: output, shape index: {1}]  }
   0x1   :  { %v46_v0 = vld [vmem:[%s1209_s0] sm:$0xff]  ;;  %v48_v1 = vld [vmem:[%s1209_s0 + $0x8] sm:$0xff]  ;;  %v50_v2 = vld [vmem:[%s1209_s0 + $0x10] sm:$0xff]  ;;  %95 = vst [vmem:[#allocation2] sm:$0x1] %v845_v6 }
   0x2   :  { %v52_v3 = vld [vmem:[%s1209_s0 + $0x18] sm:$0xff]  ;;  %v54_v4 = vld [vmem:[%s1209_s0 + $0x20] sm:$0xff]  ;;  %v56_v5 = vld [vmem:[%s1209_s0 + $0x28] sm:$0xff]  ;;  %66 = vst [vmem:[#allocation1] sm:$0xff] %v46_v0 }
   0x3   :  { %70 = vst [vmem:[#allocation1 + $0x8] sm:$0xff] %v48_v1  ;;  %74 = vst [vmem:[#allocation1 + $0x10] sm:$0xff] %v50_v2  ;;  %v58_v7 = vld [vmem:[%s1209_s0 + $0x30] sm:$0xff]  ;;  %v60_v8 = vld [vmem:[%s1209_s0 + $0x38] sm:$0xff] }
   0x4   :  { %78 = vst [vmem:[#allocation1 + $0x18] sm:$0xff] %v52_v3  ;;  %82 = vst [vmem:[#allocation1 + $0x20] sm:$0xff] %v54_v4 }
   0x5   :  { %86 = vst [vmem:[#allocation1 + $0x28] sm:$0xff] %v56_v5  ;;  %90 = vst [vmem:[#allocation1 + $0x30] sm:$0xff] %v58_v7 }
   0x6   :  { %94 = vst [vmem:[#allocation1 + $0x38] sm:$0xff] %v60_v8 }
   0x7 LB: > { %v103_v9 = vlaneseq  ;;  %v895_v12 = vstv %s843_s25  ;;  %s200_s0 = scalar_lea.vmem [#allocation1], %s843_s25  ;;  %s939_s26 = smov [#allocation1]  ;;  %s843_s25 = sphi %s886_s25, %s101_s25  }
   0x8   : > { %s384_s27 = scalar_lea.vmem [#allocation4], %s843_s25  ;;  %s1019_s28 = smov [#allocation1] }
   0x9   : > { %v102_v10 = vld [vmem:[#allocation1] sm:$0xff]  ;;  %v892_v11 = vshrl.u32 %v103_v9, 7  ;;  %s1021_s29 = smov [#allocation4] }
   0xa   : > { %v111_v13 = vld [vmem:[#allocation1 + $0x8] sm:$0xff]  ;;  %v121_v15 = vld [vmem:[#allocation1 + $0x10] sm:$0xff] }
   0xb   : > { %vm107_vm0 = vcmp.gt.s32.totalorder %v892_v11, %v895_v12  ;;  %v114_v14 = vadd.s32 8, %v892_v11  ;;  %v124_v16 = vadd.s32 16, %v892_v11  ;;  %v131_v17 = vld [vmem:[#allocation1 + $0x18] sm:$0xff]  ;;  %v134_v18 = vadd.s32 24, %v892_v11  ;;  %v141_v24 = vld [vmem:[#allocation1 + $0x20] sm:$0xff] }
   0xc   : > { %v108_v19 = vsel %vm107_vm0, %v102_v10, 0.0  ;;  %v144_v20 = vadd.s32 32, %v892_v11  ;;  %v154_v21 = vadd.s32 40, %v892_v11  ;;  %v164_v22 = vadd.s32 48, %v892_v11  ;;  %v151_v30 = vld [vmem:[#allocation1 + $0x28] sm:$0xff]  ;;  %v161_v35 = vld [vmem:[#allocation1 + $0x30] sm:$0xff] }
   0xd   : > { %v109_v23 = vmul.f32 %v108_v19, %v108_v19  ;;  %vm116_vm1 = vcmp.gt.s32.totalorder %v114_v14, %v895_v12  ;;  %vm126_vm2 = vcmp.gt.s32.totalorder %v124_v16, %v895_v12  ;;  %vm136_vm3 = vcmp.gt.s32.totalorder %v134_v18, %v895_v12  ;;  %v171_v39 = vld [vmem:[#allocation1 + $0x38] sm:$0xff]  ;;  %v917_v56 = vld [vmem:[%s200_s0] ss:$0 sm:$0xff] }
   0xe   : > { %v117_v25 = vsel %vm116_vm1, %v111_v13, 0.0  ;;  %v127_v26 = vsel %vm126_vm2, %v121_v15, 0.0  ;;  %v137_v27 = vsel %vm136_vm3, %v131_v17, 0.0  ;;  %vm146_vm4 = vcmp.gt.s32.totalorder %v144_v20, %v895_v12 }
   0xf   : > { %v118_v28 = vmul.f32 %v117_v25, %v117_v25  ;;  %v128_v29 = vmul.f32 %v127_v26, %v127_v26  ;;  %v147_v31 = vsel %vm146_vm4, %v141_v24, 0.0  ;;  %vm156_vm5 = vcmp.gt.s32.totalorder %v154_v21, %v895_v12 }
  0x10   : > { %v174_v32 = vadd.s32 56, %v892_v11  ;;  %v138_v34 = vmul.f32 %v137_v27, %v137_v27  ;;  %vm166_vm6 = vcmp.gt.s32.totalorder %v164_v22, %v895_v12  ;;  %v157_v36 = vsel %vm156_vm5, %v151_v30, 0.0  ;;  %v776_v30 = vld [vmem:[%s939_s26 + $0x10] sm:$0xff] }
  0x11   : > { %v119_v33 = vadd.f32 %v118_v28, %v109_v23  ;;  %v148_v38 = vmul.f32 %v147_v31, %v147_v31  ;;  %v167_v40 = vsel %vm166_vm6, %v161_v35, 0.0  ;;  %v158_v42 = vmul.f32 %v157_v36, %v157_v36  ;;  %v240_v31 = vld [vmem:[%s939_s26] sm:$0xff]  ;;  %v779_v36 = vld [vmem:[%s939_s26 + $0x28] sm:$0xff] }
  0x12   : > { %vm176_vm7 = vcmp.gt.s32.totalorder %v174_v32, %v895_v12  ;;  %v168_v45 = vmul.f32 %v167_v40, %v167_v40  ;;  %v202_v57 = vand.u32 2147483647, %v917_v56  ;;  %vm227_vm13 = vcmp.lt.f32.partialorder %v917_v56, 0.0 }
  0x13   : > { %v129_v37 = vadd.f32 %v128_v29, %v119_v33  ;;  %v179_v43 = vsel %vm176_vm7, %v171_v39, 0.0  ;;  %v239_v11 = vmov %v892_v11  ;;  %v777_v33 = vld [vmem:[%s939_s26 + $0x18] sm:$0xff]  ;;  %v951_v35 = vand.u32 127, %v103_v9 }
  0x14   : > { %v180_v47 = vmul.f32 %v179_v43, %v179_v43  ;;  %v203_v62 = vmax.f32 %v202_v57, 0.0  ;;  %v276_v25 = vadd.s32 16, %v239_v11  ;;  %v294_v26 = vadd.s32 24, %v239_v11 }
  0x15   : > { %v139_v41 = vadd.f32 %v138_v34, %v129_v37  ;;  %v258_v27 = vadd.s32 8, %v239_v11  ;;  %v330_v28 = vadd.s32 40, %v239_v11  ;;  %v312_v29 = vadd.s32 32, %v239_v11  ;;  %v775_v34 = vld [vmem:[%s939_s26 + $0x8] sm:$0xff]  ;;  %v778_v37 = vld [vmem:[%s939_s26 + $0x20] sm:$0xff] }
  0x16   : > { %vm278_vm14 = vcmp.gt.s32.totalorder %v276_v25, %v895_v12  ;;  %vm243_vm15 = vcmp.gt.s32.totalorder %v239_v11, %v895_v12  ;;  %v366_v32 = vadd.s32 56, %v239_v11  ;;  %vm296_vm0 = vcmp.gt.s32.totalorder %v294_v26, %v895_v12 }
  0x17   : > { %v149_v44 = vadd.f32 %v148_v38, %v139_v41  ;;  %vm260_vm1 = vcmp.gt.s32.totalorder %v258_v27, %v895_v12  ;;  %vm332_vm2 = vcmp.gt.s32.totalorder %v330_v28, %v895_v12  ;;  %vm314_vm3 = vcmp.gt.s32.totalorder %v312_v29, %v895_v12  ;;  %v397_v29 = vld [vmem:[#allocation2] ss:$0 sm:$0xff] }
  0x18   : > { %v348_v38 = vadd.s32 48, %v239_v11  ;;  %v279_v39 = vsel %vm278_vm14, %v776_v30, 0.0  ;;  %v244_v40 = vsel %vm243_vm15, %v240_v31, 0.0  ;;  %v297_v41 = vsel %vm296_vm0, %v777_v33, 0.0  ;;  %v783_v33 = vld [vmem:[%s1019_s28 + $0x8] sm:$0xff] }
  0x19   : > { %v159_v46 = vadd.f32 %v158_v42, %v149_v44  ;;  %v261_v42 = vsel %vm260_vm1, %v775_v34, 0.0  ;;  %vm368_vm4 = vcmp.gt.s32.totalorder %v366_v32, %v895_v12  ;;  %vm369_vm5 = vcmp.lt.s32.totalorder %v366_v32, 64  ;;  %v407_v32 = vld [vmem:[%s1019_s28] sm:$0xff] }
  0x1a   : > { %v333_v43 = vsel %vm332_vm2, %v779_v36, 0.0  ;;  %v315_v44 = vsel %vm314_vm3, %v778_v37, 0.0  ;;  %vm960_vm6 = vcmp.eq.s32.totalorder %v951_v35, %v895_v12  ;;  %vm350_vm7 = vcmp.gt.s32.totalorder %v348_v38, %v895_v12 }
  0x1b   : > { %v169_v48 = vadd.f32 %v168_v45, %v159_v46  ;;  %v846_v28 = vmov 1.0   ;;  %v404_v11 = vmov %v892_v11  ;;  %vm1092_vm3 = vcmp.gt.s32.totalorder %v951_v35, %v895_v12 }
  0x1d   : > { %v181_v49 = vadd.f32 %v180_v47, %v169_v48 }
  0x1f   : > { %v182_v50 = vrot.slane %v181_v49, 4 }
  0x21   : > { %v183_v51 = vadd.f32 %v182_v50, %v181_v49  ;;  %v781_v50 = vld [vmem:[%s939_s26 + $0x38] sm:$0xff] }
  0x23   : > { %v184_v52 = vrot.slane %v183_v51, 2 }
  0x25   : > { %v185_v53 = vadd.f32 %v184_v52, %v183_v51  ;;  %v780_v52 = vld [vmem:[%s939_s26 + $0x30] sm:$0xff] }
  0x27   : > { %v186_v54 = vrot.slane %v185_v53, 1 }
  0x29   : > { %v913_v55 = vadd.f32 %v186_v54, %v185_v53 }
  0x2b   : > { %827 = vrsqrt.f32 %v913_v55  ;;  %vm190_vm8 = vcmp.eq.f32.partialorder %v913_v55, inf  ;;  %v193_v59 = vand.u32 2147483648, %v913_v55  ;;  %vm192_vm9 = vcmp.eq.f32.partialorder %v913_v55, 0.0 }
  0x38   : > { %v828_v58 = vpop.eup %827 }
  0x39   : > { %v189_v60 = vmul.f32 %v828_v58, %v913_v55 }
  0x3b   : > { %v191_v61 = vsel %vm190_vm8, %v913_v55, %v189_v60  ;;  %vm966_vm8 = vmand %vm368_vm4, %vm369_vm5 }
  0x3c   : > { %v194_v63 = vsel %vm192_vm9, %v193_v59, %v191_v61 }
  0x3d   : > { %v204_v0 = vand.u32 2147483647, %v194_v63  ;;  %v371_v63 = vsel %vm966_vm8, %v781_v50, 0.0  ;;  %v791_v50 = vld [vmem:[%s1019_s28 + $0x28] sm:$0xff] }
  0x3f   : > { %v205_v1 = vmax.f32 %v203_v62, %v204_v0 }
  0x41   : > { %829 = vrcp.f32 %v205_v1  ;;  %vm217_vm12 = vcmp.eq.f32.partialorder %v205_v1, 0.0 }
  0x4e   : > { %v830_v2 = vpop.eup %829 }
  0x4f   : > { %v207_v3 = vmul.f32 %v830_v2, %v202_v57  ;;  %v210_v4 = vmul.f32 0.0, %v830_v2  ;;  %v214_v5 = vmul.f32 %v830_v2, %v204_v0  ;;  %v351_v0 = vsel %vm350_vm7, %v780_v52, 0.0 }
  0x51   : > { %v208_v6 = vmul.f32 %v207_v3, %v207_v3  ;;  %v211_v7 = vmul.f32 %v210_v4, %v210_v4  ;;  %v215_v8 = vmul.f32 %v214_v5, %v214_v5 }
  0x53   : > { %v212_v10 = vadd.f32 %v211_v7, %v208_v6 }
  0x55   : > { %v216_v13 = vadd.f32 %v215_v8, %v212_v10 }
  0x57   : > { %831 = vrsqrt.f32 %v216_v13  ;;  %vm220_vm10 = vcmp.eq.f32.partialorder %v216_v13, inf  ;;  %v223_v15 = vand.u32 2147483648, %v216_v13  ;;  %vm222_vm11 = vcmp.eq.f32.partialorder %v216_v13, 0.0 }
  0x64   : > { %v832_v14 = vpop.eup %831 }
  0x65   : > { %v219_v16 = vmul.f32 %v832_v14, %v216_v13 }
  0x67   : > { %v221_v17 = vsel %vm220_vm10, %v216_v13, %v219_v16 }
  0x68   : > { %v224_v18 = vsel %vm222_vm11, %v223_v15, %v221_v17 }
  0x69   : > { %v225_v19 = vmul.f32 %v224_v18, %v205_v1 }
  0x6b   : > { %v226_v20 = vsel %vm217_vm12, 0.0, %v225_v19 }
  0x6c   : > { %v228_v21 = vxor.u32 2147483648, %v226_v20 }
  0x6e   : > { %v928_v22 = vsel %vm227_vm13, %v226_v20, %v228_v21 }
  0x6f   : > { %v934_v23 = vsel %vm192_vm9, %v917_v56, %v928_v22  ;;  %v230_v3 = vsub.f32 %v928_v22, %v917_v56 }
  0x70   : > { %v235_v24 = vsub.f32 %v917_v56, %v934_v23 }
  0x72   : > { %833 = vrcp.f32 %v235_v24 }
  0x73   : > { %835 = vrcp.f32 %v928_v22 }
  0x7f   : > { %v834_v9 = vpop.eup %833 }
  0x80   : > { %v281_v46 = vmul.f32 %v834_v9, %v279_v39  ;;  %v246_v47 = vmul.f32 %v834_v9, %v244_v40  ;;  %v299_v48 = vmul.f32 %v834_v9, %v297_v41  ;;  %v263_v49 = vmul.f32 %v834_v9, %v261_v42  ;;  %v836_v8 = vpop.eup %835  ;;  %v785_v39 = vld [vmem:[%s1019_s28 + $0x10] sm:$0xff]  ;;  %v787_v42 = vld [vmem:[%s1019_s28 + $0x18] sm:$0xff] }
  0x81   : > { %v335_v53 = vmul.f32 %v834_v9, %v333_v43  ;;  %v317_v54 = vmul.f32 %v834_v9, %v315_v44  ;;  %v373_v6 = vmul.f32 %v834_v9, %v371_v63  ;;  %v353_v7 = vmul.f32 %v834_v9, %v351_v0 }
  0x82   : > { %v282_v57 = vsel %vm192_vm9, 0.0, %v281_v46  ;;  %v247_v58 = vsel %vm192_vm9, 0.0, %v246_v47  ;;  %v300_v59 = vsel %vm192_vm9, 0.0, %v299_v48  ;;  %v264_v60 = vsel %vm192_vm9, 0.0, %v263_v49  ;;  %v789_v46 = vld [vmem:[%s1019_s28 + $0x20] sm:$0xff] }
  0x83   : > { %v287_v61 = vsel %vm960_vm6, %v282_v57, 0.0  ;;  %v252_v62 = vsel %vm960_vm6, %v247_v58, 0.0  ;;  %v305_v1 = vsel %vm960_vm6, %v300_v59, 0.0  ;;  %v269_v2 = vsel %vm960_vm6, %v264_v60, 0.0  ;;  %v795_v57 = vld [vmem:[%s1019_s28 + $0x38] sm:$0xff]  ;;  %v793_v59 = vld [vmem:[%s1019_s28 + $0x30] sm:$0xff]  ;;  %s1044_s28 = smov %s1019_s28 }
  0x84   : > { %288 = vadd.xlane.f32.xlu1 %v287_v61  ;;  %253 = vadd.xlane.f32.xlu0 %v252_v62  ;;  %v336_v4 = vsel %vm192_vm9, 0.0, %v335_v53  ;;  %v318_v5 = vsel %vm192_vm9, 0.0, %v317_v54  ;;  %v374_v56 = vsel %vm192_vm9, 0.0, %v373_v6  ;;  %v354_v14 = vsel %vm192_vm9, 0.0, %v353_v7  ;;  %s638_s30 = scalar_lea.vmem %s1044_s28, %s843_s25  ;;  %s101_s25 = sadd.s32 1, %s843_s25  }
  0x85   : > { %v341_v10 = vsel %vm960_vm6, %v336_v4, 0.0  ;;  %v323_v13 = vsel %vm960_vm6, %v318_v5, 0.0  ;;  %v232_v15 = vmul.f32 %v836_v8, %v230_v3  ;;  %v379_v16 = vsel %vm960_vm6, %v374_v56, 0.0  ;;  %p98_p0 = scmp.ge.s32.totalorder %s101_s25, 32  }
  0x86   : > { %v359_v17 = vsel %vm960_vm6, %v354_v14, 0.0  ;;  %v451_v53 = vadd.s32 56, %v404_v11  ;;  %v470_v11 = vmov %v892_v11 }
  0x87   : > { %v234_v18 = vsel %vm192_vm9, 0.0, %v232_v15  ;;  %v491_v6 = vadd.s32 8, %v470_v11  ;;  %v512_v8 = vadd.s32 16, %v470_v11  ;;  %vm487_vm10 = vcmp.ge.s32.totalorder %v470_v11, %v895_v12 }
  0x88   : > { %306 = vadd.xlane.f32.xlu1 %v305_v1  ;;  %270 = vadd.xlane.f32.xlu0 %v269_v2  ;;  %v390_v19 = vsel %vm960_vm6, %v234_v18, 0.0  ;;  %vm457_vm9 = vcmp.lt.s32.totalorder %v451_v53, 64  ;;  %v554_v14 = vadd.s32 32, %v470_v11  ;;  %vm1052_vm13 = vmand %vm960_vm6, %vm487_vm10  ;;  %v617_v18 = vadd.s32 56, %v470_v11 }
  0x89   : > { %vm508_vm11 = vcmp.ge.s32.totalorder %v491_v6, %v895_v12  ;;  %vm529_vm12 = vcmp.ge.s32.totalorder %v512_v8, %v895_v12 }
  0x8a   : > { %vm1059_vm15 = vmand %vm960_vm6, %vm508_vm11  ;;  %vm571_vm2 = vcmp.ge.s32.totalorder %v554_v14, %v895_v12  ;;  %vm634_vm7 = vcmp.ge.s32.totalorder %v617_v18, %v895_v12 }
  0x8b   : > { %vm1068_vm0 = vmand %vm960_vm6, %vm529_vm12 }
  0x8c   : > { %342 = vadd.xlane.f32.xlu1 %v341_v10  ;;  %324 = vadd.xlane.f32.xlu0 %v323_v13  ;;  %v533_v10 = vadd.s32 24, %v470_v11  ;;  %vm1106_vm8 = vmand %vm960_vm6, %vm571_vm2 }
  0x8d   : > { %vm1130_vm11 = vmand %vm960_vm6, %vm634_vm7 }
  0x8e   : > { %vm550_vm14 = vcmp.ge.s32.totalorder %v533_v10, %v895_v12 }
  0x8f   : > { %vm1077_vm1 = vmand %vm960_vm6, %vm550_vm14 }
  0x90   : > { %380 = vadd.xlane.f32.xlu1 %v379_v16  ;;  %360 = vadd.xlane.f32.xlu0 %v359_v17  ;;  %v575_v16 = vadd.s32 40, %v470_v11  ;;  %v596_v17 = vadd.s32 48, %v470_v11  ;;  %v803_v11 = vld [vmem:[%s1044_s28 + $0x18] sm:$0xff] }
  0x92   : > { %vm592_vm4 = vcmp.ge.s32.totalorder %v575_v16, %v895_v12  ;;  %vm613_vm5 = vcmp.ge.s32.totalorder %v596_v17, %v895_v12 }
  0x93   : > { %vm1122_vm10 = vmand %vm960_vm6, %vm613_vm5 }
  0x94   : > { %391 = vadd.xlane.f32.xlu0 %v390_v19 }
 0x10d   : > { %v289_v20 = vpop.xlane.xlu1 %288  ;;  %v254_v21 = vpop.xlane.xlu0 %253 }
 0x10e   : > { %291 = vst [vmem:[#allocation4 + $0x10] sm:$0xff] %v289_v20  ;;  %255 = vst [vmem:[#allocation4] sm:$0xff] %v254_v21  ;;  %v477_v21 = vld [vmem:[%s1044_s28] sm:$0xff] }
 0x111   : > { %v307_v22 = vpop.xlane.xlu1 %306  ;;  %v271_v24 = vpop.xlane.xlu0 %270 }
 0x112   : > { %309 = vst [vmem:[#allocation4 + $0x18] sm:$0xff] %v307_v22  ;;  %273 = vst [vmem:[#allocation4 + $0x8] sm:$0xff] %v271_v24  ;;  %v797_v22 = vld [vmem:[%s1044_s28 + $0x8] sm:$0xff]  ;;  %v800_v24 = vld [vmem:[%s1044_s28 + $0x10] sm:$0xff] }
 0x115   : > { %v343_v25 = vpop.xlane.xlu1 %342  ;;  %v325_v26 = vpop.xlane.xlu0 %324 }
 0x116   : > { %345 = vst [vmem:[#allocation4 + $0x28] sm:$0xff] %v343_v25  ;;  %327 = vst [vmem:[#allocation4 + $0x20] sm:$0xff] %v325_v26 }
 0x119   : > { %v381_v55 = vpop.xlane.xlu1 %380  ;;  %v361_v27 = vpop.xlane.xlu0 %360 }
 0x11a   : > { %383 = vst [vmem:[#allocation4 + $0x38] sm:$0xff] %v381_v55  ;;  %363 = vst [vmem:[#allocation4 + $0x30] sm:$0xff] %v361_v27 }
 0x11b   : > { %385 = vst [vmem:[%s384_s27] sm:$0x1] %v846_v28  ;;  %v806_v28 = vld [vmem:[%s1044_s28 + $0x20] sm:$0xff] }
 0x11d   : > { %v1014_v30 = vpop.xlane.xlu0 %391 }
 0x11e   : > { %v398_v31 = vsel %vm960_vm6, %v1014_v30, %v397_v29  ;;  %v809_v29 = vld [vmem:[%s1044_s28 + $0x28] sm:$0xff] }
 0x11f   : > { %399 = vst [vmem:[#allocation2] sm:$0x1] %v398_v31  ;;  %v812_v31 = vld [vmem:[%s1044_s28 + $0x30] sm:$0xff] }
 0x122   : > { %v406_v34 = vld [vmem:[%s1021_s29] sm:$0xff]  ;;  %v782_v37 = vld [vmem:[%s1021_s29 + $0x8] sm:$0xff]  ;;  %v784_v38 = vld [vmem:[%s1021_s29 + $0x10] sm:$0xff] }
 0x123   : > { %v408_v36 = vmul.f32 %v407_v32, %v406_v34  ;;  %v414_v40 = vmul.f32 %v783_v33, %v782_v37  ;;  %v786_v41 = vld [vmem:[%s1021_s29 + $0x18] sm:$0xff]  ;;  %v421_v44 = vmul.f32 %v785_v39, %v784_v38  ;;  %v788_v9 = vld [vmem:[%s1021_s29 + $0x20] sm:$0xff]  ;;  %v790_v49 = vld [vmem:[%s1021_s29 + $0x28] sm:$0xff] }
 0x124   : > { %v428_v48 = vmul.f32 %v787_v42, %v786_v41  ;;  %v435_v52 = vmul.f32 %v789_v46, %v788_v9  ;;  %v794_v54 = vld [vmem:[%s1021_s29 + $0x38] sm:$0xff]  ;;  %v792_v58 = vld [vmem:[%s1021_s29 + $0x30] sm:$0xff]  ;;  %v442_v61 = vmul.f32 %v791_v50, %v790_v49  ;;  %s1048_s29 = smov %s1021_s29 }
 0x125   : > { %v415_v43 = vadd.f32 %v414_v40, %v408_v36  ;;  %v456_v62 = vmul.f32 %v795_v57, %v794_v54  ;;  %v449_v0 = vmul.f32 %v793_v59, %v792_v58  ;;  %v475_v26 = vld [vmem:[%s1048_s29] sm:$0xff]  ;;  %v796_v55 = vld [vmem:[%s1048_s29 + $0x8] sm:$0xff]  ;;  %v815_v32 = vld [vmem:[%s1044_s28 + $0x38] sm:$0xff] }
 0x126   : > { %v799_v34 = vld [vmem:[%s1048_s29 + $0x10] sm:$0xff]  ;;  %v802_v36 = vld [vmem:[%s1048_s29 + $0x18] sm:$0xff]  ;;  %v805_v37 = vld [vmem:[%s1048_s29 + $0x20] sm:$0xff] }
 0x127   : > { %v422_v47 = vadd.f32 %v421_v44, %v415_v43  ;;  %v458_v2 = vsel %vm457_vm9, %v456_v62, 0.0  ;;  %v808_v39 = vld [vmem:[%s1048_s29 + $0x28] sm:$0xff]  ;;  %v811_v40 = vld [vmem:[%s1048_s29 + $0x30] sm:$0xff]  ;;  %v814_v41 = vld [vmem:[%s1048_s29 + $0x38] sm:$0xff] }
 0x128   : > { %vm1114_vm9 = vmand %vm960_vm6, %vm592_vm4  ;;  %v650_v17 = vld [vmem:[#allocation2] sm:$0x1] (%p98_p0) }
 0x129   : > { %v429_v51 = vadd.f32 %v428_v48, %v422_v47  ;;  %653 = vst [vmem:[#allocation3] sm:$0x1] (%p98_p0), %v650_v17 }
 0x12b   : > { %v436_v60 = vadd.f32 %v435_v52, %v429_v51 }
 0x12d   : > { %v443_v63 = vadd.f32 %v442_v61, %v436_v60 }
 0x12f   : > { %v450_v1 = vadd.f32 %v449_v0, %v443_v63 }
 0x130   :  { %v733_v25 = vld [vmem:[#allocation3] sm:$0x1] (%p98_p0) }
 0x131   : > { %v459_v3 = vadd.f32 %v458_v2, %v450_v1  ;;  %734 = vst [vmem:[%s1211_s2] sm:$0x1] (%p98_p0), %v733_v25 }
 0x133   : > { %v460_v4 = vrot.slane %v459_v3, 4 }
 0x135   : > { %v461_v5 = vadd.f32 %v460_v4, %v459_v3 }
 0x137   : > { %v462_v7 = vrot.slane %v461_v5, 2 }
 0x139   : > { %v463_v13 = vadd.f32 %v462_v7, %v461_v5 }
 0x13b   : > { %v464_v56 = vrot.slane %v463_v13, 1 }
 0x13d   : > { %v465_v19 = vadd.f32 %v464_v56, %v463_v13 }
 0x13f   : > { %v471_v33 = vmul.f32 %v465_v19, %v1014_v30 }
 0x141   : > { %v476_v42 = vmul.f32 %v475_v26, %v471_v33  ;;  %v496_v30 = vmul.f32 %v796_v55, %v471_v33  ;;  %v517_v43 = vmul.f32 %v799_v34, %v471_v33  ;;  %v538_v44 = vmul.f32 %v802_v36, %v471_v33 }
 0x142   : > { %v559_v9 = vmul.f32 %v805_v37, %v471_v33  ;;  %v580_v46 = vmul.f32 %v808_v39, %v471_v33  ;;  %v601_v47 = vmul.f32 %v811_v40, %v471_v33  ;;  %v622_v48 = vmul.f32 %v814_v41, %v471_v33 }
 0x143   : > { %v480_v50 = vsub.f32 %v477_v21, %v476_v42  ;;  %v501_v51 = vsub.f32 %v797_v22, %v496_v30  ;;  %v522_v52 = vsub.f32 %v800_v24, %v517_v43  ;;  %v543_v53 = vsub.f32 %v803_v11, %v538_v44 }
 0x144   : > { %v564_v57 = vsub.f32 %v806_v28, %v559_v9  ;;  %v585_v58 = vsub.f32 %v809_v29, %v580_v46  ;;  %v606_v59 = vsub.f32 %v812_v31, %v601_v47  ;;  %v627_v60 = vsub.f32 %v815_v32, %v622_v48 }
 0x145   : > { %v481_v62 = vsel %vm1092_vm3, %v480_v50, %v477_v21  ;;  %v502_v63 = vsel %vm1092_vm3, %v501_v51, %v797_v22  ;;  %v523_v0 = vsel %vm1092_vm3, %v522_v52, %v800_v24  ;;  %v544_v1 = vsel %vm1092_vm3, %v543_v53, %v803_v11 }
 0x146   : > { %v489_v12 = vsel %vm1052_vm13, %v475_v26, %v481_v62  ;;  %v510_v2 = vsel %vm1059_vm15, %v796_v55, %v502_v63  ;;  %v531_v3 = vsel %vm1068_vm0, %v799_v34, %v523_v0  ;;  %v552_v4 = vsel %vm1077_vm1, %v802_v36, %v544_v1 }
 0x147   : > { %490 = vst [vmem:[%s1044_s28] sm:$0xff] %v489_v12  ;;  %798 = vst [vmem:[%s1044_s28 + $0x8] sm:$0xff] %v510_v2  ;;  %v565_v5 = vsel %vm1092_vm3, %v564_v57, %v806_v28  ;;  %v586_v6 = vsel %vm1092_vm3, %v585_v58, %v809_v29  ;;  %v607_v7 = vsel %vm1092_vm3, %v606_v59, %v812_v31 }
 0x148   : > { %801 = vst [vmem:[%s1044_s28 + $0x10] sm:$0xff] %v531_v3  ;;  %804 = vst [vmem:[%s1044_s28 + $0x18] sm:$0xff] %v552_v4  ;;  %v628_v8 = vsel %vm1092_vm3, %v627_v60, %v815_v32  ;;  %v573_v10 = vsel %vm1106_vm8, %v805_v37, %v565_v5  ;;  %v594_v13 = vsel %vm1114_vm9, %v808_v39, %v586_v6 }
 0x149   : > { %v615_v56 = vsel %vm1122_vm10, %v811_v40, %v607_v7  ;;  %v636_v14 = vsel %vm1130_vm11, %v814_v41, %v628_v8  ;;  %807 = vst [vmem:[%s1044_s28 + $0x20] sm:$0xff] %v573_v10  ;;  %810 = vst [vmem:[%s1044_s28 + $0x28] sm:$0xff] %v594_v13 }
 0x14a   : > { %813 = vst [vmem:[%s1044_s28 + $0x30] sm:$0xff] %v615_v56  ;;  %816 = vst [vmem:[%s1044_s28 + $0x38] sm:$0xff] %v636_v14 }
 0x14f   :  { %100 = sbr.rel (!%p98_p0) target bundleno = 7 (0x7), region = 202 }
 0x151   : > { %v639_v15 = vld [vmem:[%s638_s30] ss:$0 sm:$0xff] }
 0x152   : > { %v644_v16 = vsel %vm960_vm6, %v934_v23, %v639_v15 }
 0x153   : > { %645 = vst [vmem:[%s638_s30] sm:$0x1] %v644_v16 }
 0x15a   :  { %v696_v18 = vld [vmem:[#allocation1] sm:$0xff]  ;;  %v698_v19 = vld [vmem:[#allocation1 + $0x8] sm:$0xff]  ;;  %v700_v23 = vld [vmem:[#allocation1 + $0x10] sm:$0xff] }
 0x15b   :  { %697 = vst [vmem:[%s1210_s1] sm:$0xff] %v696_v18  ;;  %699 = vst [vmem:[%s1210_s1 + $0x8] sm:$0xff] %v698_v19  ;;  %v702_v45 = vld [vmem:[#allocation1 + $0x18] sm:$0xff]  ;;  %v704_v20 = vld [vmem:[#allocation1 + $0x20] sm:$0xff] }
 0x15c   :  { %701 = vst [vmem:[%s1210_s1 + $0x10] sm:$0xff] %v700_v23  ;;  %703 = vst [vmem:[%s1210_s1 + $0x18] sm:$0xff] %v702_v45  ;;  %v706_v21 = vld [vmem:[#allocation1 + $0x28] sm:$0xff]  ;;  %v708_v22 = vld [vmem:[#allocation1 + $0x30] sm:$0xff] }
 0x15d   :  { %705 = vst [vmem:[%s1210_s1 + $0x20] sm:$0xff] %v704_v20  ;;  %v710_v24 = vld [vmem:[#allocation1 + $0x38] sm:$0xff]  ;;  %707 = vst [vmem:[%s1210_s1 + $0x28] sm:$0xff] %v706_v21 }
 0x15e   :  { %709 = vst [vmem:[%s1210_s1 + $0x30] sm:$0xff] %v708_v22  ;;  %711 = vst [vmem:[%s1210_s1 + $0x38] sm:$0xff] %v710_v24 }

// kernel: custom-call.137
= control target key start
LH: loop header
LB: loop body
LE: loop exit
PB: predicated region body
PF: predicated region fallthrough
CT: control target
= control target key end

     0   :  { %v1563_v0 = vmov 0.0   ;;  %vm54_vm0 = vcmask 7168   ;;  %vm111_vm1 = vcmask 15368   ;;  %vm128_vm2 = vcmask 1047553   ;;  %s1952_s0 = inlined_call_operand.vmem [shape: f32[32,32], index: 0, kind: input, shape index: {}]   ;;  %s1953_s1 = inlined_call_operand.vmem [shape: f32[32,32], index: 1, kind: output, shape index: {}]  }
   0x1   :  { %47 = vst [vmem:[#allocation1] sm:$0xff] %v1563_v0  ;;  %v1579_v4 = vld [vmem:[%s1952_s0] sm:$0xff]  ;;  %v1597_v16 = vld [vmem:[%s1952_s0 + $0x8] sm:$0xff]  ;;  %vm129_vm3 = vmand %vm111_vm1, %vm128_vm2  ;;  %vm172_vm4 = vcmask 23568   ;;  %vm189_vm5 = vcmask 1047554   ;;  %vm233_vm7 = vcmask 31768  }
   0x2   :  { %37 = vst [vmem:[#allocation0] sm:$0xff] %v1579_v4  ;;  %39 = vst [vmem:[#allocation0 + $0x8] sm:$0xff] %v1597_v16  ;;  %v1619_v34 = vld [vmem:[%s1952_s0 + $0x10] sm:$0xff]  ;;  %v1640_v55 = vld [vmem:[%s1952_s0 + $0x18] sm:$0xff]  ;;  %vm250_vm8 = vcmask 1047555   ;;  %vm294_vm10 = vcmask 39968  }
   0x3   :  { %41 = vst [vmem:[#allocation0 + $0x10] sm:$0xff] %v1619_v34  ;;  %vm190_vm6 = vmand %vm172_vm4, %vm189_vm5  ;;  %vm311_vm11 = vcmask 1047556   ;;  %vm355_vm13 = vcmask 48168   ;;  %vm372_vm14 = vcmask 1047557  }
   0x4   :  { %43 = vst [vmem:[#allocation0 + $0x18] sm:$0xff] %v1640_v55  ;;  %vm251_vm9 = vmand %vm233_vm7, %vm250_vm8 }
   0x5   :  { %vm312_vm12 = vmand %vm294_vm10, %vm311_vm11 }
   0x6   :  { %vm373_vm15 = vmand %vm355_vm13, %vm372_vm14 }
   0x8   :  { %v55_v1 = vld [vmem:[#allocation1] ss:$0 sm:$0xff] }
   0x9   :  { %v57_v2 = vmul.f32 %v55_v1, %v55_v1  ;;  %v1574_v3 = vmul.f32 0.0, %v55_v1  ;;  %v56_v5 = vld [vmem:[#allocation0] ss:$0 sm:$0xff]  ;;  %v115_v17 = vld [vmem:[#allocation0 + $0x1] ss:$0 sm:$0xff] }
   0xa   :  { %v176_v41 = vld [vmem:[#allocation0 + $0x2] ss:$0 sm:$0xff] }
   0xb   :  { %58 = vadd.xlane.f32.xlu0 %v57_v2 }
   0xf   :  { %65 = vadd.xlane.f32.xlu0 %v1574_v3 }
  0x94   :  { %v59_v6 = vpop.xlane.xlu0 %58 }
  0x95   :  { %v60_v7 = vsub.f32 %v56_v5, %v59_v6 }
  0x97   :  { %1498 = vrsqrt.f32 %v60_v7 }
  0x98   :  { %v66_v8 = vpop.xlane.xlu0 %65 }
  0x99   :  { %v67_v9 = vsub.f32 %v1579_v4, %v66_v8  ;;  %v237_v8 = vld [vmem:[#allocation0 + $0x3] ss:$0 sm:$0xff] }
  0xa4   :  { %v1584_v10 = vpop.eup %1498 }
  0xa5   :  { %v68_v11 = vmul.f32 %v1584_v10, %v67_v9 }
  0xa7   :  { %v69_v12 = vsel %vm54_vm0, %v68_v11, 0.0 }
  0xa8   :  { %71 = vst [vmem:[#allocation1] sm:$0xff] %v69_v12 }
  0xaf   :  { %v1588_v13 = vld [vmem:[#allocation1 + $0x1] ss:$0 sm:$0xff] }
  0xb0   :  { %v123_v14 = vmul.f32 %v1588_v13, %v69_v12  ;;  %v116_v15 = vmul.f32 %v1588_v13, %v1588_v13 }
  0xb2   :  { %124 = vadd.xlane.f32.xlu0 %v123_v14  ;;  %117 = vadd.xlane.f32.xlu1 %v116_v15 }
  0xb6   :  { %77 = vadd.xlane.f32.xlu1 %v1574_v3 }
 0x13b   :  { %v118_v18 = vpop.xlane.xlu1 %117  ;;  %v125_v24 = vpop.xlane.xlu0 %124 }
 0x13c   :  { %v119_v19 = vsub.f32 %v115_v17, %v118_v18  ;;  %v126_v26 = vsub.f32 %v1579_v4, %v125_v24 }
 0x13e   :  { %1500 = vrsqrt.f32 %v119_v19 }
 0x13f   :  { %v78_v20 = vpop.xlane.xlu1 %77 }
 0x140   :  { %v79_v21 = vsub.f32 %v1597_v16, %v78_v20 }
 0x142   :  { %v80_v22 = vmul.f32 %v1584_v10, %v79_v21 }
 0x144   :  { %v81_v23 = vsel %vm54_vm0, %v80_v22, 0.0 }
 0x145   :  { %v137_v25 = vmul.f32 %v1588_v13, %v81_v23 }
 0x147   :  { %138 = vadd.xlane.f32.xlu1 %v137_v25 }
 0x14b   :  { %v1605_v27 = vpop.eup %1500 }
 0x14c   :  { %v127_v28 = vmul.f32 %v1605_v27, %v126_v26 }
 0x14e   :  { %v130_v29 = vsel %vm129_vm3, %v127_v28, 0.0 }
 0x14f   :  { %v131_v30 = vadd.f32 %v130_v29, %v69_v12 }
 0x151   :  { %132 = vst [vmem:[#allocation1] sm:$0xff] %v131_v30 }
 0x158   :  { %v1610_v31 = vld [vmem:[#allocation1 + $0x2] ss:$0 sm:$0xff] }
 0x159   :  { %v177_v32 = vmul.f32 %v1610_v31, %v1610_v31  ;;  %v184_v33 = vmul.f32 %v1610_v31, %v131_v30 }
 0x15b   :  { %178 = vadd.xlane.f32.xlu0 %v177_v32  ;;  %185 = vadd.xlane.f32.xlu1 %v184_v33 }
 0x15f   :  { %90 = vadd.xlane.f32.xlu0 %v1574_v3 }
 0x1d0   :  { %v139_v35 = vpop.xlane.xlu1 %138 }
 0x1d1   :  { %v140_v36 = vsub.f32 %v1597_v16, %v139_v35 }
 0x1d3   :  { %v141_v37 = vmul.f32 %v1605_v27, %v140_v36 }
 0x1d5   :  { %v142_v38 = vsel %vm111_vm1, %v141_v37, 0.0 }
 0x1d6   :  { %v143_v39 = vadd.f32 %v142_v38, %v81_v23 }
 0x1d8   :  { %v198_v40 = vmul.f32 %v1610_v31, %v143_v39 }
 0x1da   :  { %199 = vadd.xlane.f32.xlu1 %v198_v40 }
 0x1e4   :  { %v179_v42 = vpop.xlane.xlu0 %178  ;;  %v186_v48 = vpop.xlane.xlu1 %185 }
 0x1e5   :  { %v180_v43 = vsub.f32 %v176_v41, %v179_v42  ;;  %v187_v50 = vsub.f32 %v1579_v4, %v186_v48  ;;  %v298_v41 = vld [vmem:[#allocation0 + $0x4] ss:$0 sm:$0xff] }
 0x1e7   :  { %1502 = vrsqrt.f32 %v180_v43 }
 0x1e8   :  { %v91_v44 = vpop.xlane.xlu0 %90 }
 0x1e9   :  { %v92_v45 = vsub.f32 %v1619_v34, %v91_v44 }
 0x1eb   :  { %v93_v46 = vmul.f32 %v1584_v10, %v92_v45 }
 0x1ed   :  { %v94_v47 = vsel %vm54_vm0, %v93_v46, 0.0 }
 0x1ee   :  { %v150_v49 = vmul.f32 %v1588_v13, %v94_v47 }
 0x1f0   :  { %151 = vadd.xlane.f32.xlu1 %v150_v49 }
 0x1f4   :  { %v1631_v51 = vpop.eup %1502  ;;  %103 = vadd.xlane.f32.xlu1 %v1574_v3 }
 0x1f5   :  { %v188_v52 = vmul.f32 %v1631_v51, %v187_v50 }
 0x1f7   :  { %v191_v53 = vsel %vm190_vm6, %v188_v52, 0.0  ;;  %vm538_vm6 = vcmask 72768  }
 0x1f8   :  { %v192_v54 = vadd.f32 %v191_v53, %v131_v30 }
 0x1fa   :  { %193 = vst [vmem:[#allocation1] sm:$0xff] %v192_v54 }
 0x201   :  { %v1643_v56 = vld [vmem:[#allocation1 + $0x3] ss:$0 sm:$0xff] }
 0x202   :  { %v238_v57 = vmul.f32 %v1643_v56, %v1643_v56  ;;  %v245_v58 = vmul.f32 %v1643_v56, %v192_v54 }
 0x204   :  { %239 = vadd.xlane.f32.xlu0 %v238_v57 }
 0x208   :  { %246 = vadd.xlane.f32.xlu0 %v245_v58 }
 0x263   :  { %v200_v59 = vpop.xlane.xlu1 %199 }
 0x264   :  { %v201_v60 = vsub.f32 %v1597_v16, %v200_v59 }
 0x266   :  { %v202_v61 = vmul.f32 %v1631_v51, %v201_v60 }
 0x268   :  { %v203_v62 = vsel %vm172_vm4, %v202_v61, 0.0 }
 0x269   :  { %v204_v63 = vadd.f32 %v203_v62, %v143_v39 }
 0x26b   :  { %v259_v0 = vmul.f32 %v1643_v56, %v204_v63 }
 0x26d   :  { %260 = vadd.xlane.f32.xlu0 %v259_v0 }
 0x279   :  { %v152_v1 = vpop.xlane.xlu1 %151 }
 0x27a   :  { %v153_v2 = vsub.f32 %v1619_v34, %v152_v1 }
 0x27c   :  { %v154_v3 = vmul.f32 %v1605_v27, %v153_v2 }
 0x27d   :  { %v104_v17 = vpop.xlane.xlu1 %103 }
 0x27e   :  { %v155_v5 = vsel %vm111_vm1, %v154_v3, 0.0  ;;  %v105_v19 = vsub.f32 %v1640_v55, %v104_v17 }
 0x27f   :  { %v156_v6 = vadd.f32 %v155_v5, %v94_v47 }
 0x280   :  { %v106_v22 = vmul.f32 %v1584_v10, %v105_v19  ;;  %v359_v19 = vld [vmem:[#allocation0 + $0x5] ss:$0 sm:$0xff] }
 0x281   :  { %v211_v7 = vmul.f32 %v1610_v31, %v156_v6 }
 0x282   :  { %v107_v23 = vsel %vm54_vm0, %v106_v22, 0.0  ;;  %vm416_vm0 = vcmask 56368  }
 0x283   :  { %212 = vadd.xlane.f32.xlu1 %v211_v7  ;;  %v163_v28 = vmul.f32 %v1588_v13, %v107_v23 }
 0x28d   :  { %v240_v9 = vpop.xlane.xlu0 %239 }
 0x28e   :  { %v241_v11 = vsub.f32 %v237_v8, %v240_v9 }
 0x290   :  { %1504 = vrsqrt.f32 %v241_v11 }
 0x291   :  { %v247_v12 = vpop.xlane.xlu0 %246 }
 0x292   :  { %v248_v14 = vsub.f32 %v1579_v4, %v247_v12 }
 0x29d   :  { %v1657_v15 = vpop.eup %1504 }
 0x29e   :  { %v249_v18 = vmul.f32 %v1657_v15, %v248_v14 }
 0x2a0   :  { %v252_v20 = vsel %vm251_vm9, %v249_v18, 0.0 }
 0x2a1   :  { %v253_v21 = vadd.f32 %v252_v20, %v192_v54 }
 0x2a3   :  { %254 = vst [vmem:[#allocation1] sm:$0xff] %v253_v21 }
 0x2aa   :  { %v1665_v24 = vld [vmem:[#allocation1 + $0x4] ss:$0 sm:$0xff] }
 0x2ab   :  { %v299_v25 = vmul.f32 %v1665_v24, %v1665_v24  ;;  %v306_v26 = vmul.f32 %v1665_v24, %v253_v21 }
 0x2ad   :  { %300 = vadd.xlane.f32.xlu0 %v299_v25  ;;  %307 = vadd.xlane.f32.xlu1 %v306_v26 }
 0x2b1   :  { %164 = vadd.xlane.f32.xlu0 %v163_v28 }
 0x2f6   :  { %v261_v29 = vpop.xlane.xlu0 %260 }
 0x2f7   :  { %v262_v30 = vsub.f32 %v1597_v16, %v261_v29 }
 0x2f9   :  { %v263_v32 = vmul.f32 %v1657_v15, %v262_v30 }
 0x2fb   :  { %v264_v10 = vsel %vm233_vm7, %v263_v32, 0.0 }
 0x2fc   :  { %v265_v33 = vadd.f32 %v264_v10, %v204_v63 }
 0x2fe   :  { %v320_v35 = vmul.f32 %v1665_v24, %v265_v33 }
 0x300   :  { %321 = vadd.xlane.f32.xlu1 %v320_v35 }
 0x30c   :  { %v213_v36 = vpop.xlane.xlu1 %212 }
 0x30d   :  { %v214_v37 = vsub.f32 %v1619_v34, %v213_v36 }
 0x30f   :  { %v215_v38 = vmul.f32 %v1631_v51, %v214_v37 }
 0x311   :  { %v216_v39 = vsel %vm172_vm4, %v215_v38, 0.0 }
 0x312   :  { %v217_v13 = vadd.f32 %v216_v39, %v156_v6 }
 0x314   :  { %v272_v40 = vmul.f32 %v1643_v56, %v217_v13 }
 0x316   :  { %273 = vadd.xlane.f32.xlu0 %v272_v40 }
 0x336   :  { %v301_v42 = vpop.xlane.xlu0 %300  ;;  %v308_v49 = vpop.xlane.xlu1 %307 }
 0x337   :  { %v302_v43 = vsub.f32 %v298_v41, %v301_v42  ;;  %v309_v52 = vsub.f32 %v1579_v4, %v308_v49  ;;  %v420_v49 = vld [vmem:[#allocation0 + $0x6] ss:$0 sm:$0xff] }
 0x339   :  { %1506 = vrsqrt.f32 %v302_v43 }
 0x33a   :  { %v165_v44 = vpop.xlane.xlu0 %164 }
 0x33b   :  { %v166_v45 = vsub.f32 %v1640_v55, %v165_v44 }
 0x33d   :  { %v167_v46 = vmul.f32 %v1605_v27, %v166_v45 }
 0x33f   :  { %v168_v47 = vsel %vm111_vm1, %v167_v46, 0.0  ;;  %vm433_vm1 = vcmask 1047558  }
 0x340   :  { %v169_v48 = vadd.f32 %v168_v47, %v107_v23  ;;  %vm434_vm3 = vmand %vm416_vm0, %vm433_vm1 }
 0x342   :  { %v224_v50 = vmul.f32 %v1610_v31, %v169_v48 }
 0x344   :  { %225 = vadd.xlane.f32.xlu0 %v224_v50 }
 0x346   :  { %v1684_v53 = vpop.eup %1506 }
 0x347   :  { %v310_v54 = vmul.f32 %v1684_v53, %v309_v52 }
 0x349   :  { %v313_v57 = vsel %vm312_vm12, %v310_v54, 0.0 }
 0x34a   :  { %v314_v27 = vadd.f32 %v313_v57, %v253_v21 }
 0x34c   :  { %315 = vst [vmem:[#allocation1] sm:$0xff] %v314_v27 }
 0x353   :  { %v1689_v58 = vld [vmem:[#allocation1 + $0x5] ss:$0 sm:$0xff] }
 0x354   :  { %v360_v31 = vmul.f32 %v1689_v58, %v1689_v58  ;;  %v367_v59 = vmul.f32 %v1689_v58, %v314_v27 }
 0x356   :  { %361 = vadd.xlane.f32.xlu1 %v360_v31 }
 0x35a   :  { %368 = vadd.xlane.f32.xlu1 %v367_v59 }
 0x389   :  { %v322_v60 = vpop.xlane.xlu1 %321 }
 0x38a   :  { %v323_v61 = vsub.f32 %v1597_v16, %v322_v60 }
 0x38c   :  { %v324_v62 = vmul.f32 %v1684_v53, %v323_v61 }
 0x38e   :  { %v325_v63 = vsel %vm294_vm10, %v324_v62, 0.0 }
 0x38f   :  { %v326_v0 = vadd.f32 %v325_v63, %v265_v33 }
 0x391   :  { %v381_v1 = vmul.f32 %v1689_v58, %v326_v0 }
 0x393   :  { %382 = vadd.xlane.f32.xlu0 %v381_v1 }
 0x39f   :  { %v274_v2 = vpop.xlane.xlu0 %273 }
 0x3a0   :  { %v275_v3 = vsub.f32 %v1619_v34, %v274_v2 }
 0x3a2   :  { %v276_v5 = vmul.f32 %v1657_v15, %v275_v3 }
 0x3a4   :  { %v277_v6 = vsel %vm233_vm7, %v276_v5, 0.0 }
 0x3a5   :  { %v278_v7 = vadd.f32 %v277_v6, %v217_v13 }
 0x3a7   :  { %v333_v8 = vmul.f32 %v1665_v24, %v278_v7 }
 0x3a9   :  { %334 = vadd.xlane.f32.xlu1 %v333_v8 }
 0x3cd   :  { %v226_v9 = vpop.xlane.xlu0 %225 }
 0x3ce   :  { %v227_v11 = vsub.f32 %v1640_v55, %v226_v9 }
 0x3d0   :  { %v228_v12 = vmul.f32 %v1631_v51, %v227_v11 }
 0x3d2   :  { %v229_v14 = vsel %vm172_vm4, %v228_v12, 0.0  ;;  %vm477_vm4 = vcmask 64568  }
 0x3d3   :  { %v230_v17 = vadd.f32 %v229_v14, %v169_v48 }
 0x3d5   :  { %v285_v18 = vmul.f32 %v1643_v56, %v230_v17 }
 0x3d7   :  { %286 = vadd.xlane.f32.xlu0 %v285_v18 }
 0x3df   :  { %v362_v20 = vpop.xlane.xlu1 %361 }
 0x3e0   :  { %v363_v21 = vsub.f32 %v359_v19, %v362_v20  ;;  %v481_v19 = vld [vmem:[#allocation0 + $0x7] ss:$0 sm:$0xff] }
 0x3e2   :  { %1508 = vrsqrt.f32 %v363_v21 }
 0x3e3   :  { %v369_v22 = vpop.xlane.xlu1 %368 }
 0x3e4   :  { %v370_v23 = vsub.f32 %v1579_v4, %v369_v22 }
 0x3ef   :  { %v1707_v25 = vpop.eup %1508 }
 0x3f0   :  { %v371_v51 = vmul.f32 %v1707_v25, %v370_v23 }
 0x3f2   :  { %v374_v26 = vsel %vm373_vm15, %v371_v51, 0.0 }
 0x3f3   :  { %v375_v28 = vadd.f32 %v374_v26, %v314_v27 }
 0x3f5   :  { %376 = vst [vmem:[#allocation1] sm:$0xff] %v375_v28 }
 0x3fc   :  { %v1712_v56 = vld [vmem:[#allocation1 + $0x6] ss:$0 sm:$0xff] }
 0x3fd   :  { %v428_v29 = vmul.f32 %v1712_v56, %v375_v28  ;;  %v421_v30 = vmul.f32 %v1712_v56, %v1712_v56 }
 0x3ff   :  { %429 = vadd.xlane.f32.xlu0 %v428_v29  ;;  %422 = vadd.xlane.f32.xlu1 %v421_v30 }
 0x41c   :  { %v383_v32 = vpop.xlane.xlu0 %382 }
 0x41d   :  { %v384_v10 = vsub.f32 %v1597_v16, %v383_v32 }
 0x41f   :  { %v385_v33 = vmul.f32 %v1707_v25, %v384_v10 }
 0x421   :  { %v386_v35 = vsel %vm355_vm13, %v385_v33, 0.0 }
 0x422   :  { %v387_v36 = vadd.f32 %v386_v35, %v326_v0 }
 0x424   :  { %v442_v37 = vmul.f32 %v1712_v56, %v387_v36 }
 0x426   :  { %443 = vadd.xlane.f32.xlu1 %v442_v37 }
 0x432   :  { %v335_v38 = vpop.xlane.xlu1 %334 }
 0x433   :  { %v336_v39 = vsub.f32 %v1619_v34, %v335_v38 }
 0x435   :  { %v337_v13 = vmul.f32 %v1684_v53, %v336_v39 }
 0x437   :  { %v338_v40 = vsel %vm294_vm10, %v337_v13, 0.0 }
 0x438   :  { %v339_v41 = vadd.f32 %v338_v40, %v278_v7 }
 0x43a   :  { %v394_v42 = vmul.f32 %v1689_v58, %v339_v41 }
 0x43c   :  { %395 = vadd.xlane.f32.xlu0 %v394_v42 }
 0x460   :  { %v287_v43 = vpop.xlane.xlu0 %286 }
 0x461   :  { %v288_v44 = vsub.f32 %v1640_v55, %v287_v43  ;;  %v542_v43 = vld [vmem:[#allocation0 + $0x8] ss:$0 sm:$0xff] }
 0x463   :  { %v289_v45 = vmul.f32 %v1657_v15, %v288_v44 }
 0x465   :  { %v290_v46 = vsel %vm233_vm7, %v289_v45, 0.0  ;;  %vm587_vm7 = vcmask 80968  }
 0x466   :  { %v291_v47 = vadd.f32 %v290_v46, %v230_v17  ;;  %vm607_vm9 = vmand %vm587_vm7, %vm128_vm2 }
 0x468   :  { %v346_v48 = vmul.f32 %v1665_v24, %v291_v47 }
 0x46a   :  { %347 = vadd.xlane.f32.xlu1 %v346_v48 }
 0x488   :  { %v423_v50 = vpop.xlane.xlu1 %422  ;;  %v430_v54 = vpop.xlane.xlu0 %429 }
 0x489   :  { %v424_v52 = vsub.f32 %v420_v49, %v423_v50  ;;  %v431_v57 = vsub.f32 %v1579_v4, %v430_v54 }
 0x48b   :  { %1510 = vrsqrt.f32 %v424_v52 }
 0x498   :  { %v1730_v27 = vpop.eup %1510 }
 0x499   :  { %v432_v15 = vmul.f32 %v1730_v27, %v431_v57 }
 0x49b   :  { %v435_v31 = vsel %vm434_vm3, %v432_v15, 0.0 }
 0x49c   :  { %v436_v59 = vadd.f32 %v435_v31, %v375_v28 }
 0x49e   :  { %437 = vst [vmem:[#allocation1] sm:$0xff] %v436_v59 }
 0x4a5   :  { %v1735_v24 = vld [vmem:[#allocation1 + $0x7] ss:$0 sm:$0xff] }
 0x4a6   :  { %v482_v60 = vmul.f32 %v1735_v24, %v1735_v24 }
 0x4a8   :  { %483 = vadd.xlane.f32.xlu0 %v482_v60 }
 0x4af   :  { %v444_v61 = vpop.xlane.xlu1 %443 }
 0x4b0   :  { %v445_v62 = vsub.f32 %v1597_v16, %v444_v61 }
 0x4b2   :  { %v446_v4 = vmul.f32 %v1730_v27, %v445_v62 }
 0x4b4   :  { %v447_v63 = vsel %vm416_vm0, %v446_v4, 0.0 }
 0x4b5   :  { %v448_v0 = vadd.f32 %v447_v63, %v387_v36 }
 0x4b7   :  { %v503_v1 = vmul.f32 %v1735_v24, %v448_v0 }
 0x4b9   :  { %504 = vadd.xlane.f32.xlu1 %v503_v1 }
 0x4c5   :  { %v396_v2 = vpop.xlane.xlu0 %395 }
 0x4c6   :  { %v397_v3 = vsub.f32 %v1619_v34, %v396_v2 }
 0x4c8   :  { %v398_v5 = vmul.f32 %v1707_v25, %v397_v3 }
 0x4ca   :  { %v399_v6 = vsel %vm355_vm13, %v398_v5, 0.0 }
 0x4cb   :  { %v400_v7 = vadd.f32 %v399_v6, %v339_v41 }
 0x4cd   :  { %v455_v8 = vmul.f32 %v1712_v56, %v400_v7 }
 0x4cf   :  { %456 = vadd.xlane.f32.xlu0 %v455_v8  ;;  %v591_v8 = vld [vmem:[#allocation0 + $0x9] ss:$0 sm:$0xff] }
 0x4f3   :  { %v348_v9 = vpop.xlane.xlu1 %347 }
 0x4f4   :  { %v349_v11 = vsub.f32 %v1640_v55, %v348_v9 }
 0x4f6   :  { %v350_v12 = vmul.f32 %v1684_v53, %v349_v11 }
 0x4f8   :  { %v351_v14 = vsel %vm294_vm10, %v350_v12, 0.0  ;;  %vm638_vm10 = vcmask 89168  }
 0x4f9   :  { %v352_v17 = vadd.f32 %v351_v14, %v291_v47  ;;  %vm658_vm12 = vmand %vm638_vm10, %vm189_vm5 }
 0x4fb   :  { %v407_v18 = vmul.f32 %v1689_v58, %v352_v17 }
 0x4fd   :  { %408 = vadd.xlane.f32.xlu1 %v407_v18 }
 0x531   :  { %v484_v20 = vpop.xlane.xlu0 %483 }
 0x532   :  { %v485_v21 = vsub.f32 %v481_v19, %v484_v20 }
 0x534   :  { %1512 = vrsqrt.f32 %v485_v21 }
 0x541   :  { %v1752_v51 = vpop.eup %1512 }
 0x542   :  { %v505_v22 = vpop.xlane.xlu1 %504 }
 0x543   :  { %v506_v23 = vsub.f32 %v1597_v16, %v505_v22 }
 0x545   :  { %v507_v26 = vmul.f32 %v1752_v51, %v506_v23 }
 0x547   :  { %v508_v53 = vsel %vm477_vm4, %v507_v26, 0.0 }
 0x548   :  { %v509_v28 = vadd.f32 %v508_v53, %v448_v0 }
 0x54a   :  { %511 = vst [vmem:[#allocation1 + $0x8] sm:$0xff] %v509_v28 }
 0x551   :  { %v1756_v29 = vld [vmem:[#allocation1 + $0x8] ss:$0 sm:$0xff] }
 0x552   :  { %v552_v58 = vmul.f32 %v1756_v29, %v509_v28  ;;  %v543_v30 = vmul.f32 %v1756_v29, %v1756_v29 }
 0x554   :  { %553 = vadd.xlane.f32.xlu1 %v552_v58  ;;  %544 = vadd.xlane.f32.xlu0 %v543_v30 }
 0x558   :  { %v457_v32 = vpop.xlane.xlu0 %456 }
 0x559   :  { %v458_v10 = vsub.f32 %v1619_v34, %v457_v32 }
 0x55b   :  { %v459_v33 = vmul.f32 %v1730_v27, %v458_v10 }
 0x55d   :  { %v460_v35 = vsel %vm416_vm0, %v459_v33, 0.0 }
 0x55e   :  { %v461_v36 = vadd.f32 %v460_v35, %v400_v7 }
 0x560   :  { %v516_v37 = vmul.f32 %v1735_v24, %v461_v36 }
 0x562   :  { %517 = vadd.xlane.f32.xlu0 %v516_v37 }
 0x586   :  { %v409_v38 = vpop.xlane.xlu1 %408 }
 0x587   :  { %v410_v39 = vsub.f32 %v1640_v55, %v409_v38 }
 0x589   :  { %v411_v13 = vmul.f32 %v1707_v25, %v410_v39  ;;  %v642_v39 = vld [vmem:[#allocation0 + $0xa] ss:$0 sm:$0xff] }
 0x58b   :  { %v412_v40 = vsel %vm355_vm13, %v411_v13, 0.0  ;;  %vm689_vm13 = vcmask 97368  }
 0x58c   :  { %v413_v41 = vadd.f32 %v412_v40, %v352_v17  ;;  %vm709_vm15 = vmand %vm689_vm13, %vm250_vm8 }
 0x58e   :  { %v468_v42 = vmul.f32 %v1712_v56, %v413_v41 }
 0x590   :  { %469 = vadd.xlane.f32.xlu1 %v468_v42 }
 0x5dd   :  { %v545_v44 = vpop.xlane.xlu0 %544  ;;  %v554_v46 = vpop.xlane.xlu1 %553 }
 0x5de   :  { %v546_v45 = vsub.f32 %v542_v43, %v545_v44  ;;  %v555_v48 = vsub.f32 %v1597_v16, %v554_v46 }
 0x5e0   :  { %1514 = vrsqrt.f32 %v546_v45 }
 0x5eb   :  { %v518_v47 = vpop.xlane.xlu0 %517 }
 0x5ec   :  { %v519_v49 = vsub.f32 %v1619_v34, %v518_v47 }
 0x5ed   :  { %v1771_v50 = vpop.eup %1514 }
 0x5ee   :  { %v556_v25 = vmul.f32 %v1771_v50, %v555_v48  ;;  %v520_v52 = vmul.f32 %v1752_v51, %v519_v49 }
 0x5f0   :  { %v557_v56 = vsel %vm538_vm6, %v556_v25, 0.0  ;;  %v521_v54 = vsel %vm477_vm4, %v520_v52, 0.0 }
 0x5f1   :  { %v558_v57 = vadd.f32 %v557_v56, %v509_v28  ;;  %v522_v15 = vadd.f32 %v521_v54, %v461_v36 }
 0x5f3   :  { %560 = vst [vmem:[#allocation1 + $0x8] sm:$0xff] %v558_v57  ;;  %v565_v31 = vmul.f32 %v1756_v29, %v522_v15 }
 0x5f5   :  { %566 = vadd.xlane.f32.xlu1 %v565_v31 }
 0x5fa   :  { %v1778_v59 = vld [vmem:[#allocation1 + $0x9] ss:$0 sm:$0xff] }
 0x5fb   :  { %v592_v60 = vmul.f32 %v1778_v59, %v1778_v59  ;;  %v601_v61 = vmul.f32 %v1778_v59, %v558_v57 }
 0x5fd   :  { %593 = vadd.xlane.f32.xlu0 %v592_v60 }
 0x601   :  { %602 = vadd.xlane.f32.xlu0 %v601_v61 }
 0x619   :  { %v470_v62 = vpop.xlane.xlu1 %469 }
 0x61a   :  { %v471_v4 = vsub.f32 %v1640_v55, %v470_v62 }
 0x61c   :  { %v472_v63 = vmul.f32 %v1730_v27, %v471_v4 }
 0x61e   :  { %v473_v0 = vsel %vm416_vm0, %v472_v63, 0.0  ;;  %vm740_vm0 = vcmask 105568  }
 0x61f   :  { %v474_v1 = vadd.f32 %v473_v0, %v413_v41  ;;  %vm760_vm3 = vmand %vm740_vm0, %vm311_vm11 }
 0x621   :  { %v529_v2 = vmul.f32 %v1735_v24, %v474_v1 }
 0x623   :  { %530 = vadd.xlane.f32.xlu1 %v529_v2  ;;  %v693_v2 = vld [vmem:[#allocation0 + $0xb] ss:$0 sm:$0xff] }
 0x67e   :  { %v567_v3 = vpop.xlane.xlu1 %566 }
 0x67f   :  { %v568_v5 = vsub.f32 %v1619_v34, %v567_v3 }
 0x681   :  { %v569_v6 = vmul.f32 %v1771_v50, %v568_v5 }
 0x683   :  { %v570_v7 = vsel %vm538_vm6, %v569_v6, 0.0 }
 0x684   :  { %v571_v9 = vadd.f32 %v570_v7, %v522_v15 }
 0x686   :  { %v594_v11 = vpop.xlane.xlu0 %593  ;;  %v616_v12 = vmul.f32 %v1778_v59, %v571_v9 }
 0x687   :  { %v595_v14 = vsub.f32 %v591_v8, %v594_v11 }
 0x688   :  { %617 = vadd.xlane.f32.xlu0 %v616_v12 }
 0x689   :  { %1516 = vrsqrt.f32 %v595_v14 }
 0x68a   :  { %v603_v27 = vpop.xlane.xlu0 %602 }
 0x68b   :  { %v604_v24 = vsub.f32 %v1597_v16, %v603_v27 }
 0x696   :  { %v1517_v17 = vpop.eup %1516 }
 0x697   :  { %v605_v18 = vmul.f32 %v1517_v17, %v604_v24 }
 0x699   :  { %v608_v19 = vsel %vm607_vm9, %v605_v18, 0.0  ;;  %vm842_vm9 = vcmask 121968  }
 0x69a   :  { %v609_v20 = vadd.f32 %v608_v19, %v558_v57 }
 0x69c   :  { %611 = vst [vmem:[#allocation1 + $0x8] sm:$0xff] %v609_v20 }
 0x6a3   :  { %v640_v21 = vld [vmem:[#allocation1 + $0xa] ss:$0 sm:$0xff] }
 0x6a4   :  { %v643_v22 = vmul.f32 %v640_v21, %v640_v21  ;;  %v652_v23 = vmul.f32 %v640_v21, %v609_v20 }
 0x6a6   :  { %644 = vadd.xlane.f32.xlu1 %v643_v22  ;;  %653 = vadd.xlane.f32.xlu0 %v652_v23 }
 0x6ac   :  { %v531_v26 = vpop.xlane.xlu1 %530 }
 0x6ad   :  { %v532_v53 = vsub.f32 %v1640_v55, %v531_v26 }
 0x6af   :  { %v533_v28 = vmul.f32 %v1752_v51, %v532_v53 }
 0x6b1   :  { %v534_v58 = vsel %vm477_vm4, %v533_v28, 0.0 }
 0x6b2   :  { %v535_v30 = vadd.f32 %v534_v58, %v474_v1 }
 0x6b4   :  { %v578_v32 = vmul.f32 %v1756_v29, %v535_v30 }
 0x6b6   :  { %579 = vadd.xlane.f32.xlu1 %v578_v32  ;;  %v744_v32 = vld [vmem:[#allocation0 + $0xc] ss:$0 sm:$0xff] }
 0x711   :  { %v618_v10 = vpop.xlane.xlu0 %617 }
 0x712   :  { %v619_v33 = vsub.f32 %v1619_v34, %v618_v10 }
 0x714   :  { %v620_v35 = vmul.f32 %v1517_v17, %v619_v33 }
 0x716   :  { %v621_v36 = vsel %vm587_vm7, %v620_v35, 0.0  ;;  %v1818_v35 = vld [vmem:[#allocation0 + $0x8] sm:$0xff] }
 0x717   :  { %v622_v37 = vadd.f32 %v621_v36, %v571_v9 }
 0x719   :  { %v667_v38 = vmul.f32 %v640_v21, %v622_v37 }
 0x71b   :  { %668 = vadd.xlane.f32.xlu0 %v667_v38 }
 0x72f   :  { %v645_v13 = vpop.xlane.xlu1 %644  ;;  %v654_v41 = vpop.xlane.xlu0 %653 }
 0x730   :  { %v646_v40 = vsub.f32 %v642_v39, %v645_v13  ;;  %v655_v43 = vsub.f32 %v1597_v16, %v654_v41 }
 0x732   :  { %1518 = vrsqrt.f32 %v646_v40 }
 0x73f   :  { %v580_v42 = vpop.xlane.xlu1 %579  ;;  %v1519_v44 = vpop.eup %1518 }
 0x740   :  { %v581_v29 = vsub.f32 %v1640_v55, %v580_v42  ;;  %v656_v45 = vmul.f32 %v1519_v44, %v655_v43 }
 0x742   :  { %v582_v46 = vmul.f32 %v1771_v50, %v581_v29  ;;  %v659_v47 = vsel %vm658_vm12, %v656_v45, 0.0  ;;  %vm893_vm12 = vcmask 130168  }
 0x743   :  { %v660_v49 = vadd.f32 %v659_v47, %v609_v20 }
 0x744   :  { %v583_v48 = vsel %vm538_vm6, %v582_v46, 0.0  ;;  %vm791_vm6 = vcmask 113768  }
 0x745   :  { %v584_v25 = vadd.f32 %v583_v48, %v535_v30  ;;  %662 = vst [vmem:[#allocation1 + $0x8] sm:$0xff] %v660_v49 }
 0x747   :  { %v629_v52 = vmul.f32 %v1778_v59, %v584_v25 }
 0x749   :  { %630 = vadd.xlane.f32.xlu0 %v629_v52 }
 0x74c   :  { %v691_v56 = vld [vmem:[#allocation1 + $0xb] ss:$0 sm:$0xff] }
 0x74d   :  { %v694_v54 = vmul.f32 %v691_v56, %v691_v56  ;;  %v703_v57 = vmul.f32 %v691_v56, %v660_v49 }
 0x74f   :  { %695 = vadd.xlane.f32.xlu1 %v694_v54 }
 0x753   :  { %704 = vadd.xlane.f32.xlu1 %v703_v57 }
 0x7a4   :  { %v669_v15 = vpop.xlane.xlu0 %668 }
 0x7a5   :  { %v670_v31 = vsub.f32 %v1619_v34, %v669_v15  ;;  %v795_v15 = vld [vmem:[#allocation0 + $0xd] ss:$0 sm:$0xff] }
 0x7a7   :  { %v671_v60 = vmul.f32 %v1519_v44, %v670_v31 }
 0x7a9   :  { %v672_v50 = vsel %vm638_vm10, %v671_v60, 0.0 }
 0x7aa   :  { %v673_v61 = vadd.f32 %v672_v50, %v622_v37 }
 0x7ac   :  { %v718_v62 = vmul.f32 %v691_v56, %v673_v61 }
 0x7ae   :  { %719 = vadd.xlane.f32.xlu0 %v718_v62 }
 0x7d2   :  { %v631_v4 = vpop.xlane.xlu0 %630 }
 0x7d3   :  { %v632_v63 = vsub.f32 %v1640_v55, %v631_v4 }
 0x7d5   :  { %v633_v0 = vmul.f32 %v1517_v17, %v632_v63 }
 0x7d7   :  { %v634_v59 = vsel %vm587_vm7, %v633_v0, 0.0  ;;  %vm811_vm7 = vmand %vm791_vm6, %vm372_vm14 }
 0x7d8   :  { %v635_v1 = vadd.f32 %v634_v59, %v584_v25  ;;  %v696_v3 = vpop.xlane.xlu1 %695 }
 0x7d9   :  { %v697_v6 = vsub.f32 %v693_v2, %v696_v3  ;;  %v1830_v2 = vld [vmem:[#allocation0 + $0x10] sm:$0xff] }
 0x7da   :  { %v680_v5 = vmul.f32 %v640_v21, %v635_v1 }
 0x7db   :  { %1520 = vrsqrt.f32 %v697_v6 }
 0x7dc   :  { %681 = vadd.xlane.f32.xlu1 %v680_v5  ;;  %v705_v7 = vpop.xlane.xlu1 %704 }
 0x7dd   :  { %v706_v8 = vsub.f32 %v1597_v16, %v705_v7 }
 0x7e8   :  { %v1521_v9 = vpop.eup %1520 }
 0x7e9   :  { %v707_v11 = vmul.f32 %v1521_v9, %v706_v8 }
 0x7eb   :  { %v710_v12 = vsel %vm709_vm15, %v707_v11, 0.0  ;;  %vm980_vm15 = vcmask 146568  }
 0x7ec   :  { %v711_v14 = vadd.f32 %v710_v12, %v660_v49 }
 0x7ee   :  { %713 = vst [vmem:[#allocation1 + $0x8] sm:$0xff] %v711_v14 }
 0x7f5   :  { %v742_v27 = vld [vmem:[#allocation1 + $0xc] ss:$0 sm:$0xff] }
 0x7f6   :  { %v754_v24 = vmul.f32 %v742_v27, %v711_v14  ;;  %v745_v17 = vmul.f32 %v742_v27, %v742_v27 }
 0x7f8   :  { %755 = vadd.xlane.f32.xlu1 %v754_v24  ;;  %746 = vadd.xlane.f32.xlu0 %v745_v17 }
 0x837   :  { %v720_v18 = vpop.xlane.xlu0 %719 }
 0x838   :  { %v721_v19 = vsub.f32 %v1619_v34, %v720_v18  ;;  %v846_v18 = vld [vmem:[#allocation0 + $0xe] ss:$0 sm:$0xff] }
 0x83a   :  { %v722_v20 = vmul.f32 %v1521_v9, %v721_v19 }
 0x83c   :  { %v723_v21 = vsel %vm689_vm13, %v722_v20, 0.0 }
 0x83d   :  { %v724_v16 = vadd.f32 %v723_v21, %v673_v61 }
 0x83f   :  { %v769_v22 = vmul.f32 %v742_v27, %v724_v16 }
 0x841   :  { %770 = vadd.xlane.f32.xlu0 %v769_v22 }
 0x865   :  { %v682_v23 = vpop.xlane.xlu1 %681 }
 0x866   :  { %v683_v26 = vsub.f32 %v1640_v55, %v682_v23 }
 0x868   :  { %v684_v53 = vmul.f32 %v1519_v44, %v683_v26 }
 0x86a   :  { %v685_v28 = vsel %vm638_vm10, %v684_v53, 0.0  ;;  %vm862_vm10 = vmand %vm842_vm9, %vm433_vm1 }
 0x86b   :  { %v686_v58 = vadd.f32 %v685_v28, %v635_v1 }
 0x86d   :  { %v731_v30 = vmul.f32 %v691_v56, %v686_v58 }
 0x86f   :  { %732 = vadd.xlane.f32.xlu1 %v731_v30 }
 0x881   :  { %v747_v10 = vpop.xlane.xlu0 %746  ;;  %v756_v36 = vpop.xlane.xlu1 %755 }
 0x882   :  { %v748_v33 = vsub.f32 %v744_v32, %v747_v10  ;;  %v757_v37 = vsub.f32 %v1818_v35, %v756_v36  ;;  %v1849_v36 = vld [vmem:[#allocation0 + $0x18] sm:$0xff] }
 0x884   :  { %1522 = vrsqrt.f32 %v748_v33 }
 0x891   :  { %v1523_v38 = vpop.eup %1522 }
 0x892   :  { %v758_v39 = vmul.f32 %v1523_v38, %v757_v37 }
 0x894   :  { %v761_v13 = vsel %vm760_vm3, %v758_v39, 0.0  ;;  %vm1018_vm3 = vcmask 154768  }
 0x895   :  { %v762_v40 = vadd.f32 %v761_v13, %v711_v14 }
 0x897   :  { %764 = vst [vmem:[#allocation1 + $0x8] sm:$0xff] %v762_v40 }
 0x89e   :  { %v793_v41 = vld [vmem:[#allocation1 + $0xd] ss:$0 sm:$0xff] }
 0x89f   :  { %v805_v42 = vmul.f32 %v793_v41, %v762_v40  ;;  %v796_v43 = vmul.f32 %v793_v41, %v793_v41 }
 0x8a1   :  { %806 = vadd.xlane.f32.xlu1 %v805_v42  ;;  %797 = vadd.xlane.f32.xlu0 %v796_v43  ;;  %v897_v42 = vld [vmem:[#allocation0 + $0xf] ss:$0 sm:$0xff] }
 0x8ca   :  { %v771_v29 = vpop.xlane.xlu0 %770 }
 0x8cb   :  { %v772_v44 = vsub.f32 %v1619_v34, %v771_v29 }
 0x8cd   :  { %v773_v45 = vmul.f32 %v1523_v38, %v772_v44 }
 0x8cf   :  { %v774_v46 = vsel %vm740_vm0, %v773_v45, 0.0 }
 0x8d0   :  { %v775_v47 = vadd.f32 %v774_v46, %v724_v16 }
 0x8d2   :  { %v820_v48 = vmul.f32 %v793_v41, %v775_v47 }
 0x8d4   :  { %821 = vadd.xlane.f32.xlu0 %v820_v48 }
 0x8f8   :  { %v733_v49 = vpop.xlane.xlu1 %732 }
 0x8f9   :  { %v734_v25 = vsub.f32 %v1640_v55, %v733_v49 }
 0x8fb   :  { %v735_v52 = vmul.f32 %v1521_v9, %v734_v25 }
 0x8fd   :  { %v736_v56 = vsel %vm689_vm13, %v735_v52, 0.0  ;;  %vm944_vm13 = vcmask 138368  }
 0x8fe   :  { %v737_v54 = vadd.f32 %v736_v56, %v686_v58 }
 0x900   :  { %v782_v57 = vmul.f32 %v742_v27, %v737_v54 }
 0x902   :  { %783 = vadd.xlane.f32.xlu1 %v782_v57 }
 0x92a   :  { %v798_v31 = vpop.xlane.xlu0 %797  ;;  %v807_v34 = vpop.xlane.xlu1 %806 }
 0x92b   :  { %v799_v60 = vsub.f32 %v795_v15, %v798_v31  ;;  %v808_v50 = vsub.f32 %v1818_v35, %v807_v34 }
 0x92d   :  { %1524 = vrsqrt.f32 %v799_v60 }
 0x93a   :  { %v1525_v61 = vpop.eup %1524 }
 0x93b   :  { %v809_v62 = vmul.f32 %v1525_v61, %v808_v50  ;;  %v948_v50 = vld [vmem:[#allocation0 + $0x10] ss:$0 sm:$0xff] }
 0x93d   :  { %v812_v4 = vsel %vm811_vm7, %v809_v62, 0.0  ;;  %vm1056_vm7 = vcmask 162968  }
 0x93e   :  { %v813_v63 = vadd.f32 %v812_v4, %v762_v40 }
 0x940   :  { %815 = vst [vmem:[#allocation1 + $0x8] sm:$0xff] %v813_v63 }
 0x947   :  { %v844_v0 = vld [vmem:[#allocation1 + $0xe] ss:$0 sm:$0xff] }
 0x948   :  { %v856_v59 = vmul.f32 %v844_v0, %v813_v63  ;;  %v847_v1 = vmul.f32 %v844_v0, %v844_v0 }
 0x94a   :  { %857 = vadd.xlane.f32.xlu1 %v856_v59  ;;  %848 = vadd.xlane.f32.xlu0 %v847_v1 }
 0x95d   :  { %v822_v3 = vpop.xlane.xlu0 %821 }
 0x95e   :  { %v823_v5 = vsub.f32 %v1830_v2, %v822_v3 }
 0x960   :  { %v824_v6 = vmul.f32 %v1525_v61, %v823_v5 }
 0x962   :  { %v825_v7 = vsel %vm791_vm6, %v824_v6, 0.0 }
 0x963   :  { %v826_v8 = vadd.f32 %v825_v7, %v775_v47 }
 0x965   :  { %v871_v9 = vmul.f32 %v844_v0, %v826_v8 }
 0x967   :  { %872 = vadd.xlane.f32.xlu0 %v871_v9 }
 0x98b   :  { %v784_v11 = vpop.xlane.xlu1 %783 }
 0x98c   :  { %v785_v12 = vsub.f32 %v1640_v55, %v784_v11 }
 0x98e   :  { %v786_v14 = vmul.f32 %v1523_v38, %v785_v12 }
 0x990   :  { %v787_v27 = vsel %vm740_vm0, %v786_v14, 0.0  ;;  %vm1000_vm0 = vmand %vm980_vm15, %vm128_vm2 }
 0x991   :  { %v788_v24 = vadd.f32 %v787_v27, %v737_v54 }
 0x993   :  { %v833_v17 = vmul.f32 %v793_v41, %v788_v24 }
 0x995   :  { %834 = vadd.xlane.f32.xlu1 %v833_v17 }
 0x9d3   :  { %v849_v19 = vpop.xlane.xlu0 %848  ;;  %v858_v21 = vpop.xlane.xlu1 %857 }
 0x9d4   :  { %v850_v20 = vsub.f32 %v846_v18, %v849_v19  ;;  %v859_v16 = vsub.f32 %v1818_v35, %v858_v21 }
 0x9d6   :  { %1526 = vrsqrt.f32 %v850_v20 }
 0x9e3   :  { %v1527_v22 = vpop.eup %1526 }
 0x9e4   :  { %v860_v23 = vmul.f32 %v1527_v22, %v859_v16 }
 0x9e6   :  { %v863_v55 = vsel %vm862_vm10, %v860_v23, 0.0  ;;  %vm1094_vm10 = vcmask 171168  }
 0x9e7   :  { %v1839_v26 = vadd.f32 %v863_v55, %v813_v63 }
 0x9e9   :  { %866 = vst [vmem:[#allocation1 + $0x8] sm:$0xff] %v1839_v26 }
 0x9f0   :  { %v1842_v53 = vld [vmem:[#allocation1 + $0xf] ss:$0 sm:$0xff]  ;;  %v873_v28 = vpop.xlane.xlu0 %872 }
 0x9f1   :  { %v898_v58 = vmul.f32 %v1842_v53, %v1842_v53  ;;  %v874_v30 = vsub.f32 %v1830_v2, %v873_v28 }
 0x9f3   :  { %899 = vadd.xlane.f32.xlu0 %v898_v58  ;;  %v875_v32 = vmul.f32 %v1527_v22, %v874_v30 }
 0x9f5   :  { %v876_v10 = vsel %vm842_vm9, %v875_v32, 0.0 }
 0x9f6   :  { %v877_v33 = vadd.f32 %v876_v10, %v826_v8 }
 0x9f8   :  { %v922_v35 = vmul.f32 %v1842_v53, %v877_v33 }
 0x9fa   :  { %923 = vadd.xlane.f32.xlu1 %v922_v35 }
 0xa1e   :  { %v835_v37 = vpop.xlane.xlu1 %834 }
 0xa1f   :  { %v836_v38 = vsub.f32 %v1849_v36, %v835_v37 }
 0xa21   :  { %v837_v39 = vmul.f32 %v1525_v61, %v836_v38 }
 0xa23   :  { %v838_v13 = vsel %vm791_vm6, %v837_v39, 0.0  ;;  %vm1038_vm6 = vmand %vm1018_vm3, %vm189_vm5 }
 0xa24   :  { %v839_v40 = vadd.f32 %v838_v13, %v788_v24  ;;  %v984_v24 = vld [vmem:[#allocation0 + $0x11] ss:$0 sm:$0xff] }
 0xa26   :  { %v884_v41 = vmul.f32 %v844_v0, %v839_v40 }
 0xa28   :  { %885 = vadd.xlane.f32.xlu0 %v884_v41 }
 0xa7c   :  { %v900_v43 = vpop.xlane.xlu0 %899 }
 0xa7d   :  { %v901_v29 = vsub.f32 %v897_v42, %v900_v43  ;;  %v1022_v43 = vld [vmem:[#allocation0 + $0x12] ss:$0 sm:$0xff] }
 0xa7f   :  { %1528 = vrsqrt.f32 %v901_v29 }
 0xa83   :  { %v924_v44 = vpop.xlane.xlu1 %923 }
 0xa84   :  { %v925_v45 = vsub.f32 %v1830_v2, %v924_v44 }
 0xa8c   :  { %v1854_v46 = vpop.eup %1528 }
 0xa8d   :  { %v926_v47 = vmul.f32 %v1854_v46, %v925_v45 }
 0xa8f   :  { %v927_v48 = vsel %vm893_vm12, %v926_v47, 0.0 }
 0xa90   :  { %v928_v49 = vadd.f32 %v927_v48, %v877_v33 }
 0xa92   :  { %930 = vst [vmem:[#allocation1 + $0x10] sm:$0xff] %v928_v49 }
 0xa99   :  { %v946_v25 = vld [vmem:[#allocation1 + $0x10] ss:$0 sm:$0xff] }
 0xa9a   :  { %v958_v52 = vmul.f32 %v946_v25, %v928_v49  ;;  %v949_v56 = vmul.f32 %v946_v25, %v946_v25 }
 0xa9c   :  { %959 = vadd.xlane.f32.xlu0 %v958_v52  ;;  %950 = vadd.xlane.f32.xlu1 %v949_v56 }
 0xab1   :  { %v886_v54 = vpop.xlane.xlu0 %885 }
 0xab2   :  { %v887_v57 = vsub.f32 %v1849_v36, %v886_v54 }
 0xab4   :  { %v888_v15 = vmul.f32 %v1527_v22, %v887_v57 }
 0xab6   :  { %v889_v31 = vsel %vm842_vm9, %v888_v15, 0.0  ;;  %vm1076_vm9 = vmand %vm1056_vm7, %vm250_vm8 }
 0xab7   :  { %v890_v60 = vadd.f32 %v889_v31, %v839_v40 }
 0xab9   :  { %v935_v34 = vmul.f32 %v1842_v53, %v890_v60 }
 0xabb   :  { %936 = vadd.xlane.f32.xlu1 %v935_v34 }
 0xb25   :  { %v951_v61 = vpop.xlane.xlu1 %950  ;;  %v960_v4 = vpop.xlane.xlu0 %959 }
 0xb26   :  { %v952_v62 = vsub.f32 %v948_v50, %v951_v61  ;;  %v961_v63 = vsub.f32 %v1830_v2, %v960_v4 }
 0xb28   :  { %1530 = vrsqrt.f32 %v952_v62  ;;  %v1060_v62 = vld [vmem:[#allocation0 + $0x13] ss:$0 sm:$0xff] }
 0xb35   :  { %v1531_v0 = vpop.eup %1530 }
 0xb36   :  { %v962_v59 = vmul.f32 %v1531_v0, %v961_v63 }
 0xb38   :  { %v963_v1 = vsel %vm944_vm13, %v962_v59, 0.0 }
 0xb39   :  { %v964_v3 = vadd.f32 %v963_v1, %v928_v49 }
 0xb3b   :  { %966 = vst [vmem:[#allocation1 + $0x10] sm:$0xff] %v964_v3 }
 0xb42   :  { %v982_v6 = vld [vmem:[#allocation1 + $0x11] ss:$0 sm:$0xff] }
 0xb43   :  { %v985_v8 = vmul.f32 %v982_v6, %v982_v6  ;;  %v994_v12 = vmul.f32 %v982_v6, %v964_v3 }
 0xb44   :  { %v937_v5 = vpop.xlane.xlu1 %936 }
 0xb45   :  { %v938_v7 = vsub.f32 %v1849_v36, %v937_v5  ;;  %986 = vadd.xlane.f32.xlu0 %v985_v8 }
 0xb47   :  { %v939_v9 = vmul.f32 %v1854_v46, %v938_v7 }
 0xb49   :  { %v940_v11 = vsel %vm893_vm12, %v939_v9, 0.0  ;;  %995 = vadd.xlane.f32.xlu0 %v994_v12 }
 0xb4a   :  { %v941_v14 = vadd.f32 %v940_v11, %v890_v60 }
 0xb4c   :  { %v971_v27 = vmul.f32 %v946_v25, %v941_v14 }
 0xb4e   :  { %972 = vadd.xlane.f32.xlu1 %v971_v27 }
 0xbce   :  { %v987_v17 = vpop.xlane.xlu0 %986 }
 0xbcf   :  { %v988_v18 = vsub.f32 %v984_v24, %v987_v17 }
 0xbd1   :  { %1532 = vrsqrt.f32 %v988_v18  ;;  %v1098_v18 = vld [vmem:[#allocation0 + $0x14] ss:$0 sm:$0xff] }
 0xbd2   :  { %v996_v16 = vpop.xlane.xlu0 %995 }
 0xbd3   :  { %v997_v55 = vsub.f32 %v1830_v2, %v996_v16 }
 0xbd7   :  { %v973_v19 = vpop.xlane.xlu1 %972 }
 0xbd8   :  { %v974_v20 = vsub.f32 %v1849_v36, %v973_v19 }
 0xbda   :  { %v975_v21 = vmul.f32 %v1531_v0, %v974_v20 }
 0xbdc   :  { %v976_v22 = vsel %vm944_vm13, %v975_v21, 0.0  ;;  %vm1114_vm13 = vmand %vm1094_vm10, %vm311_vm11 }
 0xbdd   :  { %v977_v23 = vadd.f32 %v976_v22, %v941_v14 }
 0xbde   :  { %v1533_v58 = vpop.eup %1532 }
 0xbdf   :  { %v1009_v28 = vmul.f32 %v982_v6, %v977_v23  ;;  %v998_v30 = vmul.f32 %v1533_v58, %v997_v55 }
 0xbe1   :  { %1010 = vadd.xlane.f32.xlu1 %v1009_v28  ;;  %v1001_v32 = vsel %vm1000_vm0, %v998_v30, 0.0 }
 0xbe2   :  { %v1002_v10 = vadd.f32 %v1001_v32, %v964_v3 }
 0xbe4   :  { %1004 = vst [vmem:[#allocation1 + $0x10] sm:$0xff] %v1002_v10 }
 0xbeb   :  { %v1020_v33 = vld [vmem:[#allocation1 + $0x12] ss:$0 sm:$0xff] }
 0xbec   :  { %v1023_v35 = vmul.f32 %v1020_v33, %v1020_v33  ;;  %v1032_v37 = vmul.f32 %v1020_v33, %v1002_v10 }
 0xbee   :  { %1024 = vadd.xlane.f32.xlu0 %v1023_v35  ;;  %1033 = vadd.xlane.f32.xlu1 %v1032_v37 }
 0xc6a   :  { %v1011_v38 = vpop.xlane.xlu1 %1010 }
 0xc6b   :  { %v1012_v39 = vsub.f32 %v1849_v36, %v1011_v38 }
 0xc6d   :  { %v1013_v13 = vmul.f32 %v1533_v58, %v1012_v39 }
 0xc6f   :  { %v1014_v40 = vsel %vm980_vm15, %v1013_v13, 0.0  ;;  %v1136_v13 = vld [vmem:[#allocation0 + $0x15] ss:$0 sm:$0xff]  ;;  %vm1132_vm15 = vcmask 179368  }
 0xc70   :  { %v1015_v41 = vadd.f32 %v1014_v40, %v977_v23  ;;  %vm1152_vm0 = vmand %vm1132_vm15, %vm372_vm14 }
 0xc72   :  { %v1047_v42 = vmul.f32 %v1020_v33, %v1015_v41 }
 0xc74   :  { %1048 = vadd.xlane.f32.xlu0 %v1047_v42 }
 0xc77   :  { %v1025_v29 = vpop.xlane.xlu0 %1024  ;;  %v1034_v45 = vpop.xlane.xlu1 %1033 }
 0xc78   :  { %v1026_v44 = vsub.f32 %v1022_v43, %v1025_v29  ;;  %v1035_v47 = vsub.f32 %v1830_v2, %v1034_v45 }
 0xc7a   :  { %1534 = vrsqrt.f32 %v1026_v44 }
 0xc87   :  { %v1535_v48 = vpop.eup %1534 }
 0xc88   :  { %v1036_v49 = vmul.f32 %v1535_v48, %v1035_v47 }
 0xc8a   :  { %v1039_v25 = vsel %vm1038_vm6, %v1036_v49, 0.0 }
 0xc8b   :  { %v1040_v52 = vadd.f32 %v1039_v25, %v1002_v10 }
 0xc8d   :  { %1042 = vst [vmem:[#allocation1 + $0x10] sm:$0xff] %v1040_v52 }
 0xc94   :  { %v1058_v56 = vld [vmem:[#allocation1 + $0x13] ss:$0 sm:$0xff] }
 0xc95   :  { %v1070_v54 = vmul.f32 %v1058_v56, %v1040_v52  ;;  %v1061_v57 = vmul.f32 %v1058_v56, %v1058_v56 }
 0xc97   :  { %1071 = vadd.xlane.f32.xlu0 %v1070_v54  ;;  %1062 = vadd.xlane.f32.xlu1 %v1061_v57 }
 0xcfd   :  { %v1049_v15 = vpop.xlane.xlu0 %1048 }
 0xcfe   :  { %v1050_v31 = vsub.f32 %v1849_v36, %v1049_v15 }
 0xd00   :  { %v1051_v60 = vmul.f32 %v1535_v48, %v1050_v31 }
 0xd02   :  { %v1052_v34 = vsel %vm1018_vm3, %v1051_v60, 0.0  ;;  %v1174_v60 = vld [vmem:[#allocation0 + $0x16] ss:$0 sm:$0xff]  ;;  %vm1170_vm3 = vcmask 187568  }
 0xd03   :  { %v1053_v50 = vadd.f32 %v1052_v34, %v1015_v41  ;;  %vm1190_vm6 = vmand %vm1170_vm3, %vm433_vm1 }
 0xd05   :  { %v1085_v61 = vmul.f32 %v1058_v56, %v1053_v50 }
 0xd07   :  { %1086 = vadd.xlane.f32.xlu1 %v1085_v61 }
 0xd20   :  { %v1063_v4 = vpop.xlane.xlu1 %1062  ;;  %v1072_v0 = vpop.xlane.xlu0 %1071 }
 0xd21   :  { %v1064_v63 = vsub.f32 %v1060_v62, %v1063_v4  ;;  %v1073_v59 = vsub.f32 %v1830_v2, %v1072_v0 }
 0xd23   :  { %1536 = vrsqrt.f32 %v1064_v63 }
 0xd30   :  { %v1537_v1 = vpop.eup %1536 }
 0xd31   :  { %v1074_v3 = vmul.f32 %v1537_v1, %v1073_v59 }
 0xd33   :  { %v1077_v5 = vsel %vm1076_vm9, %v1074_v3, 0.0  ;;  %vm1246_vm9 = vcmask 203968  }
 0xd34   :  { %v1078_v6 = vadd.f32 %v1077_v5, %v1040_v52 }
 0xd36   :  { %1080 = vst [vmem:[#allocation1 + $0x10] sm:$0xff] %v1078_v6 }
 0xd3d   :  { %v1096_v7 = vld [vmem:[#allocation1 + $0x14] ss:$0 sm:$0xff] }
 0xd3e   :  { %v1108_v8 = vmul.f32 %v1096_v7, %v1078_v6  ;;  %v1099_v9 = vmul.f32 %v1096_v7, %v1096_v7 }
 0xd40   :  { %1109 = vadd.xlane.f32.xlu1 %v1108_v8  ;;  %1100 = vadd.xlane.f32.xlu0 %v1099_v9 }
 0xd90   :  { %v1087_v11 = vpop.xlane.xlu1 %1086 }
 0xd91   :  { %v1088_v12 = vsub.f32 %v1849_v36, %v1087_v11 }
 0xd93   :  { %v1089_v14 = vmul.f32 %v1537_v1, %v1088_v12  ;;  %v1212_v12 = vld [vmem:[#allocation0 + $0x17] ss:$0 sm:$0xff] }
 0xd95   :  { %v1090_v27 = vsel %vm1056_vm7, %v1089_v14, 0.0  ;;  %vm1208_vm7 = vcmask 195768  }
 0xd96   :  { %v1091_v24 = vadd.f32 %v1090_v27, %v1053_v50 }
 0xd98   :  { %v1123_v17 = vmul.f32 %v1096_v7, %v1091_v24 }
 0xd9a   :  { %1124 = vadd.xlane.f32.xlu0 %v1123_v17 }
 0xdc9   :  { %v1101_v19 = vpop.xlane.xlu0 %1100  ;;  %v1110_v21 = vpop.xlane.xlu1 %1109 }
 0xdca   :  { %v1102_v20 = vsub.f32 %v1098_v18, %v1101_v19  ;;  %v1111_v16 = vsub.f32 %v1830_v2, %v1110_v21 }
 0xdcc   :  { %1538 = vrsqrt.f32 %v1102_v20 }
 0xdd9   :  { %v1539_v22 = vpop.eup %1538 }
 0xdda   :  { %v1112_v23 = vmul.f32 %v1539_v22, %v1111_v16 }
 0xddc   :  { %v1115_v55 = vsel %vm1114_vm13, %v1112_v23, 0.0 }
 0xddd   :  { %v1116_v28 = vadd.f32 %v1115_v55, %v1078_v6  ;;  %v1250_v55 = vld [vmem:[#allocation0 + $0x18] ss:$0 sm:$0xff] }
 0xddf   :  { %1118 = vst [vmem:[#allocation1 + $0x10] sm:$0xff] %v1116_v28 }
 0xde6   :  { %v1134_v58 = vld [vmem:[#allocation1 + $0x15] ss:$0 sm:$0xff] }
 0xde7   :  { %v1146_v30 = vmul.f32 %v1134_v58, %v1116_v28  ;;  %v1137_v32 = vmul.f32 %v1134_v58, %v1134_v58 }
 0xde9   :  { %1147 = vadd.xlane.f32.xlu0 %v1146_v30  ;;  %1138 = vadd.xlane.f32.xlu1 %v1137_v32 }
 0xe23   :  { %v1125_v10 = vpop.xlane.xlu0 %1124 }
 0xe24   :  { %v1126_v33 = vsub.f32 %v1849_v36, %v1125_v10 }
 0xe26   :  { %v1127_v35 = vmul.f32 %v1539_v22, %v1126_v33 }
 0xe28   :  { %v1128_v37 = vsel %vm1094_vm10, %v1127_v35, 0.0  ;;  %vm1269_vm10 = vcmask 212168  }
 0xe29   :  { %v1129_v38 = vadd.f32 %v1128_v37, %v1091_v24  ;;  %vm1289_vm13 = vmand %vm1269_vm10, %vm128_vm2 }
 0xe2b   :  { %v1161_v39 = vmul.f32 %v1134_v58, %v1129_v38 }
 0xe2d   :  { %1162 = vadd.xlane.f32.xlu1 %v1161_v39 }
 0xe72   :  { %v1139_v40 = vpop.xlane.xlu1 %1138  ;;  %v1148_v42 = vpop.xlane.xlu0 %1147 }
 0xe73   :  { %v1140_v41 = vsub.f32 %v1136_v13, %v1139_v40  ;;  %v1149_v43 = vsub.f32 %v1830_v2, %v1148_v42  ;;  %v1273_v40 = vld [vmem:[#allocation0 + $0x19] ss:$0 sm:$0xff] }
 0xe75   :  { %1540 = vrsqrt.f32 %v1140_v41 }
 0xe82   :  { %v1541_v29 = vpop.eup %1540 }
 0xe83   :  { %v1150_v44 = vmul.f32 %v1541_v29, %v1149_v43 }
 0xe85   :  { %v1153_v45 = vsel %vm1152_vm0, %v1150_v44, 0.0  ;;  %vm1319_vm0 = vcmask 228568  }
 0xe86   :  { %v1154_v47 = vadd.f32 %v1153_v45, %v1116_v28 }
 0xe88   :  { %1156 = vst [vmem:[#allocation1 + $0x10] sm:$0xff] %v1154_v47 }
 0xe8f   :  { %v1172_v48 = vld [vmem:[#allocation1 + $0x16] ss:$0 sm:$0xff] }
 0xe90   :  { %v1184_v49 = vmul.f32 %v1172_v48, %v1154_v47  ;;  %v1175_v25 = vmul.f32 %v1172_v48, %v1172_v48 }
 0xe92   :  { %1185 = vadd.xlane.f32.xlu1 %v1184_v49  ;;  %1176 = vadd.xlane.f32.xlu0 %v1175_v25 }
 0xeb6   :  { %v1163_v52 = vpop.xlane.xlu1 %1162 }
 0xeb7   :  { %v1164_v56 = vsub.f32 %v1849_v36, %v1163_v52 }
 0xeb9   :  { %v1165_v54 = vmul.f32 %v1541_v29, %v1164_v56  ;;  %v1298_v56 = vld [vmem:[#allocation0 + $0x1a] ss:$0 sm:$0xff] }
 0xebb   :  { %v1166_v57 = vsel %vm1132_vm15, %v1165_v54, 0.0  ;;  %vm1294_vm15 = vcmask 220368  }
 0xebc   :  { %v1167_v15 = vadd.f32 %v1166_v57, %v1129_v38  ;;  %vm1314_vm2 = vmand %vm1294_vm15, %vm189_vm5 }
 0xebd   :  { %vm1339_vm5 = vmand %vm1319_vm0, %vm250_vm8 }
 0xebe   :  { %v1199_v31 = vmul.f32 %v1172_v48, %v1167_v15 }
 0xec0   :  { %1200 = vadd.xlane.f32.xlu0 %v1199_v31 }
 0xf1b   :  { %v1177_v34 = vpop.xlane.xlu0 %1176  ;;  %v1186_v61 = vpop.xlane.xlu1 %1185 }
 0xf1c   :  { %v1178_v50 = vsub.f32 %v1174_v60, %v1177_v34  ;;  %v1187_v62 = vsub.f32 %v1830_v2, %v1186_v61 }
 0xf1e   :  { %1542 = vrsqrt.f32 %v1178_v50 }
 0xf2b   :  { %v1543_v4 = vpop.eup %1542 }
 0xf2c   :  { %v1188_v63 = vmul.f32 %v1543_v4, %v1187_v62 }
 0xf2e   :  { %v1191_v0 = vsel %vm1190_vm6, %v1188_v63, 0.0  ;;  %vm1369_vm6 = vcmask 244968  }
 0xf2f   :  { %v1895_v59 = vadd.f32 %v1191_v0, %v1154_v47  ;;  %v1323_v0 = vld [vmem:[#allocation0 + $0x1b] ss:$0 sm:$0xff] }
 0xf31   :  { %1194 = vst [vmem:[#allocation1 + $0x10] sm:$0xff] %v1895_v59 }
 0xf38   :  { %v1898_v1 = vld [vmem:[#allocation1 + $0x17] ss:$0 sm:$0xff] }
 0xf39   :  { %v1213_v3 = vmul.f32 %v1898_v1, %v1898_v1 }
 0xf3b   :  { %1214 = vadd.xlane.f32.xlu1 %v1213_v3 }
 0xf49   :  { %v1201_v5 = vpop.xlane.xlu0 %1200 }
 0xf4a   :  { %v1202_v6 = vsub.f32 %v1849_v36, %v1201_v5 }
 0xf4c   :  { %v1203_v7 = vmul.f32 %v1543_v4, %v1202_v6 }
 0xf4e   :  { %v1204_v8 = vsel %vm1170_vm3, %v1203_v7, 0.0  ;;  %vm1344_vm3 = vcmask 236768  }
 0xf4f   :  { %v1205_v9 = vadd.f32 %v1204_v8, %v1167_v15  ;;  %vm1364_vm8 = vmand %vm1344_vm3, %vm311_vm11 }
 0xf50   :  { %vm1389_vm11 = vmand %vm1369_vm6, %vm372_vm14  ;;  %vm494_vm14 = vcmask 1047559  }
 0xf51   :  { %v1237_v11 = vmul.f32 %v1898_v1, %v1205_v9  ;;  %vm1228_vm10 = vmand %vm1208_vm7, %vm494_vm14 }
 0xf53   :  { %1238 = vadd.xlane.f32.xlu0 %v1237_v11 }
 0xfc4   :  { %v1215_v14 = vpop.xlane.xlu1 %1214 }
 0xfc5   :  { %v1216_v27 = vsub.f32 %v1212_v12, %v1215_v14 }
 0xfc7   :  { %1544 = vrsqrt.f32 %v1216_v27 }
 0xfd4   :  { %v1905_v18 = vpop.eup %1544 }
 0xfdc   :  { %v1239_v24 = vpop.xlane.xlu0 %1238 }
 0xfdd   :  { %v1240_v17 = vsub.f32 %v1849_v36, %v1239_v24 }
 0xfdf   :  { %v1241_v19 = vmul.f32 %v1905_v18, %v1240_v17  ;;  %v1348_v17 = vld [vmem:[#allocation0 + $0x1c] ss:$0 sm:$0xff] }
 0xfe1   :  { %v1242_v20 = vsel %vm1208_vm7, %v1241_v19, 0.0  ;;  %vm1419_vm7 = vcmask 261368  }
 0xfe2   :  { %v1243_v21 = vadd.f32 %v1242_v20, %v1205_v9  ;;  %vm1439_vm15 = vmand %vm1419_vm7, %vm494_vm14 }
 0xfe4   :  { %1245 = vst [vmem:[#allocation1 + $0x18] sm:$0xff] %v1243_v21 }
 0xfeb   :  { %v1248_v16 = vld [vmem:[#allocation1 + $0x18] ss:$0 sm:$0xff] }
 0xfec   :  { %v1260_v22 = vmul.f32 %v1248_v16, %v1243_v21  ;;  %v1251_v23 = vmul.f32 %v1248_v16, %v1248_v16 }
 0xfee   :  { %1261 = vadd.xlane.f32.xlu0 %v1260_v22  ;;  %1252 = vadd.xlane.f32.xlu1 %v1251_v23 }
0x1077   :  { %v1253_v28 = vpop.xlane.xlu1 %1252  ;;  %v1262_v30 = vpop.xlane.xlu0 %1261 }
0x1078   :  { %v1254_v58 = vsub.f32 %v1250_v55, %v1253_v28  ;;  %v1263_v32 = vsub.f32 %v1849_v36, %v1262_v30 }
0x107a   :  { %1546 = vrsqrt.f32 %v1254_v58 }
0x1087   :  { %v1547_v10 = vpop.eup %1546 }
0x1088   :  { %v1264_v33 = vmul.f32 %v1547_v10, %v1263_v32  ;;  %v1373_v10 = vld [vmem:[#allocation0 + $0x1d] ss:$0 sm:$0xff] }
0x108a   :  { %v1265_v35 = vsel %vm1246_vm9, %v1264_v33, 0.0  ;;  %vm495_vm9 = vmand %vm477_vm4, %vm494_vm14 }
0x108b   :  { %v1266_v37 = vadd.f32 %v1265_v35, %v1243_v21 }
0x108d   :  { %1268 = vst [vmem:[#allocation1 + $0x18] sm:$0xff] %v1266_v37 }
0x1094   :  { %v1271_v38 = vld [vmem:[#allocation1 + $0x19] ss:$0 sm:$0xff] }
0x1095   :  { %v1283_v39 = vmul.f32 %v1271_v38, %v1266_v37  ;;  %v1274_v13 = vmul.f32 %v1271_v38, %v1271_v38 }
0x1097   :  { %1284 = vadd.xlane.f32.xlu0 %v1283_v39  ;;  %1275 = vadd.xlane.f32.xlu1 %v1274_v13 }
0x1120   :  { %v1276_v41 = vpop.xlane.xlu1 %1275  ;;  %v1285_v43 = vpop.xlane.xlu0 %1284 }
0x1121   :  { %v1277_v42 = vsub.f32 %v1273_v40, %v1276_v41  ;;  %v1286_v29 = vsub.f32 %v1849_v36, %v1285_v43 }
0x1123   :  { %1548 = vrsqrt.f32 %v1277_v42 }
0x1130   :  { %v1549_v44 = vpop.eup %1548 }
0x1131   :  { %v1287_v45 = vmul.f32 %v1549_v44, %v1286_v29  ;;  %v488_v44 = vld [vmem:[#allocation1] sm:$0xff] }
0x1133   :  { %v1290_v47 = vsel %vm1289_vm13, %v1287_v45, 0.0  ;;  %v1562_v45 = vld [vmem:[#allocation1 + $0x7] ss:$0 sm:$0xff]  ;;  %vm1394_vm13 = vcmask 253168  }
0x1134   :  { %v1291_v48 = vadd.f32 %v1290_v47, %v1266_v37  ;;  %v489_v47 = vmul.f32 %v1562_v45, %v488_v44  ;;  %vm1414_vm4 = vmand %vm1394_vm13, %vm433_vm1 }
0x1135   :  { %vm913_vm1 = vmand %vm893_vm12, %vm494_vm14 }
0x1136   :  { %1293 = vst [vmem:[#allocation1 + $0x18] sm:$0xff] %v1291_v48 }
0x113d   :  { %v1296_v49 = vld [vmem:[#allocation1 + $0x1a] ss:$0 sm:$0xff] }
0x113e   :  { %v1308_v25 = vmul.f32 %v1296_v49, %v1291_v48  ;;  %v1299_v52 = vmul.f32 %v1296_v49, %v1296_v49  ;;  %v1398_v49 = vld [vmem:[#allocation0 + $0x1e] ss:$0 sm:$0xff] }
0x1140   :  { %1309 = vadd.xlane.f32.xlu0 %v1308_v25  ;;  %1300 = vadd.xlane.f32.xlu1 %v1299_v52 }
0x11c9   :  { %v1301_v54 = vpop.xlane.xlu1 %1300  ;;  %v1310_v15 = vpop.xlane.xlu0 %1309 }
0x11ca   :  { %v1302_v57 = vsub.f32 %v1298_v56, %v1301_v54  ;;  %v1311_v31 = vsub.f32 %v1849_v36, %v1310_v15  ;;  %v487_v54 = vld [vmem:[#allocation0] sm:$0xff] }
0x11cc   :  { %1550 = vrsqrt.f32 %v1302_v57 }
0x11d9   :  { %v1551_v60 = vpop.eup %1550 }
0x11da   :  { %v1312_v34 = vmul.f32 %v1551_v60, %v1311_v31 }
0x11dc   :  { %v1315_v50 = vsel %vm1314_vm2, %v1312_v34, 0.0 }
0x11dd   :  { %v1316_v61 = vadd.f32 %v1315_v50, %v1291_v48  ;;  %v1222_v48 = vmul.f32 %v1898_v1, %v1895_v59 }
0x11df   :  { %1318 = vst [vmem:[#allocation1 + $0x18] sm:$0xff] %v1316_v61 }
0x11e6   :  { %v1321_v62 = vld [vmem:[#allocation1 + $0x1b] ss:$0 sm:$0xff] }
0x11e7   :  { %v1333_v4 = vmul.f32 %v1321_v62, %v1316_v61  ;;  %v1324_v63 = vmul.f32 %v1321_v62, %v1321_v62 }
0x11e9   :  { %1334 = vadd.xlane.f32.xlu0 %v1333_v4  ;;  %1325 = vadd.xlane.f32.xlu1 %v1324_v63 }
0x1272   :  { %v1326_v3 = vpop.xlane.xlu1 %1325  ;;  %v1335_v6 = vpop.xlane.xlu0 %1334 }
0x1273   :  { %v1327_v5 = vsub.f32 %v1323_v0, %v1326_v3  ;;  %v1336_v7 = vsub.f32 %v1849_v36, %v1335_v6 }
0x1275   :  { %1552 = vrsqrt.f32 %v1327_v5 }
0x1282   :  { %v1553_v8 = vpop.eup %1552 }
0x1283   :  { %v1337_v9 = vmul.f32 %v1553_v8, %v1336_v7  ;;  %v1423_v7 = vld [vmem:[#allocation0 + $0x1f] ss:$0 sm:$0xff] }
0x1285   :  { %v1340_v11 = vsel %vm1339_vm5, %v1337_v9, 0.0 }
0x1286   :  { %v1341_v12 = vadd.f32 %v1340_v11, %v1316_v61  ;;  %v904_v11 = vld [vmem:[#allocation0 + $0x8] sm:$0xff] }
0x1288   :  { %1343 = vst [vmem:[#allocation1 + $0x18] sm:$0xff] %v1341_v12 }
0x128f   :  { %v1346_v14 = vld [vmem:[#allocation1 + $0x1c] ss:$0 sm:$0xff] }
0x1290   :  { %v1358_v27 = vmul.f32 %v1346_v14, %v1341_v12  ;;  %v1349_v24 = vmul.f32 %v1346_v14, %v1346_v14 }
0x1292   :  { %1359 = vadd.xlane.f32.xlu0 %v1358_v27  ;;  %1350 = vadd.xlane.f32.xlu1 %v1349_v24 }
0x131b   :  { %v1351_v19 = vpop.xlane.xlu1 %1350  ;;  %v1360_v21 = vpop.xlane.xlu0 %1359 }
0x131c   :  { %v1352_v20 = vsub.f32 %v1348_v17, %v1351_v19  ;;  %v1361_v16 = vsub.f32 %v1849_v36, %v1360_v21 }
0x131e   :  { %1554 = vrsqrt.f32 %v1352_v20 }
0x132b   :  { %v1555_v22 = vpop.eup %1554 }
0x132c   :  { %v1362_v23 = vmul.f32 %v1555_v22, %v1361_v16 }
0x132e   :  { %v1365_v55 = vsel %vm1364_vm8, %v1362_v23, 0.0 }
0x132f   :  { %v1366_v28 = vadd.f32 %v1365_v55, %v1341_v12 }
0x1331   :  { %1368 = vst [vmem:[#allocation1 + $0x18] sm:$0xff] %v1366_v28 }
0x1338   :  { %v1371_v58 = vld [vmem:[#allocation1 + $0x1d] ss:$0 sm:$0xff] }
0x1339   :  { %v1383_v30 = vmul.f32 %v1371_v58, %v1366_v28  ;;  %v1374_v32 = vmul.f32 %v1371_v58, %v1371_v58 }
0x133b   :  { %1384 = vadd.xlane.f32.xlu0 %v1383_v30  ;;  %1375 = vadd.xlane.f32.xlu1 %v1374_v32 }
0x13c4   :  { %v1376_v33 = vpop.xlane.xlu1 %1375  ;;  %v1385_v37 = vpop.xlane.xlu0 %1384 }
0x13c5   :  { %v1377_v35 = vsub.f32 %v1373_v10, %v1376_v33  ;;  %v1386_v38 = vsub.f32 %v1849_v36, %v1385_v37 }
0x13c7   :  { %1556 = vrsqrt.f32 %v1377_v35 }
0x13d4   :  { %v1557_v39 = vpop.eup %1556 }
0x13d5   :  { %v1387_v13 = vmul.f32 %v1557_v39, %v1386_v38 }
0x13d7   :  { %v1390_v40 = vsel %vm1389_vm11, %v1387_v13, 0.0 }
0x13d8   :  { %v1391_v41 = vadd.f32 %v1390_v40, %v1366_v28 }
0x13da   :  { %1393 = vst [vmem:[#allocation1 + $0x18] sm:$0xff] %v1391_v41 }
0x13e1   :  { %v1396_v42 = vld [vmem:[#allocation1 + $0x1e] ss:$0 sm:$0xff] }
0x13e2   :  { %v1408_v43 = vmul.f32 %v1396_v42, %v1391_v41  ;;  %v1399_v29 = vmul.f32 %v1396_v42, %v1396_v42 }
0x13e4   :  { %1409 = vadd.xlane.f32.xlu0 %v1408_v43  ;;  %1400 = vadd.xlane.f32.xlu1 %v1399_v29 }
0x13e8   :  { %490 = vadd.xlane.f32.xlu0 %v489_v47 }
0x13ec   :  { %1223 = vadd.xlane.f32.xlu0 %v1222_v48 }
0x146d   :  { %v1410_v25 = vpop.xlane.xlu0 %1409  ;;  %v1401_v52 = vpop.xlane.xlu1 %1400 }
0x146e   :  { %v1402_v56 = vsub.f32 %v1398_v49, %v1401_v52 }
0x1470   :  { %1558 = vrsqrt.f32 %v1402_v56 }
0x1471   :  { %v491_v57 = vpop.xlane.xlu0 %490 }
0x1472   :  { %v492_v15 = vsub.f32 %v487_v54, %v491_v57 }
0x1474   :  { %v493_v31 = vmul.f32 %v1752_v51, %v492_v15  ;;  %v1411_v51 = vsub.f32 %v1849_v36, %v1410_v25 }
0x1475   :  { %v1224_v60 = vpop.xlane.xlu0 %1223 }
0x1476   :  { %v496_v34 = vsel %vm495_vm9, %v493_v31, 0.0  ;;  %v1225_v50 = vsub.f32 %v1830_v2, %v1224_v60 }
0x1477   :  { %v497_v1 = vadd.f32 %v496_v34, %v488_v44 }
0x1478   :  { %v1226_v61 = vmul.f32 %v1905_v18, %v1225_v50 }
0x1479   :  { %498 = vst [vmem:[#allocation1] sm:$0xff] %v497_v1  ;;  %1479 = vst [vmem:[%s1953_s1] sm:$0xff] %v497_v1 }
0x147a   :  { %v1229_v62 = vsel %vm1228_vm10, %v1226_v61, 0.0 }
0x147b   :  { %v1230_v4 = vadd.f32 %v1229_v62, %v1895_v59  ;;  %v907_v59 = vmul.f32 %v1842_v53, %v1839_v26 }
0x147d   :  { %v1559_v63 = vpop.eup %1558  ;;  %1232 = vst [vmem:[#allocation1 + $0x10] sm:$0xff] %v1230_v4  ;;  %1483 = vst [vmem:[%s1953_s1 + $0x10] sm:$0xff] %v1230_v4 }
0x147e   :  { %v1412_v2 = vmul.f32 %v1559_v63, %v1411_v51 }
0x1480   :  { %v1415_v18 = vsel %vm1414_vm4, %v1412_v2, 0.0 }
0x1481   :  { %v1416_v0 = vadd.f32 %v1415_v18, %v1391_v41 }
0x1483   :  { %1418 = vst [vmem:[#allocation1 + $0x18] sm:$0xff] %v1416_v0 }
0x148a   :  { %v1421_v3 = vld [vmem:[#allocation1 + $0x1f] ss:$0 sm:$0xff] }
0x148b   :  { %v1424_v5 = vmul.f32 %v1421_v3, %v1421_v3  ;;  %v1433_v6 = vmul.f32 %v1421_v3, %v1416_v0 }
0x148d   :  { %1425 = vadd.xlane.f32.xlu1 %v1424_v5 }
0x1491   :  { %908 = vadd.xlane.f32.xlu1 %v907_v59 }
0x1495   :  { %1434 = vadd.xlane.f32.xlu1 %v1433_v6 }
0x1516   :  { %v1426_v8 = vpop.xlane.xlu1 %1425 }
0x1517   :  { %v1427_v9 = vsub.f32 %v1423_v7, %v1426_v8 }
0x1519   :  { %1560 = vrsqrt.f32 %v1427_v9 }
0x151a   :  { %v909_v12 = vpop.xlane.xlu1 %908 }
0x151b   :  { %v910_v14 = vsub.f32 %v904_v11, %v909_v12 }
0x151d   :  { %v911_v27 = vmul.f32 %v1854_v46, %v910_v14 }
0x151e   :  { %v1435_v53 = vpop.xlane.xlu1 %1434 }
0x151f   :  { %v914_v24 = vsel %vm913_vm1, %v911_v27, 0.0  ;;  %v1436_v19 = vsub.f32 %v1849_v36, %v1435_v53 }
0x1520   :  { %v915_v17 = vadd.f32 %v914_v24, %v1839_v26 }
0x1522   :  { %917 = vst [vmem:[#allocation1 + $0x8] sm:$0xff] %v915_v17  ;;  %1481 = vst [vmem:[%s1953_s1 + $0x8] sm:$0xff] %v915_v17 }
0x1526   :  { %v1561_v20 = vpop.eup %1560 }
0x1527   :  { %v1437_v21 = vmul.f32 %v1561_v20, %v1436_v19 }
0x1529   :  { %v1440_v16 = vsel %vm1439_vm15, %v1437_v21, 0.0 }
0x152a   :  { %v1441_v22 = vadd.f32 %v1440_v16, %v1416_v0 }
0x152c   :  { %1443 = vst [vmem:[#allocation1 + $0x18] sm:$0xff] %v1441_v22  ;;  %1485 = vst [vmem:[%s1953_s1 + $0x18] sm:$0xff] %v1441_v22 }

// kernel: custom-call.138
= control target key start
LH: loop header
LB: loop body
LE: loop exit
PB: predicated region body
PF: predicated region fallthrough
CT: control target
= control target key end

     0   :  { %v47_v0 = vlaneseq  ;;  %v732_v9 = vmov -1.0   ;;  %v733_v53 = vmov 0.0   ;;  %s886_s0 = inlined_call_operand.vmem [shape: f32[1,32,32], index: 0, kind: input, shape index: {}]   ;;  %s887_s1 = inlined_call_operand.vmem [shape: f32[1,32,32], index: 1, kind: output, shape index: {}]  }
   0x1   :  { %v36_v1 = vld [vmem:[%s886_s0] sm:$0xff]  ;;  %v38_v36 = vld [vmem:[%s886_s0 + $0x8] sm:$0xff] }
   0x2   :  { %v747_v2 = vand.u32 127, %v47_v0  ;;  %v749_v3 = vshrl.u32 %v47_v0, 7 }
   0x4   :  { %vm53_vm0 = vcmp.eq.s32.totalorder %v749_v3, %v747_v2  ;;  %vm49_vm1 = vcmp.lt.s32.totalorder %v747_v2, 32  ;;  %vm58_vm2 = vcmp.ge.s32.totalorder %v749_v3, %v747_v2  ;;  %vm120_vm4 = vcmp.eq.s32.totalorder %v747_v2, 0 }
   0x5   :  { %v55_v4 = vsel %vm53_vm0, %v36_v1, 0.0  ;;  %vm59_vm3 = vmand %vm58_vm2, %vm49_vm1  ;;  %vm117_vm5 = vcmp.eq.s32.totalorder %v747_v2, %v749_v3  ;;  %v121_v10 = vsel %vm120_vm4, 1.0, %v732_v9  ;;  %vm149_vm6 = vcmp.eq.s32.totalorder %v747_v2, 1 }
   0x6   :  { %56 = vadd.xlane.f32.xlu0 %v55_v4  ;;  %v60_v6 = vsel %vm59_vm3, %v36_v1, 0.0  ;;  %v122_v11 = vsel %vm117_vm5, %v121_v10, 0.0  ;;  %vm159_vm7 = vcmp.eq.s32.totalorder %v747_v2, 2  ;;  %vm169_vm8 = vcmp.eq.s32.totalorder %v747_v2, 3 }
   0x7   :  { %vm179_vm9 = vcmp.eq.s32.totalorder %v747_v2, 4  ;;  %v68_v31 = vadd.s32 8, %v749_v3  ;;  %vm189_vm11 = vcmp.eq.s32.totalorder %v747_v2, 5  ;;  %vm199_vm14 = vcmp.eq.s32.totalorder %v747_v2, 6 }
   0x8   :  { %vm209_vm0 = vcmp.eq.s32.totalorder %v747_v2, 7  ;;  %vm219_vm2 = vcmp.eq.s32.totalorder %v747_v2, 8  ;;  %vm233_vm3 = vcmp.eq.s32.totalorder %v747_v2, 9  ;;  %vm247_vm4 = vcmp.eq.s32.totalorder %v747_v2, 10 }
   0x9   :  { %vm69_vm10 = vcmp.eq.s32.totalorder %v68_v31, %v747_v2  ;;  %vm74_vm12 = vcmp.ge.s32.totalorder %v68_v31, %v747_v2  ;;  %vm128_vm15 = vcmp.eq.s32.totalorder %v747_v2, %v68_v31  ;;  %vm261_vm5 = vcmp.eq.s32.totalorder %v747_v2, 11 }
   0xa   :  { %v71_v37 = vsel %vm69_vm10, %v38_v36, 0.0  ;;  %vm75_vm13 = vmand %vm74_vm12, %vm49_vm1  ;;  %v129_v54 = vsel %vm128_vm15, -1.0, %v733_v53  ;;  %vm317_vm12 = vcmp.eq.s32.totalorder %v747_v2, 15  ;;  %vm349_vm15 = vcmp.eq.s32.totalorder %v747_v2, 17 }
   0xb   :  { %v76_v44 = vsel %vm75_vm13, %v38_v36, 0.0 }
  0x8f   :  { %v753_v5 = vpop.xlane.xlu0 %56 }
  0x90   :  { %724 = vrcp.f32 %v753_v5 }
  0x9d   :  { %v761_v7 = vpop.eup %724 }
  0x9e   :  { %v62_v8 = vmul.f32 %v761_v7, %v60_v6 }
  0xa0   :  { %63 = vst [vmem:[#allocation2] sm:$0xff] %v62_v8 }
  0xa7   :  { %v145_v12 = vld [vmem:[#allocation2 + $0x1] ss:$0 sm:$0xff]  ;;  %v155_v15 = vld [vmem:[#allocation2 + $0x2] ss:$0 sm:$0xff]  ;;  %v165_v20 = vld [vmem:[#allocation2 + $0x3] ss:$0 sm:$0xff] }
  0xa8   :  { %v146_v13 = vxor.u32 2147483648, %v145_v12  ;;  %v156_v17 = vxor.u32 2147483648, %v155_v15  ;;  %v166_v22 = vxor.u32 2147483648, %v165_v20  ;;  %v175_v25 = vld [vmem:[#allocation2 + $0x4] ss:$0 sm:$0xff] }
  0xa9   :  { %v176_v27 = vxor.u32 2147483648, %v175_v25  ;;  %v185_v30 = vld [vmem:[#allocation2 + $0x5] ss:$0 sm:$0xff]  ;;  %v195_v38 = vld [vmem:[#allocation2 + $0x6] ss:$0 sm:$0xff] }
  0xaa   :  { %v150_v14 = vmul.f32 %v146_v13, %v122_v11  ;;  %v186_v33 = vxor.u32 2147483648, %v185_v30  ;;  %v196_v40 = vxor.u32 2147483648, %v195_v38  ;;  %v205_v47 = vld [vmem:[#allocation2 + $0x7] ss:$0 sm:$0xff] }
  0xab   :  { %v206_v50 = vxor.u32 2147483648, %v205_v47  ;;  %v84_v47 = vadd.s32 16, %v749_v3 }
  0xac   :  { %151 = vadd.xlane.f32.xlu0 %v150_v14 }
  0xad   :  { %vm90_vm10 = vcmp.ge.s32.totalorder %v84_v47, %v747_v2  ;;  %vm135_vm13 = vcmp.eq.s32.totalorder %v747_v2, %v84_v47 }
 0x135   :  { %v152_v16 = vpop.xlane.xlu0 %151 }
 0x136   :  { %v153_v18 = vsel %vm149_vm6, %v152_v16, %v122_v11  ;;  %vm275_vm6 = vcmp.eq.s32.totalorder %v747_v2, 12 }
 0x137   :  { %v160_v19 = vmul.f32 %v156_v17, %v153_v18 }
 0x139   :  { %161 = vadd.xlane.f32.xlu1 %v160_v19 }
 0x1c2   :  { %v162_v21 = vpop.xlane.xlu1 %161 }
 0x1c3   :  { %v163_v23 = vsel %vm159_vm7, %v162_v21, %v153_v18  ;;  %vm289_vm7 = vcmp.eq.s32.totalorder %v747_v2, 13 }
 0x1c4   :  { %v170_v24 = vmul.f32 %v166_v22, %v163_v23 }
 0x1c6   :  { %171 = vadd.xlane.f32.xlu1 %v170_v24 }
 0x24f   :  { %v172_v26 = vpop.xlane.xlu1 %171 }
 0x250   :  { %v173_v28 = vsel %vm169_vm8, %v172_v26, %v163_v23  ;;  %vm85_vm8 = vcmp.eq.s32.totalorder %v84_v47, %v747_v2 }
 0x251   :  { %v180_v29 = vmul.f32 %v176_v27, %v173_v28 }
 0x253   :  { %181 = vadd.xlane.f32.xlu0 %v180_v29 }
 0x2dc   :  { %v182_v32 = vpop.xlane.xlu0 %181 }
 0x2dd   :  { %v183_v34 = vsel %vm179_vm9, %v182_v32, %v173_v28  ;;  %vm303_vm9 = vcmp.eq.s32.totalorder %v747_v2, 14 }
 0x2de   :  { %v190_v35 = vmul.f32 %v186_v33, %v183_v34 }
 0x2e0   :  { %191 = vadd.xlane.f32.xlu1 %v190_v35 }
 0x2e4   :  { %72 = vadd.xlane.f32.xlu1 %v71_v37 }
 0x369   :  { %v192_v39 = vpop.xlane.xlu1 %191 }
 0x36a   :  { %v193_v41 = vsel %vm189_vm11, %v192_v39, %v183_v34  ;;  %vm91_vm11 = vmand %vm90_vm10, %vm49_vm1  ;;  %vm475_vm10 = vcmp.eq.s32.totalorder %v747_v2, 24 }
 0x36b   :  { %v200_v42 = vmul.f32 %v196_v40, %v193_v41 }
 0x36d   :  { %201 = vadd.xlane.f32.xlu0 %v200_v42  ;;  %v777_v43 = vpop.xlane.xlu1 %72 }
 0x36e   :  { %726 = vrcp.f32 %v777_v43 }
 0x37b   :  { %v783_v45 = vpop.eup %726 }
 0x37c   :  { %v78_v46 = vmul.f32 %v783_v45, %v76_v44 }
 0x37e   :  { %79 = vst [vmem:[#allocation2 + $0x8] sm:$0xff] %v78_v46 }
 0x385   :  { %v215_v48 = vld [vmem:[#allocation2 + $0x8] ss:$0 sm:$0xff]  ;;  %v229_v59 = vld [vmem:[#allocation2 + $0x9] ss:$0 sm:$0xff]  ;;  %v243_v6 = vld [vmem:[#allocation2 + $0xa] ss:$0 sm:$0xff] }
 0x386   :  { %v216_v51 = vxor.u32 2147483648, %v215_v48  ;;  %v230_v62 = vxor.u32 2147483648, %v229_v59  ;;  %v244_v10 = vxor.u32 2147483648, %v243_v6  ;;  %v257_v15 = vld [vmem:[#allocation2 + $0xb] ss:$0 sm:$0xff] }
 0x387   :  { %v258_v18 = vxor.u32 2147483648, %v257_v15  ;;  %v271_v23 = vld [vmem:[#allocation2 + $0xc] ss:$0 sm:$0xff]  ;;  %v285_v31 = vld [vmem:[#allocation2 + $0xd] ss:$0 sm:$0xff] }
 0x388   :  { %v224_v56 = vmul.f32 %v216_v51, %v129_v54  ;;  %v272_v26 = vxor.u32 2147483648, %v271_v23  ;;  %v286_v34 = vxor.u32 2147483648, %v285_v31  ;;  %v299_v39 = vld [vmem:[#allocation2 + $0xe] ss:$0 sm:$0xff] }
 0x389   :  { %v300_v42 = vxor.u32 2147483648, %v299_v39 }
 0x3f6   :  { %v202_v49 = vpop.xlane.xlu0 %201 }
 0x3f7   :  { %v203_v52 = vsel %vm199_vm14, %v202_v49, %v193_v41  ;;  %vm331_vm14 = vcmp.eq.s32.totalorder %v747_v2, 16 }
 0x3f8   :  { %v210_v55 = vmul.f32 %v206_v50, %v203_v52 }
 0x3fa   :  { %211 = vadd.xlane.f32.xlu0 %v210_v55  ;;  %v313_v55 = vld [vmem:[#allocation2 + $0xf] ss:$0 sm:$0xff] }
 0x3fe   :  { %225 = vadd.xlane.f32.xlu0 %v224_v56 }
 0x483   :  { %v212_v57 = vpop.xlane.xlu0 %211 }
 0x484   :  { %v213_v58 = vsel %vm209_vm0, %v212_v57, %v203_v52  ;;  %v314_v57 = vxor.u32 2147483648, %v313_v55  ;;  %vm367_vm0 = vcmp.eq.s32.totalorder %v747_v2, 18 }
 0x485   :  { %v220_v60 = vmul.f32 %v216_v51, %v213_v58  ;;  %v40_v51 = vld [vmem:[%s886_s0 + $0x10] sm:$0xff] }
 0x487   :  { %v226_v61 = vpop.xlane.xlu0 %225  ;;  %221 = vadd.xlane.f32.xlu1 %v220_v60 }
 0x488   :  { %v227_v63 = vsel %vm219_vm2, %v226_v61, %v129_v54  ;;  %v87_v54 = vsel %vm85_vm8, %v40_v51, 0.0 }
 0x489   :  { %v238_v0 = vmul.f32 %v230_v62, %v227_v63 }
 0x48b   :  { %239 = vadd.xlane.f32.xlu0 %v238_v0 }
 0x510   :  { %v222_v1 = vpop.xlane.xlu1 %221 }
 0x511   :  { %v223_v4 = vsel %vm219_vm2, %v222_v1, %v213_v58  ;;  %vm385_vm2 = vcmp.eq.s32.totalorder %v747_v2, 19 }
 0x512   :  { %v234_v8 = vmul.f32 %v230_v62, %v223_v4 }
 0x514   :  { %v240_v9 = vpop.xlane.xlu0 %239  ;;  %235 = vadd.xlane.f32.xlu1 %v234_v8 }
 0x515   :  { %v241_v11 = vsel %vm233_vm3, %v240_v9, %v227_v63  ;;  %v92_v63 = vsel %vm91_vm11, %v40_v51, 0.0  ;;  %vm497_vm11 = vcmp.eq.s32.totalorder %v747_v2, 25 }
 0x516   :  { %v252_v12 = vmul.f32 %v244_v10, %v241_v11 }
 0x518   :  { %253 = vadd.xlane.f32.xlu0 %v252_v12 }
 0x59d   :  { %v236_v13 = vpop.xlane.xlu1 %235 }
 0x59e   :  { %v237_v14 = vsel %vm233_vm3, %v236_v13, %v223_v4  ;;  %vm403_vm3 = vcmp.eq.s32.totalorder %v747_v2, 20 }
 0x59f   :  { %v248_v16 = vmul.f32 %v244_v10, %v237_v14 }
 0x5a1   :  { %v254_v17 = vpop.xlane.xlu0 %253  ;;  %249 = vadd.xlane.f32.xlu1 %v248_v16 }
 0x5a2   :  { %v255_v19 = vsel %vm247_vm4, %v254_v17, %v241_v11 }
 0x5a3   :  { %v266_v20 = vmul.f32 %v258_v18, %v255_v19 }
 0x5a5   :  { %267 = vadd.xlane.f32.xlu0 %v266_v20 }
 0x62a   :  { %v250_v21 = vpop.xlane.xlu1 %249 }
 0x62b   :  { %v251_v22 = vsel %vm247_vm4, %v250_v21, %v237_v14  ;;  %v136_v14 = vsel %vm135_vm13, -1.0, %v733_v53  ;;  %vm421_vm4 = vcmp.eq.s32.totalorder %v747_v2, 21  ;;  %vm541_vm13 = vcmp.eq.s32.totalorder %v747_v2, 27 }
 0x62c   :  { %v262_v24 = vmul.f32 %v258_v18, %v251_v22 }
 0x62e   :  { %v268_v25 = vpop.xlane.xlu0 %267  ;;  %263 = vadd.xlane.f32.xlu1 %v262_v24 }
 0x62f   :  { %v269_v27 = vsel %vm261_vm5, %v268_v25, %v255_v19 }
 0x630   :  { %v280_v28 = vmul.f32 %v272_v26, %v269_v27 }
 0x632   :  { %281 = vadd.xlane.f32.xlu0 %v280_v28 }
 0x6b7   :  { %v264_v29 = vpop.xlane.xlu1 %263 }
 0x6b8   :  { %v265_v30 = vsel %vm261_vm5, %v264_v29, %v251_v22 }
 0x6b9   :  { %v276_v32 = vmul.f32 %v272_v26, %v265_v30 }
 0x6bb   :  { %v282_v33 = vpop.xlane.xlu0 %281  ;;  %277 = vadd.xlane.f32.xlu1 %v276_v32 }
 0x6bc   :  { %v283_v35 = vsel %vm275_vm6, %v282_v33, %v269_v27 }
 0x6bd   :  { %v294_v36 = vmul.f32 %v286_v34, %v283_v35 }
 0x6bf   :  { %295 = vadd.xlane.f32.xlu0 %v294_v36 }
 0x744   :  { %v278_v37 = vpop.xlane.xlu1 %277 }
 0x745   :  { %v279_v38 = vsel %vm275_vm6, %v278_v37, %v265_v30  ;;  %vm439_vm6 = vcmp.eq.s32.totalorder %v747_v2, 22 }
 0x746   :  { %v290_v40 = vmul.f32 %v286_v34, %v279_v38 }
 0x748   :  { %v296_v41 = vpop.xlane.xlu0 %295  ;;  %291 = vadd.xlane.f32.xlu1 %v290_v40 }
 0x749   :  { %v297_v44 = vsel %vm289_vm7, %v296_v41, %v283_v35 }
 0x74a   :  { %v308_v46 = vmul.f32 %v300_v42, %v297_v44 }
 0x74c   :  { %309 = vadd.xlane.f32.xlu0 %v308_v46 }
 0x7d1   :  { %v292_v48 = vpop.xlane.xlu1 %291 }
 0x7d2   :  { %v293_v49 = vsel %vm289_vm7, %v292_v48, %v279_v38 }
 0x7d3   :  { %v304_v50 = vmul.f32 %v300_v42, %v293_v49 }
 0x7d5   :  { %v310_v52 = vpop.xlane.xlu0 %309  ;;  %305 = vadd.xlane.f32.xlu1 %v304_v50 }
 0x7d6   :  { %v311_v56 = vsel %vm303_vm9, %v310_v52, %v297_v44 }
 0x7d7   :  { %v322_v58 = vmul.f32 %v314_v57, %v311_v56 }
 0x7d9   :  { %88 = vadd.xlane.f32.xlu1 %v87_v54 }
 0x7dd   :  { %323 = vadd.xlane.f32.xlu1 %v322_v58 }
 0x85e   :  { %v306_v59 = vpop.xlane.xlu1 %305 }
 0x85f   :  { %v307_v60 = vsel %vm303_vm9, %v306_v59, %v293_v49 }
 0x860   :  { %v318_v61 = vmul.f32 %v314_v57, %v307_v60 }
 0x862   :  { %319 = vadd.xlane.f32.xlu0 %v318_v61  ;;  %v802_v62 = vpop.xlane.xlu1 %88 }
 0x863   :  { %728 = vrcp.f32 %v802_v62 }
 0x866   :  { %v324_v4 = vpop.xlane.xlu1 %323 }
 0x867   :  { %v325_v9 = vsel %vm317_vm12, %v324_v4, %v311_v56 }
 0x870   :  { %v808_v0 = vpop.eup %728 }
 0x871   :  { %v94_v1 = vmul.f32 %v808_v0, %v92_v63 }
 0x873   :  { %95 = vst [vmem:[#allocation2 + $0x10] sm:$0xff] %v94_v1 }
 0x87a   :  { %v327_v6 = vld [vmem:[#allocation2 + $0x10] ss:$0 sm:$0xff]  ;;  %v345_v16 = vld [vmem:[#allocation2 + $0x11] ss:$0 sm:$0xff]  ;;  %v363_v27 = vld [vmem:[#allocation2 + $0x12] ss:$0 sm:$0xff] }
 0x87b   :  { %v328_v8 = vxor.u32 2147483648, %v327_v6  ;;  %v346_v18 = vxor.u32 2147483648, %v345_v16  ;;  %v364_v29 = vxor.u32 2147483648, %v363_v27  ;;  %v381_v38 = vld [vmem:[#allocation2 + $0x13] ss:$0 sm:$0xff] }
 0x87c   :  { %v382_v40 = vxor.u32 2147483648, %v381_v38  ;;  %v399_v51 = vld [vmem:[#allocation2 + $0x14] ss:$0 sm:$0xff]  ;;  %v417_v1 = vld [vmem:[#allocation2 + $0x15] ss:$0 sm:$0xff] }
 0x87d   :  { %v336_v10 = vmul.f32 %v328_v8, %v325_v9  ;;  %v340_v15 = vmul.f32 %v328_v8, %v136_v14  ;;  %v400_v54 = vxor.u32 2147483648, %v399_v51  ;;  %v418_v6 = vxor.u32 2147483648, %v417_v1  ;;  %v435_v16 = vld [vmem:[#allocation2 + $0x16] ss:$0 sm:$0xff] }
 0x87f   :  { %337 = vadd.xlane.f32.xlu1 %v336_v10 }
 0x8eb   :  { %v320_v11 = vpop.xlane.xlu0 %319 }
 0x8ec   :  { %v321_v12 = vsel %vm317_vm12, %v320_v11, %v307_v60  ;;  %vm519_vm12 = vcmp.eq.s32.totalorder %v747_v2, 26 }
 0x8ed   :  { %v332_v13 = vmul.f32 %v328_v8, %v321_v12 }
 0x8ef   :  { %333 = vadd.xlane.f32.xlu0 %v332_v13 }
 0x8f3   :  { %341 = vadd.xlane.f32.xlu0 %v340_v15 }
 0x908   :  { %v338_v17 = vpop.xlane.xlu1 %337 }
 0x909   :  { %v339_v19 = vsel %vm331_vm14, %v338_v17, %v325_v9  ;;  %v100_v17 = vadd.s32 24, %v749_v3 }
 0x90a   :  { %v354_v20 = vmul.f32 %v346_v18, %v339_v19 }
 0x90b   :  { %vm101_vm5 = vcmp.eq.s32.totalorder %v100_v17, %v747_v2  ;;  %vm106_vm7 = vcmp.ge.s32.totalorder %v100_v17, %v747_v2  ;;  %vm142_vm9 = vcmp.eq.s32.totalorder %v747_v2, %v100_v17 }
 0x90c   :  { %355 = vadd.xlane.f32.xlu0 %v354_v20  ;;  %vm107_vm8 = vmand %vm106_vm7, %vm49_vm1  ;;  %vm457_vm1 = vcmp.eq.s32.totalorder %v747_v2, 23 }
 0x978   :  { %v334_v21 = vpop.xlane.xlu0 %333 }
 0x979   :  { %v335_v22 = vsel %vm331_vm14, %v334_v21, %v321_v12 }
 0x97a   :  { %v350_v23 = vmul.f32 %v346_v18, %v335_v22 }
 0x97c   :  { %v342_v24 = vpop.xlane.xlu0 %341  ;;  %351 = vadd.xlane.f32.xlu1 %v350_v23 }
 0x97d   :  { %v343_v25 = vsel %vm331_vm14, %v342_v24, %v136_v14  ;;  %vm563_vm14 = vcmp.eq.s32.totalorder %v747_v2, 28 }
 0x97e   :  { %v358_v26 = vmul.f32 %v346_v18, %v343_v25 }
 0x980   :  { %359 = vadd.xlane.f32.xlu1 %v358_v26 }
 0x995   :  { %v356_v28 = vpop.xlane.xlu0 %355 }
 0x996   :  { %v357_v30 = vsel %vm349_vm15, %v356_v28, %v339_v19  ;;  %v436_v19 = vxor.u32 2147483648, %v435_v16 }
 0x997   :  { %v372_v31 = vmul.f32 %v364_v29, %v357_v30 }
 0x999   :  { %373 = vadd.xlane.f32.xlu1 %v372_v31 }
 0xa05   :  { %v352_v32 = vpop.xlane.xlu1 %351 }
 0xa06   :  { %v353_v33 = vsel %vm349_vm15, %v352_v32, %v335_v22  ;;  %v42_v22 = vld [vmem:[%s886_s0 + $0x18] sm:$0xff] }
 0xa07   :  { %v368_v34 = vmul.f32 %v364_v29, %v353_v33  ;;  %v103_v23 = vsel %vm101_vm5, %v42_v22, 0.0  ;;  %vm648_vm5 = vweird.f32 %v753_v5 }
 0xa09   :  { %369 = vadd.xlane.f32.xlu0 %v368_v34  ;;  %v360_v35 = vpop.xlane.xlu1 %359 }
 0xa0a   :  { %v361_v36 = vsel %vm349_vm15, %v360_v35, %v343_v25  ;;  %v108_v35 = vsel %vm107_vm8, %v42_v22, 0.0  ;;  %vm585_vm15 = vcmp.eq.s32.totalorder %v747_v2, 29 }
 0xa0b   :  { %v376_v37 = vmul.f32 %v364_v29, %v361_v36  ;;  %v453_v29 = vld [vmem:[#allocation2 + $0x17] ss:$0 sm:$0xff] }
 0xa0c   :  { %v454_v31 = vxor.u32 2147483648, %v453_v29 }
 0xa0d   :  { %377 = vadd.xlane.f32.xlu0 %v376_v37 }
 0xa22   :  { %v374_v39 = vpop.xlane.xlu1 %373 }
 0xa23   :  { %v375_v41 = vsel %vm367_vm0, %v374_v39, %v357_v30 }
 0xa24   :  { %v390_v42 = vmul.f32 %v382_v40, %v375_v41 }
 0xa26   :  { %391 = vadd.xlane.f32.xlu0 %v390_v42 }
 0xa92   :  { %v370_v44 = vpop.xlane.xlu0 %369 }
 0xa93   :  { %v371_v46 = vsel %vm367_vm0, %v370_v44, %v353_v33 }
 0xa94   :  { %v386_v47 = vmul.f32 %v382_v40, %v371_v46 }
 0xa96   :  { %387 = vadd.xlane.f32.xlu1 %v386_v47  ;;  %v378_v48 = vpop.xlane.xlu0 %377 }
 0xa97   :  { %v379_v49 = vsel %vm367_vm0, %v378_v48, %v361_v36  ;;  %vm607_vm0 = vcmp.eq.s32.totalorder %v747_v2, 30 }
 0xa98   :  { %v394_v50 = vmul.f32 %v382_v40, %v379_v49 }
 0xa9a   :  { %395 = vadd.xlane.f32.xlu1 %v394_v50  ;;  %v143_v50 = vsel %vm142_vm9, -1.0, %v733_v53 }
 0xaaf   :  { %v392_v52 = vpop.xlane.xlu0 %391 }
 0xab0   :  { %v393_v55 = vsel %vm385_vm2, %v392_v52, %v375_v41 }
 0xab1   :  { %v408_v56 = vmul.f32 %v400_v54, %v393_v55 }
 0xab3   :  { %409 = vadd.xlane.f32.xlu1 %v408_v56 }
 0xb1f   :  { %v388_v57 = vpop.xlane.xlu1 %387 }
 0xb20   :  { %v389_v58 = vsel %vm385_vm2, %v388_v57, %v371_v46 }
 0xb21   :  { %v404_v59 = vmul.f32 %v400_v54, %v389_v58 }
 0xb23   :  { %405 = vadd.xlane.f32.xlu0 %v404_v59  ;;  %v396_v60 = vpop.xlane.xlu1 %395 }
 0xb24   :  { %v397_v61 = vsel %vm385_vm2, %v396_v60, %v379_v49  ;;  %vm629_vm2 = vcmp.eq.s32.totalorder %v747_v2, 31 }
 0xb25   :  { %v412_v63 = vmul.f32 %v400_v54, %v397_v61 }
 0xb27   :  { %413 = vadd.xlane.f32.xlu0 %v412_v63 }
 0xb3c   :  { %v410_v4 = vpop.xlane.xlu1 %409 }
 0xb3d   :  { %v411_v8 = vsel %vm403_vm3, %v410_v4, %v393_v55 }
 0xb3e   :  { %v426_v9 = vmul.f32 %v418_v6, %v411_v8 }
 0xb40   :  { %427 = vadd.xlane.f32.xlu0 %v426_v9 }
 0xbac   :  { %v406_v10 = vpop.xlane.xlu0 %405 }
 0xbad   :  { %v407_v11 = vsel %vm403_vm3, %v406_v10, %v389_v58 }
 0xbae   :  { %v422_v12 = vmul.f32 %v418_v6, %v407_v11 }
 0xbb0   :  { %423 = vadd.xlane.f32.xlu1 %v422_v12  ;;  %v414_v13 = vpop.xlane.xlu0 %413 }
 0xbb1   :  { %v415_v14 = vsel %vm403_vm3, %v414_v13, %v397_v61  ;;  %vm653_vm3 = vweird.f32 %v777_v43 }
 0xbb2   :  { %v430_v15 = vmul.f32 %v418_v6, %v415_v14 }
 0xbb4   :  { %431 = vadd.xlane.f32.xlu1 %v430_v15 }
 0xbc9   :  { %v428_v18 = vpop.xlane.xlu0 %427 }
 0xbca   :  { %v429_v20 = vsel %vm421_vm4, %v428_v18, %v411_v8 }
 0xbcb   :  { %v444_v21 = vmul.f32 %v436_v19, %v429_v20 }
 0xbcd   :  { %445 = vadd.xlane.f32.xlu1 %v444_v21 }
 0xbd1   :  { %104 = vadd.xlane.f32.xlu1 %v103_v23 }
 0xc39   :  { %v424_v24 = vpop.xlane.xlu1 %423 }
 0xc3a   :  { %v425_v25 = vsel %vm421_vm4, %v424_v24, %v407_v11 }
 0xc3b   :  { %v440_v3 = vmul.f32 %v436_v19, %v425_v25 }
 0xc3d   :  { %441 = vadd.xlane.f32.xlu0 %v440_v3  ;;  %v432_v26 = vpop.xlane.xlu1 %431 }
 0xc3e   :  { %v433_v27 = vsel %vm421_vm4, %v432_v26, %v415_v14 }
 0xc3f   :  { %v448_v28 = vmul.f32 %v436_v19, %v433_v27 }
 0xc41   :  { %449 = vadd.xlane.f32.xlu0 %v448_v28 }
 0xc56   :  { %v446_v30 = vpop.xlane.xlu1 %445 }
 0xc57   :  { %v447_v32 = vsel %vm439_vm6, %v446_v30, %v429_v20 }
 0xc58   :  { %v462_v33 = vmul.f32 %v454_v31, %v447_v32 }
 0xc5a   :  { %463 = vadd.xlane.f32.xlu1 %v462_v33  ;;  %v834_v34 = vpop.xlane.xlu1 %104 }
 0xc5b   :  { %730 = vrcp.f32 %v834_v34  ;;  %vm665_vm4 = vweird.f32 %v834_v34 }
 0xc68   :  { %v840_v36 = vpop.eup %730 }
 0xc69   :  { %v110_v37 = vmul.f32 %v840_v36, %v108_v35 }
 0xc6b   :  { %111 = vst [vmem:[#allocation2 + $0x18] sm:$0xff] %v110_v37 }
 0xc72   :  { %v471_v46 = vld [vmem:[#allocation2 + $0x18] ss:$0 sm:$0xff]  ;;  %v493_v60 = vld [vmem:[#allocation2 + $0x19] ss:$0 sm:$0xff]  ;;  %v515_v15 = vld [vmem:[#allocation2 + $0x1a] ss:$0 sm:$0xff] }
 0xc73   :  { %v472_v47 = vxor.u32 2147483648, %v471_v46  ;;  %v494_v63 = vxor.u32 2147483648, %v493_v60  ;;  %v516_v17 = vxor.u32 2147483648, %v515_v15  ;;  %v537_v28 = vld [vmem:[#allocation2 + $0x1b] ss:$0 sm:$0xff] }
 0xc74   :  { %v538_v30 = vxor.u32 2147483648, %v537_v28  ;;  %v559_v46 = vld [vmem:[#allocation2 + $0x1c] ss:$0 sm:$0xff] }
 0xc75   :  { %v488_v52 = vmul.f32 %v472_v47, %v143_v50 }
 0xcc6   :  { %v442_v38 = vpop.xlane.xlu0 %441 }
 0xcc7   :  { %v443_v39 = vsel %vm439_vm6, %v442_v38, %v425_v25 }
 0xcc8   :  { %v458_v40 = vmul.f32 %v454_v31, %v443_v39 }
 0xcca   :  { %459 = vadd.xlane.f32.xlu0 %v458_v40  ;;  %v450_v41 = vpop.xlane.xlu0 %449 }
 0xccb   :  { %v451_v42 = vsel %vm439_vm6, %v450_v41, %v433_v27  ;;  %vm659_vm6 = vweird.f32 %v802_v62 }
 0xccc   :  { %v466_v44 = vmul.f32 %v454_v31, %v451_v42 }
 0xcce   :  { %467 = vadd.xlane.f32.xlu0 %v466_v44 }
 0xce3   :  { %v464_v48 = vpop.xlane.xlu1 %463 }
 0xce4   :  { %v465_v49 = vsel %vm457_vm1, %v464_v48, %v447_v32  ;;  %v560_v48 = vxor.u32 2147483648, %v559_v46 }
 0xce5   :  { %v480_v51 = vmul.f32 %v472_v47, %v465_v49 }
 0xce7   :  { %481 = vadd.xlane.f32.xlu0 %v480_v51 }
 0xceb   :  { %489 = vadd.xlane.f32.xlu0 %v488_v52 }
 0xd53   :  { %v460_v54 = vpop.xlane.xlu0 %459 }
 0xd54   :  { %v461_v55 = vsel %vm457_vm1, %v460_v54, %v443_v39 }
 0xd55   :  { %v476_v56 = vmul.f32 %v472_v47, %v461_v55 }
 0xd57   :  { %v468_v57 = vpop.xlane.xlu0 %467  ;;  %477 = vadd.xlane.f32.xlu1 %v476_v56 }
 0xd58   :  { %v469_v58 = vsel %vm457_vm1, %v468_v57, %v451_v42 }
 0xd59   :  { %v484_v59 = vmul.f32 %v472_v47, %v469_v58 }
 0xd5b   :  { %485 = vadd.xlane.f32.xlu1 %v484_v59 }
 0xd70   :  { %v482_v61 = vpop.xlane.xlu0 %481 }
 0xd71   :  { %v483_v1 = vsel %vm475_vm10, %v482_v61, %v465_v49  ;;  %v581_v61 = vld [vmem:[#allocation2 + $0x1d] ss:$0 sm:$0xff] }
 0xd72   :  { %v502_v4 = vmul.f32 %v494_v63, %v483_v1 }
 0xd74   :  { %503 = vadd.xlane.f32.xlu0 %v502_v4  ;;  %v490_v53 = vpop.xlane.xlu0 %489 }
 0xd75   :  { %v491_v6 = vsel %vm475_vm10, %v490_v53, %v143_v50 }
 0xd76   :  { %v510_v8 = vmul.f32 %v494_v63, %v491_v6 }
 0xd78   :  { %511 = vadd.xlane.f32.xlu0 %v510_v8 }
 0xde0   :  { %v478_v9 = vpop.xlane.xlu1 %477 }
 0xde1   :  { %v479_v10 = vsel %vm475_vm10, %v478_v9, %v461_v55 }
 0xde2   :  { %v498_v11 = vmul.f32 %v494_v63, %v479_v10 }
 0xde4   :  { %499 = vadd.xlane.f32.xlu1 %v498_v11  ;;  %v486_v12 = vpop.xlane.xlu1 %485 }
 0xde5   :  { %v487_v13 = vsel %vm475_vm10, %v486_v12, %v469_v58 }
 0xde6   :  { %v506_v14 = vmul.f32 %v494_v63, %v487_v13 }
 0xde8   :  { %507 = vadd.xlane.f32.xlu1 %v506_v14 }
 0xdfd   :  { %v504_v16 = vpop.xlane.xlu0 %503 }
 0xdfe   :  { %v505_v18 = vsel %vm497_vm11, %v504_v16, %v483_v1  ;;  %v582_v1 = vxor.u32 2147483648, %v581_v61  ;;  %v603_v16 = vld [vmem:[#allocation2 + $0x1e] ss:$0 sm:$0xff] }
 0xdff   :  { %v524_v19 = vmul.f32 %v516_v17, %v505_v18 }
 0xe01   :  { %525 = vadd.xlane.f32.xlu0 %v524_v19  ;;  %v512_v20 = vpop.xlane.xlu0 %511 }
 0xe02   :  { %v513_v21 = vsel %vm497_vm11, %v512_v20, %v491_v6 }
 0xe03   :  { %v532_v22 = vmul.f32 %v516_v17, %v513_v21 }
 0xe05   :  { %533 = vadd.xlane.f32.xlu0 %v532_v22 }
 0xe6d   :  { %v500_v23 = vpop.xlane.xlu1 %499 }
 0xe6e   :  { %v501_v24 = vsel %vm497_vm11, %v500_v23, %v479_v10 }
 0xe6f   :  { %v520_v25 = vmul.f32 %v516_v17, %v501_v24 }
 0xe71   :  { %521 = vadd.xlane.f32.xlu1 %v520_v25  ;;  %v508_v3 = vpop.xlane.xlu1 %507 }
 0xe72   :  { %v509_v26 = vsel %vm497_vm11, %v508_v3, %v487_v13 }
 0xe73   :  { %v528_v27 = vmul.f32 %v516_v17, %v509_v26 }
 0xe75   :  { %529 = vadd.xlane.f32.xlu1 %v528_v27 }
 0xe8a   :  { %v526_v29 = vpop.xlane.xlu0 %525 }
 0xe8b   :  { %v527_v31 = vsel %vm519_vm12, %v526_v29, %v505_v18  ;;  %v604_v18 = vxor.u32 2147483648, %v603_v16  ;;  %v625_v29 = vld [vmem:[#allocation2 + $0x1f] ss:$0 sm:$0xff] }
 0xe8c   :  { %v546_v32 = vmul.f32 %v538_v30, %v527_v31 }
 0xe8e   :  { %547 = vadd.xlane.f32.xlu0 %v546_v32  ;;  %v534_v33 = vpop.xlane.xlu0 %533 }
 0xe8f   :  { %v535_v35 = vsel %vm519_vm12, %v534_v33, %v513_v21 }
 0xe90   :  { %v554_v37 = vmul.f32 %v538_v30, %v535_v35 }
 0xe92   :  { %555 = vadd.xlane.f32.xlu0 %v554_v37 }
 0xefa   :  { %v522_v38 = vpop.xlane.xlu1 %521 }
 0xefb   :  { %v523_v39 = vsel %vm519_vm12, %v522_v38, %v501_v24 }
 0xefc   :  { %v542_v40 = vmul.f32 %v538_v30, %v523_v39 }
 0xefe   :  { %543 = vadd.xlane.f32.xlu1 %v542_v40  ;;  %v530_v41 = vpop.xlane.xlu1 %529 }
 0xeff   :  { %v531_v42 = vsel %vm519_vm12, %v530_v41, %v509_v26 }
 0xf00   :  { %v550_v44 = vmul.f32 %v538_v30, %v531_v42 }
 0xf02   :  { %551 = vadd.xlane.f32.xlu1 %v550_v44 }
 0xf17   :  { %v548_v47 = vpop.xlane.xlu0 %547 }
 0xf18   :  { %v549_v49 = vsel %vm541_vm13, %v548_v47, %v527_v31  ;;  %v626_v31 = vxor.u32 2147483648, %v625_v29 }
 0xf19   :  { %v568_v50 = vmul.f32 %v560_v48, %v549_v49 }
 0xf1b   :  { %569 = vadd.xlane.f32.xlu0 %v568_v50  ;;  %v556_v51 = vpop.xlane.xlu0 %555 }
 0xf1c   :  { %v557_v52 = vsel %vm541_vm13, %v556_v51, %v535_v35 }
 0xf1d   :  { %v576_v54 = vmul.f32 %v560_v48, %v557_v52 }
 0xf1f   :  { %577 = vadd.xlane.f32.xlu0 %v576_v54 }
 0xf87   :  { %v544_v55 = vpop.xlane.xlu1 %543 }
 0xf88   :  { %v545_v56 = vsel %vm541_vm13, %v544_v55, %v523_v39 }
 0xf89   :  { %v564_v57 = vmul.f32 %v560_v48, %v545_v56 }
 0xf8b   :  { %565 = vadd.xlane.f32.xlu1 %v564_v57  ;;  %v552_v58 = vpop.xlane.xlu1 %551 }
 0xf8c   :  { %v553_v59 = vsel %vm541_vm13, %v552_v58, %v531_v42 }
 0xf8d   :  { %v572_v60 = vmul.f32 %v560_v48, %v553_v59 }
 0xf8f   :  { %573 = vadd.xlane.f32.xlu1 %v572_v60 }
 0xfa4   :  { %v570_v63 = vpop.xlane.xlu0 %569 }
 0xfa5   :  { %v571_v4 = vsel %vm563_vm14, %v570_v63, %v549_v49 }
 0xfa6   :  { %v590_v53 = vmul.f32 %v582_v1, %v571_v4 }
 0xfa8   :  { %591 = vadd.xlane.f32.xlu0 %v590_v53  ;;  %v578_v6 = vpop.xlane.xlu0 %577 }
 0xfa9   :  { %v579_v8 = vsel %vm563_vm14, %v578_v6, %v557_v52 }
 0xfaa   :  { %v598_v9 = vmul.f32 %v582_v1, %v579_v8 }
 0xfac   :  { %599 = vadd.xlane.f32.xlu0 %v598_v9 }
0x1014   :  { %v566_v10 = vpop.xlane.xlu1 %565 }
0x1015   :  { %v567_v11 = vsel %vm563_vm14, %v566_v10, %v545_v56 }
0x1016   :  { %v586_v12 = vmul.f32 %v582_v1, %v567_v11 }
0x1018   :  { %587 = vadd.xlane.f32.xlu1 %v586_v12  ;;  %v574_v13 = vpop.xlane.xlu1 %573 }
0x1019   :  { %v575_v14 = vsel %vm563_vm14, %v574_v13, %v553_v59 }
0x101a   :  { %v594_v15 = vmul.f32 %v582_v1, %v575_v14 }
0x101c   :  { %595 = vadd.xlane.f32.xlu1 %v594_v15 }
0x1031   :  { %v592_v17 = vpop.xlane.xlu0 %591 }
0x1032   :  { %v593_v19 = vsel %vm585_vm15, %v592_v17, %v571_v4 }
0x1033   :  { %v612_v20 = vmul.f32 %v604_v18, %v593_v19 }
0x1035   :  { %613 = vadd.xlane.f32.xlu0 %v612_v20  ;;  %v600_v21 = vpop.xlane.xlu0 %599 }
0x1036   :  { %v601_v22 = vsel %vm585_vm15, %v600_v21, %v579_v8 }
0x1037   :  { %v620_v23 = vmul.f32 %v604_v18, %v601_v22 }
0x1039   :  { %621 = vadd.xlane.f32.xlu0 %v620_v23 }
0x10a1   :  { %v588_v24 = vpop.xlane.xlu1 %587 }
0x10a2   :  { %v589_v25 = vsel %vm585_vm15, %v588_v24, %v567_v11 }
0x10a3   :  { %v608_v3 = vmul.f32 %v604_v18, %v589_v25 }
0x10a5   :  { %609 = vadd.xlane.f32.xlu1 %v608_v3  ;;  %v596_v26 = vpop.xlane.xlu1 %595 }
0x10a6   :  { %v597_v27 = vsel %vm585_vm15, %v596_v26, %v575_v14 }
0x10a7   :  { %v616_v28 = vmul.f32 %v604_v18, %v597_v27 }
0x10a9   :  { %617 = vadd.xlane.f32.xlu1 %v616_v28 }
0x10be   :  { %v614_v30 = vpop.xlane.xlu0 %613 }
0x10bf   :  { %v615_v32 = vsel %vm607_vm0, %v614_v30, %v593_v19 }
0x10c0   :  { %v634_v33 = vmul.f32 %v626_v31, %v615_v32 }
0x10c2   :  { %635 = vadd.xlane.f32.xlu0 %v634_v33  ;;  %v622_v35 = vpop.xlane.xlu0 %621 }
0x10c3   :  { %v623_v37 = vsel %vm607_vm0, %v622_v35, %v601_v22 }
0x10c4   :  { %v642_v38 = vmul.f32 %v626_v31, %v623_v37 }
0x10c6   :  { %643 = vadd.xlane.f32.xlu0 %v642_v38 }
0x112e   :  { %v610_v39 = vpop.xlane.xlu1 %609 }
0x112f   :  { %v611_v40 = vsel %vm607_vm0, %v610_v39, %v589_v25 }
0x1130   :  { %v630_v41 = vmul.f32 %v626_v31, %v611_v40 }
0x1132   :  { %631 = vadd.xlane.f32.xlu1 %v630_v41  ;;  %v618_v42 = vpop.xlane.xlu1 %617 }
0x1133   :  { %v619_v44 = vsel %vm607_vm0, %v618_v42, %v597_v27 }
0x1134   :  { %v638_v46 = vmul.f32 %v626_v31, %v619_v44 }
0x1136   :  { %639 = vadd.xlane.f32.xlu1 %v638_v46 }
0x114b   :  { %v636_v47 = vpop.xlane.xlu0 %635 }
0x114c   :  { %v637_v48 = vsel %vm629_vm2, %v636_v47, %v615_v32 }
0x114d   :  { %v652_v49 = vmul.f32 %v783_v45, %v637_v48 }
0x114f   :  { %v654_v50 = vsel %vm653_vm3, %v637_v48, %v652_v49  ;;  %v644_v51 = vpop.xlane.xlu0 %643 }
0x1150   :  { %706 = vst [vmem:[%s887_s1 + $0x8] sm:$0xff] %v654_v50  ;;  %v645_v52 = vsel %vm629_vm2, %v644_v51, %v623_v37 }
0x1151   :  { %v664_v54 = vmul.f32 %v840_v36, %v645_v52 }
0x1153   :  { %v666_v55 = vsel %vm665_vm4, %v645_v52, %v664_v54 }
0x1154   :  { %710 = vst [vmem:[%s887_s1 + $0x18] sm:$0xff] %v666_v55 }
0x11bb   :  { %v632_v45 = vpop.xlane.xlu1 %631 }
0x11bc   :  { %v633_v43 = vsel %vm629_vm2, %v632_v45, %v611_v40 }
0x11bd   :  { %v647_v56 = vmul.f32 %v761_v7, %v633_v43 }
0x11bf   :  { %v649_v57 = vsel %vm648_vm5, %v633_v43, %v647_v56  ;;  %v640_v58 = vpop.xlane.xlu1 %639 }
0x11c0   :  { %704 = vst [vmem:[%s887_s1] sm:$0xff] %v649_v57  ;;  %v641_v34 = vsel %vm629_vm2, %v640_v58, %v619_v44 }
0x11c1   :  { %v658_v36 = vmul.f32 %v808_v0, %v641_v34 }
0x11c3   :  { %v660_v59 = vsel %vm659_vm6, %v641_v34, %v658_v36 }
0x11c4   :  { %708 = vst [vmem:[%s887_s1 + $0x10] sm:$0xff] %v660_v59 }

// kernel: custom-call.61
= control target key start
LH: loop header
LB: loop body
LE: loop exit
PB: predicated region body
PF: predicated region fallthrough
CT: control target
= control target key end

     0   :  { %s3492_s0 = inlined_call_operand.vmem [shape: f32[16,16], index: 0, kind: input, shape index: {}]   ;;  %s3493_s1 = inlined_call_operand.vmem [shape: f32[16,16], index: 1, kind: input, shape index: {}]   ;;  %s3494_s2 = inlined_call_operand.vmem [shape: f32[16,16], index: 2, kind: input, shape index: {}]   ;;  %s3495_s3 = inlined_call_operand.vmem [shape: f32[16,16], index: 3, kind: input, shape index: {}]   ;;  %s3496_s4 = inlined_call_operand.vmem [shape: f32[16], index: 4, kind: output, shape index: {0}]   ;;  %s3497_s5 = inlined_call_operand.vmem [shape: f32[16], index: 5, kind: output, shape index: {1}]   ;;  %s3498_s6 = inlined_call_operand.vmem [shape: f32[16,16], index: 6, kind: output, shape index: {2}]   ;;  %s3499_s7 = inlined_call_operand.vmem [shape: f32[16,16], index: 7, kind: output, shape index: {3}]   ;;  %s3500_s8 = inlined_call_operand.vmem [shape: f32[16,16], index: 8, kind: output, shape index: {4}]   ;;  %s3501_s9 = inlined_call_operand.vmem [shape: f32[16,16], index: 9, kind: output, shape index: {5}]  }
   0x1   :  { %s24_s11 = scalar_lea.vmem %s3492_s0, 8 }
   0x2   :  { %p1755_p0 = scmp.gt.s32.totalorder %s3492_s0, %s24_s11 }
   0x3   :  { %s2932_s14 = smov (!%p1755_p0), [#allocation0]   ;;  %s2936_s17 = smov (!%p1755_p0), %s3492_s0  }
   0x4   :  { %1756 = sbr.rel (%p1755_p0) target bundleno = 17 (0x11), region = 421 }
   0x9 LB: > { %v58_v0 = vld [vmem:[%s2938_s17] sm:$0xff]  ;;  %s60_s17 = scalar_lea.vmem %s2938_s17, 8   ;;  %s2938_s17 = sphi %s2936_s17, %s60_s17   ;;  %s2934_s14 = sphi %s2932_s14, %s61_s14  }
   0xa   : > { %59 = vst [vmem:[%s2934_s14] sm:$0xff] %v58_v0  ;;  %s61_s14 = scalar_lea.vmem %s2934_s14, 8   ;;  %p55_p1 = scmp.gt.s32.totalorder %s60_s17, %s24_s11 }
   0xc   :  { %57 = sbr.rel (!%p55_p1) target bundleno = 9 (0x9), region = 427 }
  0x11 PF:  { %s87_s20 = scalar_lea.vmem %s3493_s1, 8 }
  0x12   :  { %p1775_p2 = scmp.gt.s32.totalorder %s3493_s1, %s87_s20 }
  0x13   :  { %s2940_s0 = smov (!%p1775_p2), [#allocation1]   ;;  %s2944_s25 = smov (!%p1775_p2), %s3493_s1  }
  0x14   :  { %1776 = sbr.rel (%p1775_p2) target bundleno = 33 (0x21), region = 443 }
  0x19 LB: > { %v121_v1 = vld [vmem:[%s2946_s25] sm:$0xff]  ;;  %s123_s25 = scalar_lea.vmem %s2946_s25, 8   ;;  %s2946_s25 = sphi %s2944_s25, %s123_s25   ;;  %s2942_s0 = sphi %s2940_s0, %s124_s0  }
  0x1a   : > { %122 = vst [vmem:[%s2942_s0] sm:$0xff] %v121_v1  ;;  %s124_s0 = scalar_lea.vmem %s2942_s0, 8   ;;  %p118_p3 = scmp.gt.s32.totalorder %s123_s25, %s87_s20 }
  0x1c   :  { %120 = sbr.rel (!%p118_p3) target bundleno = 25 (0x19), region = 449 }
  0x21 PF:  { %s150_s28 = scalar_lea.vmem %s3494_s2, 8 }
  0x22   :  { %p1795_p4 = scmp.gt.s32.totalorder %s3494_s2, %s150_s28 }
  0x23   :  { %s2948_s1 = smov (!%p1795_p4), [#allocation2]   ;;  %s2952_s12 = smov (!%p1795_p4), %s3494_s2  }
  0x24   :  { %1796 = sbr.rel (%p1795_p4) target bundleno = 49 (0x31), region = 465 }
  0x29 LB: > { %v184_v2 = vld [vmem:[%s2954_s12] sm:$0xff]  ;;  %s186_s12 = scalar_lea.vmem %s2954_s12, 8   ;;  %s2954_s12 = sphi %s2952_s12, %s186_s12   ;;  %s2950_s1 = sphi %s2948_s1, %s187_s1  }
  0x2a   : > { %185 = vst [vmem:[%s2950_s1] sm:$0xff] %v184_v2  ;;  %s187_s1 = scalar_lea.vmem %s2950_s1, 8   ;;  %p181_p5 = scmp.gt.s32.totalorder %s186_s12, %s150_s28 }
  0x2c   :  { %183 = sbr.rel (!%p181_p5) target bundleno = 41 (0x29), region = 471 }
  0x31 PF:  { %s213_s15 = scalar_lea.vmem %s3495_s3, 8 }
  0x32   :  { %p1815_p6 = scmp.gt.s32.totalorder %s3495_s3, %s213_s15 }
  0x33   :  { %s2956_s2 = smov (!%p1815_p6), [#allocation3]   ;;  %s2960_s20 = smov (!%p1815_p6), %s3495_s3  }
  0x34   :  { %1816 = sbr.rel (%p1815_p6) target bundleno = 65 (0x41), region = 487 }
  0x39 LB: > { %v247_v3 = vld [vmem:[%s2962_s20] sm:$0xff]  ;;  %s249_s20 = scalar_lea.vmem %s2962_s20, 8   ;;  %s2962_s20 = sphi %s2960_s20, %s249_s20   ;;  %s2958_s2 = sphi %s2956_s2, %s250_s2  }
  0x3a   : > { %248 = vst [vmem:[%s2958_s2] sm:$0xff] %v247_v3  ;;  %s250_s2 = scalar_lea.vmem %s2958_s2, 8   ;;  %p244_p7 = scmp.gt.s32.totalorder %s249_s20, %s213_s15 }
  0x3c   :  { %246 = sbr.rel (!%p244_p7) target bundleno = 57 (0x39), region = 493 }
  0x41 PF:  { %s263_s21 = smov [#allocation12]  ;;  %v264_v4 = vld [vmem:[#allocation0] sm:$0xff]  ;;  %v268_v5 = vld [vmem:[#allocation0 + $0x8] sm:$0xff]  ;;  %s270_s22 = smov [#allocation13]  ;;  %v271_v6 = vld [vmem:[#allocation1] sm:$0xff]  ;;  %v304_v7 = vlaneseq  ;;  %v3004_v11 = vmov 0.0  }
  0x42   :  { %265 = vst [vmem:[%s263_s21] sm:$0xff] %v264_v4  ;;  %2080 = vst [vmem:[%s263_s21 + $0x8] sm:$0xff] %v268_v5  ;;  %v275_v8 = vld [vmem:[#allocation1 + $0x8] sm:$0xff]  ;;  %s277_s3 = smov [#allocation14]  ;;  %v278_v9 = vld [vmem:[#allocation2] sm:$0xff]  ;;  %s284_s0 = smov [#allocation15] }
  0x43   :  { %272 = vst [vmem:[%s270_s22] sm:$0xff] %v271_v6  ;;  %v282_v10 = vld [vmem:[#allocation2 + $0x8] sm:$0xff]  ;;  %291 = vst [vmem:[#allocation8] sm:$0xff] %v3004_v11  ;;  %v285_v12 = vld [vmem:[#allocation3] sm:$0xff]  ;;  %v3093_v14 = vand.u32 127, %v304_v7  ;;  %v3095_v15 = vshrl.u32 %v304_v7, 7  ;;  %s303_s23 = smov [#allocation8] }
  0x44   :  { %293 = vst [vmem:[#allocation8 + $0x8] sm:$0xff] %v3004_v11  ;;  %294 = vst [vmem:[#allocation9] sm:$0xff] %v3004_v11  ;;  %v289_v13 = vld [vmem:[#allocation3 + $0x8] sm:$0xff]  ;;  %s323_s24 = smov [#allocation11]  ;;  %s1833_s25 = smov [#allocation12] }
  0x45   :  { %296 = vst [vmem:[#allocation9 + $0x8] sm:$0xff] %v3004_v11  ;;  %297 = vst [vmem:[#allocation10] sm:$0xff] %v3004_v11  ;;  %v306_v14 = vmov %v3093_v14  ;;  %v309_v15 = vmov %v3095_v15  ;;  %vm1837_vm4 = vcmp.lt.s32.totalorder %v3093_v14, 16  ;;  %s1859_s26 = smov [#allocation13]  ;;  %s1882_s27 = smov [#allocation14] }
  0x46   :  { %299 = vst [vmem:[#allocation10 + $0x8] sm:$0xff] %v3004_v11  ;;  %300 = vst [vmem:[#allocation11] sm:$0xff] %v3004_v11  ;;  %v326_v14 = vmov %v3093_v14  ;;  %v329_v15 = vmov %v3095_v15  ;;  %v319_v16 = vadd.s32 8, %v309_v15  ;;  %vm313_vm0 = vcmp.eq.s32.totalorder %v309_v15, %v306_v14  ;;  %s1905_s28 = smov [#allocation15] }
  0x47   :  { %302 = vst [vmem:[#allocation11 + $0x8] sm:$0xff] %v3004_v11  ;;  %2081 = vst [vmem:[%s270_s22 + $0x8] sm:$0xff] %v275_v8  ;;  %v339_v17 = vadd.s32 8, %v329_v15  ;;  %vm333_vm1 = vcmp.eq.s32.totalorder %v329_v15, %v326_v14  ;;  %v1832_v15 = vmov %v3095_v15 }
  0x48   :  { %279 = vst [vmem:[%s277_s3] sm:$0xff] %v278_v9  ;;  %2082 = vst [vmem:[%s277_s3 + $0x8] sm:$0xff] %v282_v10  ;;  %vm320_vm2 = vcmp.eq.s32.totalorder %v319_v16, %v306_v14  ;;  %v1848_v34 = vadd.s32 8, %v1832_v15 }
  0x49   :  { %286 = vst [vmem:[%s284_s0] sm:$0xff] %v285_v12  ;;  %2083 = vst [vmem:[%s284_s0 + $0x8] sm:$0xff] %v289_v13  ;;  %vm340_vm3 = vcmp.eq.s32.totalorder %v339_v17, %v326_v14  ;;  %v1829_v14 = vmov %v3093_v14  ;;  %v1839_v26 = vld [vmem:[%s1833_s25] sm:$0xff]  ;;  %v2088_v27 = vld [vmem:[%s1833_s25 + $0x8] sm:$0xff] }
  0x4a   :  { %vm1842_vm5 = vcmp.eq.s32.totalorder %v1832_v15, %v1829_v14  ;;  %v1855_v14 = vmov %v3093_v14  ;;  %v1840_v29 = vsel %vm1837_vm4, %v1839_v26, 0.0  ;;  %v1846_v30 = vsel %vm1837_vm4, %v2088_v27, 0.0 }
  0x4b   :  { %v310_v18 = vld [vmem:[%s303_s23] sm:$0xff]  ;;  %v2084_v19 = vld [vmem:[%s303_s23 + $0x8] sm:$0xff]  ;;  %v1841_v35 = vmul.f32 %v1840_v29, %v1840_v29  ;;  %v1847_v36 = vmul.f32 %v1846_v30, %v1846_v30  ;;  %vm1849_vm6 = vcmp.eq.s32.totalorder %v1848_v34, %v1829_v14  ;;  %v1904_v15 = vmov %v3095_v15 }
  0x4c   :  { %v314_v21 = vsel %vm313_vm0, 1.0, %v310_v18  ;;  %v321_v22 = vsel %vm320_vm2, 1.0, %v2084_v19  ;;  %v1858_v15 = vmov %v3095_v15  ;;  %v1878_v14 = vmov %v3093_v14 }
  0x4d   :  { %315 = vst [vmem:[%s303_s23] sm:$0xff] %v314_v21  ;;  %2085 = vst [vmem:[%s303_s23 + $0x8] sm:$0xff] %v321_v22  ;;  %v1852_v41 = vadd.f32 %v1847_v36, %v1841_v35  ;;  %v1843_v45 = vsel %vm1842_vm5, 0.0, %v1841_v35  ;;  %v1850_v49 = vsel %vm1849_vm6, 0.0, %v1847_v36  ;;  %v1901_v14 = vmov %v3093_v14 }
  0x4e   :  { %v330_v20 = vld [vmem:[%s323_s24] sm:$0xff]  ;;  %v2086_v24 = vld [vmem:[%s323_s24 + $0x8] sm:$0xff]  ;;  %v1851_v51 = vadd.f32 %v1850_v49, %v1843_v45  ;;  %v1881_v15 = vmov %v3095_v15  ;;  %v1922_v56 = vadd.s32 8, %v1904_v15  ;;  %vm1914_vm7 = vcmp.eq.s32.totalorder %v1904_v15, %v1901_v14 }
  0x4f   :  { %v334_v23 = vsel %vm333_vm1, 1.0, %v330_v20  ;;  %v341_v25 = vsel %vm340_vm3, 1.0, %v2086_v24  ;;  %v1865_v28 = vld [vmem:[%s1859_s26] sm:$0xff]  ;;  %v2089_v32 = vld [vmem:[%s1859_s26 + $0x8] sm:$0xff] }
  0x50   :  { %335 = vst [vmem:[%s323_s24] sm:$0xff] %v334_v23  ;;  %2087 = vst [vmem:[%s323_s24 + $0x8] sm:$0xff] %v341_v25  ;;  %v1866_v31 = vsel %vm1837_vm4, %v1865_v28, 0.0  ;;  %v1888_v33 = vld [vmem:[%s1882_s27] sm:$0xff]  ;;  %v1872_v38 = vsel %vm1837_vm4, %v2089_v32, 0.0  ;;  %v2090_v39 = vld [vmem:[%s1882_s27 + $0x8] sm:$0xff]  ;;  %vm1923_vm8 = vcmp.eq.s32.totalorder %v1922_v56, %v1901_v14 }
  0x51   :  { %v1867_v37 = vmul.f32 %v1866_v31, %v1866_v31  ;;  %v1889_v40 = vsel %vm1837_vm4, %v1888_v33, 0.0  ;;  %v1873_v42 = vmul.f32 %v1872_v38, %v1872_v38  ;;  %v1911_v43 = vld [vmem:[%s1905_s28] sm:$0xff]  ;;  %v1895_v44 = vsel %vm1837_vm4, %v2090_v39, 0.0  ;;  %v2091_v48 = vld [vmem:[%s1905_s28 + $0x8] sm:$0xff] }
  0x52   :  { %v1890_v47 = vmul.f32 %v1889_v40, %v1889_v40  ;;  %v1912_v50 = vsel %vm1837_vm4, %v1911_v43, 0.0  ;;  %v1896_v53 = vmul.f32 %v1895_v44, %v1895_v44  ;;  %v1920_v54 = vsel %vm1837_vm4, %v2091_v48, 0.0 }
  0x53   :  { %v1869_v46 = vadd.f32 %v1867_v37, %v1852_v41  ;;  %v1868_v55 = vadd.f32 %v1867_v37, %v1851_v51  ;;  %v1913_v58 = vmul.f32 %v1912_v50, %v1912_v50  ;;  %v1921_v61 = vmul.f32 %v1920_v54, %v1920_v54 }
  0x55   :  { %v1875_v52 = vadd.f32 %v1873_v42, %v1869_v46  ;;  %v1874_v59 = vadd.f32 %v1873_v42, %v1868_v55  ;;  %v1915_v0 = vsel %vm1914_vm7, 0.0, %v1913_v58  ;;  %v1924_v3 = vsel %vm1923_vm8, 0.0, %v1921_v61 }
  0x57   :  { %v1892_v57 = vadd.f32 %v1890_v47, %v1875_v52  ;;  %v1891_v62 = vadd.f32 %v1890_v47, %v1874_v59 }
  0x59   :  { %v1898_v60 = vadd.f32 %v1896_v53, %v1892_v57  ;;  %v1897_v1 = vadd.f32 %v1896_v53, %v1891_v62 }
  0x5b   :  { %v1917_v63 = vadd.f32 %v1913_v58, %v1898_v60  ;;  %v1916_v4 = vadd.f32 %v1915_v0, %v1897_v1 }
  0x5d   :  { %v1926_v2 = vadd.f32 %v1921_v61, %v1917_v63  ;;  %v1925_v5 = vadd.f32 %v1924_v3, %v1916_v4 }
  0x5f   :  { %1927 = vadd.xlane.f32.xlu0 %v1926_v2 }
  0x63   :  { %1935 = vadd.xlane.f32.xlu0 %v1925_v5 }
  0xe8   :  { %v1928_v6 = vpop.xlane.xlu0 %1927 }
  0xe9   :  { %v1929_v7 = vrot.slane %v1928_v6, 4 }
  0xeb   :  { %v1930_v8 = vadd.f32 %v1929_v7, %v1928_v6 }
  0xec   :  { %v1936_v9 = vpop.xlane.xlu0 %1935 }
  0xed   :  { %v1931_v10 = vrot.slane %v1930_v8, 2  ;;  %v1937_v11 = vrot.slane %v1936_v9, 4 }
  0xef   :  { %v1938_v12 = vadd.f32 %v1937_v11, %v1936_v9  ;;  %v1932_v13 = vadd.f32 %v1931_v10, %v1930_v8 }
  0xf1   :  { %v1939_v16 = vrot.slane %v1938_v12, 2  ;;  %v1933_v18 = vrot.slane %v1932_v13, 1 }
  0xf3   :  { %v1940_v17 = vadd.f32 %v1939_v16, %v1938_v12  ;;  %v1934_v21 = vadd.f32 %v1933_v18, %v1932_v13 }
  0xf5   :  { %v1941_v19 = vrot.slane %v1940_v17, 1 }
  0xf7   :  { %v1942_v20 = vadd.f32 %v1941_v19, %v1940_v17 }
  0xf9   :  { %2213 = vpush %v1942_v20 }
  0xfa   :  { %2215 = vpush %v1934_v21 }
 0x12a   :  { %s2214_s29 = spop %2213 }
 0x12b   :  { %s2216_s30 = spop %2215 }
 0x12c   :  { %s1945_s1 = smul.f32 1e-10, %s2216_s30 }
 0x12e   :  { %p1946_p8 = scmp.le.f32.partialorder %s2214_s29, %s1945_s1 }
 0x12f   :  { %s3127_s10 = smov (!%p1946_p8), 0  }
 0x130   :  { %1949 = sbr.rel (%p1946_p8) target bundleno = 1031 (0x407), region = 509 }
 0x135 LB: > { %s3132_s11 = smov 0   ;;  %s2966_s10 = sphi %s3127_s10, %s3502_s10  }
 0x136 LB: >> { %s479_s12 = smov [#allocation12]  ;;  %v483_v14 = vmov %v3093_v14  ;;  %v486_v15 = vmov %v3095_v15  ;;  %s505_s13 = smov [#allocation13]  ;;  %vm1012_vm8 = vcmp.eq.s32.totalorder %v3095_v15, 0  ;;  %s2970_s11 = sphi %s3132_s11, %s478_s11  }
 0x137   : >> { %v509_v14 = vmov %v3093_v14  ;;  %v512_v15 = vmov %v3095_v15  ;;  %v487_v22 = vld [vmem:[%s479_s12] sm:$0xff]  ;;  %vm490_vm9 = vcmp.eq.s32.totalorder %v486_v15, %v483_v14  ;;  %v2092_v23 = vld [vmem:[%s479_s12 + $0x8] sm:$0xff]  ;;  %v495_v24 = vadd.s32 8, %v486_v15  ;;  %s531_s14 = smov [#allocation15]  ;;  %s480_s15 = smov [#allocation16] }
 0x138   : >> { %vm516_vm10 = vcmp.eq.s32.totalorder %v512_v15, %v509_v14  ;;  %v521_v25 = vadd.s32 8, %v512_v15  ;;  %v491_v26 = vsel %vm490_vm9, %v487_v22, 0.0  ;;  %v513_v27 = vld [vmem:[%s505_s13] sm:$0xff]  ;;  %v2093_v28 = vld [vmem:[%s505_s13 + $0x8] sm:$0xff]  ;;  %v535_v14 = vmov %v3093_v14  ;;  %s506_s16 = smov [#allocation17]  ;;  %s532_s17 = smov [#allocation18] }
 0x139   : >> { %v538_v15 = vmov %v3095_v15  ;;  %vm496_vm11 = vcmp.eq.s32.totalorder %v495_v24, %v483_v14  ;;  %v517_v29 = vsel %vm516_vm10, %v513_v27, 0.0  ;;  %v539_v30 = vld [vmem:[%s531_s14] sm:$0xff]  ;;  %v2094_v34 = vld [vmem:[%s531_s14 + $0x8] sm:$0xff]  ;;  %s561_s2 = smov [#allocation17]  ;;  %s559_s18 = smov [#allocation16]  ;;  %vm1036_vm9 = vcmp.eq.s32.totalorder %v3095_v15, 7 }
 0x13a   : >> { %vm522_vm12 = vcmp.eq.s32.totalorder %v521_v25, %v509_v14  ;;  %vm542_vm13 = vcmp.eq.s32.totalorder %v538_v15, %v535_v14  ;;  %v497_v31 = vsel %vm496_vm11, %v2092_v23, %v491_v26  ;;  %v547_v35 = vadd.s32 8, %v538_v15  ;;  %s563_s19 = smov [#allocation18]  ;;  %s598_s20 = smov [#allocation19] }
 0x13b   : >> { %v523_v32 = vsel %vm522_vm12, %v2093_v28, %v517_v29  ;;  %v543_v33 = vsel %vm542_vm13, %v539_v30, 0.0  ;;  %v498_v36 = vrot.slane %v497_v31, 4  ;;  %s600_s21 = smov [#allocation20]  ;;  %s557_s22 = smov [#allocation21]  ;;  %v628_v15 = vmov %v3095_v15 }
 0x13c   : >> { %v524_v37 = vrot.slane %v523_v32, 4  ;;  %vm548_vm14 = vcmp.eq.s32.totalorder %v547_v35, %v535_v14  ;;  %s558_s3 = smov [#allocation22]  ;;  %s602_s22 = smov %s557_s22  ;;  %v659_v15 = vmov %v3095_v15  ;;  %v629_v24 = vadd.s32 8, %v628_v15 }
 0x13d   : >> { %v499_v38 = vadd.f32 %v498_v36, %v497_v31  ;;  %v549_v40 = vsel %vm548_vm14, %v2094_v34, %v543_v33  ;;  %s604_s3 = smov %s558_s3  ;;  %v610_v14 = vmov %v3093_v14  ;;  %v613_v15 = vmov %v3095_v15  ;;  %s606_s0 = smov [#allocation21] }
 0x13e   : >> { %v525_v39 = vadd.f32 %v524_v37, %v523_v32  ;;  %v550_v41 = vrot.slane %v549_v40, 4  ;;  %v625_v14 = vmov %v3093_v14  ;;  %v660_v25 = vadd.s32 8, %v659_v15  ;;  %s621_s23 = smov [#allocation21]  ;;  %s637_s24 = smov [#allocation22] }
 0x13f   : >> { %v500_v42 = vrot.slane %v499_v38, 2  ;;  %v641_v14 = vmov %v3093_v14  ;;  %v644_v15 = vmov %v3095_v15  ;;  %vm615_vm3 = vcmp.eq.s32.totalorder %v613_v15, %v610_v14  ;;  %s652_s25 = smov [#allocation22]  ;;  %s619_s26 = smov [#allocation23] }
 0x140   : >> { %v526_v43 = vrot.slane %v525_v39, 2  ;;  %v551_v44 = vadd.f32 %v550_v41, %v549_v40  ;;  %v656_v14 = vmov %v3093_v14  ;;  %vm630_vm5 = vcmp.eq.s32.totalorder %v629_v24, %v625_v14  ;;  %s634_s27 = smov [#allocation23]  ;;  %s668_s28 = smov [#allocation23] }
 0x141   : >> { %v501_v45 = vadd.f32 %v500_v42, %v499_v38  ;;  %vm646_vm6 = vcmp.eq.s32.totalorder %v644_v15, %v641_v14  ;;  %vm661_vm7 = vcmp.eq.s32.totalorder %v660_v25, %v656_v14  ;;  %s650_s29 = smov [#allocation24]  ;;  %s3151_s30 = smov [#allocation12]  ;;  %v815_v15 = vmov %v3095_v15 }
 0x142   : >> { %v527_v46 = vadd.f32 %v526_v43, %v525_v39  ;;  %v552_v47 = vrot.slane %v551_v44, 2  ;;  %s665_s1 = smov [#allocation24]  ;;  %s3153_s12 = smov [#allocation13]  ;;  %v676_v38 = vld [vmem:[%s3151_s30] sm:$0xff]  ;;  %v793_v15 = vmov %v3095_v15  ;;  %v812_v14 = vmov %v3093_v14 }
 0x143   : >> { %v502_v48 = vrot.slane %v501_v45, 1  ;;  %s3155_s13 = smov [#allocation14]  ;;  %s3157_s14 = smov [#allocation15]  ;;  %v677_v39 = vld [vmem:[%s3153_s12] sm:$0xff]  ;;  %v835_v15 = vmov %v3095_v15  ;;  %v790_v14 = vmov %v3093_v14  ;;  %vm819_vm10 = vcmp.eq.s32.totalorder %v815_v15, %v812_v14 }
 0x144   : >> { %v528_v49 = vrot.slane %v527_v46, 1  ;;  %v553_v50 = vadd.f32 %v552_v47, %v551_v44  ;;  %v678_v40 = vld [vmem:[%s3155_s13] sm:$0xff]  ;;  %v856_v15 = vmov %v3095_v15  ;;  %v832_v14 = vmov %v3093_v14  ;;  %s478_s11 = sadd.s32 1, %s2970_s11  }
 0x145   : >> { %v503_v51 = vadd.f32 %v502_v48, %v501_v45  ;;  %v679_v41 = vld [vmem:[%s3157_s14] sm:$0xff]  ;;  %v853_v14 = vmov %v3093_v14  ;;  %vm798_vm12 = vcmp.eq.s32.totalorder %v793_v15, %v790_v14  ;;  %vm839_vm14 = vcmp.eq.s32.totalorder %v835_v15, %v832_v14  ;;  %p475_p9 = scmp.ge.s32.totalorder %s478_s11, 31  }
 0x146   : >> { %v529_v52 = vadd.f32 %v528_v49, %v527_v46  ;;  %v554_v53 = vrot.slane %v553_v50, 1  ;;  %s426_s11 = smov (%p475_p9), [#allocation15] }
 0x147   : >> { %504 = vst [vmem:[%s480_s15] sm:$0x1] %v503_v51  ;;  %s1092_s15 = smov [#allocation23] }
 0x148   : >> { %530 = vst [vmem:[%s506_s16] sm:$0x1] %v529_v52  ;;  %v555_v54 = vadd.f32 %v554_v53, %v553_v50  ;;  %s3159_s16 = smov [#allocation8] }
 0x149   : >> { %v1100_v42 = vld [vmem:[%s3159_s16] sm:$0xff] }
 0x14a   : >> { %556 = vst [vmem:[%s532_s17] sm:$0x1] %v555_v54  ;;  %s3161_s17 = smov [#allocation9] }
 0x14b   : >> { %v1101_v43 = vld [vmem:[%s3161_s17] sm:$0xff] }
 0x14e   : >> { %v560_v57 = vld [vmem:[%s559_s18] sm:$0xff]  ;;  %s3166_s18 = smov [#allocation11] }
 0x14f   : >> { %v562_v55 = vld [vmem:[%s561_s2] sm:$0xff]  ;;  %v583_v8 = vand.u32 2147483647, %v560_v57  ;;  %s3164_s2 = smov [#allocation10] }
 0x150   : >> { %v566_v56 = vmul.f32 2.0, %v562_v55  ;;  %v584_v11 = vand.u32 2147483647, %v562_v55  ;;  %v1102_v45 = vld [vmem:[%s3164_s2] sm:$0xff] }
 0x151   : >> { %v564_v58 = vld [vmem:[%s563_s19] sm:$0xff]  ;;  %s670_s19 = smov [#allocation24] }
 0x152   : >> { %2692 = vrcp.f32 %v566_v56  ;;  %v565_v59 = vsub.f32 %v564_v58, %v560_v57  ;;  %v585_v9 = vand.u32 2147483647, %v564_v58  ;;  %v1103_v46 = vld [vmem:[%s3166_s18] sm:$0xff] }
 0x154   : >> { %v586_v10 = vmin.f32 %v583_v8, %v585_v9 }
 0x156   : >> { %v587_v12 = vmul.f32 1.1920929e-08, %v586_v10 }
 0x158   : >> { %vm588_vm2 = vcmp.le.f32.partialorder %v584_v11, %v587_v12 }
 0x15f   : >> { %v2693_v60 = vpop.eup %2692 }
 0x160   : >> { %v568_v61 = vmul.f32 %v2693_v60, %v565_v59 }
 0x162   : >> { %v570_v62 = vmul.f32 %v568_v61, %v568_v61  ;;  %vm569_vm1 = vcmp.ge.f32.partialorder %v568_v61, 0.0 }
 0x164   : >> { %v571_v63 = vadd.f32 1.0, %v570_v62 }
 0x166   : >> { %2694 = vrsqrt.f32 %v571_v63  ;;  %vm574_vm15 = vcmp.eq.f32.partialorder %v571_v63, inf  ;;  %v577_v1 = vand.u32 2147483648, %v571_v63  ;;  %vm576_vm0 = vcmp.eq.f32.partialorder %v571_v63, 0.0 }
 0x173   : >> { %v2695_v0 = vpop.eup %2694 }
 0x174   : >> { %v573_v2 = vmul.f32 %v2695_v0, %v571_v63 }
 0x176   : >> { %v575_v3 = vsel %vm574_vm15, %v571_v63, %v573_v2 }
 0x177   : >> { %v578_v4 = vsel %vm576_vm0, %v577_v1, %v575_v3  ;;  %vm861_vm0 = vcmp.eq.s32.totalorder %v856_v15, %v853_v14 }
 0x178   : >> { %v579_v5 = vxor.u32 2147483648, %v578_v4 }
 0x17a   : >> { %v580_v6 = vsel %vm569_vm1, %v578_v4, %v579_v5 }
 0x17b   : >> { %v581_v7 = vadd.f32 %v580_v6, %v568_v61 }
 0x17d   : >> { %2696 = vrcp.f32 %v581_v7 }
 0x18a   : >> { %v2697_v13 = vpop.eup %2696 }
 0x18b   : >> { %v589_v16 = vsel %vm588_vm2, 0.0, %v2697_v13  ;;  %vm883_vm2 = vcmp.eq.s32.totalorder %v3093_v14, 0 }
 0x18c   : >> { %v590_v17 = vmul.f32 %v589_v16, %v589_v16  ;;  %v594_v18 = vmul.f32 %v589_v16, %v562_v55 }
 0x18e   : >> { %v591_v19 = vadd.f32 1.0, %v590_v17  ;;  %v595_v20 = vsub.f32 %v560_v57, %v594_v18  ;;  %v597_v21 = vadd.f32 %v594_v18, %v564_v58 }
 0x190   : >> { %2698 = vrsqrt.f32 %v591_v19  ;;  %599 = vst [vmem:[%s598_s20] sm:$0xff] %v595_v20  ;;  %601 = vst [vmem:[%s600_s21] sm:$0xff] %v597_v21  ;;  %s1094_s20 = smov [#allocation24]  ;;  %s696_s21 = smov [#allocation23] }
 0x19d   : >> { %v2699_v22 = vpop.eup %2698 }
 0x19e   : >> { %603 = vst [vmem:[%s602_s22] sm:$0xff] %v2699_v22  ;;  %v593_v23 = vmul.f32 %v2699_v22, %v589_v16  ;;  %s1120_s22 = smov [#allocation23] }
 0x1a0   : >> { %605 = vst [vmem:[%s604_s3] sm:$0xff] %v593_v23  ;;  %s699_s3 = smov [#allocation24] }
 0x1a5   : >> { %v607_v26 = vld [vmem:[%s606_s0] ss:$0 sm:$0xff]  ;;  %s3183_s0 = smov [#allocation12] }
 0x1a6   : >> { %v622_v27 = vld [vmem:[%s621_s23] ss:$0 sm:$0xff]  ;;  %v616_v28 = vsel %vm615_vm3, %v607_v26, 0.0  ;;  %s3185_s23 = smov [#allocation14]  ;;  %vm887_vm3 = vcmp.eq.s32.totalorder %v3093_v14, 1 }
 0x1a7   : >> { %v631_v29 = vsel %vm630_vm5, %v622_v27, 0.0  ;;  %617 = vadd.xlane.f32.xlu0 %v616_v28  ;;  %v638_v30 = vld [vmem:[%s637_s24] ss:$0 sm:$0xff]  ;;  %s1123_s24 = smov [#allocation24]  ;;  %vm900_vm5 = vcmp.eq.s32.totalorder %v3093_v14, 15 }
 0x1a8   : >> { %632 = vadd.xlane.f32.xlu1 %v631_v29  ;;  %v653_v31 = vld [vmem:[%s652_s25] ss:$0 sm:$0xff]  ;;  %v647_v32 = vsel %vm646_vm6, %v638_v30, 0.0  ;;  %s3187_s25 = smov [#allocation15] }
 0x1a9   : >> { %v662_v33 = vsel %vm661_vm7, %v653_v31, 0.0 }
 0x1ab   : >> { %648 = vadd.xlane.f32.xlu0 %v647_v32 }
 0x1ac   : >> { %663 = vadd.xlane.f32.xlu1 %v662_v33 }
 0x230   : >> { %v618_v34 = vpop.xlane.xlu0 %617 }
 0x231   : >> { %v633_v35 = vpop.xlane.xlu1 %632  ;;  %620 = vst [vmem:[%s619_s26] sm:$0xff] %v618_v34  ;;  %s3189_s26 = smov [#allocation8] }
 0x232   : >> { %2095 = vst [vmem:[%s634_s27 + $0x8] sm:$0xff] %v633_v35  ;;  %s3191_s27 = smov [#allocation9] }
 0x234   : >> { %v649_v36 = vpop.xlane.xlu0 %648 }
 0x235   : >> { %v664_v37 = vpop.xlane.xlu1 %663  ;;  %651 = vst [vmem:[%s650_s29] sm:$0xff] %v649_v36  ;;  %s3195_s29 = smov [#allocation11] }
 0x236   : >> { %2096 = vst [vmem:[%s665_s1 + $0x8] sm:$0xff] %v664_v37  ;;  %s3211_s1 = smov [#allocation8] }
 0x239   : >> { %v669_v44 = vld [vmem:[%s668_s28] sm:$0xff]  ;;  %v2097_v10 = vld [vmem:[%s696_s21 + $0x8] sm:$0xff]  ;;  %s3193_s28 = smov [#allocation10]  ;;  %s760_s21 = smov [#allocation13] }
 0x23a   : >> { %v1093_v47 = vld [vmem:[%s1092_s15] sm:$0xff]  ;;  %v680_v48 = vmul.f32 %v676_v38, %v669_v44  ;;  %v683_v49 = vmul.f32 %v677_v39, %v669_v44  ;;  %v687_v50 = vmul.f32 %v678_v40, %v669_v44  ;;  %v690_v51 = vmul.f32 %v679_v41, %v669_v44  ;;  %v2155_v11 = vld [vmem:[%s1120_s22 + $0x8] sm:$0xff]  ;;  %s732_s15 = smov [#allocation22]  ;;  %s762_s22 = smov [#allocation14] }
 0x23b   : >> { %v1104_v52 = vmul.f32 %v1100_v42, %v1093_v47  ;;  %v1107_v53 = vmul.f32 %v1101_v43, %v1093_v47  ;;  %v1111_v54 = vmul.f32 %v1102_v45, %v1093_v47  ;;  %v1114_v55 = vmul.f32 %v1103_v46, %v1093_v47 }
 0x23d   : >> { %v671_v56 = vld [vmem:[%s670_s19] sm:$0xff]  ;;  %v2098_v12 = vld [vmem:[%s699_s3 + $0x8] sm:$0xff]  ;;  %s3231_s19 = smov [#allocation15]  ;;  %s764_s3 = smov [#allocation15] }
 0x23e   : >> { %v1095_v57 = vld [vmem:[%s1094_s20] sm:$0xff]  ;;  %v681_v58 = vmul.f32 %v678_v40, %v671_v56  ;;  %v684_v59 = vmul.f32 %v679_v41, %v671_v56  ;;  %v686_v60 = vmul.f32 %v676_v38, %v671_v56  ;;  %v689_v61 = vmul.f32 %v677_v39, %v671_v56  ;;  %v2156_v13 = vld [vmem:[%s1123_s24 + $0x8] sm:$0xff]  ;;  %s758_s20 = smov [#allocation12]  ;;  %s809_s24 = smov [#allocation13] }
 0x23f   : >> { %v1105_v62 = vmul.f32 %v1102_v45, %v1095_v57  ;;  %v1108_v63 = vmul.f32 %v1103_v46, %v1095_v57  ;;  %v1110_v0 = vmul.f32 %v1100_v42, %v1095_v57  ;;  %v1113_v1 = vmul.f32 %v1101_v43, %v1095_v57 }
 0x240   : >> { %v682_v2 = vsub.f32 %v680_v48, %v681_v58  ;;  %v685_v3 = vsub.f32 %v683_v49, %v684_v59  ;;  %v688_v4 = vadd.f32 %v687_v50, %v686_v60  ;;  %v691_v5 = vadd.f32 %v690_v51, %v689_v61 }
 0x241   : >> { %v1106_v6 = vsub.f32 %v1104_v52, %v1105_v62  ;;  %v1109_v7 = vsub.f32 %v1107_v53, %v1108_v63  ;;  %v1112_v8 = vadd.f32 %v1111_v54, %v1110_v0  ;;  %v1115_v9 = vadd.f32 %v1114_v55, %v1113_v1  ;;  %v3238_v52 = vld [vmem:[%s732_s15] ss:$0 sm:$0xff]  ;;  %s3339_s15 = smov [#allocation13] }
 0x242   : >> { %692 = vst [vmem:[%s3151_s30] sm:$0xff] %v682_v2  ;;  %694 = vst [vmem:[%s3155_s13] sm:$0xff] %v688_v4  ;;  %s3197_s30 = smov [#allocation13]  ;;  %s3216_s13 = smov [#allocation9] }
 0x243   : >> { %695 = vst [vmem:[%s3157_s14] sm:$0xff] %v691_v5  ;;  %693 = vst [vmem:[%s3153_s12] sm:$0xff] %v685_v3  ;;  %s3213_s12 = smov [#allocation10]  ;;  %s730_s14 = smov [#allocation21] }
 0x244   : >> { %1116 = vst [vmem:[%s3159_s16] sm:$0xff] %v1106_v6  ;;  %1117 = vst [vmem:[%s3161_s17] sm:$0xff] %v1109_v7  ;;  %s3221_s16 = smov [#allocation12]  ;;  %s3224_s17 = smov [#allocation11]  ;;  %v3236_v51 = vld [vmem:[%s730_s14] ss:$0 sm:$0xff] }
 0x245   : >> { %1118 = vst [vmem:[%s3164_s2] sm:$0xff] %v1112_v8  ;;  %1119 = vst [vmem:[%s3166_s18] sm:$0xff] %v1115_v9  ;;  %s3226_s2 = smov [#allocation13]  ;;  %s3229_s18 = smov [#allocation14] }
 0x246   : >> { %s3335_s14 = smov [#allocation15] }
 0x249   : >> { %v2099_v16 = vld [vmem:[%s3183_s0 + $0x8] sm:$0xff] }
 0x24a   : >> { %v2101_v17 = vld [vmem:[%s3185_s23 + $0x8] sm:$0xff]  ;;  %v714_v19 = vmul.f32 %v2099_v16, %v2097_v10  ;;  %v720_v22 = vmul.f32 %v2099_v16, %v2098_v12 }
 0x24b   : >> { %v2102_v18 = vld [vmem:[%s3187_s25 + $0x8] sm:$0xff]  ;;  %v715_v20 = vmul.f32 %v2101_v17, %v2098_v12  ;;  %v721_v26 = vmul.f32 %v2101_v17, %v2097_v10 }
 0x24c   : >> { %v718_v21 = vmul.f32 %v2102_v18, %v2098_v12  ;;  %v2157_v23 = vld [vmem:[%s3189_s26 + $0x8] sm:$0xff]  ;;  %v724_v27 = vmul.f32 %v2102_v18, %v2097_v10 }
 0x24d   : >> { %v2158_v24 = vld [vmem:[%s3191_s27 + $0x8] sm:$0xff]  ;;  %v1138_v29 = vmul.f32 %v2157_v23, %v2155_v11  ;;  %v716_v32 = vsub.f32 %v714_v19, %v715_v20  ;;  %v1144_v35 = vmul.f32 %v2157_v23, %v2156_v13  ;;  %v722_v36 = vadd.f32 %v721_v26, %v720_v22 }
 0x24e   : >> { %v2159_v25 = vld [vmem:[%s3193_s28 + $0x8] sm:$0xff]  ;;  %v1141_v33 = vmul.f32 %v2158_v24, %v2155_v11  ;;  %v1147_v39 = vmul.f32 %v2158_v24, %v2156_v13 }
 0x24f   : >> { %v2160_v28 = vld [vmem:[%s3195_s29 + $0x8] sm:$0xff]  ;;  %v1139_v30 = vmul.f32 %v2159_v25, %v2156_v13  ;;  %v1145_v38 = vmul.f32 %v2159_v25, %v2155_v11  ;;  %2103 = vst [vmem:[%s3183_s0 + $0x8] sm:$0xff] %v716_v32  ;;  %2105 = vst [vmem:[%s3185_s23 + $0x8] sm:$0xff] %v722_v36  ;;  %s787_s0 = smov [#allocation19]  ;;  %s850_s23 = smov [#allocation20] }
 0x250   : >> { %v2100_v31 = vld [vmem:[%s3197_s30 + $0x8] sm:$0xff]  ;;  %v1142_v34 = vmul.f32 %v2160_v28, %v2156_v13  ;;  %v1148_v41 = vmul.f32 %v2160_v28, %v2155_v11 }
 0x251   : >> { %v1140_v37 = vsub.f32 %v1138_v29, %v1139_v30  ;;  %v717_v42 = vmul.f32 %v2100_v31, %v2097_v10  ;;  %v723_v43 = vmul.f32 %v2100_v31, %v2098_v12  ;;  %v1146_v44 = vadd.f32 %v1145_v38, %v1144_v35 }
 0x252   : >> { %v1143_v40 = vsub.f32 %v1141_v33, %v1142_v34  ;;  %v1149_v45 = vadd.f32 %v1148_v41, %v1147_v39 }
 0x253   : >> { %2161 = vst [vmem:[%s3189_s26 + $0x8] sm:$0xff] %v1140_v37  ;;  %v719_v46 = vsub.f32 %v717_v42, %v718_v21  ;;  %v725_v47 = vadd.f32 %v724_v27, %v723_v43  ;;  %2163 = vst [vmem:[%s3193_s28 + $0x8] sm:$0xff] %v1146_v44  ;;  %s829_s26 = smov [#allocation14]  ;;  %s3324_s28 = smov [#allocation13] }
 0x254   : >> { %2162 = vst [vmem:[%s3191_s27 + $0x8] sm:$0xff] %v1143_v40  ;;  %2164 = vst [vmem:[%s3195_s29 + $0x8] sm:$0xff] %v1149_v45  ;;  %s849_s27 = smov [#allocation15]  ;;  %s3326_s29 = smov [#allocation12] }
 0x255   : >> { %2104 = vst [vmem:[%s3197_s30 + $0x8] sm:$0xff] %v719_v46  ;;  %2106 = vst [vmem:[%s3187_s25 + $0x8] sm:$0xff] %v725_v47  ;;  %v825_v46 = vadd.s32 8, %v815_v15  ;;  %v805_v47 = vadd.s32 8, %v793_v15  ;;  %s3312_s25 = smov [#allocation12]  ;;  %s3005_s30 = smov 1  }
 0x256   : >> { %v738_v53 = vld [vmem:[%s3221_s16] sm:$0xff] }
 0x257   : >> { %v742_v11 = vmul.f32 %v738_v53, %v3236_v51  ;;  %v745_v12 = vmul.f32 %v738_v53, %v3238_v52  ;;  %v740_v18 = vld [vmem:[%s3229_s18] sm:$0xff]  ;;  %vm826_vm11 = vcmp.eq.s32.totalorder %v825_v46, %v812_v14  ;;  %vm806_vm13 = vcmp.eq.s32.totalorder %v805_v47, %v790_v14 }
 0x258   : >> { %v748_v22 = vmul.f32 %v740_v18, %v3236_v51  ;;  %v751_v24 = vmul.f32 %v740_v18, %v3238_v52 }
 0x25a   : >> { %v1156_v48 = vld [vmem:[%s3211_s1] ss:$0 sm:$0xff]  ;;  %v2166_v50 = vld [vmem:[%s3211_s1 + $0x7] ss:$0 sm:$0xff]  ;;  %v2167_v55 = vld [vmem:[%s3211_s1 + $0x7] sm:$0xfe] }
 0x25b   : >> { %v2165_v49 = vld [vmem:[%s3211_s1 - $0x1] sm:$0xfe]  ;;  %v2168_v56 = vld [vmem:[%s3211_s1 + $0xf] ss:$0 sm:$0xff]  ;;  %v1174_v58 = vsel %vm1012_vm8, %v2166_v50, %v2167_v55  ;;  %v2172_v61 = vld [vmem:[%s3213_s12 + $0x8] ss:$0 sm:$0xff] }
 0x25c   : >> { %v1163_v54 = vsel %vm1012_vm8, %v1156_v48, %v2165_v49  ;;  %v1200_v57 = vld [vmem:[%s3216_s13] ss:$0 sm:$0xff]  ;;  %v2171_v60 = vld [vmem:[%s3213_s12 + $0x9] sm:$0x7f]  ;;  %2169 = vst [vmem:[%s3211_s1 + $0x8] sm:$0xff] %v1174_v58  ;;  %v845_v48 = vadd.s32 8, %v835_v15 }
 0x25d   : >> { %1166 = vst [vmem:[%s3211_s1] sm:$0xff] %v1163_v54  ;;  %v1178_v59 = vld [vmem:[%s3213_s12] ss:$0 sm:$0xff]  ;;  %v1187_v62 = vsel %vm1036_vm9, %v2168_v56, %v2171_v60  ;;  %v2174_v63 = vld [vmem:[%s3213_s12 + $0x1] sm:$0x7f]  ;;  %v2177_v4 = vld [vmem:[%s3216_s13 + $0x7] sm:$0xfe] }
 0x25e   : >> { %2170 = vst [vmem:[%s3211_s1 + $0x1] sm:$0x1] %v1178_v59  ;;  %v2175_v0 = vld [vmem:[%s3216_s13 - $0x1] sm:$0xfe]  ;;  %v2176_v1 = vld [vmem:[%s3216_s13 + $0x7] ss:$0 sm:$0xff]  ;;  %v1195_v2 = vsel %vm1036_vm9, %v2172_v61, %v2174_v63  ;;  %vm846_vm15 = vcmp.eq.s32.totalorder %v845_v48, %v832_v14 }
 0x25f   : >> { %2173 = vst [vmem:[%s3213_s12 + $0x8] sm:$0xff] %v1187_v62  ;;  %v1207_v3 = vsel %vm1012_vm8, %v1200_v57, %v2175_v0  ;;  %v2178_v5 = vld [vmem:[%s3216_s13 + $0xf] ss:$0 sm:$0xff]  ;;  %v1222_v6 = vld [vmem:[%s3224_s17] ss:$0 sm:$0xff]  ;;  %1197 = vst [vmem:[%s3213_s12] sm:$0xff] %v1195_v2  ;;  %v1218_v7 = vsel %vm1012_vm8, %v2176_v1, %v2177_v4  ;;  %v868_v49 = vadd.s32 8, %v856_v15  ;;  %v350_v15 = vmov (%p475_p9), %v3095_v15 }
 0x260   : >> { %1210 = vst [vmem:[%s3216_s13] sm:$0xff] %v1207_v3  ;;  %v2181_v8 = vld [vmem:[%s3224_s17 + $0x9] sm:$0x7f]  ;;  %v2182_v9 = vld [vmem:[%s3224_s17 + $0x8] ss:$0 sm:$0xff]  ;;  %v2184_v10 = vld [vmem:[%s3224_s17 + $0x1] sm:$0x7f] }
 0x261   : >> { %2179 = vst [vmem:[%s3216_s13 + $0x8] sm:$0xff] %v1218_v7  ;;  %2180 = vst [vmem:[%s3216_s13 + $0x1] sm:$0x1] %v1222_v6  ;;  %v1231_v13 = vsel %vm1036_vm9, %v2178_v5, %v2181_v8  ;;  %v1239_v16 = vsel %vm1036_vm9, %v2182_v9, %v2184_v10  ;;  %v739_v17 = vld [vmem:[%s3226_s2] sm:$0xff]  ;;  %vm869_vm1 = vcmp.eq.s32.totalorder %v868_v49, %v853_v14  ;;  %s3330_s1 = smov [#allocation12]  ;;  %s3333_s12 = smov [#allocation14]  ;;  %v347_v14 = vmov (%p475_p9), %v3093_v14 }
 0x262   : >> { %v741_v19 = vld [vmem:[%s3231_s19] sm:$0xff]  ;;  %2183 = vst [vmem:[%s3224_s17 + $0x8] sm:$0xff] %v1231_v13  ;;  %1241 = vst [vmem:[%s3224_s17] sm:$0xff] %v1239_v16  ;;  %v743_v20 = vmul.f32 %v739_v17, %v3238_v52  ;;  %v746_v21 = vmul.f32 %v739_v17, %v3236_v51  ;;  %s3006_s13 = smov 127   ;;  %s3344_s17 = smov [#allocation15]  ;;  %vm362_vm6 = vcmp.eq.s32.totalorder (%p475_p9), %v350_v15, %v347_v14  ;;  %v376_v14 = vmov (%p475_p9), %v3093_v14 }
 0x263   : >> { %v749_v23 = vmul.f32 %v741_v19, %v3238_v52  ;;  %v752_v25 = vmul.f32 %v741_v19, %v3236_v51  ;;  %v794_v50 = vld [vmem:[%s787_s0] ss:$0 sm:$0xff]  ;;  %s403_s0 = smov (%p475_p9), [#allocation14] }
 0x264   : >> { %v744_v26 = vsub.f32 %v742_v11, %v743_v20  ;;  %v747_v27 = vadd.f32 %v746_v21, %v745_v12 }
 0x265   : >> { %v750_v28 = vsub.f32 %v748_v22, %v749_v23  ;;  %v753_v29 = vadd.f32 %v752_v25, %v751_v24 }
 0x266   : >> { %754 = vst [vmem:[%s3221_s16] sm:$0xff] %v744_v26  ;;  %755 = vst [vmem:[%s3226_s2] sm:$0xff] %v747_v27  ;;  %s3342_s16 = smov [#allocation14]  ;;  %s3382_s2 = smov [#allocation12] }
 0x267   : >> { %756 = vst [vmem:[%s3229_s18] sm:$0xff] %v750_v28  ;;  %757 = vst [vmem:[%s3231_s19] sm:$0xff] %v753_v29  ;;  %s3386_s18 = smov [#allocation13]  ;;  %s3391_s19 = smov [#allocation14] }
 0x26d   : >> { %v2107_v30 = vld [vmem:[%s758_s20 + $0x8] sm:$0xff] }
 0x26e   : >> { %v2108_v31 = vld [vmem:[%s760_s21 + $0x8] sm:$0xff]  ;;  %v773_v34 = vmul.f32 %v2107_v30, %v3238_v52  ;;  %v770_v36 = vmul.f32 %v2107_v30, %v3236_v51 }
 0x26f   : >> { %v2109_v32 = vld [vmem:[%s762_s22 + $0x8] sm:$0xff]  ;;  %v771_v33 = vmul.f32 %v2108_v31, %v3238_v52  ;;  %v774_v35 = vmul.f32 %v2108_v31, %v3236_v51 }
 0x270   : >> { %v2110_v37 = vld [vmem:[%s764_s3 + $0x8] sm:$0xff]  ;;  %v776_v38 = vmul.f32 %v2109_v32, %v3236_v51  ;;  %v779_v40 = vmul.f32 %v2109_v32, %v3238_v52 }
 0x271   : >> { %v777_v39 = vmul.f32 %v2110_v37, %v3238_v52  ;;  %v780_v41 = vmul.f32 %v2110_v37, %v3236_v51  ;;  %v775_v42 = vadd.f32 %v774_v35, %v773_v34  ;;  %v772_v43 = vsub.f32 %v770_v36, %v771_v33  ;;  %v857_v51 = vld [vmem:[%s850_s23] ss:$0 sm:$0xff] }
 0x273   : >> { %v778_v44 = vsub.f32 %v776_v38, %v777_v39  ;;  %v781_v45 = vadd.f32 %v780_v41, %v779_v40  ;;  %2112 = vst [vmem:[%s760_s21 + $0x8] sm:$0xff] %v775_v42  ;;  %2111 = vst [vmem:[%s758_s20 + $0x8] sm:$0xff] %v772_v43  ;;  %s1049_s20 = smov [#allocation15]  ;;  %s1242_s21 = sadd.s32 (%p475_p9), 1, %s2966_s10  }
 0x274   : > { %p471_p10 = scmp.ge.s32.totalorder (%p475_p9), %s1242_s21, 15  ;;  %s3502_s10 = smov (%p475_p9), %s1242_s21 }
 0x275   : >> { %2113 = vst [vmem:[%s762_s22 + $0x8] sm:$0xff] %v778_v44  ;;  %2114 = vst [vmem:[%s764_s3 + $0x8] sm:$0xff] %v781_v45  ;;  %s351_s22 = smov (%p475_p9), [#allocation12]  ;;  %s380_s3 = smov (%p475_p9), [#allocation13] }
 0x27a   : >> { %v816_v52 = vld [vmem:[%s809_s24] sm:$0xff]  ;;  %v2117_v53 = vld [vmem:[%s809_s24 + $0x8] sm:$0xff] }
 0x27b   : >> { %v795_v54 = vld [vmem:[%s3312_s25] sm:$0xff]  ;;  %v820_v55 = vsel %vm819_vm10, 0.0, %v816_v52  ;;  %v827_v56 = vsel %vm826_vm11, 0.0, %v2117_v53  ;;  %v2115_v58 = vld [vmem:[%s3312_s25 + $0x8] sm:$0xff] }
 0x27c   : >> { %v799_v57 = vsel %vm798_vm12, %v794_v50, %v795_v54  ;;  %v836_v59 = vld [vmem:[%s829_s26] sm:$0xff]  ;;  %v2119_v60 = vld [vmem:[%s829_s26 + $0x8] sm:$0xff]  ;;  %821 = vst [vmem:[%s809_s24] sm:$0xff] %v820_v55  ;;  %2118 = vst [vmem:[%s809_s24 + $0x8] sm:$0xff] %v827_v56  ;;  %v807_v61 = vsel %vm806_vm13, %v794_v50, %v2115_v58 }
 0x27d   : >> { %800 = vst [vmem:[%s3312_s25] sm:$0xff] %v799_v57  ;;  %v840_v62 = vsel %vm839_vm14, 0.0, %v836_v59  ;;  %v847_v63 = vsel %vm846_vm15, 0.0, %v2119_v60  ;;  %v858_v0 = vld [vmem:[%s849_s27] sm:$0xff]  ;;  %v2121_v1 = vld [vmem:[%s849_s27 + $0x8] sm:$0xff]  ;;  %2116 = vst [vmem:[%s3312_s25 + $0x8] sm:$0xff] %v807_v61 }
 0x27e   : >> { %841 = vst [vmem:[%s829_s26] sm:$0xff] %v840_v62  ;;  %2120 = vst [vmem:[%s829_s26 + $0x8] sm:$0xff] %v847_v63  ;;  %v862_v2 = vsel %vm861_vm0, %v857_v51, %v858_v0  ;;  %v870_v3 = vsel %vm869_vm1, %v857_v51, %v2121_v1 }
 0x27f   : >> { %863 = vst [vmem:[%s849_s27] sm:$0xff] %v862_v2  ;;  %2122 = vst [vmem:[%s849_s27 + $0x8] sm:$0xff] %v870_v3 }
 0x283   : >> { %v874_v4 = vld [vmem:[%s3324_s28] sm:$0xff]  ;;  %v2123_v9 = vld [vmem:[%s3339_s15 + $0x8] sm:$0xff] }
 0x284   : >> { %875 = vrot.lane.b32.xlu1 %v874_v4, %s3005_s30  ;;  %v878_v5 = vld [vmem:[%s3326_s29] sm:$0xff]  ;;  %v2125_v6 = vld [vmem:[%s3330_s1 + $0x8] sm:$0xff] }
 0x285   : >> { %879 = vrot.lane.b32.xlu0 %v878_v5, %s3005_s30  ;;  %v944_v7 = vld [vmem:[%s3333_s12] sm:$0xff]  ;;  %v2131_v10 = vld [vmem:[%s3342_s16 + $0x8] sm:$0xff] }
 0x286   : >> { %v940_v8 = vld [vmem:[%s3335_s14] sm:$0xff]  ;;  %v2129_v11 = vld [vmem:[%s3344_s17 + $0x8] sm:$0xff] }
 0x288   : >> { %911 = vrot.lane.b32.xlu1 %v2125_v6, %s3005_s30 }
 0x289   : >> { %896 = vrot.lane.b32.xlu0 %v874_v4, %s3006_s13 }
 0x28c   : >> { %945 = vrot.lane.b32.xlu1 %v944_v7, %s3005_s30 }
 0x28d   : >> { %941 = vrot.lane.b32.xlu0 %v940_v8, %s3005_s30 }
 0x290   : >> { %907 = vrot.lane.b32.xlu1 %v2123_v9, %s3005_s30 }
 0x291   : >> { %928 = vrot.lane.b32.xlu0 %v2123_v9, %s3006_s13 }
 0x294   : >> { %977 = vrot.lane.b32.xlu1 %v2131_v10, %s3005_s30 }
 0x295   : >> { %973 = vrot.lane.b32.xlu0 %v2129_v11, %s3005_s30 }
 0x298   : >> { %962 = vrot.lane.b32.xlu1 %v940_v8, %s3006_s13 }
 0x29c   : >> { %994 = vrot.lane.b32.xlu1 %v2129_v11, %s3006_s13 }
 0x2f6   : >> { %v876_v12 = vpop.permute.xlu1 %875 }
 0x2f7   : >> { %v880_v13 = vpop.permute.xlu0 %879 }
 0x2f8   : >> { %v884_v16 = vsel %vm883_vm2, %v878_v5, %v880_v13 }
 0x2f9   : >> { %v888_v17 = vsel %vm887_vm3, %v876_v12, %v884_v16 }
 0x2fa   : >> { %v894_v18 = vsel %vm1837_vm4, %v888_v17, 0.0  ;;  %v912_v19 = vpop.permute.xlu1 %911 }
 0x2fb   : >> { %v897_v20 = vpop.permute.xlu0 %896  ;;  %934 = vst [vmem:[%s3326_s29] sm:$0xff] %v894_v18  ;;  %v916_v27 = vsel %vm883_vm2, %v2125_v6, %v912_v19 }
 0x2fc   : >> { %v901_v21 = vsel %vm900_vm5, %v878_v5, %v897_v20 }
 0x2fd   : >> { %935 = vst [vmem:[%s3324_s28] sm:$0xff] %v901_v21 }
 0x2fe   : >> { %v946_v22 = vpop.permute.xlu1 %945 }
 0x2ff   : >> { %v950_v23 = vsel %vm883_vm2, %v944_v7, %v946_v22  ;;  %v942_v24 = vpop.permute.xlu0 %941 }
 0x300   : >> { %v954_v25 = vsel %vm887_vm3, %v942_v24, %v950_v23 }
 0x301   : >> { %v960_v26 = vsel %vm1837_vm4, %v954_v25, 0.0 }
 0x302   : >> { %v908_v28 = vpop.permute.xlu1 %907  ;;  %1000 = vst [vmem:[%s3333_s12] sm:$0xff] %v960_v26 }
 0x303   : >> { %v920_v29 = vsel %vm887_vm3, %v908_v28, %v916_v27  ;;  %v929_v30 = vpop.permute.xlu0 %928 }
 0x304   : >> { %v926_v31 = vsel %vm1837_vm4, %v920_v29, 0.0  ;;  %v933_v32 = vsel %vm900_vm5, %v2125_v6, %v929_v30 }
 0x305   : >> { %2127 = vst [vmem:[%s3330_s1 + $0x8] sm:$0xff] %v926_v31  ;;  %2128 = vst [vmem:[%s3339_s15 + $0x8] sm:$0xff] %v933_v32 }
 0x306   : >> { %v978_v33 = vpop.permute.xlu1 %977 }
 0x307   : >> { %v982_v34 = vsel %vm883_vm2, %v2131_v10, %v978_v33  ;;  %v974_v35 = vpop.permute.xlu0 %973 }
 0x308   : >> { %v986_v36 = vsel %vm887_vm3, %v974_v35, %v982_v34 }
 0x309   : >> { %v992_v37 = vsel %vm1837_vm4, %v986_v36, 0.0 }
 0x30a   : >> { %v963_v38 = vpop.permute.xlu1 %962  ;;  %2133 = vst [vmem:[%s3342_s16 + $0x8] sm:$0xff] %v992_v37 }
 0x30b   : >> { %v967_v39 = vsel %vm900_vm5, %v944_v7, %v963_v38  ;;  %v369_v7 = vadd.s32 (%p475_p9), 8, %v350_v15  ;;  %v379_v15 = vmov (%p475_p9), %v3095_v15 }
 0x30c   : >> { %v1006_v40 = vld [vmem:[%s3382_s2] ss:$0 sm:$0xff]  ;;  %v2136_v42 = vld [vmem:[%s3382_s2 + $0x7] ss:$0 sm:$0xff]  ;;  %1001 = vst [vmem:[%s3335_s14] sm:$0xff] %v967_v39  ;;  %v2137_v44 = vld [vmem:[%s3382_s2 + $0x7] sm:$0xfe]  ;;  %v425_v15 = vmov (%p475_p9), %v3095_v15 }
 0x30d   : >> { %v2135_v41 = vld [vmem:[%s3382_s2 - $0x1] sm:$0xfe]  ;;  %v1024_v47 = vsel %vm1012_vm8, %v2136_v42, %v2137_v44  ;;  %v2146_v49 = vld [vmem:[%s3386_s18 + $0x7] ss:$0 sm:$0xff]  ;;  %v2147_v50 = vld [vmem:[%s3386_s18 + $0x7] sm:$0xfe]  ;;  %vm370_vm7 = vcmp.eq.s32.totalorder (%p475_p9), %v369_v7, %v347_v14  ;;  %v399_v14 = vmov (%p475_p9), %v3093_v14  ;;  %v402_v15 = vmov (%p475_p9), %v3095_v15 }
 0x30e   : >> { %v1013_v43 = vsel %vm1012_vm8, %v1006_v40, %v2135_v41  ;;  %v1050_v45 = vld [vmem:[%s3386_s18] ss:$0 sm:$0xff]  ;;  %v2148_v51 = vld [vmem:[%s3386_s18 + $0xf] ss:$0 sm:$0xff]  ;;  %v995_v52 = vpop.permute.xlu1 %994  ;;  %v1068_v53 = vsel %vm1012_vm8, %v2146_v49, %v2147_v50  ;;  %v422_v14 = vmov (%p475_p9), %v3093_v14  ;;  %v446_v36 = vadd.s32 (%p475_p9), 8, %v425_v15 }
 0x30f   : >> { %v2145_v46 = vld [vmem:[%s3386_s18 - $0x1] sm:$0xfe]  ;;  %1016 = vst [vmem:[%s3382_s2] sm:$0xff] %v1013_v43  ;;  %v999_v54 = vsel %vm900_vm5, %v2131_v10, %v995_v52  ;;  %v2138_v55 = vld [vmem:[%s3382_s2 + $0xf] ss:$0 sm:$0xff]  ;;  %2149 = vst [vmem:[%s3386_s18 + $0x8] sm:$0xff] %v1068_v53 }
 0x310   : >> { %v1057_v48 = vsel %vm1012_vm8, %v1050_v45, %v2145_v46  ;;  %2134 = vst [vmem:[%s3344_s17 + $0x8] sm:$0xff] %v999_v54  ;;  %2139 = vst [vmem:[%s3382_s2 + $0x8] sm:$0xff] %v1024_v47  ;;  %vm437_vm8 = vcmp.eq.s32.totalorder (%p475_p9), %v425_v15, %v422_v14 }
 0x311   : >> { %1060 = vst [vmem:[%s3386_s18] sm:$0xff] %v1057_v48  ;;  %v1028_v56 = vld [vmem:[%s3391_s19] ss:$0 sm:$0xff]  ;;  %v2141_v57 = vld [vmem:[%s3391_s19 + $0x9] sm:$0x7f]  ;;  %v2142_v58 = vld [vmem:[%s3391_s19 + $0x8] ss:$0 sm:$0xff] }
 0x312   : >> { %2140 = vst [vmem:[%s3382_s2 + $0x1] sm:$0x1] %v1028_v56  ;;  %v1037_v59 = vsel %vm1036_vm9, %v2138_v55, %v2141_v57  ;;  %v2144_v60 = vld [vmem:[%s3391_s19 + $0x1] sm:$0x7f] }
 0x313   : >> { %2143 = vst [vmem:[%s3391_s19 + $0x8] sm:$0xff] %v1037_v59  ;;  %v1045_v61 = vsel %vm1036_vm9, %v2142_v58, %v2144_v60 }
 0x314   : >> { %1047 = vst [vmem:[%s3391_s19] sm:$0xff] %v1045_v61 }
 0x316   : > { %477 = sbr.rel (!%p475_p9) target bundleno = 310 (0x136), region = 504 }
 0x317   : >> { %v1072_v62 = vld [vmem:[%s1049_s20] ss:$0 sm:$0xff]  ;;  %v2151_v63 = vld [vmem:[%s1049_s20 + $0x9] sm:$0x7f]  ;;  %v2152_v0 = vld [vmem:[%s1049_s20 + $0x8] ss:$0 sm:$0xff] }
 0x318   : >> { %2150 = vst [vmem:[%s3386_s18 + $0x1] sm:$0x1] %v1072_v62  ;;  %v1081_v1 = vsel %vm1036_vm9, %v2148_v51, %v2151_v63  ;;  %v2154_v2 = vld [vmem:[%s1049_s20 + $0x1] sm:$0x7f] }
 0x319   : >> { %2153 = vst [vmem:[%s1049_s20 + $0x8] sm:$0xff] %v1081_v1  ;;  %v1089_v3 = vsel %vm1036_vm9, %v2152_v0, %v2154_v2  ;;  %v357_v4 = vld [vmem:[%s351_s22] sm:$0xff] (%p475_p9)  ;;  %v2185_v5 = vld [vmem:[%s351_s22 + $0x8] sm:$0xff] (%p475_p9)  ;;  %vm447_vm9 = vcmp.eq.s32.totalorder (%p475_p9), %v446_v36, %v422_v14 }
 0x31a   : >> { %1091 = vst [vmem:[%s1049_s20] sm:$0xff] %v1089_v3  ;;  %v358_v8 = vsel (%p475_p9), %vm1837_vm4, %v357_v4, 0.0  ;;  %v366_v9 = vsel (%p475_p9), %vm1837_vm4, %v2185_v5, 0.0 }
 0x31b   : > { %v409_v12 = vld [vmem:[%s403_s0] sm:$0xff]  ;;  %v359_v13 = vmul.f32 %v358_v8, %v358_v8  ;;  %v367_v16 = vmul.f32 %v366_v9, %v366_v9  ;;  %v2187_v19 = vld [vmem:[%s403_s0 + $0x8] sm:$0xff] }
 0x31c   : > { %v410_v20 = vsel %vm1837_vm4, %v409_v12, 0.0  ;;  %v416_v24 = vsel %vm1837_vm4, %v2187_v19, 0.0 }
 0x31d   : > { %v373_v21 = vadd.f32 %v367_v16, %v359_v13  ;;  %v363_v25 = vsel %vm362_vm6, 0.0, %v359_v13  ;;  %v411_v27 = vmul.f32 %v410_v20, %v410_v20  ;;  %v371_v29 = vsel %vm370_vm7, 0.0, %v367_v16 }
 0x31e   : > { %v372_v31 = vadd.f32 %v371_v29, %v363_v25  ;;  %v417_v33 = vmul.f32 %v416_v24, %v416_v24 }
 0x31f   : > { %v386_v6 = vld [vmem:[%s380_s3] sm:$0xff]  ;;  %v2186_v11 = vld [vmem:[%s380_s3 + $0x8] sm:$0xff] }
 0x320   : > { %v387_v10 = vsel %vm1837_vm4, %v386_v6, 0.0  ;;  %v393_v18 = vsel %vm1837_vm4, %v2186_v11, 0.0 }
 0x321   : > { %v388_v17 = vmul.f32 %v387_v10, %v387_v10  ;;  %v394_v22 = vmul.f32 %v393_v18, %v393_v18  ;;  %v432_v23 = vld [vmem:[%s426_s11] sm:$0xff]  ;;  %v2188_v28 = vld [vmem:[%s426_s11 + $0x8] sm:$0xff] }
 0x322   : > { %v433_v30 = vsel %vm1837_vm4, %v432_v23, 0.0  ;;  %v443_v34 = vsel %vm1837_vm4, %v2188_v28, 0.0 }
 0x323   : > { %v390_v26 = vadd.f32 %v388_v17, %v373_v21  ;;  %v389_v35 = vadd.f32 %v388_v17, %v372_v31  ;;  %v434_v38 = vmul.f32 %v433_v30, %v433_v30  ;;  %v444_v41 = vmul.f32 %v443_v34, %v443_v34 }
 0x325   : > { %v396_v32 = vadd.f32 %v394_v22, %v390_v26  ;;  %v395_v39 = vadd.f32 %v394_v22, %v389_v35  ;;  %v438_v44 = vsel %vm437_vm8, 0.0, %v434_v38  ;;  %v448_v47 = vsel %vm447_vm9, 0.0, %v444_v41 }
 0x327   : > { %v413_v37 = vadd.f32 %v411_v27, %v396_v32  ;;  %v412_v42 = vadd.f32 %v411_v27, %v395_v39 }
 0x329   : > { %v419_v40 = vadd.f32 %v417_v33, %v413_v37  ;;  %v418_v45 = vadd.f32 %v417_v33, %v412_v42 }
 0x32b   : > { %v440_v43 = vadd.f32 %v434_v38, %v419_v40  ;;  %v439_v48 = vadd.f32 %v438_v44, %v418_v45 }
 0x32d   : > { %v450_v46 = vadd.f32 %v444_v41, %v440_v43  ;;  %v449_v49 = vadd.f32 %v448_v47, %v439_v48 }
 0x32f   : > { %451 = vadd.xlane.f32.xlu0 %v450_v46 }
 0x333   : > { %459 = vadd.xlane.f32.xlu0 %v449_v49 }
 0x3b8   : > { %v452_v50 = vpop.xlane.xlu0 %451 }
 0x3b9   : > { %v453_v51 = vrot.slane %v452_v50, 4 }
 0x3bb   : > { %v454_v52 = vadd.f32 %v453_v51, %v452_v50 }
 0x3bc   : > { %v460_v53 = vpop.xlane.xlu0 %459 }
 0x3bd   : > { %v455_v54 = vrot.slane %v454_v52, 2  ;;  %v461_v55 = vrot.slane %v460_v53, 4 }
 0x3bf   : > { %v462_v56 = vadd.f32 %v461_v55, %v460_v53  ;;  %v456_v57 = vadd.f32 %v455_v54, %v454_v52 }
 0x3c1   : > { %v463_v58 = vrot.slane %v462_v56, 2  ;;  %v457_v60 = vrot.slane %v456_v57, 1 }
 0x3c3   : > { %v464_v59 = vadd.f32 %v463_v58, %v462_v56  ;;  %v458_v63 = vadd.f32 %v457_v60, %v456_v57 }
 0x3c5   : > { %v465_v61 = vrot.slane %v464_v59, 1 }
 0x3c7   : > { %v466_v62 = vadd.f32 %v465_v61, %v464_v59 }
 0x3c9   : > { %2217 = vpush %v466_v62 }
 0x3ca   : > { %2219 = vpush %v458_v63 }
 0x3fa   : > { %s2218_s23 = spop %2217 }
 0x3fb   : > { %s2220_s24 = spop %2219 }
 0x3fc   : > { %s469_s25 = smul.f32 1e-10, %s2220_s24 }
 0x3fe   : > { %p470_p11 = scmp.le.f32.partialorder %s2218_s23, %s469_s25 }
 0x400   : > { %p472_p12 = por %p471_p10, %p470_p11 }
 0x402   :  { %1244 = sbr.rel (!%p472_p12) target bundleno = 309 (0x135), region = 515 }
 0x407 PF:  { %s1245_s26 = smov [#allocation12]  ;;  %v1249_v14 = vmov %v3093_v14  ;;  %v1252_v15 = vmov %v3095_v15  ;;  %s1271_s27 = smov [#allocation15] }
 0x408   :  { %v1275_v14 = vmov %v3093_v14  ;;  %v1278_v15 = vmov %v3095_v15  ;;  %v1253_v0 = vld [vmem:[%s1245_s26] sm:$0xff]  ;;  %vm1256_vm10 = vcmp.eq.s32.totalorder %v1252_v15, %v1249_v14  ;;  %v2189_v1 = vld [vmem:[%s1245_s26 + $0x8] sm:$0xff]  ;;  %v1261_v2 = vadd.s32 8, %v1252_v15  ;;  %s1246_s10 = smov [#allocation4]  ;;  %s1272_s28 = smov [#allocation6] }
 0x409   :  { %vm1282_vm11 = vcmp.eq.s32.totalorder %v1278_v15, %v1275_v14  ;;  %v1287_v3 = vadd.s32 8, %v1278_v15  ;;  %v1257_v4 = vsel %vm1256_vm10, %v1253_v0, 0.0  ;;  %v1279_v5 = vld [vmem:[%s1271_s27] sm:$0xff]  ;;  %v2190_v6 = vld [vmem:[%s1271_s27 + $0x8] sm:$0xff]  ;;  %s2972_s15 = smov %s3498_s6   ;;  %s2976_s16 = smov [#allocation8]  }
 0x40a   :  { %vm1262_vm4 = vcmp.eq.s32.totalorder %v1261_v2, %v1249_v14  ;;  %v1283_v7 = vsel %vm1282_vm11, %v1279_v5, 0.0 }
 0x40b   :  { %vm1288_vm12 = vcmp.eq.s32.totalorder %v1287_v3, %v1275_v14  ;;  %v1263_v8 = vsel %vm1262_vm4, %v2189_v1, %v1257_v4 }
 0x40c   :  { %v1289_v9 = vsel %vm1288_vm12, %v2190_v6, %v1283_v7  ;;  %v1264_v10 = vrot.slane %v1263_v8, 4 }
 0x40d   :  { %v1290_v11 = vrot.slane %v1289_v9, 4 }
 0x40e   :  { %v1265_v12 = vadd.f32 %v1264_v10, %v1263_v8 }
 0x40f   :  { %v1291_v13 = vadd.f32 %v1290_v11, %v1289_v9 }
 0x410   :  { %v1266_v16 = vrot.slane %v1265_v12, 2 }
 0x411   :  { %v1292_v17 = vrot.slane %v1291_v13, 2 }
 0x412   :  { %v1267_v18 = vadd.f32 %v1266_v16, %v1265_v12 }
 0x413   :  { %v1293_v19 = vadd.f32 %v1292_v17, %v1291_v13 }
 0x414   :  { %v1268_v20 = vrot.slane %v1267_v18, 1 }
 0x415   :  { %v1294_v21 = vrot.slane %v1293_v19, 1 }
 0x416   :  { %v1269_v15 = vadd.f32 %v1268_v20, %v1267_v18 }
 0x417   :  { %v1295_v22 = vadd.f32 %v1294_v21, %v1293_v19 }
 0x418   :  { %1270 = vst [vmem:[%s1246_s10] sm:$0x1] %v1269_v15 }
 0x419   :  { %1296 = vst [vmem:[%s1272_s28] sm:$0x1] %v1295_v22 }
 0x41f   :  { %v1301_v23 = vld [vmem:[#allocation4] sm:$0x1] }
 0x420   :  { %v1309_v14 = vld [vmem:[#allocation6] sm:$0x1]  ;;  %1304 = vst [vmem:[#allocation5] sm:$0x1] %v1301_v23 }
 0x421   :  { %1312 = vst [vmem:[#allocation7] sm:$0x1] %v1309_v14 }
 0x427   :  { %v1376_v24 = vld [vmem:[#allocation5] sm:$0x1] }
 0x428   :  { %v1441_v25 = vld [vmem:[#allocation7] sm:$0x1]  ;;  %1377 = vst [vmem:[%s3496_s4] sm:$0x1] %v1376_v24 }
 0x429   :  { %1442 = vst [vmem:[%s3497_s5] sm:$0x1] %v1441_v25 }
 0x42a LB: > { %v1490_v26 = vld [vmem:[%s2978_s16] sm:$0xff]  ;;  %s1492_s16 = scalar_lea.vmem %s2978_s16, 8   ;;  %s2978_s16 = sphi %s2976_s16, %s1492_s16   ;;  %s2974_s15 = sphi %s2972_s15, %s1493_s15  }
 0x42b   : > { %1491 = vst [vmem:[%s2974_s15] sm:$0xff] %v1490_v26  ;;  %s1493_s15 = scalar_lea.vmem %s2974_s15, 8   ;;  %p1487_p13 = scmp.gt.s32.totalorder %s1492_s16, [#allocation8 + $0x8] }
 0x42c   :  { %s2980_s5 = smov (%p1487_p13), %s3499_s7   ;;  %s2984_s2 = smov (%p1487_p13), [#allocation9]  }
 0x42d   :  { %1489 = sbr.rel (!%p1487_p13) target bundleno = 1066 (0x42a), region = 581 }
 0x432 LB: > { %v1553_v27 = vld [vmem:[%s2986_s2] sm:$0xff]  ;;  %s1555_s2 = scalar_lea.vmem %s2986_s2, 8   ;;  %s2986_s2 = sphi %s2984_s2, %s1555_s2   ;;  %s2982_s5 = sphi %s2980_s5, %s1556_s5  }
 0x433   : > { %1554 = vst [vmem:[%s2982_s5] sm:$0xff] %v1553_v27  ;;  %s1556_s5 = scalar_lea.vmem %s2982_s5, 8   ;;  %p1550_p0 = scmp.gt.s32.totalorder %s1555_s2, [#allocation9 + $0x8] }
 0x434   :  { %s2988_s19 = smov (%p1550_p0), %s3500_s8   ;;  %s2992_s20 = smov (%p1550_p0), [#allocation10]  }
 0x435   :  { %1552 = sbr.rel (!%p1550_p0) target bundleno = 1074 (0x432), region = 603 }
 0x43a LB: > { %v1616_v28 = vld [vmem:[%s2994_s20] sm:$0xff]  ;;  %s1618_s20 = scalar_lea.vmem %s2994_s20, 8   ;;  %s2994_s20 = sphi %s2992_s20, %s1618_s20   ;;  %s2990_s19 = sphi %s2988_s19, %s1619_s19  }
 0x43b   : > { %1617 = vst [vmem:[%s2990_s19] sm:$0xff] %v1616_v28  ;;  %s1619_s19 = scalar_lea.vmem %s2990_s19, 8   ;;  %p1613_p1 = scmp.gt.s32.totalorder %s1618_s20, [#allocation10 + $0x8] }
 0x43c   :  { %s2996_s22 = smov (%p1613_p1), %s3501_s9   ;;  %s3000_s3 = smov (%p1613_p1), [#allocation11]  }
 0x43d   :  { %1615 = sbr.rel (!%p1613_p1) target bundleno = 1082 (0x43a), region = 625 }
 0x442 LB: > { %v1679_v29 = vld [vmem:[%s3002_s3] sm:$0xff]  ;;  %s1681_s3 = scalar_lea.vmem %s3002_s3, 8   ;;  %s3002_s3 = sphi %s3000_s3, %s1681_s3   ;;  %s2998_s22 = sphi %s2996_s22, %s1682_s22  }
 0x443   : > { %1680 = vst [vmem:[%s2998_s22] sm:$0xff] %v1679_v29  ;;  %s1682_s22 = scalar_lea.vmem %s2998_s22, 8   ;;  %p1676_p2 = scmp.gt.s32.totalorder %s1681_s3, [#allocation11 + $0x8] }
 0x445   :  { %1678 = sbr.rel (!%p1676_p2) target bundleno = 1090 (0x442), region = 647 }

// kernel: reverse
= control target key start
LH: loop header
LB: loop body
LE: loop exit
PB: predicated region body
PF: predicated region fallthrough
CT: control target
= control target key end

     0   :  { %v2_v0 = vlaneseq  ;;  %s130_s0 = inlined_call_operand.vmem [shape: f32[32], index: 0, kind: input, shape index: {}]   ;;  %s131_s1 = inlined_call_operand.vmem [shape: f32[32], index: 1, kind: output, shape index: {}]  }
   0x2   :  { %v3_v1 = vsub.s32 31, %v2_v0 }
   0x4   :  { %4 = vset.pattern.permute.xlu0 %v3_v1 }
   0x5   :  { %v46_v2 = vld [vmem:[#allocation1] sm:$0x1]  ;;  %v22_v3 = vld [vmem:[%s130_s0] sm:$0x1]  ;;  %v61_v10 = vshrl.u32 %v2_v0, 7 }
   0x6   :  { %47 = vst [vmem:[#allocation0] sm:$0x1] %v46_v2  ;;  %23 = vst [vmem:[#allocation1 + $0x1] sm:$0x1] %v22_v3 }
   0x7   :  { %vm62_vm0 = vcmp.lt.s32.totalorder %v61_v10, 1 }
   0xd   :  { %v49_v4 = vld [vmem:[#allocation0 + $0x7] ss:$-1 sm:$0xff]  ;;  %v43_v5 = vld [vmem:[#allocation1 + $0x1] sm:$0x1] }
   0xe   :  { %v50_v6 = vrot.slane %v49_v4, 7  ;;  %45 = vst [vmem:[#allocation0 + $0x8] sm:$0x1] %v43_v5 }
  0x10   :  { %51 = vperm.xlu0 %4, %v50_v6  }
  0x15   :  { %v56_v7 = vld [vmem:[#allocation0 + $0xf] ss:$-1 sm:$0xff] }
  0x16   :  { %v57_v8 = vrot.slane %v56_v7, 7 }
  0x18   :  { %58 = vperm.xlu0 %4, %v57_v8  }
  0x8b   :  { %v52_v9 = vpop.permute.xlu0 %51 }
  0x8c   :  { %53 = vst [vmem:[#allocation2] sm:$0xff] %v52_v9 }
  0x93   :  { %v59_v11 = vpop.permute.xlu0 %58 }
  0x94   :  { %63 = vst.msk [vmem:[#allocation2] sm:$0xff] %vm62_vm0, %v59_v11 }
  0x9b   :  { %v68_v12 = vld [vmem:[#allocation2] sm:$0x1] }
  0x9c   :  { %71 = vst [vmem:[#allocation3] sm:$0x1] %v68_v12 }
  0xa3   :  { %v88_v13 = vld [vmem:[#allocation3] sm:$0x1] }
  0xa4   :  { %89 = vst [vmem:[%s131_s1] sm:$0x1] %v88_v13 }

// kernel: custom-call.31
= control target key start
LH: loop header
LB: loop body
LE: loop exit
PB: predicated region body
PF: predicated region fallthrough
CT: control target
= control target key end

     0   :  { %v549_v4 = vmov 0.0   ;;  %s578_s17 = smov 0   ;;  %s737_s0 = inlined_call_operand.vmem [shape: f32[32,32], index: 0, kind: input, shape index: {}]   ;;  %s738_s1 = inlined_call_operand.vmem [shape: f32[32,32], index: 1, kind: output, shape index: {0}]   ;;  %s739_s2 = inlined_call_operand.vmem [shape: f32[32], index: 2, kind: output, shape index: {1}]  }
   0x1   :  { %v38_v0 = vld [vmem:[%s737_s0] sm:$0xff]  ;;  %v40_v1 = vld [vmem:[%s737_s0 + $0x8] sm:$0xff]  ;;  %v42_v2 = vld [vmem:[%s737_s0 + $0x10] sm:$0xff]  ;;  %63 = vst [vmem:[#allocation2] sm:$0x1] %v549_v4 }
   0x2   :  { %v44_v3 = vld [vmem:[%s737_s0 + $0x18] sm:$0xff]  ;;  %50 = vst [vmem:[#allocation1] sm:$0xff] %v38_v0  ;;  %54 = vst [vmem:[#allocation1 + $0x8] sm:$0xff] %v40_v1 }
   0x3   :  { %58 = vst [vmem:[#allocation1 + $0x10] sm:$0xff] %v42_v2  ;;  %62 = vst [vmem:[#allocation1 + $0x18] sm:$0xff] %v44_v3 }
   0x4 LB: > { %v71_v5 = vlaneseq  ;;  %v587_v8 = vstv %s547_s17  ;;  %s128_s0 = scalar_lea.vmem [#allocation1], %s547_s17  ;;  %s164_s18 = smov [#allocation1]  ;;  %s547_s17 = sphi %s578_s17, %s69_s17  }
   0x5   : > { %s240_s19 = scalar_lea.vmem [#allocation4], %s547_s17  ;;  %s655_s20 = smov [#allocation1] }
   0x6   : > { %v584_v7 = vshrl.u32 %v71_v5, 7  ;;  %s257_s21 = smov [#allocation4] }
   0x8   : > { %vm75_vm0 = vcmp.gt.s32.totalorder %v584_v7, %v587_v8  ;;  %v82_v10 = vadd.s32 8, %v584_v7  ;;  %v92_v12 = vadd.s32 16, %v584_v7  ;;  %v102_v14 = vadd.s32 24, %v584_v7 }
   0x9   : > { %v70_v6 = vld [vmem:[#allocation1] sm:$0xff]  ;;  %v79_v9 = vld [vmem:[#allocation1 + $0x8] sm:$0xff]  ;;  %v167_v7 = vmov %v584_v7 }
   0xa   : > { %v89_v11 = vld [vmem:[#allocation1 + $0x10] sm:$0xff]  ;;  %v99_v13 = vld [vmem:[#allocation1 + $0x18] sm:$0xff]  ;;  %v76_v15 = vsel %vm75_vm0, %v70_v6, 0.0  ;;  %vm84_vm1 = vcmp.gt.s32.totalorder %v82_v10, %v587_v8  ;;  %vm94_vm2 = vcmp.gt.s32.totalorder %v92_v12, %v587_v8  ;;  %vm104_vm3 = vcmp.gt.s32.totalorder %v102_v14, %v587_v8  ;;  %v601_v32 = vld [vmem:[%s128_s0] ss:$0 sm:$0xff] }
   0xb   : > { %v77_v16 = vmul.f32 %v76_v15, %v76_v15  ;;  %v85_v17 = vsel %vm84_vm1, %v79_v9, 0.0  ;;  %v95_v18 = vsel %vm94_vm2, %v89_v11, 0.0  ;;  %v107_v19 = vsel %vm104_vm3, %v99_v13, 0.0  ;;  %v504_v1 = vld [vmem:[%s164_s18 + $0x10] sm:$0xff]  ;;  %v168_v2 = vld [vmem:[%s164_s18] sm:$0xff]  ;;  %v505_v3 = vld [vmem:[%s164_s18 + $0x18] sm:$0xff] }
   0xc   : > { %v86_v20 = vmul.f32 %v85_v17, %v85_v17  ;;  %v96_v21 = vmul.f32 %v95_v18, %v95_v18  ;;  %v108_v23 = vmul.f32 %v107_v19, %v107_v19  ;;  %v130_v33 = vand.u32 2147483647, %v601_v32  ;;  %v503_v4 = vld [vmem:[%s164_s18 + $0x8] sm:$0xff] }
   0xd   : > { %vm155_vm9 = vcmp.lt.f32.partialorder %v601_v32, 0.0  ;;  %v222_v62 = vadd.s32 24, %v167_v7  ;;  %v204_v63 = vadd.s32 16, %v167_v7  ;;  %v186_v0 = vadd.s32 8, %v167_v7 }
   0xe   : > { %v87_v22 = vadd.f32 %v86_v20, %v77_v16  ;;  %v131_v38 = vmax.f32 %v130_v33, 0.0  ;;  %vm171_vm12 = vcmp.gt.s32.totalorder %v167_v7, %v587_v8  ;;  %v625_v6 = vand.u32 127, %v71_v5 }
   0xf   : > { %vm224_vm10 = vcmp.gt.s32.totalorder %v222_v62, %v587_v8  ;;  %vm225_vm11 = vcmp.lt.s32.totalorder %v222_v62, 32  ;;  %vm206_vm13 = vcmp.gt.s32.totalorder %v204_v63, %v587_v8  ;;  %vm188_vm15 = vcmp.gt.s32.totalorder %v186_v0, %v587_v8 }
  0x10   : > { %v97_v24 = vadd.f32 %v96_v21, %v87_v22  ;;  %vm226_vm14 = vmand %vm224_vm10, %vm225_vm11  ;;  %v172_v9 = vsel %vm171_vm12, %v168_v2, 0.0  ;;  %v207_v10 = vsel %vm206_vm13, %v504_v1, 0.0  ;;  %v189_v12 = vsel %vm188_vm15, %v503_v4, 0.0 }
  0x11   : > { %v227_v11 = vsel %vm226_vm14, %v505_v3, 0.0  ;;  %vm630_vm0 = vcmp.eq.s32.totalorder %v625_v6, %v587_v8  ;;  %v260_v7 = vmov %v584_v7 }
  0x12   : > { %v109_v25 = vadd.f32 %v108_v23, %v97_v24 }
  0x14   : > { %v110_v26 = vrot.slane %v109_v25, 4 }
  0x16   : > { %v111_v27 = vadd.f32 %v110_v26, %v109_v25 }
  0x18   : > { %v112_v28 = vrot.slane %v111_v27, 2 }
  0x1a   : > { %v113_v29 = vadd.f32 %v112_v28, %v111_v27 }
  0x1c   : > { %v114_v30 = vrot.slane %v113_v29, 1 }
  0x1e   : > { %v597_v31 = vadd.f32 %v114_v30, %v113_v29 }
  0x20   : > { %531 = vrsqrt.f32 %v597_v31  ;;  %vm118_vm4 = vcmp.eq.f32.partialorder %v597_v31, inf  ;;  %v121_v35 = vand.u32 2147483648, %v597_v31  ;;  %vm120_vm5 = vcmp.eq.f32.partialorder %v597_v31, 0.0 }
  0x2d   : > { %v532_v34 = vpop.eup %531 }
  0x2e   : > { %v117_v36 = vmul.f32 %v532_v34, %v597_v31 }
  0x30   : > { %v119_v37 = vsel %vm118_vm4, %v597_v31, %v117_v36  ;;  %v550_v36 = vmov 1.0  }
  0x31   : > { %v122_v39 = vsel %vm120_vm5, %v121_v35, %v119_v37  ;;  %v253_v37 = vld [vmem:[#allocation2] ss:$0 sm:$0xff] }
  0x32   : > { %v132_v40 = vand.u32 2147483647, %v122_v39  ;;  %v263_v39 = vld [vmem:[%s655_s20] sm:$0xff] }
  0x34   : > { %v133_v41 = vmax.f32 %v131_v38, %v132_v40 }
  0x36   : > { %533 = vrcp.f32 %v133_v41  ;;  %vm145_vm8 = vcmp.eq.f32.partialorder %v133_v41, 0.0 }
  0x43   : > { %v534_v42 = vpop.eup %533 }
  0x44   : > { %v135_v43 = vmul.f32 %v534_v42, %v130_v33  ;;  %v138_v44 = vmul.f32 0.0, %v534_v42  ;;  %v142_v45 = vmul.f32 %v534_v42, %v132_v40  ;;  %v507_v40 = vld [vmem:[%s655_s20 + $0x8] sm:$0xff]  ;;  %v279_v42 = vadd.s32 24, %v260_v7 }
  0x45   : > { %v298_v7 = vmov %v584_v7 }
  0x46   : > { %v136_v46 = vmul.f32 %v135_v43, %v135_v43  ;;  %v139_v47 = vmul.f32 %v138_v44, %v138_v44  ;;  %v143_v48 = vmul.f32 %v142_v45, %v142_v45  ;;  %v511_v43 = vld [vmem:[%s655_s20 + $0x18] sm:$0xff]  ;;  %vm285_vm1 = vcmp.lt.s32.totalorder %v279_v42, 32 }
  0x47   : > { %v340_v63 = vadd.s32 16, %v298_v7  ;;  %vm315_vm2 = vcmp.ge.s32.totalorder %v298_v7, %v587_v8  ;;  %v361_v0 = vadd.s32 24, %v298_v7 }
  0x48   : > { %v140_v49 = vadd.f32 %v139_v47, %v136_v46  ;;  %vm675_vm4 = vmand %vm630_vm0, %vm315_vm2 }
  0x4a   : > { %v144_v50 = vadd.f32 %v143_v48, %v140_v49 }
  0x4c   : > { %535 = vrsqrt.f32 %v144_v50  ;;  %vm148_vm6 = vcmp.eq.f32.partialorder %v144_v50, inf  ;;  %v151_v52 = vand.u32 2147483648, %v144_v50  ;;  %vm150_vm7 = vcmp.eq.f32.partialorder %v144_v50, 0.0 }
  0x59   : > { %v536_v51 = vpop.eup %535 }
  0x5a   : > { %v147_v53 = vmul.f32 %v536_v51, %v144_v50 }
  0x5c   : > { %v149_v54 = vsel %vm148_vm6, %v144_v50, %v147_v53  ;;  %vm378_vm6 = vcmp.ge.s32.totalorder %v361_v0, %v587_v8 }
  0x5d   : > { %v152_v55 = vsel %vm150_vm7, %v151_v52, %v149_v54  ;;  %vm698_vm10 = vmand %vm630_vm0, %vm378_vm6 }
  0x5e   : > { %v153_v56 = vmul.f32 %v152_v55, %v133_v41  ;;  %v509_v41 = vld [vmem:[%s655_s20 + $0x10] sm:$0xff]  ;;  %s666_s20 = smov %s655_s20 }
  0x5f   : > { %v305_v2 = vld [vmem:[%s666_s20] sm:$0xff]  ;;  %v513_v3 = vld [vmem:[%s666_s20 + $0x8] sm:$0xff]  ;;  %v516_v4 = vld [vmem:[%s666_s20 + $0x10] sm:$0xff]  ;;  %s382_s22 = scalar_lea.vmem %s666_s20, %s547_s17  ;;  %s69_s17 = sadd.s32 1, %s547_s17  }
  0x60   : > { %v154_v57 = vsel %vm145_vm8, 0.0, %v153_v56  ;;  %vm307_vm8 = vcmp.gt.s32.totalorder %v625_v6, %v587_v8  ;;  %p66_p0 = scmp.ge.s32.totalorder %s69_s17, 32  }
  0x61   : > { %v156_v58 = vxor.u32 2147483648, %v154_v57 }
  0x63   : > { %v157_v59 = vsel %vm155_vm9, %v154_v57, %v156_v58 }
  0x64   : > { %v615_v60 = vsel %vm120_vm5, %v601_v32, %v157_v59  ;;  %537 = vrcp.f32 %v157_v59  ;;  %v158_v13 = vsub.f32 %v157_v59, %v601_v32 }
  0x65   : > { %v163_v61 = vsub.f32 %v601_v32, %v615_v60 }
  0x67   : > { %539 = vrcp.f32 %v163_v61  ;;  %v319_v61 = vadd.s32 8, %v298_v7 }
  0x69   : > { %vm336_vm3 = vcmp.ge.s32.totalorder %v319_v61, %v587_v8 }
  0x6a   : > { %vm684_vm7 = vmand %vm630_vm0, %vm336_vm3 }
  0x71   : > { %v538_v14 = vpop.eup %537 }
  0x72   : > { %v160_v5 = vmul.f32 %v538_v14, %v158_v13 }
  0x74   : > { %v540_v15 = vpop.eup %539  ;;  %v162_v29 = vsel %vm120_vm5, 0.0, %v160_v5 }
  0x75   : > { %v209_v17 = vmul.f32 %v540_v15, %v207_v10  ;;  %v174_v18 = vmul.f32 %v540_v15, %v172_v9  ;;  %v229_v19 = vmul.f32 %v540_v15, %v227_v11  ;;  %v191_v20 = vmul.f32 %v540_v15, %v189_v12  ;;  %v519_v11 = vld [vmem:[%s666_s20 + $0x18] sm:$0xff] }
  0x76   : > { %v246_v30 = vsel %vm630_vm0, %v162_v29, 0.0 }
  0x77   : > { %v210_v21 = vsel %vm120_vm5, 0.0, %v209_v17  ;;  %v175_v22 = vsel %vm120_vm5, 0.0, %v174_v18  ;;  %v230_v23 = vsel %vm120_vm5, 0.0, %v229_v19  ;;  %v192_v24 = vsel %vm120_vm5, 0.0, %v191_v20 }
  0x78   : > { %v215_v25 = vsel %vm630_vm0, %v210_v21, 0.0  ;;  %v180_v26 = vsel %vm630_vm0, %v175_v22, 0.0  ;;  %v235_v27 = vsel %vm630_vm0, %v230_v23, 0.0  ;;  %v197_v28 = vsel %vm630_vm0, %v192_v24, 0.0 }
  0x79   : > { %216 = vadd.xlane.f32.xlu1 %v215_v25  ;;  %181 = vadd.xlane.f32.xlu0 %v180_v26  ;;  %vm357_vm5 = vcmp.ge.s32.totalorder %v340_v63, %v587_v8 }
  0x7a   : > { %vm692_vm9 = vmand %vm630_vm0, %vm357_vm5 }
  0x7d   : > { %236 = vadd.xlane.f32.xlu1 %v235_v27  ;;  %198 = vadd.xlane.f32.xlu0 %v197_v28 }
  0x81   : > { %247 = vadd.xlane.f32.xlu0 %v246_v30 }
 0x102   : > { %v217_v32 = vpop.xlane.xlu1 %216  ;;  %v182_v33 = vpop.xlane.xlu0 %181 }
 0x103   : > { %219 = vst [vmem:[#allocation4 + $0x10] sm:$0xff] %v217_v32  ;;  %183 = vst [vmem:[#allocation4] sm:$0xff] %v182_v33 }
 0x106   : > { %v237_v34 = vpop.xlane.xlu1 %236  ;;  %v199_v35 = vpop.xlane.xlu0 %198 }
 0x107   : > { %239 = vst [vmem:[#allocation4 + $0x18] sm:$0xff] %v237_v34  ;;  %201 = vst [vmem:[#allocation4 + $0x8] sm:$0xff] %v199_v35 }
 0x108   : > { %241 = vst [vmem:[%s240_s19] sm:$0x1] %v550_v36 }
 0x10a   : > { %v248_v31 = vpop.xlane.xlu0 %247 }
 0x10b   : > { %v254_v38 = vsel %vm630_vm0, %v248_v31, %v253_v37 }
 0x10c   : > { %255 = vst [vmem:[#allocation2] sm:$0x1] %v254_v38 }
 0x10f   : > { %v262_v44 = vld [vmem:[%s257_s21] sm:$0xff]  ;;  %v506_v45 = vld [vmem:[%s257_s21 + $0x8] sm:$0xff]  ;;  %v508_v46 = vld [vmem:[%s257_s21 + $0x10] sm:$0xff] }
 0x110   : > { %v264_v47 = vmul.f32 %v263_v39, %v262_v44  ;;  %v270_v48 = vmul.f32 %v507_v40, %v506_v45  ;;  %v510_v49 = vld [vmem:[%s257_s21 + $0x18] sm:$0xff]  ;;  %v277_v52 = vmul.f32 %v509_v41, %v508_v46  ;;  %s295_s21 = smov %s257_s21 }
 0x111   : > { %v284_v50 = vmul.f32 %v511_v43, %v510_v49  ;;  %v303_v9 = vld [vmem:[%s295_s21] sm:$0xff]  ;;  %v512_v13 = vld [vmem:[%s295_s21 + $0x8] sm:$0xff]  ;;  %v515_v14 = vld [vmem:[%s295_s21 + $0x10] sm:$0xff] }
 0x112   : > { %v271_v51 = vadd.f32 %v270_v48, %v264_v47  ;;  %v518_v7 = vld [vmem:[%s295_s21 + $0x18] sm:$0xff] }
 0x113   : > { %v286_v54 = vsel %vm285_vm1, %v284_v50, 0.0  ;;  %v394_v35 = vld [vmem:[#allocation2] sm:$0x1] (%p66_p0) }
 0x114   : > { %v278_v53 = vadd.f32 %v277_v52, %v271_v51  ;;  %397 = vst [vmem:[#allocation3] sm:$0x1] (%p66_p0), %v394_v35 }
 0x116   : > { %v287_v55 = vadd.f32 %v286_v54, %v278_v53 }
 0x118   : > { %v288_v56 = vrot.slane %v287_v55, 4 }
 0x11a   : > { %v289_v57 = vadd.f32 %v288_v56, %v287_v55 }
 0x11c   : > { %v290_v58 = vrot.slane %v289_v57, 2 }
 0x11e   : > { %v291_v59 = vadd.f32 %v290_v58, %v289_v57 }
 0x120   : > { %v292_v62 = vrot.slane %v291_v59, 1 }
 0x122   : > { %v293_v1 = vadd.f32 %v292_v62, %v291_v59 }
 0x124   : > { %v299_v12 = vmul.f32 %v293_v1, %v248_v31  ;;  %v461_v31 = vld [vmem:[#allocation3] sm:$0x1] (%p66_p0) }
 0x125   :  { %462 = vst [vmem:[%s739_s2] sm:$0x1] (%p66_p0), %v461_v31 }
 0x126   : > { %v304_v17 = vmul.f32 %v303_v9, %v299_v12  ;;  %v324_v18 = vmul.f32 %v512_v13, %v299_v12  ;;  %v345_v19 = vmul.f32 %v515_v14, %v299_v12  ;;  %v366_v20 = vmul.f32 %v518_v7, %v299_v12 }
 0x128   : > { %v308_v22 = vsub.f32 %v305_v2, %v304_v17  ;;  %v329_v23 = vsub.f32 %v513_v3, %v324_v18  ;;  %v350_v8 = vsub.f32 %v516_v4, %v345_v19  ;;  %v371_v6 = vsub.f32 %v519_v11, %v366_v20 }
 0x12a   : > { %v309_v24 = vsel %vm307_vm8, %v308_v22, %v305_v2  ;;  %v330_v25 = vsel %vm307_vm8, %v329_v23, %v513_v3  ;;  %v351_v26 = vsel %vm307_vm8, %v350_v8, %v516_v4  ;;  %v372_v27 = vsel %vm307_vm8, %v371_v6, %v519_v11 }
 0x12b   : > { %v317_v28 = vsel %vm675_vm4, %v303_v9, %v309_v24  ;;  %v338_v29 = vsel %vm684_vm7, %v512_v13, %v330_v25  ;;  %v359_v30 = vsel %vm692_vm9, %v515_v14, %v351_v26  ;;  %v380_v32 = vsel %vm698_vm10, %v518_v7, %v372_v27 }
 0x12c   : > { %318 = vst [vmem:[%s666_s20] sm:$0xff] %v317_v28  ;;  %514 = vst [vmem:[%s666_s20 + $0x8] sm:$0xff] %v338_v29 }
 0x12d   : > { %517 = vst [vmem:[%s666_s20 + $0x10] sm:$0xff] %v359_v30  ;;  %520 = vst [vmem:[%s666_s20 + $0x18] sm:$0xff] %v380_v32 }
 0x132   :  { %68 = sbr.rel (!%p66_p0) target bundleno = 4 (0x4), region = 166 }
 0x134   : > { %v383_v33 = vld [vmem:[%s382_s22] ss:$0 sm:$0xff] }
 0x135   : > { %v388_v34 = vsel %vm630_vm0, %v615_v60, %v383_v33 }
 0x136   : > { %389 = vst [vmem:[%s382_s22] sm:$0x1] %v388_v34 }
 0x13d   :  { %v432_v36 = vld [vmem:[#allocation1] sm:$0xff]  ;;  %v434_v37 = vld [vmem:[#allocation1 + $0x8] sm:$0xff]  ;;  %v436_v60 = vld [vmem:[#allocation1 + $0x10] sm:$0xff] }
 0x13e   :  { %433 = vst [vmem:[%s738_s1] sm:$0xff] %v432_v36  ;;  %435 = vst [vmem:[%s738_s1 + $0x8] sm:$0xff] %v434_v37  ;;  %v438_v16 = vld [vmem:[#allocation1 + $0x18] sm:$0xff] }
 0x13f   :  { %437 = vst [vmem:[%s738_s1 + $0x10] sm:$0xff] %v436_v60  ;;  %439 = vst [vmem:[%s738_s1 + $0x18] sm:$0xff] %v438_v16 }

// kernel: custom-call.62
= control target key start
LH: loop header
LB: loop body
LE: loop exit
PB: predicated region body
PF: predicated region fallthrough
CT: control target
= control target key end

     0   :  { %v549_v4 = vmov 0.0   ;;  %s578_s17 = smov 0   ;;  %s737_s0 = inlined_call_operand.vmem [shape: f32[32,2], index: 0, kind: input, shape index: {}]   ;;  %s738_s1 = inlined_call_operand.vmem [shape: f32[32,2], index: 1, kind: output, shape index: {0}]   ;;  %s739_s2 = inlined_call_operand.vmem [shape: f32[2], index: 2, kind: output, shape index: {1}]  }
   0x1   :  { %v38_v0 = vld [vmem:[%s737_s0] sm:$0xff]  ;;  %v40_v1 = vld [vmem:[%s737_s0 + $0x8] sm:$0xff]  ;;  %v42_v2 = vld [vmem:[%s737_s0 + $0x10] sm:$0xff]  ;;  %63 = vst [vmem:[#allocation2] sm:$0x1] %v549_v4 }
   0x2   :  { %v44_v3 = vld [vmem:[%s737_s0 + $0x18] sm:$0xff]  ;;  %50 = vst [vmem:[#allocation1] sm:$0xff] %v38_v0  ;;  %54 = vst [vmem:[#allocation1 + $0x8] sm:$0xff] %v40_v1 }
   0x3   :  { %58 = vst [vmem:[#allocation1 + $0x10] sm:$0xff] %v42_v2  ;;  %62 = vst [vmem:[#allocation1 + $0x18] sm:$0xff] %v44_v3 }
   0x4 LB: > { %v71_v5 = vlaneseq  ;;  %v587_v8 = vstv %s547_s17  ;;  %s128_s0 = scalar_lea.vmem [#allocation1], %s547_s17  ;;  %s164_s18 = smov [#allocation1]  ;;  %s547_s17 = sphi %s578_s17, %s69_s17  }
   0x5   : > { %s240_s19 = scalar_lea.vmem [#allocation4], %s547_s17  ;;  %s655_s20 = smov [#allocation1] }
   0x6   : > { %v584_v7 = vshrl.u32 %v71_v5, 7  ;;  %s257_s21 = smov [#allocation4] }
   0x8   : > { %vm75_vm0 = vcmp.gt.s32.totalorder %v584_v7, %v587_v8  ;;  %v82_v10 = vadd.s32 8, %v584_v7  ;;  %v92_v12 = vadd.s32 16, %v584_v7  ;;  %v102_v14 = vadd.s32 24, %v584_v7 }
   0x9   : > { %v70_v6 = vld [vmem:[#allocation1] sm:$0xff]  ;;  %v79_v9 = vld [vmem:[#allocation1 + $0x8] sm:$0xff]  ;;  %v167_v7 = vmov %v584_v7 }
   0xa   : > { %v89_v11 = vld [vmem:[#allocation1 + $0x10] sm:$0xff]  ;;  %v99_v13 = vld [vmem:[#allocation1 + $0x18] sm:$0xff]  ;;  %v76_v15 = vsel %vm75_vm0, %v70_v6, 0.0  ;;  %vm84_vm1 = vcmp.gt.s32.totalorder %v82_v10, %v587_v8  ;;  %vm94_vm2 = vcmp.gt.s32.totalorder %v92_v12, %v587_v8  ;;  %vm104_vm3 = vcmp.gt.s32.totalorder %v102_v14, %v587_v8  ;;  %v601_v32 = vld [vmem:[%s128_s0] ss:$0 sm:$0xff] }
   0xb   : > { %v77_v16 = vmul.f32 %v76_v15, %v76_v15  ;;  %v85_v17 = vsel %vm84_vm1, %v79_v9, 0.0  ;;  %v95_v18 = vsel %vm94_vm2, %v89_v11, 0.0  ;;  %v107_v19 = vsel %vm104_vm3, %v99_v13, 0.0  ;;  %v504_v1 = vld [vmem:[%s164_s18 + $0x10] sm:$0xff]  ;;  %v168_v2 = vld [vmem:[%s164_s18] sm:$0xff]  ;;  %v505_v3 = vld [vmem:[%s164_s18 + $0x18] sm:$0xff] }
   0xc   : > { %v86_v20 = vmul.f32 %v85_v17, %v85_v17  ;;  %v96_v21 = vmul.f32 %v95_v18, %v95_v18  ;;  %v108_v23 = vmul.f32 %v107_v19, %v107_v19  ;;  %v130_v33 = vand.u32 2147483647, %v601_v32  ;;  %v503_v4 = vld [vmem:[%s164_s18 + $0x8] sm:$0xff] }
   0xd   : > { %vm155_vm9 = vcmp.lt.f32.partialorder %v601_v32, 0.0  ;;  %v222_v62 = vadd.s32 24, %v167_v7  ;;  %v204_v63 = vadd.s32 16, %v167_v7  ;;  %v186_v0 = vadd.s32 8, %v167_v7 }
   0xe   : > { %v87_v22 = vadd.f32 %v86_v20, %v77_v16  ;;  %v131_v38 = vmax.f32 %v130_v33, 0.0  ;;  %vm171_vm12 = vcmp.gt.s32.totalorder %v167_v7, %v587_v8  ;;  %v625_v6 = vand.u32 127, %v71_v5 }
   0xf   : > { %vm224_vm10 = vcmp.gt.s32.totalorder %v222_v62, %v587_v8  ;;  %vm225_vm11 = vcmp.lt.s32.totalorder %v222_v62, 32  ;;  %vm206_vm13 = vcmp.gt.s32.totalorder %v204_v63, %v587_v8  ;;  %vm188_vm15 = vcmp.gt.s32.totalorder %v186_v0, %v587_v8 }
  0x10   : > { %v97_v24 = vadd.f32 %v96_v21, %v87_v22  ;;  %vm226_vm14 = vmand %vm224_vm10, %vm225_vm11  ;;  %v172_v9 = vsel %vm171_vm12, %v168_v2, 0.0  ;;  %v207_v10 = vsel %vm206_vm13, %v504_v1, 0.0  ;;  %v189_v12 = vsel %vm188_vm15, %v503_v4, 0.0 }
  0x11   : > { %v227_v11 = vsel %vm226_vm14, %v505_v3, 0.0  ;;  %vm630_vm0 = vcmp.eq.s32.totalorder %v625_v6, %v587_v8  ;;  %v260_v7 = vmov %v584_v7 }
  0x12   : > { %v109_v25 = vadd.f32 %v108_v23, %v97_v24 }
  0x14   : > { %v110_v26 = vrot.slane %v109_v25, 4 }
  0x16   : > { %v111_v27 = vadd.f32 %v110_v26, %v109_v25 }
  0x18   : > { %v112_v28 = vrot.slane %v111_v27, 2 }
  0x1a   : > { %v113_v29 = vadd.f32 %v112_v28, %v111_v27 }
  0x1c   : > { %v114_v30 = vrot.slane %v113_v29, 1 }
  0x1e   : > { %v597_v31 = vadd.f32 %v114_v30, %v113_v29 }
  0x20   : > { %531 = vrsqrt.f32 %v597_v31  ;;  %vm118_vm4 = vcmp.eq.f32.partialorder %v597_v31, inf  ;;  %v121_v35 = vand.u32 2147483648, %v597_v31  ;;  %vm120_vm5 = vcmp.eq.f32.partialorder %v597_v31, 0.0 }
  0x2d   : > { %v532_v34 = vpop.eup %531 }
  0x2e   : > { %v117_v36 = vmul.f32 %v532_v34, %v597_v31 }
  0x30   : > { %v119_v37 = vsel %vm118_vm4, %v597_v31, %v117_v36  ;;  %v550_v36 = vmov 1.0  }
  0x31   : > { %v122_v39 = vsel %vm120_vm5, %v121_v35, %v119_v37  ;;  %v253_v37 = vld [vmem:[#allocation2] ss:$0 sm:$0xff] }
  0x32   : > { %v132_v40 = vand.u32 2147483647, %v122_v39  ;;  %v263_v39 = vld [vmem:[%s655_s20] sm:$0xff] }
  0x34   : > { %v133_v41 = vmax.f32 %v131_v38, %v132_v40 }
  0x36   : > { %533 = vrcp.f32 %v133_v41  ;;  %vm145_vm8 = vcmp.eq.f32.partialorder %v133_v41, 0.0 }
  0x43   : > { %v534_v42 = vpop.eup %533 }
  0x44   : > { %v135_v43 = vmul.f32 %v534_v42, %v130_v33  ;;  %v138_v44 = vmul.f32 0.0, %v534_v42  ;;  %v142_v45 = vmul.f32 %v534_v42, %v132_v40  ;;  %v507_v40 = vld [vmem:[%s655_s20 + $0x8] sm:$0xff]  ;;  %v279_v42 = vadd.s32 24, %v260_v7 }
  0x45   : > { %v298_v7 = vmov %v584_v7 }
  0x46   : > { %v136_v46 = vmul.f32 %v135_v43, %v135_v43  ;;  %v139_v47 = vmul.f32 %v138_v44, %v138_v44  ;;  %v143_v48 = vmul.f32 %v142_v45, %v142_v45  ;;  %v511_v43 = vld [vmem:[%s655_s20 + $0x18] sm:$0xff]  ;;  %vm285_vm1 = vcmp.lt.s32.totalorder %v279_v42, 32 }
  0x47   : > { %v340_v63 = vadd.s32 16, %v298_v7  ;;  %vm315_vm2 = vcmp.ge.s32.totalorder %v298_v7, %v587_v8  ;;  %v361_v0 = vadd.s32 24, %v298_v7 }
  0x48   : > { %v140_v49 = vadd.f32 %v139_v47, %v136_v46  ;;  %vm675_vm4 = vmand %vm630_vm0, %vm315_vm2 }
  0x4a   : > { %v144_v50 = vadd.f32 %v143_v48, %v140_v49 }
  0x4c   : > { %535 = vrsqrt.f32 %v144_v50  ;;  %vm148_vm6 = vcmp.eq.f32.partialorder %v144_v50, inf  ;;  %v151_v52 = vand.u32 2147483648, %v144_v50  ;;  %vm150_vm7 = vcmp.eq.f32.partialorder %v144_v50, 0.0 }
  0x59   : > { %v536_v51 = vpop.eup %535 }
  0x5a   : > { %v147_v53 = vmul.f32 %v536_v51, %v144_v50 }
  0x5c   : > { %v149_v54 = vsel %vm148_vm6, %v144_v50, %v147_v53  ;;  %vm378_vm6 = vcmp.ge.s32.totalorder %v361_v0, %v587_v8 }
  0x5d   : > { %v152_v55 = vsel %vm150_vm7, %v151_v52, %v149_v54  ;;  %vm698_vm10 = vmand %vm630_vm0, %vm378_vm6 }
  0x5e   : > { %v153_v56 = vmul.f32 %v152_v55, %v133_v41  ;;  %v509_v41 = vld [vmem:[%s655_s20 + $0x10] sm:$0xff]  ;;  %s666_s20 = smov %s655_s20 }
  0x5f   : > { %v305_v2 = vld [vmem:[%s666_s20] sm:$0xff]  ;;  %v513_v3 = vld [vmem:[%s666_s20 + $0x8] sm:$0xff]  ;;  %v516_v4 = vld [vmem:[%s666_s20 + $0x10] sm:$0xff]  ;;  %s382_s22 = scalar_lea.vmem %s666_s20, %s547_s17  ;;  %s69_s17 = sadd.s32 1, %s547_s17  }
  0x60   : > { %v154_v57 = vsel %vm145_vm8, 0.0, %v153_v56  ;;  %vm307_vm8 = vcmp.gt.s32.totalorder %v625_v6, %v587_v8  ;;  %p66_p0 = scmp.ge.s32.totalorder %s69_s17, 2  }
  0x61   : > { %v156_v58 = vxor.u32 2147483648, %v154_v57 }
  0x63   : > { %v157_v59 = vsel %vm155_vm9, %v154_v57, %v156_v58 }
  0x64   : > { %v615_v60 = vsel %vm120_vm5, %v601_v32, %v157_v59  ;;  %537 = vrcp.f32 %v157_v59  ;;  %v158_v13 = vsub.f32 %v157_v59, %v601_v32 }
  0x65   : > { %v163_v61 = vsub.f32 %v601_v32, %v615_v60 }
  0x67   : > { %539 = vrcp.f32 %v163_v61  ;;  %v319_v61 = vadd.s32 8, %v298_v7 }
  0x69   : > { %vm336_vm3 = vcmp.ge.s32.totalorder %v319_v61, %v587_v8 }
  0x6a   : > { %vm684_vm7 = vmand %vm630_vm0, %vm336_vm3 }
  0x71   : > { %v538_v14 = vpop.eup %537 }
  0x72   : > { %v160_v5 = vmul.f32 %v538_v14, %v158_v13 }
  0x74   : > { %v540_v15 = vpop.eup %539  ;;  %v162_v29 = vsel %vm120_vm5, 0.0, %v160_v5 }
  0x75   : > { %v209_v17 = vmul.f32 %v540_v15, %v207_v10  ;;  %v174_v18 = vmul.f32 %v540_v15, %v172_v9  ;;  %v229_v19 = vmul.f32 %v540_v15, %v227_v11  ;;  %v191_v20 = vmul.f32 %v540_v15, %v189_v12  ;;  %v519_v11 = vld [vmem:[%s666_s20 + $0x18] sm:$0xff] }
  0x76   : > { %v246_v30 = vsel %vm630_vm0, %v162_v29, 0.0 }
  0x77   : > { %v210_v21 = vsel %vm120_vm5, 0.0, %v209_v17  ;;  %v175_v22 = vsel %vm120_vm5, 0.0, %v174_v18  ;;  %v230_v23 = vsel %vm120_vm5, 0.0, %v229_v19  ;;  %v192_v24 = vsel %vm120_vm5, 0.0, %v191_v20 }
  0x78   : > { %v215_v25 = vsel %vm630_vm0, %v210_v21, 0.0  ;;  %v180_v26 = vsel %vm630_vm0, %v175_v22, 0.0  ;;  %v235_v27 = vsel %vm630_vm0, %v230_v23, 0.0  ;;  %v197_v28 = vsel %vm630_vm0, %v192_v24, 0.0 }
  0x79   : > { %216 = vadd.xlane.f32.xlu1 %v215_v25  ;;  %181 = vadd.xlane.f32.xlu0 %v180_v26  ;;  %vm357_vm5 = vcmp.ge.s32.totalorder %v340_v63, %v587_v8 }
  0x7a   : > { %vm692_vm9 = vmand %vm630_vm0, %vm357_vm5 }
  0x7d   : > { %236 = vadd.xlane.f32.xlu1 %v235_v27  ;;  %198 = vadd.xlane.f32.xlu0 %v197_v28 }
  0x81   : > { %247 = vadd.xlane.f32.xlu0 %v246_v30 }
 0x102   : > { %v217_v32 = vpop.xlane.xlu1 %216  ;;  %v182_v33 = vpop.xlane.xlu0 %181 }
 0x103   : > { %219 = vst [vmem:[#allocation4 + $0x10] sm:$0xff] %v217_v32  ;;  %183 = vst [vmem:[#allocation4] sm:$0xff] %v182_v33 }
 0x106   : > { %v237_v34 = vpop.xlane.xlu1 %236  ;;  %v199_v35 = vpop.xlane.xlu0 %198 }
 0x107   : > { %239 = vst [vmem:[#allocation4 + $0x18] sm:$0xff] %v237_v34  ;;  %201 = vst [vmem:[#allocation4 + $0x8] sm:$0xff] %v199_v35 }
 0x108   : > { %241 = vst [vmem:[%s240_s19] sm:$0x1] %v550_v36 }
 0x10a   : > { %v248_v31 = vpop.xlane.xlu0 %247 }
 0x10b   : > { %v254_v38 = vsel %vm630_vm0, %v248_v31, %v253_v37 }
 0x10c   : > { %255 = vst [vmem:[#allocation2] sm:$0x1] %v254_v38 }
 0x10f   : > { %v262_v44 = vld [vmem:[%s257_s21] sm:$0xff]  ;;  %v506_v45 = vld [vmem:[%s257_s21 + $0x8] sm:$0xff]  ;;  %v508_v46 = vld [vmem:[%s257_s21 + $0x10] sm:$0xff] }
 0x110   : > { %v264_v47 = vmul.f32 %v263_v39, %v262_v44  ;;  %v270_v48 = vmul.f32 %v507_v40, %v506_v45  ;;  %v510_v49 = vld [vmem:[%s257_s21 + $0x18] sm:$0xff]  ;;  %v277_v52 = vmul.f32 %v509_v41, %v508_v46  ;;  %s295_s21 = smov %s257_s21 }
 0x111   : > { %v284_v50 = vmul.f32 %v511_v43, %v510_v49  ;;  %v303_v9 = vld [vmem:[%s295_s21] sm:$0xff]  ;;  %v512_v13 = vld [vmem:[%s295_s21 + $0x8] sm:$0xff]  ;;  %v515_v14 = vld [vmem:[%s295_s21 + $0x10] sm:$0xff] }
 0x112   : > { %v271_v51 = vadd.f32 %v270_v48, %v264_v47  ;;  %v518_v7 = vld [vmem:[%s295_s21 + $0x18] sm:$0xff] }
 0x113   : > { %v286_v54 = vsel %vm285_vm1, %v284_v50, 0.0  ;;  %v394_v35 = vld [vmem:[#allocation2] sm:$0x1] (%p66_p0) }
 0x114   : > { %v278_v53 = vadd.f32 %v277_v52, %v271_v51  ;;  %397 = vst [vmem:[#allocation3] sm:$0x1] (%p66_p0), %v394_v35 }
 0x116   : > { %v287_v55 = vadd.f32 %v286_v54, %v278_v53 }
 0x118   : > { %v288_v56 = vrot.slane %v287_v55, 4 }
 0x11a   : > { %v289_v57 = vadd.f32 %v288_v56, %v287_v55 }
 0x11c   : > { %v290_v58 = vrot.slane %v289_v57, 2 }
 0x11e   : > { %v291_v59 = vadd.f32 %v290_v58, %v289_v57 }
 0x120   : > { %v292_v62 = vrot.slane %v291_v59, 1 }
 0x122   : > { %v293_v1 = vadd.f32 %v292_v62, %v291_v59 }
 0x124   : > { %v299_v12 = vmul.f32 %v293_v1, %v248_v31  ;;  %v461_v31 = vld [vmem:[#allocation3] sm:$0x1] (%p66_p0) }
 0x125   :  { %462 = vst [vmem:[%s739_s2] sm:$0x1] (%p66_p0), %v461_v31 }
 0x126   : > { %v304_v17 = vmul.f32 %v303_v9, %v299_v12  ;;  %v324_v18 = vmul.f32 %v512_v13, %v299_v12  ;;  %v345_v19 = vmul.f32 %v515_v14, %v299_v12  ;;  %v366_v20 = vmul.f32 %v518_v7, %v299_v12 }
 0x128   : > { %v308_v22 = vsub.f32 %v305_v2, %v304_v17  ;;  %v329_v23 = vsub.f32 %v513_v3, %v324_v18  ;;  %v350_v8 = vsub.f32 %v516_v4, %v345_v19  ;;  %v371_v6 = vsub.f32 %v519_v11, %v366_v20 }
 0x12a   : > { %v309_v24 = vsel %vm307_vm8, %v308_v22, %v305_v2  ;;  %v330_v25 = vsel %vm307_vm8, %v329_v23, %v513_v3  ;;  %v351_v26 = vsel %vm307_vm8, %v350_v8, %v516_v4  ;;  %v372_v27 = vsel %vm307_vm8, %v371_v6, %v519_v11 }
 0x12b   : > { %v317_v28 = vsel %vm675_vm4, %v303_v9, %v309_v24  ;;  %v338_v29 = vsel %vm684_vm7, %v512_v13, %v330_v25  ;;  %v359_v30 = vsel %vm692_vm9, %v515_v14, %v351_v26  ;;  %v380_v32 = vsel %vm698_vm10, %v518_v7, %v372_v27 }
 0x12c   : > { %318 = vst [vmem:[%s666_s20] sm:$0xff] %v317_v28  ;;  %514 = vst [vmem:[%s666_s20 + $0x8] sm:$0xff] %v338_v29 }
 0x12d   : > { %517 = vst [vmem:[%s666_s20 + $0x10] sm:$0xff] %v359_v30  ;;  %520 = vst [vmem:[%s666_s20 + $0x18] sm:$0xff] %v380_v32 }
 0x132   :  { %68 = sbr.rel (!%p66_p0) target bundleno = 4 (0x4), region = 166 }
 0x134   : > { %v383_v33 = vld [vmem:[%s382_s22] ss:$0 sm:$0xff] }
 0x135   : > { %v388_v34 = vsel %vm630_vm0, %v615_v60, %v383_v33 }
 0x136   : > { %389 = vst [vmem:[%s382_s22] sm:$0x1] %v388_v34 }
 0x13d   :  { %v432_v36 = vld [vmem:[#allocation1] sm:$0xff]  ;;  %v434_v37 = vld [vmem:[#allocation1 + $0x8] sm:$0xff]  ;;  %v436_v60 = vld [vmem:[#allocation1 + $0x10] sm:$0xff] }
 0x13e   :  { %433 = vst [vmem:[%s738_s1] sm:$0xff] %v432_v36  ;;  %435 = vst [vmem:[%s738_s1 + $0x8] sm:$0xff] %v434_v37  ;;  %v438_v16 = vld [vmem:[#allocation1 + $0x18] sm:$0xff] }
 0x13f   :  { %437 = vst [vmem:[%s738_s1 + $0x10] sm:$0xff] %v436_v60  ;;  %439 = vst [vmem:[%s738_s1 + $0x18] sm:$0xff] %v438_v16 }

// kernel: custom-call.64
= control target key start
LH: loop header
LB: loop body
LE: loop exit
PB: predicated region body
PF: predicated region fallthrough
CT: control target
= control target key end

     0   :  { %v70_v1 = vlaneseq  ;;  %vm84_vm1 = vcmask 15360   ;;  %s232_s0 = inlined_call_operand.vmem [shape: f32[2,2], index: 0, kind: input, shape index: {}]   ;;  %s233_s1 = inlined_call_operand.vmem [shape: f32[2,2], index: 1, kind: output, shape index: {}]  }
   0x1   :  { %v63_v0 = vld [vmem:[%s232_s0] sm:$0x3] }
   0x2   :  { %64 = vst [vmem:[#allocation1] sm:$0x3] %v63_v0  ;;  %v71_v3 = vand.u32 127, %v70_v1  ;;  %v73_v4 = vshrl.u32 %v70_v1, 7 }
   0x4   :  { %vm79_vm0 = vcmp.eq.s32.totalorder %v71_v3, 0  ;;  %vm75_vm2 = vcmp.eq.s32.totalorder %v71_v3, %v73_v4  ;;  %vm88_vm3 = vcmp.eq.s32.totalorder %v71_v3, 1 }
   0x9   :  { %v68_v2 = vld [vmem:[#allocation1] sm:$0x3] }
   0xa   :  { %69 = vst [vmem:[#allocation0] sm:$0x3] %v68_v2 }
  0x11   :  { %v76_v5 = vld [vmem:[#allocation0] sm:$0xff] }
  0x12   :  { %v83_v6 = vld [vmem:[#allocation0 + $0x1] ss:$0 sm:$0xff]  ;;  %v80_v7 = vsel %vm79_vm0, %v76_v5, 1.0 }
  0x13   :  { %v85_v8 = vsel %vm84_vm1, %v83_v6, 0.0  ;;  %v81_v9 = vsel %vm75_vm2, %v80_v7, 0.0 }
  0x14   :  { %v89_v10 = vmul.f32 %v85_v8, %v81_v9 }
  0x16   :  { %90 = vadd.xlane.f32.xlu0 %v89_v10 }
  0x9f   :  { %v91_v11 = vpop.xlane.xlu0 %90 }
  0xa0   :  { %v92_v12 = vsel %vm88_vm3, %v91_v11, %v81_v9 }
  0xa1   :  { %93 = vst [vmem:[#allocation2] sm:$0xff] %v92_v12 }
  0xa8   :  { %v98_v13 = vld [vmem:[#allocation2] sm:$0x3] }
  0xa9   :  { %101 = vst [vmem:[#allocation3] sm:$0x3] %v98_v13 }
  0xb0   :  { %v163_v14 = vld [vmem:[#allocation3] sm:$0x3] }
  0xb1   :  { %164 = vst [vmem:[%s233_s1] sm:$0x3] %v163_v14 }

// kernel: custom-call.143
= control target key start
LH: loop header
LB: loop body
LE: loop exit
PB: predicated region body
PF: predicated region fallthrough
CT: control target
= control target key end

     0   :  { %v340_v1 = vmov 0.0   ;;  %s360_s11 = smov 0   ;;  %s416_s0 = inlined_call_operand.vmem [shape: f32[4,2], index: 0, kind: input, shape index: {}]   ;;  %s417_s1 = inlined_call_operand.vmem [shape: f32[4,2], index: 1, kind: output, shape index: {0}]   ;;  %s418_s2 = inlined_call_operand.vmem [shape: f32[2], index: 2, kind: output, shape index: {1}]  }
   0x1   :  { %v20_v0 = vld [vmem:[%s416_s0] sm:$0xf]  ;;  %44 = vst [vmem:[#allocation4] sm:$0x1] %v340_v1 }
   0x2   :  { %21 = vst [vmem:[#allocation1] sm:$0xf] %v20_v0 }
   0x9   :  { %v40_v2 = vld [vmem:[#allocation1] sm:$0xf] }
   0xa   :  { %41 = vst [vmem:[#allocation0] sm:$0xf] %v40_v2 }
  0x11   :  { %v42_v3 = vld [vmem:[#allocation0] sm:$0xff] }
  0x12   :  { %43 = vst [vmem:[#allocation2] sm:$0xff] %v42_v3 }
  0x13 LB: > { %v52_v4 = vlaneseq  ;;  %v369_v6 = vstv %s338_s11  ;;  %s79_s0 = scalar_lea.vmem [#allocation2], %s338_s11  ;;  %s115_s12 = smov [#allocation2]  ;;  %v341_v60 = vmov 1.0   ;;  %v150_v61 = vld [vmem:[#allocation4] ss:$0 sm:$0xff]  ;;  %s338_s11 = sphi %s360_s11, %s50_s11  }
  0x14   : > { %s137_s13 = scalar_lea.vmem [#allocation6], %s338_s11  ;;  %s153_s14 = smov [#allocation2] }
  0x15   : > { %v366_v5 = vshrl.u32 %v52_v4, 7  ;;  %v131_v49 = vand.u32 127, %v52_v4  ;;  %s154_s15 = smov [#allocation6] }
  0x17   : > { %vm56_vm0 = vcmp.gt.s32.totalorder %v366_v5, %v369_v6  ;;  %vm57_vm1 = vcmp.lt.s32.totalorder %v366_v5, 4  ;;  %v118_v5 = vmov %v366_v5  ;;  %vm384_vm12 = vcmp.eq.s32.totalorder %v131_v49, %v369_v6 }
  0x18   : > { %vm58_vm2 = vmand %vm56_vm0, %vm57_vm1  ;;  %vm122_vm9 = vcmp.gt.s32.totalorder %v118_v5, %v369_v6  ;;  %vm123_vm10 = vcmp.lt.s32.totalorder %v118_v5, 4  ;;  %v157_v5 = vmov %v366_v5  ;;  %vm183_vm15 = vcmp.gt.s32.totalorder %v131_v49, %v369_v6 }
  0x19   : > { %v51_v7 = vld [vmem:[#allocation2] sm:$0xff]  ;;  %v80_v16 = vld [vmem:[%s79_s0] ss:$0 sm:$0xff]  ;;  %vm124_vm11 = vmand %vm122_vm9, %vm123_vm10  ;;  %vm162_vm13 = vcmp.lt.s32.totalorder %v157_v5, 4  ;;  %v174_v5 = vmov %v366_v5 }
  0x1a   : > { %v59_v8 = vsel %vm58_vm2, %v51_v7, 0.0  ;;  %v81_v17 = vand.u32 2147483647, %v80_v16  ;;  %vm106_vm8 = vcmp.lt.f32.partialorder %v80_v16, 0.0  ;;  %v119_v46 = vld [vmem:[%s115_s12] sm:$0xff]  ;;  %vm191_vm14 = vcmp.ge.s32.totalorder %v174_v5, %v369_v6 }
  0x1b   : > { %v60_v9 = vmul.f32 %v59_v8, %v59_v8  ;;  %v125_v50 = vsel %vm124_vm11, %v119_v46, 0.0  ;;  %v160_v0 = vld [vmem:[%s153_s14] sm:$0xff]  ;;  %s170_s14 = smov %s153_s14  ;;  %vm192_vm0 = vmand %vm384_vm12, %vm191_vm14 }
  0x1c   : > { %v82_v22 = vmax.f32 %v81_v17, 0.0  ;;  %s195_s16 = scalar_lea.vmem %s170_s14, %s338_s11  ;;  %s50_s11 = sadd.s32 1, %s338_s11  }
  0x1d   : > { %v61_v10 = vrot.slane %v60_v9, 4  ;;  %p47_p0 = scmp.ge.s32.totalorder %s50_s11, 2  }
  0x1f   : > { %v62_v11 = vadd.f32 %v61_v10, %v60_v9 }
  0x21   : > { %v63_v12 = vrot.slane %v62_v11, 2 }
  0x23   : > { %v64_v13 = vadd.f32 %v63_v12, %v62_v11 }
  0x25   : > { %v65_v14 = vrot.slane %v64_v13, 1 }
  0x27   : > { %v66_v15 = vadd.f32 %v65_v14, %v64_v13  ;;  %v181_v14 = vld [vmem:[%s170_s14] sm:$0xff] }
  0x29   : > { %322 = vrsqrt.f32 %v66_v15  ;;  %vm69_vm3 = vcmp.eq.f32.partialorder %v66_v15, inf  ;;  %v72_v19 = vand.u32 2147483648, %v66_v15  ;;  %vm71_vm4 = vcmp.eq.f32.partialorder %v66_v15, 0.0 }
  0x36   : > { %v323_v18 = vpop.eup %322 }
  0x37   : > { %v68_v20 = vmul.f32 %v323_v18, %v66_v15 }
  0x39   : > { %v70_v21 = vsel %vm69_vm3, %v66_v15, %v68_v20 }
  0x3a   : > { %v73_v23 = vsel %vm71_vm4, %v72_v19, %v70_v21 }
  0x3b   : > { %v83_v24 = vand.u32 2147483647, %v73_v23 }
  0x3d   : > { %v84_v25 = vmax.f32 %v82_v22, %v83_v24 }
  0x3f   : > { %324 = vrcp.f32 %v84_v25  ;;  %vm96_vm7 = vcmp.eq.f32.partialorder %v84_v25, 0.0 }
  0x4c   : > { %v325_v26 = vpop.eup %324 }
  0x4d   : > { %v86_v27 = vmul.f32 %v325_v26, %v81_v17  ;;  %v89_v28 = vmul.f32 0.0, %v325_v26  ;;  %v93_v29 = vmul.f32 %v325_v26, %v83_v24 }
  0x4f   : > { %v87_v30 = vmul.f32 %v86_v27, %v86_v27  ;;  %v90_v31 = vmul.f32 %v89_v28, %v89_v28  ;;  %v94_v32 = vmul.f32 %v93_v29, %v93_v29 }
  0x51   : > { %v91_v33 = vadd.f32 %v90_v31, %v87_v30 }
  0x53   : > { %v95_v34 = vadd.f32 %v94_v32, %v91_v33 }
  0x55   : > { %326 = vrsqrt.f32 %v95_v34  ;;  %vm99_vm5 = vcmp.eq.f32.partialorder %v95_v34, inf  ;;  %v102_v36 = vand.u32 2147483648, %v95_v34  ;;  %vm101_vm6 = vcmp.eq.f32.partialorder %v95_v34, 0.0 }
  0x62   : > { %v327_v35 = vpop.eup %326 }
  0x63   : > { %v98_v37 = vmul.f32 %v327_v35, %v95_v34 }
  0x65   : > { %v100_v38 = vsel %vm99_vm5, %v95_v34, %v98_v37 }
  0x66   : > { %v103_v39 = vsel %vm101_vm6, %v102_v36, %v100_v38 }
  0x67   : > { %v104_v40 = vmul.f32 %v103_v39, %v84_v25 }
  0x69   : > { %v105_v41 = vsel %vm96_vm7, 0.0, %v104_v40 }
  0x6a   : > { %v107_v42 = vxor.u32 2147483648, %v105_v41 }
  0x6c   : > { %v108_v43 = vsel %vm106_vm8, %v105_v41, %v107_v42 }
  0x6d   : > { %v377_v44 = vsel %vm71_vm4, %v80_v16, %v108_v43  ;;  %328 = vrcp.f32 %v108_v43  ;;  %v109_v47 = vsub.f32 %v108_v43, %v80_v16 }
  0x6e   : > { %v114_v45 = vsub.f32 %v80_v16, %v377_v44 }
  0x70   : > { %330 = vrcp.f32 %v114_v45 }
  0x7a   : > { %v329_v48 = vpop.eup %328 }
  0x7b   : > { %v111_v51 = vmul.f32 %v329_v48, %v109_v47 }
  0x7d   : > { %v331_v52 = vpop.eup %330  ;;  %v113_v56 = vsel %vm71_vm4, 0.0, %v111_v51 }
  0x7e   : > { %v127_v53 = vmul.f32 %v331_v52, %v125_v50  ;;  %v143_v58 = vsel %vm384_vm12, %v113_v56, 0.0 }
  0x80   : > { %v128_v55 = vsel %vm71_vm4, 0.0, %v127_v53 }
  0x81   : > { %v133_v57 = vsel %vm384_vm12, %v128_v55, 0.0 }
  0x82   : > { %134 = vadd.xlane.f32.xlu0 %v133_v57 }
  0x86   : > { %144 = vadd.xlane.f32.xlu0 %v143_v58 }
 0x10b   : > { %v135_v59 = vpop.xlane.xlu0 %134 }
 0x10c   : > { %136 = vst [vmem:[#allocation6] sm:$0xff] %v135_v59 }
 0x10d   : > { %138 = vst [vmem:[%s137_s13] sm:$0x1] %v341_v60 }
 0x10f   : > { %v145_v62 = vpop.xlane.xlu0 %144 }
 0x110   : > { %v151_v63 = vsel %vm384_vm12, %v145_v62, %v150_v61 }
 0x111   : > { %152 = vst [vmem:[#allocation4] sm:$0x1] %v151_v63 }
 0x114   : > { %v159_v1 = vld [vmem:[%s154_s15] sm:$0xff]  ;;  %s171_s15 = smov %s154_s15 }
 0x115   : > { %v161_v2 = vmul.f32 %v160_v0, %v159_v1  ;;  %v179_v13 = vld [vmem:[%s171_s15] sm:$0xff] }
 0x117   : > { %v163_v3 = vsel %vm162_vm13, %v161_v2, 0.0 }
 0x118   : > { %v164_v4 = vrot.slane %v163_v3, 4  ;;  %v215_v6 = vld [vmem:[#allocation4] sm:$0x1] (%p47_p0) }
 0x119   :  { %218 = vst [vmem:[#allocation5] sm:$0x1] (%p47_p0), %v215_v6 }
 0x11a   : > { %v165_v7 = vadd.f32 %v164_v4, %v163_v3 }
 0x11c   : > { %v166_v8 = vrot.slane %v165_v7, 2 }
 0x11e   : > { %v167_v9 = vadd.f32 %v166_v8, %v165_v7 }
 0x120   : > { %v168_v10 = vrot.slane %v167_v9, 1  ;;  %v270_v22 = vld [vmem:[#allocation5] sm:$0x1] (%p47_p0) }
 0x121   :  { %271 = vst [vmem:[%s418_s2] sm:$0x1] (%p47_p0), %v270_v22 }
 0x122   : > { %v169_v11 = vadd.f32 %v168_v10, %v167_v9 }
 0x124   : > { %v175_v12 = vmul.f32 %v169_v11, %v145_v62 }
 0x126   : > { %v180_v15 = vmul.f32 %v179_v13, %v175_v12 }
 0x128   : > { %v184_v16 = vsub.f32 %v181_v14, %v180_v15 }
 0x12a   : > { %v185_v17 = vsel %vm183_vm15, %v184_v16, %v181_v14 }
 0x12b   : > { %v193_v18 = vsel %vm192_vm0, %v179_v13, %v185_v17 }
 0x12c   : > { %194 = vst [vmem:[%s170_s14] sm:$0xff] %v193_v18 }
 0x131   :  { %49 = sbr.rel (!%p47_p0) target bundleno = 19 (0x13), region = 131 }
 0x133   : > { %v196_v19 = vld [vmem:[%s195_s16] ss:$0 sm:$0xff] }
 0x134   : > { %v201_v20 = vsel %vm384_vm12, %v377_v44, %v196_v19 }
 0x135   : > { %202 = vst [vmem:[%s195_s16] sm:$0x1] %v201_v20 }
 0x13c   :  { %v207_v5 = vld [vmem:[#allocation2] sm:$0xf] }
 0x13d   :  { %210 = vst [vmem:[#allocation3] sm:$0xf] %v207_v5 }
 0x144   :  { %v235_v21 = vld [vmem:[#allocation3] sm:$0xf] }
 0x145   :  { %236 = vst [vmem:[%s417_s1] sm:$0xf] %v235_v21 }

// kernel: custom-call.139
= control target key start
LH: loop header
LB: loop body
LE: loop exit
PB: predicated region body
PF: predicated region fallthrough
CT: control target
= control target key end

     0   :  { %v135_v0 = vmov 0.0   ;;  %vm41_vm0 = vcmask 7168   ;;  %vm59_vm1 = vcmask 15368   ;;  %vm76_vm2 = vcmask 1047553   ;;  %s152_s0 = inlined_call_operand.vmem [shape: f32[2,2], index: 0, kind: input, shape index: {}]   ;;  %s153_s1 = inlined_call_operand.vmem [shape: f32[2,2], index: 1, kind: output, shape index: {}]  }
   0x1   :  { %40 = vst [vmem:[#allocation2] sm:$0xff] %v135_v0  ;;  %v18_v1 = vld [vmem:[%s152_s0] sm:$0x3]  ;;  %vm77_vm3 = vmand %vm59_vm1, %vm76_vm2 }
   0x2   :  { %19 = vst [vmem:[#allocation1] sm:$0x3] %v18_v1 }
   0x8   :  { %v42_v2 = vld [vmem:[#allocation2] ss:$0 sm:$0xff] }
   0x9   :  { %v44_v3 = vmul.f32 %v42_v2, %v42_v2  ;;  %v51_v4 = vmul.f32 0.0, %v42_v2  ;;  %v38_v5 = vld [vmem:[#allocation1] sm:$0x3] }
   0xa   :  { %39 = vst [vmem:[#allocation0] sm:$0x3] %v38_v5 }
   0xb   :  { %45 = vadd.xlane.f32.xlu0 %v44_v3 }
   0xf   :  { %52 = vadd.xlane.f32.xlu0 %v51_v4 }
  0x11   :  { %v43_v6 = vld [vmem:[#allocation0] ss:$0 sm:$0xff]  ;;  %v63_v18 = vld [vmem:[#allocation0 + $0x1] ss:$0 sm:$0xff] }
  0x12   :  { %v49_v10 = vld [vmem:[#allocation0] sm:$0xff] }
  0x94   :  { %v46_v7 = vpop.xlane.xlu0 %45 }
  0x95   :  { %v47_v8 = vsub.f32 %v43_v6, %v46_v7 }
  0x97   :  { %131 = vrsqrt.f32 %v47_v8 }
  0x98   :  { %v53_v9 = vpop.xlane.xlu0 %52 }
  0x99   :  { %v54_v11 = vsub.f32 %v49_v10, %v53_v9 }
  0xa4   :  { %v132_v12 = vpop.eup %131 }
  0xa5   :  { %v55_v13 = vmul.f32 %v132_v12, %v54_v11 }
  0xa7   :  { %v56_v14 = vsel %vm41_vm0, %v55_v13, 0.0 }
  0xa8   :  { %58 = vst [vmem:[#allocation2] sm:$0xff] %v56_v14 }
  0xaf   :  { %v61_v15 = vld [vmem:[#allocation2 + $0x1] ss:$0 sm:$0xff] }
  0xb0   :  { %v64_v16 = vmul.f32 %v61_v15, %v61_v15  ;;  %v71_v17 = vmul.f32 %v61_v15, %v56_v14 }
  0xb2   :  { %65 = vadd.xlane.f32.xlu1 %v64_v16 }
  0xb6   :  { %72 = vadd.xlane.f32.xlu1 %v71_v17 }
 0x13b   :  { %v66_v19 = vpop.xlane.xlu1 %65 }
 0x13c   :  { %v67_v20 = vsub.f32 %v63_v18, %v66_v19 }
 0x13e   :  { %133 = vrsqrt.f32 %v67_v20 }
 0x13f   :  { %v73_v21 = vpop.xlane.xlu1 %72 }
 0x140   :  { %v74_v22 = vsub.f32 %v49_v10, %v73_v21 }
 0x14b   :  { %v134_v23 = vpop.eup %133 }
 0x14c   :  { %v75_v24 = vmul.f32 %v134_v23, %v74_v22 }
 0x14e   :  { %v78_v25 = vsel %vm77_vm3, %v75_v24, 0.0 }
 0x14f   :  { %v79_v26 = vadd.f32 %v78_v25, %v56_v14 }
 0x151   :  { %80 = vst [vmem:[#allocation2] sm:$0xff] %v79_v26 }
 0x158   :  { %v85_v27 = vld [vmem:[#allocation2] sm:$0x3] }
 0x159   :  { %88 = vst [vmem:[#allocation3] sm:$0x3] %v85_v27 }
 0x160   :  { %v105_v28 = vld [vmem:[#allocation3] sm:$0x3] }
 0x161   :  { %106 = vst [vmem:[%s153_s1] sm:$0x3] %v105_v28 }

// kernel: custom-call.140
= control target key start
LH: loop header
LB: loop body
LE: loop exit
PB: predicated region body
PF: predicated region fallthrough
CT: control target
= control target key end

     0   :  { %v40_v1 = vlaneseq  ;;  %v135_v9 = vmov -1.0   ;;  %s158_s0 = inlined_call_operand.vmem [shape: f32[1,2,2], index: 0, kind: input, shape index: {}]   ;;  %s159_s1 = inlined_call_operand.vmem [shape: f32[1,2,2], index: 1, kind: output, shape index: {}]  }
   0x1   :  { %v18_v0 = vld [vmem:[%s158_s0] sm:$0x3] }
   0x2   :  { %19 = vst [vmem:[#allocation1] sm:$0x3] %v18_v0  ;;  %v41_v2 = vand.u32 127, %v40_v1  ;;  %v44_v3 = vshrl.u32 %v40_v1, 7 }
   0x4   :  { %vm42_vm0 = vcmp.lt.s32.totalorder %v41_v2, 2  ;;  %vm51_vm1 = vcmp.ge.s32.totalorder %v44_v3, %v41_v2  ;;  %vm46_vm3 = vcmp.eq.s32.totalorder %v44_v3, %v41_v2  ;;  %vm62_vm4 = vcmp.eq.s32.totalorder %v41_v2, %v44_v3 }
   0x5   :  { %vm149_vm2 = vmand %vm51_vm1, %vm42_vm0  ;;  %vm65_vm5 = vcmp.eq.s32.totalorder %v41_v2, 0  ;;  %vm73_vm6 = vcmp.eq.s32.totalorder %v41_v2, 1 }
   0x6   :  { %v66_v10 = vsel %vm65_vm5, 1.0, %v135_v9 }
   0x7   :  { %v67_v11 = vsel %vm62_vm4, %v66_v10, 0.0 }
   0x9   :  { %v38_v5 = vld [vmem:[#allocation1] sm:$0x3] }
   0xa   :  { %39 = vst [vmem:[#allocation0] sm:$0x3] %v38_v5 }
  0x11   :  { %v47_v6 = vld [vmem:[#allocation0] sm:$0xff] }
  0x12   :  { %v48_v7 = vsel %vm46_vm3, %v47_v6, 0.0  ;;  %v53_v8 = vsel %vm149_vm2, %v47_v6, 0.0 }
  0x13   :  { %49 = vadd.xlane.f32.xlu0 %v48_v7 }
  0x9c   :  { %v50_v12 = vpop.xlane.xlu0 %49 }
  0x9d   :  { %133 = vrcp.f32 %v50_v12  ;;  %vm80_vm7 = vweird.f32 %v50_v12 }
  0xaa   :  { %v134_v13 = vpop.eup %133 }
  0xab   :  { %v55_v14 = vmul.f32 %v134_v13, %v53_v8 }
  0xad   :  { %56 = vst [vmem:[#allocation4] sm:$0xff] %v55_v14 }
  0xb4   :  { %v69_v15 = vld [vmem:[#allocation4 + $0x1] ss:$0 sm:$0xff] }
  0xb5   :  { %v70_v16 = vxor.u32 2147483648, %v69_v15 }
  0xb7   :  { %v74_v17 = vmul.f32 %v70_v16, %v67_v11 }
  0xb9   :  { %75 = vadd.xlane.f32.xlu0 %v74_v17 }
 0x142   :  { %v76_v18 = vpop.xlane.xlu0 %75 }
 0x143   :  { %v77_v19 = vsel %vm73_vm6, %v76_v18, %v67_v11 }
 0x144   :  { %v79_v20 = vmul.f32 %v134_v13, %v77_v19 }
 0x146   :  { %v81_v21 = vsel %vm80_vm7, %v77_v19, %v79_v20 }
 0x147   :  { %82 = vst [vmem:[#allocation2] sm:$0xff] %v81_v21 }
 0x14e   :  { %v87_v22 = vld [vmem:[#allocation2] sm:$0x3] }
 0x14f   :  { %90 = vst [vmem:[#allocation3] sm:$0x3] %v87_v22 }
 0x156   :  { %v107_v23 = vld [vmem:[#allocation3] sm:$0x3] }
 0x157   :  { %108 = vst [vmem:[%s159_s1] sm:$0x3] %v107_v23 }

// kernel: reverse.1
= control target key start
LH: loop header
LB: loop body
LE: loop exit
PB: predicated region body
PF: predicated region fallthrough
CT: control target
= control target key end

     0   :  { %v2_v0 = vlaneseq  ;;  %s130_s0 = inlined_call_operand.vmem [shape: f32[2], index: 0, kind: input, shape index: {}]   ;;  %s131_s1 = inlined_call_operand.vmem [shape: f32[2], index: 1, kind: output, shape index: {}]  }
   0x2   :  { %v3_v1 = vsub.s32 1, %v2_v0 }
   0x4   :  { %4 = vset.pattern.permute.xlu0 %v3_v1 }
   0x5   :  { %v46_v2 = vld [vmem:[#allocation1] sm:$0x1]  ;;  %v22_v3 = vld [vmem:[%s130_s0] sm:$0x1]  ;;  %v61_v10 = vshrl.u32 %v2_v0, 7 }
   0x6   :  { %47 = vst [vmem:[#allocation0] sm:$0x1] %v46_v2  ;;  %23 = vst [vmem:[#allocation1 + $0x1] sm:$0x1] %v22_v3 }
   0x7   :  { %vm62_vm0 = vcmp.lt.s32.totalorder %v61_v10, 1 }
   0xd   :  { %v49_v4 = vld [vmem:[#allocation0 + $0x7] ss:$-1 sm:$0xff]  ;;  %v43_v5 = vld [vmem:[#allocation1 + $0x1] sm:$0x1] }
   0xe   :  { %v50_v6 = vrot.slane %v49_v4, 7  ;;  %45 = vst [vmem:[#allocation0 + $0x8] sm:$0x1] %v43_v5 }
  0x10   :  { %51 = vperm.xlu0 %4, %v50_v6  }
  0x15   :  { %v56_v7 = vld [vmem:[#allocation0 + $0xf] ss:$-1 sm:$0xff] }
  0x16   :  { %v57_v8 = vrot.slane %v56_v7, 7 }
  0x18   :  { %58 = vperm.xlu0 %4, %v57_v8  }
  0x8b   :  { %v52_v9 = vpop.permute.xlu0 %51 }
  0x8c   :  { %53 = vst [vmem:[#allocation2] sm:$0xff] %v52_v9 }
  0x93   :  { %v59_v11 = vpop.permute.xlu0 %58 }
  0x94   :  { %63 = vst.msk [vmem:[#allocation2] sm:$0xff] %vm62_vm0, %v59_v11 }
  0x9b   :  { %v68_v12 = vld [vmem:[#allocation2] sm:$0x1] }
  0x9c   :  { %71 = vst [vmem:[#allocation3] sm:$0x1] %v68_v12 }
  0xa3   :  { %v88_v13 = vld [vmem:[#allocation3] sm:$0x1] }
  0xa4   :  { %89 = vst [vmem:[%s131_s1] sm:$0x1] %v88_v13 }

// kernel: custom-call.49
= control target key start
LH: loop header
LB: loop body
LE: loop exit
PB: predicated region body
PF: predicated region fallthrough
CT: control target
= control target key end

     0   :  { %v340_v1 = vmov 0.0   ;;  %s360_s11 = smov 0   ;;  %s416_s0 = inlined_call_operand.vmem [shape: f32[2,2], index: 0, kind: input, shape index: {}]   ;;  %s417_s1 = inlined_call_operand.vmem [shape: f32[2,2], index: 1, kind: output, shape index: {0}]   ;;  %s418_s2 = inlined_call_operand.vmem [shape: f32[2], index: 2, kind: output, shape index: {1}]  }
   0x1   :  { %v20_v0 = vld [vmem:[%s416_s0] sm:$0x3]  ;;  %44 = vst [vmem:[#allocation4] sm:$0x1] %v340_v1 }
   0x2   :  { %21 = vst [vmem:[#allocation1] sm:$0x3] %v20_v0 }
   0x9   :  { %v40_v2 = vld [vmem:[#allocation1] sm:$0x3] }
   0xa   :  { %41 = vst [vmem:[#allocation0] sm:$0x3] %v40_v2 }
  0x11   :  { %v42_v3 = vld [vmem:[#allocation0] sm:$0xff] }
  0x12   :  { %43 = vst [vmem:[#allocation2] sm:$0xff] %v42_v3 }
  0x13 LB: > { %v52_v4 = vlaneseq  ;;  %v369_v6 = vstv %s338_s11  ;;  %s79_s0 = scalar_lea.vmem [#allocation2], %s338_s11  ;;  %s115_s12 = smov [#allocation2]  ;;  %v341_v60 = vmov 1.0   ;;  %v150_v61 = vld [vmem:[#allocation4] ss:$0 sm:$0xff]  ;;  %s338_s11 = sphi %s360_s11, %s50_s11  }
  0x14   : > { %s137_s13 = scalar_lea.vmem [#allocation6], %s338_s11  ;;  %s153_s14 = smov [#allocation2] }
  0x15   : > { %v366_v5 = vshrl.u32 %v52_v4, 7  ;;  %v131_v49 = vand.u32 127, %v52_v4  ;;  %s154_s15 = smov [#allocation6] }
  0x17   : > { %vm56_vm0 = vcmp.gt.s32.totalorder %v366_v5, %v369_v6  ;;  %vm57_vm1 = vcmp.lt.s32.totalorder %v366_v5, 2  ;;  %v118_v5 = vmov %v366_v5  ;;  %vm384_vm12 = vcmp.eq.s32.totalorder %v131_v49, %v369_v6 }
  0x18   : > { %vm58_vm2 = vmand %vm56_vm0, %vm57_vm1  ;;  %vm122_vm9 = vcmp.gt.s32.totalorder %v118_v5, %v369_v6  ;;  %vm123_vm10 = vcmp.lt.s32.totalorder %v118_v5, 2  ;;  %v157_v5 = vmov %v366_v5  ;;  %vm183_vm15 = vcmp.gt.s32.totalorder %v131_v49, %v369_v6 }
  0x19   : > { %v51_v7 = vld [vmem:[#allocation2] sm:$0xff]  ;;  %v80_v16 = vld [vmem:[%s79_s0] ss:$0 sm:$0xff]  ;;  %vm124_vm11 = vmand %vm122_vm9, %vm123_vm10  ;;  %vm162_vm13 = vcmp.lt.s32.totalorder %v157_v5, 2  ;;  %v174_v5 = vmov %v366_v5 }
  0x1a   : > { %v59_v8 = vsel %vm58_vm2, %v51_v7, 0.0  ;;  %v81_v17 = vand.u32 2147483647, %v80_v16  ;;  %vm106_vm8 = vcmp.lt.f32.partialorder %v80_v16, 0.0  ;;  %v119_v46 = vld [vmem:[%s115_s12] sm:$0xff]  ;;  %vm191_vm14 = vcmp.ge.s32.totalorder %v174_v5, %v369_v6 }
  0x1b   : > { %v60_v9 = vmul.f32 %v59_v8, %v59_v8  ;;  %v125_v50 = vsel %vm124_vm11, %v119_v46, 0.0  ;;  %v160_v0 = vld [vmem:[%s153_s14] sm:$0xff]  ;;  %s170_s14 = smov %s153_s14  ;;  %vm192_vm0 = vmand %vm384_vm12, %vm191_vm14 }
  0x1c   : > { %v82_v22 = vmax.f32 %v81_v17, 0.0  ;;  %s195_s16 = scalar_lea.vmem %s170_s14, %s338_s11  ;;  %s50_s11 = sadd.s32 1, %s338_s11  }
  0x1d   : > { %v61_v10 = vrot.slane %v60_v9, 4  ;;  %p47_p0 = scmp.ge.s32.totalorder %s50_s11, 2  }
  0x1f   : > { %v62_v11 = vadd.f32 %v61_v10, %v60_v9 }
  0x21   : > { %v63_v12 = vrot.slane %v62_v11, 2 }
  0x23   : > { %v64_v13 = vadd.f32 %v63_v12, %v62_v11 }
  0x25   : > { %v65_v14 = vrot.slane %v64_v13, 1 }
  0x27   : > { %v66_v15 = vadd.f32 %v65_v14, %v64_v13  ;;  %v181_v14 = vld [vmem:[%s170_s14] sm:$0xff] }
  0x29   : > { %322 = vrsqrt.f32 %v66_v15  ;;  %vm69_vm3 = vcmp.eq.f32.partialorder %v66_v15, inf  ;;  %v72_v19 = vand.u32 2147483648, %v66_v15  ;;  %vm71_vm4 = vcmp.eq.f32.partialorder %v66_v15, 0.0 }
  0x36   : > { %v323_v18 = vpop.eup %322 }
  0x37   : > { %v68_v20 = vmul.f32 %v323_v18, %v66_v15 }
  0x39   : > { %v70_v21 = vsel %vm69_vm3, %v66_v15, %v68_v20 }
  0x3a   : > { %v73_v23 = vsel %vm71_vm4, %v72_v19, %v70_v21 }
  0x3b   : > { %v83_v24 = vand.u32 2147483647, %v73_v23 }
  0x3d   : > { %v84_v25 = vmax.f32 %v82_v22, %v83_v24 }
  0x3f   : > { %324 = vrcp.f32 %v84_v25  ;;  %vm96_vm7 = vcmp.eq.f32.partialorder %v84_v25, 0.0 }
  0x4c   : > { %v325_v26 = vpop.eup %324 }
  0x4d   : > { %v86_v27 = vmul.f32 %v325_v26, %v81_v17  ;;  %v89_v28 = vmul.f32 0.0, %v325_v26  ;;  %v93_v29 = vmul.f32 %v325_v26, %v83_v24 }
  0x4f   : > { %v87_v30 = vmul.f32 %v86_v27, %v86_v27  ;;  %v90_v31 = vmul.f32 %v89_v28, %v89_v28  ;;  %v94_v32 = vmul.f32 %v93_v29, %v93_v29 }
  0x51   : > { %v91_v33 = vadd.f32 %v90_v31, %v87_v30 }
  0x53   : > { %v95_v34 = vadd.f32 %v94_v32, %v91_v33 }
  0x55   : > { %326 = vrsqrt.f32 %v95_v34  ;;  %vm99_vm5 = vcmp.eq.f32.partialorder %v95_v34, inf  ;;  %v102_v36 = vand.u32 2147483648, %v95_v34  ;;  %vm101_vm6 = vcmp.eq.f32.partialorder %v95_v34, 0.0 }
  0x62   : > { %v327_v35 = vpop.eup %326 }
  0x63   : > { %v98_v37 = vmul.f32 %v327_v35, %v95_v34 }
  0x65   : > { %v100_v38 = vsel %vm99_vm5, %v95_v34, %v98_v37 }
  0x66   : > { %v103_v39 = vsel %vm101_vm6, %v102_v36, %v100_v38 }
  0x67   : > { %v104_v40 = vmul.f32 %v103_v39, %v84_v25 }
  0x69   : > { %v105_v41 = vsel %vm96_vm7, 0.0, %v104_v40 }
  0x6a   : > { %v107_v42 = vxor.u32 2147483648, %v105_v41 }
  0x6c   : > { %v108_v43 = vsel %vm106_vm8, %v105_v41, %v107_v42 }
  0x6d   : > { %v377_v44 = vsel %vm71_vm4, %v80_v16, %v108_v43  ;;  %328 = vrcp.f32 %v108_v43  ;;  %v109_v47 = vsub.f32 %v108_v43, %v80_v16 }
  0x6e   : > { %v114_v45 = vsub.f32 %v80_v16, %v377_v44 }
  0x70   : > { %330 = vrcp.f32 %v114_v45 }
  0x7a   : > { %v329_v48 = vpop.eup %328 }
  0x7b   : > { %v111_v51 = vmul.f32 %v329_v48, %v109_v47 }
  0x7d   : > { %v331_v52 = vpop.eup %330  ;;  %v113_v56 = vsel %vm71_vm4, 0.0, %v111_v51 }
  0x7e   : > { %v127_v53 = vmul.f32 %v331_v52, %v125_v50  ;;  %v143_v58 = vsel %vm384_vm12, %v113_v56, 0.0 }
  0x80   : > { %v128_v55 = vsel %vm71_vm4, 0.0, %v127_v53 }
  0x81   : > { %v133_v57 = vsel %vm384_vm12, %v128_v55, 0.0 }
  0x82   : > { %134 = vadd.xlane.f32.xlu0 %v133_v57 }
  0x86   : > { %144 = vadd.xlane.f32.xlu0 %v143_v58 }
 0x10b   : > { %v135_v59 = vpop.xlane.xlu0 %134 }
 0x10c   : > { %136 = vst [vmem:[#allocation6] sm:$0xff] %v135_v59 }
 0x10d   : > { %138 = vst [vmem:[%s137_s13] sm:$0x1] %v341_v60 }
 0x10f   : > { %v145_v62 = vpop.xlane.xlu0 %144 }
 0x110   : > { %v151_v63 = vsel %vm384_vm12, %v145_v62, %v150_v61 }
 0x111   : > { %152 = vst [vmem:[#allocation4] sm:$0x1] %v151_v63 }
 0x114   : > { %v159_v1 = vld [vmem:[%s154_s15] sm:$0xff]  ;;  %s171_s15 = smov %s154_s15 }
 0x115   : > { %v161_v2 = vmul.f32 %v160_v0, %v159_v1  ;;  %v179_v13 = vld [vmem:[%s171_s15] sm:$0xff] }
 0x117   : > { %v163_v3 = vsel %vm162_vm13, %v161_v2, 0.0 }
 0x118   : > { %v164_v4 = vrot.slane %v163_v3, 4  ;;  %v215_v6 = vld [vmem:[#allocation4] sm:$0x1] (%p47_p0) }
 0x119   :  { %218 = vst [vmem:[#allocation5] sm:$0x1] (%p47_p0), %v215_v6 }
 0x11a   : > { %v165_v7 = vadd.f32 %v164_v4, %v163_v3 }
 0x11c   : > { %v166_v8 = vrot.slane %v165_v7, 2 }
 0x11e   : > { %v167_v9 = vadd.f32 %v166_v8, %v165_v7 }
 0x120   : > { %v168_v10 = vrot.slane %v167_v9, 1  ;;  %v270_v22 = vld [vmem:[#allocation5] sm:$0x1] (%p47_p0) }
 0x121   :  { %271 = vst [vmem:[%s418_s2] sm:$0x1] (%p47_p0), %v270_v22 }
 0x122   : > { %v169_v11 = vadd.f32 %v168_v10, %v167_v9 }
 0x124   : > { %v175_v12 = vmul.f32 %v169_v11, %v145_v62 }
 0x126   : > { %v180_v15 = vmul.f32 %v179_v13, %v175_v12 }
 0x128   : > { %v184_v16 = vsub.f32 %v181_v14, %v180_v15 }
 0x12a   : > { %v185_v17 = vsel %vm183_vm15, %v184_v16, %v181_v14 }
 0x12b   : > { %v193_v18 = vsel %vm192_vm0, %v179_v13, %v185_v17 }
 0x12c   : > { %194 = vst [vmem:[%s170_s14] sm:$0xff] %v193_v18 }
 0x131   :  { %49 = sbr.rel (!%p47_p0) target bundleno = 19 (0x13), region = 131 }
 0x133   : > { %v196_v19 = vld [vmem:[%s195_s16] ss:$0 sm:$0xff] }
 0x134   : > { %v201_v20 = vsel %vm384_vm12, %v377_v44, %v196_v19 }
 0x135   : > { %202 = vst [vmem:[%s195_s16] sm:$0x1] %v201_v20 }
 0x13c   :  { %v207_v5 = vld [vmem:[#allocation2] sm:$0x3] }
 0x13d   :  { %210 = vst [vmem:[#allocation3] sm:$0x3] %v207_v5 }
 0x144   :  { %v235_v21 = vld [vmem:[#allocation3] sm:$0x3] }
 0x145   :  { %236 = vst [vmem:[%s417_s1] sm:$0x3] %v235_v21 }

// kernel: net_forward.3
= control target key start
LH: loop header
LB: loop body
LE: loop exit
PB: predicated region body
PF: predicated region fallthrough
CT: control target
= control target key end

     0   :  { %s842_s20 = smov 0   ;;  %s844_s21 = smov 0   ;;  %s921_s0 = inlined_call_operand.vmem [shape: bf16[2,16,128], index: 0, kind: input, shape index: {}]   ;;  %s922_s1 = inlined_call_operand.vmem [shape: bf16[2,128,128], index: 1, kind: input, shape index: {}]   ;;  %s923_s2 = inlined_call_operand.vmem [shape: f32[2,1,128], index: 2, kind: input, shape index: {}]   ;;  %s924_s3 = inlined_call_operand.vmem [shape: bf16[128,1], index: 3, kind: input, shape index: {}]   ;;  %s925_s4 = inlined_call_operand.<no memory space> [shape: f32[1,1], index: 4, kind: input, shape index: {}]   ;;  %s926_s5 = inlined_call_operand.vmem [shape: f32[2,16,1], index: 5, kind: output, shape index: {}]  }
   0x1   :  { %v10_v0 = vstv %s925_s4  ;;  %s846_s22 = smov 0  }
   0x2   :  { %11 = vst [vmem:[#allocation2] sm:$0x1] %v10_v0 }
   0x3 LB: > { %s29_s4 = sadd.s32 1, %s801_s21  ;;  %p651_p0 = scmp.ge.s32.totalorder %s805_s22, 1  ;;  %s805_s22 = sphi %s846_s22, %s17_s22   ;;  %s801_s21 = sphi %s844_s21, %s928_s21   ;;  %s797_s20 = sphi %s842_s20, %s927_s20  }
   0x4   : > { %p31_p1 = scmp.ge.s32.totalorder %s29_s4, 2  ;;  %p228_p2 = scmp.lt.s32.totalorder %s805_s22, 3 }
   0x6   : > { %s930_s4 = smov (%p31_p1, %s29_s4), 0  ;;  %p229_p3 = pnand %p651_p0, %p228_p2 }
   0x7   : > { %p273_p4 = scmp.lt.s32.totalorder (!%p229_p3), %s797_s20, 1 }
   0x8   : > { %232 = sbr.rel (%p229_p3) target bundleno = 451 (0x1c3), region = 40 }
   0xd   : > { %v775_v1 = vld [vmem:[%s924_s3 + $0x38] sm:$0xff]   ;;  %v807_v2 = vmov 0.0   ;;  %vm808_vm0 = vmmov 0   ;;  %s932_s20 = smov (!%p273_p4, %s797_s20), 1  ;;  %v776_v3 = vld [vmem:[%s924_s3 + $0x30] sm:$0xff]   ;;  %v777_v5 = vld [vmem:[%s924_s3 + $0x28] sm:$0xff]  }
   0xe   : > { %700 = vmatprep.subr.bf16.mxu0 %v807_v2  ;;  %716 = vmatprep.mubr.msk.bf16.mxu0 %vm808_vm0, %v807_v2  ;;  %s680_s27 = sshll.u32 %s932_s20, 6  ;;  %s679_s8 = sshll.u32 %s932_s20, 3  ;;  %v778_v7 = vld [vmem:[%s924_s3 + $0x20] sm:$0xff]   ;;  %v779_v9 = vld [vmem:[%s924_s3 + $0x18] sm:$0xff]   ;;  %v780_v16 = vld [vmem:[%s924_s3 + $0x10] sm:$0xff]   ;;  %vm536_vm1 = vcmask 7168  }
   0xf   : > { %720 = vmatprep.subr.bf16.mxu1 %v807_v2  ;;  %736 = vmatprep.mubr.msk.bf16.mxu1 %vm808_vm0, %v807_v2  ;;  %s872_s30 = scalar_lea.vmem %s922_s1, %s680_s27  ;;  %s280_s13 = scalar_lea.vmem %s921_s0, %s679_s8  ;;  %v781_v17 = vld [vmem:[%s924_s3 + $0x8] sm:$0xff]   ;;  %v782_v18 = vld [vmem:[%s924_s3] sm:$0xff]  }
  0x10   : > { %721 = vmatpush3.bf16.msra.mxu1 %v775_v1  ;;  %v766_v4 = vld [vmem:[%s872_s30 + $0x38] sm:$0xff]   ;;  %v767_v6 = vld [vmem:[%s872_s30 + $0x30] sm:$0xff]   ;;  %v768_v8 = vld [vmem:[%s872_s30 + $0x28] sm:$0xff]   ;;  %s289_s27 = scalar_lea.vmem %s923_s2, %s932_s20  ;;  %s681_s28 = sshll.u32 %s932_s20, 4 }
  0x11   : > { %722 = vmatprep.subr.bf16.mxu1 %v807_v2  ;;  %701 = vmatpush3.bf16.msra.mxu0 %v766_v4  ;;  %v769_v10 = vld [vmem:[%s872_s30 + $0x20] sm:$0xff]   ;;  %v770_v11 = vld [vmem:[%s872_s30 + $0x18] sm:$0xff]   ;;  %v771_v12 = vld [vmem:[%s872_s30 + $0x10] sm:$0xff]   ;;  %s298_s6 = scalar_lea.vmem %s926_s5, %s681_s28 }
  0x12   : > { %702 = vmatprep.subr.bf16.mxu0 %v807_v2  ;;  %v772_v13 = vld [vmem:[%s872_s30 + $0x8] sm:$0xff]   ;;  %v773_v14 = vld [vmem:[%s872_s30] sm:$0xff]  }
  0x13   : > { %v774_v15 = vld [vmem:[%s280_s13] sm:$0xff]  }
  0x14   : > { %723 = vmatpush3.bf16.msra.mxu1 %v776_v3  ;;  %v658_v19 = vld [vmem:[%s289_s27] ss:$0 sm:$0xff] }
  0x15   : > { %724 = vmatprep.subr.bf16.mxu1 %v807_v2  ;;  %703 = vmatpush3.bf16.msra.mxu0 %v767_v6  ;;  %v668_v29 = vld [vmem:[#allocation2] ss:$0 sm:$0xff] }
  0x16   : > { %704 = vmatprep.subr.bf16.mxu0 %v807_v2 }
  0x18   : > { %725 = vmatpush3.bf16.msra.mxu1 %v777_v5 }
  0x19   : > { %726 = vmatprep.subr.bf16.mxu1 %v807_v2  ;;  %705 = vmatpush3.bf16.msra.mxu0 %v768_v8 }
  0x1a   : > { %706 = vmatprep.subr.bf16.mxu0 %v807_v2 }
  0x1c   : > { %727 = vmatpush3.bf16.msra.mxu1 %v778_v7 }
  0x1d   : > { %728 = vmatprep.subr.bf16.mxu1 %v807_v2  ;;  %707 = vmatpush3.bf16.msra.mxu0 %v769_v10 }
  0x1e   : > { %708 = vmatprep.subr.bf16.mxu0 %v807_v2 }
  0x20   : > { %729 = vmatpush3.bf16.msra.mxu1 %v779_v9 }
  0x21   : > { %730 = vmatprep.subr.bf16.mxu1 %v807_v2  ;;  %709 = vmatpush3.bf16.msra.mxu0 %v770_v11 }
  0x22   : > { %710 = vmatprep.subr.bf16.mxu0 %v807_v2 }
  0x24   : > { %731 = vmatpush3.bf16.msra.mxu1 %v780_v16 }
  0x25   : > { %711 = vmatpush3.bf16.msra.mxu0 %v771_v12  ;;  %732 = vmatprep.subr.bf16.mxu1 %v807_v2 }
  0x26   : > { %712 = vmatprep.subr.bf16.mxu0 %v807_v2 }
  0x28   : > { %733 = vmatpush3.bf16.msra.mxu1 %v781_v17 }
  0x29   : > { %713 = vmatpush3.bf16.msra.mxu0 %v772_v13  ;;  %734 = vmatprep.subr.bf16.mxu1 %v807_v2 }
  0x2a   : > { %714 = vmatprep.subr.bf16.mxu0 %v807_v2 }
  0x2c   : > { %735 = vmatpush3.bf16.msra.mxu1 %v782_v18 }
  0x2d   : > { %715 = vmatpush3.bf16.msra.mxu0 %v773_v14 }
  0x30   : > { %717 = vmatmul.mubr.bf16.vlgmr.msra.gmra.mxu0 %v774_v15 }
  0xf0   : > { %v414_v20 = vpop.f32.mrf.mxu0 }
  0xf1   : > { %v415_v22 = vadd.f32 %v658_v19, %v414_v20 }
  0xf2   : > { %v718_v21 = vpop.f32.mrf.mxu0 }
  0xf3   : > { %v421_v26 = vmax.f32 %v415_v22, 0.0 }
  0xf4   : > { %v417_v23 = vpop.f32.mrf.mxu0 }
  0xf5   : > { %v418_v24 = vadd.f32 %v658_v19, %v417_v23 }
  0xf6   : > { %v719_v25 = vpop.f32.mrf.mxu0 }
  0xf7   : > { %v422_v27 = vmax.f32 %v418_v24, 0.0 }
  0xf9   : > { %v423_v28 = vpack.c.bf16 %v422_v27, %v421_v26 }
  0xfb   : > { %737 = vmatmul.mubr.bf16.vlgmr.msra.gmra.mxu1 %v423_v28 }
 0x1bb   : > { %v529_v30 = vpop.f32.mrf.mxu1 }
 0x1bc   : > { %v530_v31 = vadd.f32 %v668_v29, %v529_v30 }
 0x1bd   : > { %v738_v32 = vpop.f32.mrf.mxu1 }
 0x1be   : > { %537 = vst.msk [vmem:[%s298_s6] sm:$0xff] %vm536_vm1, %v530_v31 }
 0x1bf   : > { %v532_v33 = vpop.f32.mrf.mxu1 }
 0x1c0   : > { %v533_v34 = vadd.f32 %v668_v29, %v532_v33 }
 0x1c1   : > { %v739_v35 = vpop.f32.mrf.mxu1 }
 0x1c2   : > { %538 = vst.msk [vmem:[%s298_s6 + $0x8] sm:$0xff] %vm536_vm1, %v533_v34 }
 0x1c3 PF: > { %s17_s22 = sadd.s32 1, %s805_s22   ;;  %s927_s20 = smov %s801_s21 }
 0x1c4   : > { %p14_p5 = scmp.ge.s32.totalorder %s17_s22, 4   ;;  %s928_s21 = smov %s930_s4 }
 0x1c6   :  { %16 = sbr.rel (!%p14_p5) target bundleno = 3 (0x3), region = 76 }

</bundles_post_ra>
